<compile_context>
chip_gen: v7x
topology: tpu7x:2x2x1
jax: 0.10.0
libtpu: 0.0.40
codegen_flags: <defaults>
</compile_context>

<pallas_src>
import math

import jax
import jax.numpy as jnp
from jax.experimental import pallas as pl
from jax.experimental.pallas import tpu as pltpu

# ---------------- config (small shapes consistent with the module) ----------
B = 2
IMG = 16                       # image_size (stand-in for 128)
RGB_C = 3
NOCS_C = 3                     # output_nc
IN_C = RGB_C + NOCS_C          # input_nc = 6 (rgb ++ noisy nocs)
MODEL_C = 32                   # UNet block channels (stand-in for 128..512)
CTX_D = 32                     # cross_attention_dim (stand-in for 768)
PATCH = 4
DINO_SEQ = (IMG // PATCH) ** 2         # 16 "dino" tokens
BART_SEQ = 6                           # "bart" tokens (repeat_factor = 3)
VOCAB = 64
TEMB_D = 32
NUM_TRAIN_STEPS = 50           # num_training_steps (stand-in for 1000)
HW = IMG * IMG
K_IN = RGB_C + 2 * NOCS_C      # packed kernel input channels: [rgb | gt | noise]
PAD = 24                       # scratch row halo (>= IMG + 1, multiple of 8)

# DDPM scheduler tables (DDPMScheduler defaults: linear betas)
BETAS = jnp.linspace(1e-4, 0.02, NUM_TRAIN_STEPS, dtype=jnp.float32)
ALPHAS_CUMPROD = jnp.cumprod(1.0 - BETAS)


# ---------------- in-kernel helpers ------------------------------------------
def _conv3x3_im2col(x, w_flat_ref, scr_ref, mask_l, mask_r):
    """3x3 'same' conv over a row-major flattened (H*W, Cin) feature map.

    One im2col MXU matmul: the map is staged once into a zero-haloed bf16 VMEM
    scratch; the 9 tap windows (row-shifted reads, x-boundary masked for the
    dx != 0 taps) are concatenated on the lane axis into a (HW, 9*Cin) block
    and contracted against the flattened (9*Cin, Cout) weight in a single dot
    with f32 accumulation.  w_flat row t*Cin + c corresponds to torch
    Conv2d weight[o, c, ky, kx] with t = ky*3 + kx (pad=1).
    """
    cin = x.shape[1]
    # zero only the top/bottom halo bands; interior is overwritten each step
    halo = jnp.zeros((PAD, cin), scr_ref.dtype)
    scr_ref[0:PAD, :] = halo
    scr_ref[PAD + HW:PAD + HW + PAD, :] = halo
    scr_ref[PAD:PAD + HW, :] = x

    cols = []
    for dy in (-1, 0, 1):
        for dx in (-1, 0, 1):
            start = PAD + dy * IMG + dx                # static offsets
            win = scr_ref[start:start + HW, :]         # zero halo at y edges
            if dx == -1:
                win = jnp.where(mask_l, win, 0)        # hoisted x-boundary masks
            elif dx == 1:
                win = jnp.where(mask_r, win, 0)
            cols.append(win)
    col = jnp.concatenate(cols, axis=1)                # (HW, 9*Cin) bf16
    return jnp.dot(col, w_flat_ref[...], preferred_element_type=jnp.float32)


# ---------------- the single fused kernel ------------------------------------
def _fused_kernel(scales_ref, inp_ref, temb_ref, patch_ref, tok_ref,
                  w_in_ref, w_patch_ref, b_patch_ref, w_bart_ref, b_bart_ref,
                  wq_ref, wk_ref, wv_ref, wo_ref, bo_ref, w_out_ref, b_out_ref,
                  o_ref, scr_in_ref, scr_h_ref):
    f32 = jnp.float32
    bf16 = jnp.bfloat16
    b = pl.program_id(0)

    # ---- hoisted x-boundary masks, shared by both convs ---------------------
    xcol = jax.lax.broadcasted_iota(jnp.int32, (HW, 1), 0) % IMG
    mask_l = xcol >= 1            # dx = -1 taps valid
    mask_r = xcol < IMG - 1       # dx = +1 taps valid

    # ---- DDPM add_noise, folded onto the packed input (one VPU multiply) ----
    # latents = cat([rgb, sa*gt + sb*eps]); by linearity the sa/sb scales apply
    # per packed channel of [rgb | gt | noise] against the duplicated weights.
    sa = scales_ref[b, 0]                      # sqrt(alphas_cumprod[t])
    sb = scales_ref[b, 1]                      # sqrt(1 - alphas_cumprod[t])
    cidx = jax.lax.broadcasted_iota(jnp.int32, (1, K_IN), 1)
    csc = jnp.where(cidx < RGB_C, 1.0,
                    jnp.where(cidx < RGB_C + NOCS_C, sa, sb)).astype(f32)
    inp = inp_ref[0]                           # (HW, 9) f32 = [rgb | gt | noise]
    x_in = (inp * csc).astype(bf16)

    # ---- frozen-encoder stand-ins (DINO patch embed / BART token proj) ------
    dino = jnp.dot(patch_ref[0].astype(bf16), w_patch_ref[...],
                   preferred_element_type=f32) + b_patch_ref[...]       # (16, D)
    bart = jnp.dot(tok_ref[0].astype(bf16), w_bart_ref[...],
                   preferred_element_type=f32) + b_bart_ref[...]        # (16, D)
    ctx = jnp.concatenate([dino, bart], axis=0).astype(bf16)            # (32, D)

    # ---- conv_in (3x3, pad=1) as one im2col matmul + temb bias + SiLU -------
    h = _conv3x3_im2col(x_in, w_in_ref, scr_in_ref, mask_l, mask_r)     # (HW, C)
    h = h + temb_ref[0]
    h = h * jax.nn.sigmoid(h)                                           # f32 SiLU

    # ---- cross-attention (bf16 MXU operands, f32 accumulate/softmax) --------
    q = jnp.dot(h.astype(bf16), wq_ref[...], preferred_element_type=f32)
    k = jnp.dot(ctx, wk_ref[...], preferred_element_type=f32)
    v = jnp.dot(ctx, wv_ref[...], preferred_element_type=f32)
    s = jax.lax.dot_general(q.astype(bf16), k.astype(bf16),
                            (((1,), (1,)), ((), ())),
                            preferred_element_type=f32) * (1.0 / math.sqrt(CTX_D))
    m = jnp.max(s, axis=-1, keepdims=True)
    p = jnp.exp(s - m)
    denom = jnp.sum(p, axis=-1, keepdims=True)
    p = p * pl.reciprocal(denom, approx=True)          # EUP, off the VALU path
    attn = jnp.dot(p.astype(bf16), v.astype(bf16), preferred_element_type=f32)
    h = h + jnp.dot(attn.astype(bf16), wo_ref[...],
                    preferred_element_type=f32) + bo_ref[...]

    # ---- conv_out (3x3, pad=1); output channels lane-padded to MODEL_C ------
    y = _conv3x3_im2col(h.astype(bf16), w_out_ref, scr_h_ref,
                        mask_l, mask_r) + b_out_ref[...]                # (HW, C)

    # ---- per-batch MSE partial sum vs. the injected noise (lane-dense out) --
    d = y[:, :NOCS_C] - inp[:, RGB_C + NOCS_C:]
    sse = jnp.sum(d * d, axis=(0, 1), keepdims=True)                    # (1, 1)
    o_ref[...] = jnp.zeros((1, 1, 128), f32) + sse[None]


def fused_forward(scales, inp9, temb_bias, patches, bart_tok,
                  w_in_flat, w_patch, b_patch, w_bart, b_bart,
                  wq, wk, wv, wo, bo, w_out_flat, b_out):
    Bb = inp9.shape[0]

    def full_spec(a):
        nd = a.ndim

        def imap(b):
            return (0,) * nd
        return pl.BlockSpec(a.shape, imap)

    def batch_spec(a):
        nd = a.ndim

        def imap(b):
            return (b,) + (0,) * (nd - 1)
        return pl.BlockSpec((1,) + a.shape[1:], imap)

    out = pl.pallas_call(
        _fused_kernel,
        out_shape=jax.ShapeDtypeStruct((Bb, 1, 128), jnp.float32),
        grid=(Bb,),
        in_specs=[
            pl.BlockSpec(memory_space=pltpu.MemorySpace.SMEM),   # add_noise scales
            batch_spec(inp9), batch_spec(temb_bias),
            batch_spec(patches), batch_spec(bart_tok),
            full_spec(w_in_flat), full_spec(w_patch), full_spec(b_patch),
            full_spec(w_bart), full_spec(b_bart),
            full_spec(wq), full_spec(wk), full_spec(wv),
            full_spec(wo), full_spec(bo),
            full_spec(w_out_flat), full_spec(b_out),
        ],
        out_specs=pl.BlockSpec((1, 1, 128), lambda b: (b, 0, 0)),
        scratch_shapes=[
            pltpu.VMEM((HW + 2 * PAD, K_IN), jnp.bfloat16),      # conv_in halo stage
            pltpu.VMEM((HW + 2 * PAD, MODEL_C), jnp.bfloat16),   # conv_out halo stage
        ],
        compiler_params=pltpu.CompilerParams(
            dimension_semantics=("parallel",)),   # v7x: shard batch over 2 TCs
    )(scales, inp9, temb_bias, patches, bart_tok,
      w_in_flat, w_patch, b_patch, w_bart, b_bart,
      wq, wk, wv, wo, bo, w_out_flat, b_out)
    return out[:, 0, 0]


# ---------------- glue (parameters, tiny XLA-side ops) ------------------------
def timestep_embedding(t, dim):
    half = dim // 2
    freqs = jnp.exp(-math.log(10000.0) * jnp.arange(half, dtype=jnp.float32) / half)
    args = t.astype(jnp.float32)[:, None] * freqs[None, :]
    return jnp.concatenate([jnp.cos(args), jnp.sin(args)], axis=-1)


def init_params(key):
    ks = jax.random.split(key, 11)
    nrm = lambda k, shape: 0.02 * jax.random.normal(k, shape, dtype=jnp.float32)
    return {
        # time-embedding MLP (stays in XLA: M=B rows, a Pallas launch is overhead)
        "t_w1": nrm(ks[0], (TEMB_D, 64)), "t_b1": jnp.zeros((64,), jnp.float32),
        "t_w2": nrm(ks[1], (64, MODEL_C)), "t_b2": jnp.zeros((MODEL_C,), jnp.float32),
        # conv_in: (tap, in_ch[rgb 0..2 | nocs 3..5], out_ch) == torch OIHW[o,c,t//3,t%3]
        "conv_in_w": nrm(ks[2], (9, IN_C, MODEL_C)),
        "conv_in_b": jnp.zeros((1, MODEL_C), jnp.float32),
        # cross-attention
        "wq": nrm(ks[3], (MODEL_C, CTX_D)),
        "wk": nrm(ks[4], (CTX_D, CTX_D)),
        "wv": nrm(ks[5], (CTX_D, CTX_D)),
        "wo": nrm(ks[6], (CTX_D, MODEL_C)), "bo": jnp.zeros((1, MODEL_C), jnp.float32),
        # conv_out (same tap layout as conv_in)
        "conv_out_w": nrm(ks[7], (9, MODEL_C, NOCS_C)),
        "conv_out_b": jnp.zeros((1, NOCS_C), jnp.float32),
        # frozen-encoder stand-ins
        "patch_w": nrm(ks[8], (RGB_C * PATCH * PATCH, CTX_D)),
        "patch_b": jnp.zeros((1, CTX_D), jnp.float32),
        "tok_emb": nrm(ks[9], (VOCAB, CTX_D)),
        "bart_w": nrm(ks[10], (CTX_D, CTX_D)),
        "bart_b": jnp.zeros((1, CTX_D), jnp.float32),
    }


def forward(rgb_image, nocs_gt, token_ids, key, params):
    """Mirrors DiffusionNOCSDinoBART.forward: returns the scalar MSE loss."""
    Bb = nocs_gt.shape[0]
    k_noise, k_t = jax.random.split(key)
    noise = jax.random.normal(k_noise, nocs_gt.shape, dtype=nocs_gt.dtype)
    timesteps = jax.random.randint(k_t, (Bb,), 0, NUM_TRAIN_STEPS)

    # noise_scheduler.add_noise scales (applied in-kernel via SMEM scalars)
    ac = ALPHAS_CUMPROD[timesteps]
    scales = jnp.stack([jnp.sqrt(ac), jnp.sqrt(1.0 - ac)], axis=1)     # (B, 2)

    # time-embedding MLP (tiny) folded into the conv_in bias
    temb = timestep_embedding(timesteps, TEMB_D)
    temb = jax.nn.silu(temb @ params["t_w1"] + params["t_b1"])
    temb = temb @ params["t_w2"] + params["t_b2"]                      # (B, C)
    temb_bias = params["conv_in_b"][None] + temb[:, None, :]           # (B, 1, C)

    # NCHW -> token-major (B, HW, C); pack [rgb | nocs_gt | noise] as 9 channels
    to_tok = lambda x: x.reshape(Bb, x.shape[1], HW).transpose(0, 2, 1)
    inp9 = jnp.concatenate(
        [to_tok(rgb_image), to_tok(nocs_gt), to_tok(noise)], axis=-1)  # (B, HW, 9)

    # TODO(synk): pretrained DINOv2 (with 224x224 bilinear resize) replaced by a
    # deterministic patch-embedding stand-in with the same (B, seq, dim) dataflow.
    patches = rgb_image.reshape(Bb, RGB_C, IMG // PATCH, PATCH, IMG // PATCH, PATCH)
    patches = patches.transpose(0, 2, 4, 1, 3, 5).reshape(
        Bb, DINO_SEQ, RGB_C * PATCH * PATCH)                           # (B, 16, 48)

    # TODO(synk): pretrained BART encoder + BartTokenizer replaced by a token
    # embedding lookup (gather stays in XLA) + in-kernel linear projection.
    repeat_factor = (DINO_SEQ + BART_SEQ - 1) // BART_SEQ
    bart_tok = jnp.take(params["tok_emb"], token_ids, axis=0)          # (B, 6, D)
    bart_tok = jnp.tile(bart_tok, (1, repeat_factor, 1))[:, :DINO_SEQ]  # (B, 16, D)

    bf16 = jnp.bfloat16
    # conv_in weights widened to the packed [rgb | gt | noise] input channels,
    # then flattened for the single im2col matmul (row t*K_IN + c).
    w_in9 = jnp.concatenate([params["conv_in_w"][:, :RGB_C],
                             params["conv_in_w"][:, RGB_C:],
                             params["conv_in_w"][:, RGB_C:]], axis=1)  # (9, 9, C)
    w_in_flat = w_in9.reshape(9 * K_IN, MODEL_C).astype(bf16)          # (81, C)
    # conv_out made lane-dense: pad output channels 3 -> MODEL_C with zeros
    # (only the first 3 are valid; MSE slices them in-kernel), then flatten.
    w_out_p = jnp.pad(params["conv_out_w"], ((0, 0), (0, 0), (0, MODEL_C - NOCS_C)))
    w_out_flat = w_out_p.reshape(9 * MODEL_C, MODEL_C).astype(bf16)    # (288, C)
    b_out_p = jnp.pad(params["conv_out_b"], ((0, 0), (0, MODEL_C - NOCS_C)))

    sse = fused_forward(scales, inp9, temb_bias, patches, bart_tok,
                        w_in_flat,
                        params["patch_w"].astype(bf16), params["patch_b"],
                        params["bart_w"].astype(bf16), params["bart_b"],
                        params["wq"].astype(bf16), params["wk"].astype(bf16),
                        params["wv"].astype(bf16), params["wo"].astype(bf16),
                        params["bo"], w_out_flat, b_out_p)             # (B,)
    # final mean: one tiny scalar reduce in XLA (partials were f32 in-kernel)
    return jnp.sum(sse) / float(Bb * HW * NOCS_C)


if __name__ == "__main__":
    root = jax.random.PRNGKey(0)
    k_rgb, k_nocs, k_params, k_fwd = jax.random.split(root, 4)
    rgb_image = jax.random.uniform(k_rgb, (B, RGB_C, IMG, IMG), dtype=jnp.float32)
    nocs_gt = jax.random.uniform(k_nocs, (B, NOCS_C, IMG, IMG), dtype=jnp.float32)
    # deterministic "tokenized obj_names" stand-in
    token_ids = (jnp.arange(B * BART_SEQ, dtype=jnp.int32).reshape(B, BART_SEQ) + 1) % VOCAB
    params = init_params(k_params)

    loss = jax.jit(forward)(rgb_image, nocs_gt, token_ids, k_fwd, params)
    loss = jax.block_until_ready(loss)
    assert loss.shape == () and bool(jnp.isfinite(loss))
    print("KERNEL_OK")
</pallas_src>

<mosaic_0001>
module attributes {stable_mosaic.version = 11 : i64} {
  func.func @_fused_kernel(%arg0: i32, %arg1: memref<2x2xf32, #tpu.memory_space<smem>>, %arg2: memref<1x256x9xf32, #tpu.memory_space<vmem>>, %arg3: memref<1x1x32xf32, #tpu.memory_space<vmem>>, %arg4: memref<1x16x48xf32, #tpu.memory_space<vmem>>, %arg5: memref<1x16x32xf32, #tpu.memory_space<vmem>>, %arg6: memref<81x32xbf16, #tpu.memory_space<vmem>>, %arg7: memref<48x32xbf16, #tpu.memory_space<vmem>>, %arg8: memref<1x32xf32, #tpu.memory_space<vmem>>, %arg9: memref<32x32xbf16, #tpu.memory_space<vmem>>, %arg10: memref<1x32xf32, #tpu.memory_space<vmem>>, %arg11: memref<32x32xbf16, #tpu.memory_space<vmem>>, %arg12: memref<32x32xbf16, #tpu.memory_space<vmem>>, %arg13: memref<32x32xbf16, #tpu.memory_space<vmem>>, %arg14: memref<32x32xbf16, #tpu.memory_space<vmem>>, %arg15: memref<1x32xf32, #tpu.memory_space<vmem>>, %arg16: memref<288x32xbf16, #tpu.memory_space<vmem>>, %arg17: memref<1x32xf32, #tpu.memory_space<vmem>>, %arg18: memref<1x1x128xf32, #tpu.memory_space<vmem>>, %arg19: memref<304x9xbf16, #tpu.memory_space<vmem>>, %arg20: memref<304x32xbf16, #tpu.memory_space<vmem>>) attributes {dimension_semantics = [#tpu.dimension_semantics<parallel>], iteration_bounds = array<i64: 2>, scalar_prefetch = 0 : i64, scratch_operands = 2 : i64, tpu.core_type = #tpu.core_type<tc>, window_params = [{transform_indices = @transform_0, window_bounds = array<i64: 2, 2>}, {transform_indices = @transform_1, window_bounds = array<i64: 1, 256, 9>}, {transform_indices = @transform_2, window_bounds = array<i64: 1, 1, 32>}, {transform_indices = @transform_3, window_bounds = array<i64: 1, 16, 48>}, {transform_indices = @transform_4, window_bounds = array<i64: 1, 16, 32>}, {pipeline_mode = #tpu.pipeline_mode<synchronous>, transform_indices = @transform_5, window_bounds = array<i64: 81, 32>}, {pipeline_mode = #tpu.pipeline_mode<synchronous>, transform_indices = @transform_6, window_bounds = array<i64: 48, 32>}, {pipeline_mode = #tpu.pipeline_mode<synchronous>, transform_indices = @transform_7, window_bounds = array<i64: 1, 32>}, {pipeline_mode = #tpu.pipeline_mode<synchronous>, transform_indices = @transform_8, window_bounds = array<i64: 32, 32>}, {pipeline_mode = #tpu.pipeline_mode<synchronous>, transform_indices = @transform_9, window_bounds = array<i64: 1, 32>}, {pipeline_mode = #tpu.pipeline_mode<synchronous>, transform_indices = @transform_10, window_bounds = array<i64: 32, 32>}, {pipeline_mode = #tpu.pipeline_mode<synchronous>, transform_indices = @transform_11, window_bounds = array<i64: 32, 32>}, {pipeline_mode = #tpu.pipeline_mode<synchronous>, transform_indices = @transform_12, window_bounds = array<i64: 32, 32>}, {pipeline_mode = #tpu.pipeline_mode<synchronous>, transform_indices = @transform_13, window_bounds = array<i64: 32, 32>}, {pipeline_mode = #tpu.pipeline_mode<synchronous>, transform_indices = @transform_14, window_bounds = array<i64: 1, 32>}, {pipeline_mode = #tpu.pipeline_mode<synchronous>, transform_indices = @transform_15, window_bounds = array<i64: 288, 32>}, {pipeline_mode = #tpu.pipeline_mode<synchronous>, transform_indices = @transform_16, window_bounds = array<i64: 1, 32>}, {transform_indices = @transform_17, window_bounds = array<i64: 1, 1, 128>}]} {
    %0 = tpu.iota {dimensions = array<i32: 0>} : vector<256x1xi32>
    %c16_i32 = arith.constant 16 : i32
    %c0_i32 = arith.constant 0 : i32
    %1 = arith.cmpi eq, %c16_i32, %c0_i32 : i32
    %c1_i32 = arith.constant 1 : i32
    %2 = arith.select %1, %c1_i32, %c16_i32 : i32
    %3 = vector.broadcast %2 : i32 to vector<256x1xi32>
    %4 = arith.remsi %0, %3 : vector<256x1xi32>
    %c0_i32_0 = arith.constant 0 : i32
    %5 = vector.broadcast %c0_i32_0 : i32 to vector<256x1xi32>
    %6 = arith.cmpi ne, %4, %5 : vector<256x1xi32>
    %c0_i32_1 = arith.constant 0 : i32
    %7 = vector.broadcast %c0_i32_1 : i32 to vector<256x1xi32>
    %8 = arith.cmpi slt, %4, %7 : vector<256x1xi32>
    %c0_i32_2 = arith.constant 0 : i32
    %9 = arith.cmpi slt, %2, %c0_i32_2 : i32
    %10 = vector.broadcast %9 : i1 to vector<256x1xi1>
    %11 = vector.broadcast %10 : vector<256x1xi1> to vector<256x1xi1>
    %12 = arith.xori %8, %11 : vector<256x1xi1>
    %13 = arith.andi %12, %6 : vector<256x1xi1>
    %14 = vector.broadcast %2 : i32 to vector<256x1xi32>
    %15 = arith.addi %4, %14 : vector<256x1xi32>
    %16 = arith.select %13, %15, %4 : vector<256x1xi1>, vector<256x1xi32>
    %c1_i32_3 = arith.constant 1 : i32
    %17 = vector.broadcast %c1_i32_3 : i32 to vector<256x1xi32>
    %18 = arith.cmpi sge, %16, %17 : vector<256x1xi32>
    %c15_i32 = arith.constant 15 : i32
    %19 = vector.broadcast %c15_i32 : i32 to vector<256x1xi32>
    %20 = arith.cmpi slt, %16, %19 : vector<256x1xi32>
    %21 = arith.index_cast %arg0 : i32 to index
    %c0 = arith.constant 0 : index
    %22 = memref.load %arg1[%21, %c0] : memref<2x2xf32, #tpu.memory_space<smem>>
    %23 = arith.index_cast %arg0 : i32 to index
    %c1 = arith.constant 1 : index
    %24 = memref.load %arg1[%23, %c1] : memref<2x2xf32, #tpu.memory_space<smem>>
    %25 = tpu.iota {dimensions = array<i32: 1>} : vector<1x9xi32>
    %c3_i32 = arith.constant 3 : i32
    %26 = vector.broadcast %c3_i32 : i32 to vector<1x9xi32>
    %27 = arith.cmpi slt, %25, %26 : vector<1x9xi32>
    %c6_i32 = arith.constant 6 : i32
    %28 = vector.broadcast %c6_i32 : i32 to vector<1x9xi32>
    %29 = arith.cmpi slt, %25, %28 : vector<1x9xi32>
    %30 = vector.broadcast %22 : f32 to vector<1x9xf32>
    %31 = vector.broadcast %24 : f32 to vector<1x9xf32>
    %32 = arith.select %29, %30, %31 : vector<1x9xi1>, vector<1x9xf32>
    %cst = arith.constant 1.000000e+00 : f32
    %33 = vector.broadcast %cst : f32 to vector<1x9xf32>
    %34 = arith.select %27, %33, %32 : vector<1x9xi1>, vector<1x9xf32>
    %c0_4 = arith.constant 0 : index
    %c0_5 = arith.constant 0 : index
    %c0_6 = arith.constant 0 : index
    %35 = vector.load %arg2[%c0_4, %c0_5, %c0_6] : memref<1x256x9xf32, #tpu.memory_space<vmem>>, vector<1x256x9xf32>
    %36 = vector.shape_cast %35 : vector<1x256x9xf32> to vector<256x9xf32>
    %37 = vector.broadcast %34 : vector<1x9xf32> to vector<256x9xf32>
    %38 = arith.mulf %36, %37 : vector<256x9xf32>
    %39 = arith.truncf %38 : vector<256x9xf32> to vector<256x9xbf16>
    %c0_7 = arith.constant 0 : index
    %c0_8 = arith.constant 0 : index
    %c0_9 = arith.constant 0 : index
    %40 = vector.load %arg4[%c0_7, %c0_8, %c0_9] : memref<1x16x48xf32, #tpu.memory_space<vmem>>, vector<1x16x48xf32>
    %41 = vector.shape_cast %40 : vector<1x16x48xf32> to vector<16x48xf32>
    %42 = arith.truncf %41 : vector<16x48xf32> to vector<16x48xbf16>
    %c0_10 = arith.constant 0 : index
    %c0_11 = arith.constant 0 : index
    %43 = vector.load %arg7[%c0_10, %c0_11] : memref<48x32xbf16, #tpu.memory_space<vmem>>, vector<48x32xbf16>
    %cst_12 = arith.constant dense<0.000000e+00> : vector<16x32xf32>
    %44 = tpu.matmul %42, %43, %cst_12 {dimension_numbers = #tpu.dot_dimension_numbers<[1], [0], [0], [1], [0, 0, 1, 1], [], []>} : vector<16x48xbf16>, vector<48x32xbf16>, vector<16x32xf32> -> vector<16x32xf32>
    %c0_13 = arith.constant 0 : index
    %c0_14 = arith.constant 0 : index
    %45 = vector.load %arg8[%c0_13, %c0_14] : memref<1x32xf32, #tpu.memory_space<vmem>>, vector<1x32xf32>
    %46 = vector.broadcast %45 : vector<1x32xf32> to vector<16x32xf32>
    %47 = arith.addf %44, %46 : vector<16x32xf32>
    %c0_15 = arith.constant 0 : index
    %c0_16 = arith.constant 0 : index
    %c0_17 = arith.constant 0 : index
    %48 = vector.load %arg5[%c0_15, %c0_16, %c0_17] : memref<1x16x32xf32, #tpu.memory_space<vmem>>, vector<1x16x32xf32>
    %49 = vector.shape_cast %48 : vector<1x16x32xf32> to vector<16x32xf32>
    %50 = arith.truncf %49 : vector<16x32xf32> to vector<16x32xbf16>
    %c0_18 = arith.constant 0 : index
    %c0_19 = arith.constant 0 : index
    %51 = vector.load %arg9[%c0_18, %c0_19] : memref<32x32xbf16, #tpu.memory_space<vmem>>, vector<32x32xbf16>
    %cst_20 = arith.constant dense<0.000000e+00> : vector<16x32xf32>
    %52 = tpu.matmul %50, %51, %cst_20 {dimension_numbers = #tpu.dot_dimension_numbers<[1], [0], [0], [1], [0, 0, 1, 1], [], []>} : vector<16x32xbf16>, vector<32x32xbf16>, vector<16x32xf32> -> vector<16x32xf32>
    %c0_21 = arith.constant 0 : index
    %c0_22 = arith.constant 0 : index
    %53 = vector.load %arg10[%c0_21, %c0_22] : memref<1x32xf32, #tpu.memory_space<vmem>>, vector<1x32xf32>
    %54 = vector.broadcast %53 : vector<1x32xf32> to vector<16x32xf32>
    %55 = arith.addf %52, %54 : vector<16x32xf32>
    %56 = tpu.concatenate %47, %55 in 0 : vector<16x32xf32>, vector<16x32xf32> -> vector<32x32xf32>
    %57 = arith.truncf %56 : vector<32x32xf32> to vector<32x32xbf16>
    %cst_23 = arith.constant 0.000000e+00 : bf16
    %58 = vector.broadcast %cst_23 : bf16 to vector<24x9xbf16>
    %c0_24 = arith.constant 0 : index
    %c0_25 = arith.constant 0 : index
    %59 = vector.load %arg19[%c0_24, %c0_25] : memref<304x9xbf16, #tpu.memory_space<vmem>>, vector<24x9xbf16>
    tpu.vector_store %arg19[%c0_24, %c0_25], %58 {strides = array<i32>} : memref<304x9xbf16, #tpu.memory_space<vmem>>, vector<24x9xbf16>,
    %c280 = arith.constant 280 : index
    %c0_26 = arith.constant 0 : index
    %60 = vector.load %arg19[%c280, %c0_26] : memref<304x9xbf16, #tpu.memory_space<vmem>>, vector<24x9xbf16>
    tpu.vector_store %arg19[%c280, %c0_26], %58 {strides = array<i32>} : memref<304x9xbf16, #tpu.memory_space<vmem>>, vector<24x9xbf16>,
    %c24 = arith.constant 24 : index
    %c0_27 = arith.constant 0 : index
    %61 = vector.load %arg19[%c24, %c0_27] : memref<304x9xbf16, #tpu.memory_space<vmem>>, vector<256x9xbf16>
    tpu.vector_store %arg19[%c24, %c0_27], %39 {strides = array<i32>} : memref<304x9xbf16, #tpu.memory_space<vmem>>, vector<256x9xbf16>,
    %c7 = arith.constant 7 : index
    %c0_28 = arith.constant 0 : index
    %62 = vector.load %arg19[%c7, %c0_28] : memref<304x9xbf16, #tpu.memory_space<vmem>>, vector<256x9xbf16>
    %c0_i32_29 = arith.constant 0 : i32
    %63 = arith.sitofp %c0_i32_29 : i32 to bf16
    %64 = vector.shape_cast %18 : vector<256x1xi1> to vector<256x1xi1>
    %65 = vector.broadcast %64 : vector<256x1xi1> to vector<256x9xi1>
    %66 = vector.broadcast %63 : bf16 to vector<256x9xbf16>
    %67 = arith.select %65, %62, %66 : vector<256x9xi1>, vector<256x9xbf16>
    %c8 = arith.constant 8 : index
    %c0_30 = arith.constant 0 : index
    %68 = vector.load %arg19[%c8, %c0_30] : memref<304x9xbf16, #tpu.memory_space<vmem>>, vector<256x9xbf16>
    %c9 = arith.constant 9 : index
    %c0_31 = arith.constant 0 : index
    %69 = vector.load %arg19[%c9, %c0_31] : memref<304x9xbf16, #tpu.memory_space<vmem>>, vector<256x9xbf16>
    %c0_i32_32 = arith.constant 0 : i32
    %70 = arith.sitofp %c0_i32_32 : i32 to bf16
    %71 = vector.shape_cast %20 : vector<256x1xi1> to vector<256x1xi1>
    %72 = vector.broadcast %71 : vector<256x1xi1> to vector<256x9xi1>
    %73 = vector.broadcast %70 : bf16 to vector<256x9xbf16>
    %74 = arith.select %72, %69, %73 : vector<256x9xi1>, vector<256x9xbf16>
    %c23 = arith.constant 23 : index
    %c0_33 = arith.constant 0 : index
    %75 = vector.load %arg19[%c23, %c0_33] : memref<304x9xbf16, #tpu.memory_space<vmem>>, vector<256x9xbf16>
    %c0_i32_34 = arith.constant 0 : i32
    %76 = arith.sitofp %c0_i32_34 : i32 to bf16
    %77 = vector.shape_cast %18 : vector<256x1xi1> to vector<256x1xi1>
    %78 = vector.broadcast %77 : vector<256x1xi1> to vector<256x9xi1>
    %79 = vector.broadcast %76 : bf16 to vector<256x9xbf16>
    %80 = arith.select %78, %75, %79 : vector<256x9xi1>, vector<256x9xbf16>
    %c24_35 = arith.constant 24 : index
    %c0_36 = arith.constant 0 : index
    %81 = vector.load %arg19[%c24_35, %c0_36] : memref<304x9xbf16, #tpu.memory_space<vmem>>, vector<256x9xbf16>
    %c25 = arith.constant 25 : index
    %c0_37 = arith.constant 0 : index
    %82 = vector.load %arg19[%c25, %c0_37] : memref<304x9xbf16, #tpu.memory_space<vmem>>, vector<256x9xbf16>
    %c0_i32_38 = arith.constant 0 : i32
    %83 = arith.sitofp %c0_i32_38 : i32 to bf16
    %84 = vector.shape_cast %20 : vector<256x1xi1> to vector<256x1xi1>
    %85 = vector.broadcast %84 : vector<256x1xi1> to vector<256x9xi1>
    %86 = vector.broadcast %83 : bf16 to vector<256x9xbf16>
    %87 = arith.select %85, %82, %86 : vector<256x9xi1>, vector<256x9xbf16>
    %c39 = arith.constant 39 : index
    %c0_39 = arith.constant 0 : index
    %88 = vector.load %arg19[%c39, %c0_39] : memref<304x9xbf16, #tpu.memory_space<vmem>>, vector<256x9xbf16>
    %c0_i32_40 = arith.constant 0 : i32
    %89 = arith.sitofp %c0_i32_40 : i32 to bf16
    %90 = vector.shape_cast %18 : vector<256x1xi1> to vector<256x1xi1>
    %91 = vector.broadcast %90 : vector<256x1xi1> to vector<256x9xi1>
    %92 = vector.broadcast %89 : bf16 to vector<256x9xbf16>
    %93 = arith.select %91, %88, %92 : vector<256x9xi1>, vector<256x9xbf16>
    %c40 = arith.constant 40 : index
    %c0_41 = arith.constant 0 : index
    %94 = vector.load %arg19[%c40, %c0_41] : memref<304x9xbf16, #tpu.memory_space<vmem>>, vector<256x9xbf16>
    %c41 = arith.constant 41 : index
    %c0_42 = arith.constant 0 : index
    %95 = vector.load %arg19[%c41, %c0_42] : memref<304x9xbf16, #tpu.memory_space<vmem>>, vector<256x9xbf16>
    %c0_i32_43 = arith.constant 0 : i32
    %96 = arith.sitofp %c0_i32_43 : i32 to bf16
    %97 = vector.shape_cast %20 : vector<256x1xi1> to vector<256x1xi1>
    %98 = vector.broadcast %97 : vector<256x1xi1> to vector<256x9xi1>
    %99 = vector.broadcast %96 : bf16 to vector<256x9xbf16>
    %100 = arith.select %98, %95, %99 : vector<256x9xi1>, vector<256x9xbf16>
    %101 = tpu.concatenate %67, %68, %74, %80, %81, %87, %93, %94, %100 in 1 : vector<256x9xbf16>, vector<256x9xbf16>, vector<256x9xbf16>, vector<256x9xbf16>, vector<256x9xbf16>, vector<256x9xbf16>, vector<256x9xbf16>, vector<256x9xbf16>, vector<256x9xbf16> -> vector<256x81xbf16>
    %c0_44 = arith.constant 0 : index
    %c0_45 = arith.constant 0 : index
    %102 = vector.load %arg6[%c0_44, %c0_45] : memref<81x32xbf16, #tpu.memory_space<vmem>>, vector<81x32xbf16>
    %cst_46 = arith.constant dense<0.000000e+00> : vector<256x32xf32>
    %103 = tpu.matmul %101, %102, %cst_46 {dimension_numbers = #tpu.dot_dimension_numbers<[1], [0], [0], [1], [0, 0, 1, 1], [], []>} : vector<256x81xbf16>, vector<81x32xbf16>, vector<256x32xf32> -> vector<256x32xf32>
    %c0_47 = arith.constant 0 : index
    %c0_48 = arith.constant 0 : index
    %c0_49 = arith.constant 0 : index
    %104 = vector.load %arg3[%c0_47, %c0_48, %c0_49] : memref<1x1x32xf32, #tpu.memory_space<vmem>>, vector<1x1x32xf32>
    %105 = vector.shape_cast %104 : vector<1x1x32xf32> to vector<1x32xf32>
    %106 = vector.broadcast %105 : vector<1x32xf32> to vector<256x32xf32>
    %107 = arith.addf %103, %106 : vector<256x32xf32>
    %108 = arith.negf %107 : vector<256x32xf32>
    %109 = math.exp %108 : vector<256x32xf32>
    %cst_50 = arith.constant 1.000000e+00 : f32
    %110 = vector.broadcast %cst_50 : f32 to vector<256x32xf32>
    %111 = arith.addf %110, %109 : vector<256x32xf32>
    %112 = arith.divf %110, %111 : vector<256x32xf32>
    %113 = arith.mulf %107, %112 : vector<256x32xf32>
    %114 = arith.truncf %113 : vector<256x32xf32> to vector<256x32xbf16>
    %c0_51 = arith.constant 0 : index
    %c0_52 = arith.constant 0 : index
    %115 = vector.load %arg11[%c0_51, %c0_52] : memref<32x32xbf16, #tpu.memory_space<vmem>>, vector<32x32xbf16>
    %cst_53 = arith.constant dense<0.000000e+00> : vector<256x32xf32>
    %116 = tpu.matmul %114, %115, %cst_53 {dimension_numbers = #tpu.dot_dimension_numbers<[1], [0], [0], [1], [0, 0, 1, 1], [], []>} : vector<256x32xbf16>, vector<32x32xbf16>, vector<256x32xf32> -> vector<256x32xf32>
    %c0_54 = arith.constant 0 : index
    %c0_55 = arith.constant 0 : index
    %117 = vector.load %arg12[%c0_54, %c0_55] : memref<32x32xbf16, #tpu.memory_space<vmem>>, vector<32x32xbf16>
    %cst_56 = arith.constant dense<0.000000e+00> : vector<32x32xf32>
    %118 = tpu.matmul %57, %117, %cst_56 {dimension_numbers = #tpu.dot_dimension_numbers<[1], [0], [0], [1], [0, 0, 1, 1], [], []>} : vector<32x32xbf16>, vector<32x32xbf16>, vector<32x32xf32> -> vector<32x32xf32>
    %c0_57 = arith.constant 0 : index
    %c0_58 = arith.constant 0 : index
    %119 = vector.load %arg13[%c0_57, %c0_58] : memref<32x32xbf16, #tpu.memory_space<vmem>>, vector<32x32xbf16>
    %cst_59 = arith.constant dense<0.000000e+00> : vector<32x32xf32>
    %120 = tpu.matmul %57, %119, %cst_59 {dimension_numbers = #tpu.dot_dimension_numbers<[1], [0], [0], [1], [0, 0, 1, 1], [], []>} : vector<32x32xbf16>, vector<32x32xbf16>, vector<32x32xf32> -> vector<32x32xf32>
    %121 = arith.truncf %116 : vector<256x32xf32> to vector<256x32xbf16>
    %122 = arith.truncf %118 : vector<32x32xf32> to vector<32x32xbf16>
    %cst_60 = arith.constant dense<0.000000e+00> : vector<256x32xf32>
    %123 = tpu.matmul %121, %122, %cst_60 {dimension_numbers = #tpu.dot_dimension_numbers<[1], [1], [0], [0], [0, 0, 1, 0], [], []>} : vector<256x32xbf16>, vector<32x32xbf16>, vector<256x32xf32> -> vector<256x32xf32>
    %cst_61 = arith.constant 0.176776692 : f32
    %124 = vector.broadcast %cst_61 : f32 to vector<256x32xf32>
    %125 = arith.mulf %123, %124 : vector<256x32xf32>
    %cst_62 = arith.constant dense<0xFF800000> : vector<256xf32>
    %126 = vector.multi_reduction <maximumf>, %125, %cst_62 [1] : vector<256x32xf32> to vector<256xf32>
    %127 = vector.shape_cast %126 : vector<256xf32> to vector<256x1xf32>
    %128 = vector.broadcast %127 : vector<256x1xf32> to vector<256x32xf32>
    %129 = arith.subf %125, %128 : vector<256x32xf32>
    %130 = math.exp %129 : vector<256x32xf32>
    %cst_63 = arith.constant dense<0.000000e+00> : vector<256xf32>
    %131 = vector.multi_reduction <add>, %130, %cst_63 [1] : vector<256x32xf32> to vector<256xf32>
    %132 = vector.shape_cast %131 : vector<256xf32> to vector<256x1xf32>
    %133 = tpu.reciprocal %132 {approx = true} : vector<256x1xf32> -> vector<256x1xf32>
    %134 = vector.broadcast %133 : vector<256x1xf32> to vector<256x32xf32>
    %135 = arith.mulf %130, %134 : vector<256x32xf32>
    %136 = arith.truncf %135 : vector<256x32xf32> to vector<256x32xbf16>
    %137 = arith.truncf %120 : vector<32x32xf32> to vector<32x32xbf16>
    %cst_64 = arith.constant dense<0.000000e+00> : vector<256x32xf32>
    %138 = tpu.matmul %136, %137, %cst_64 {dimension_numbers = #tpu.dot_dimension_numbers<[1], [0], [0], [1], [0, 0, 1, 1], [], []>} : vector<256x32xbf16>, vector<32x32xbf16>, vector<256x32xf32> -> vector<256x32xf32>
    %139 = arith.truncf %138 : vector<256x32xf32> to vector<256x32xbf16>
    %c0_65 = arith.constant 0 : index
    %c0_66 = arith.constant 0 : index
    %140 = vector.load %arg14[%c0_65, %c0_66] : memref<32x32xbf16, #tpu.memory_space<vmem>>, vector<32x32xbf16>
    %cst_67 = arith.constant dense<0.000000e+00> : vector<256x32xf32>
    %141 = tpu.matmul %139, %140, %cst_67 {dimension_numbers = #tpu.dot_dimension_numbers<[1], [0], [0], [1], [0, 0, 1, 1], [], []>} : vector<256x32xbf16>, vector<32x32xbf16>, vector<256x32xf32> -> vector<256x32xf32>
    %142 = arith.addf %113, %141 : vector<256x32xf32>
    %c0_68 = arith.constant 0 : index
    %c0_69 = arith.constant 0 : index
    %143 = vector.load %arg15[%c0_68, %c0_69] : memref<1x32xf32, #tpu.memory_space<vmem>>, vector<1x32xf32>
    %144 = vector.broadcast %143 : vector<1x32xf32> to vector<256x32xf32>
    %145 = arith.addf %142, %144 : vector<256x32xf32>
    %146 = arith.truncf %145 : vector<256x32xf32> to vector<256x32xbf16>
    %cst_70 = arith.constant 0.000000e+00 : bf16
    %147 = vector.broadcast %cst_70 : bf16 to vector<24x32xbf16>
    %c0_71 = arith.constant 0 : index
    %c0_72 = arith.constant 0 : index
    %148 = vector.load %arg20[%c0_71, %c0_72] : memref<304x32xbf16, #tpu.memory_space<vmem>>, vector<24x32xbf16>
    tpu.vector_store %arg20[%c0_71, %c0_72], %147 {strides = array<i32>} : memref<304x32xbf16, #tpu.memory_space<vmem>>, vector<24x32xbf16>,
    %c280_73 = arith.constant 280 : index
    %c0_74 = arith.constant 0 : index
    %149 = vector.load %arg20[%c280_73, %c0_74] : memref<304x32xbf16, #tpu.memory_space<vmem>>, vector<24x32xbf16>
    tpu.vector_store %arg20[%c280_73, %c0_74], %147 {strides = array<i32>} : memref<304x32xbf16, #tpu.memory_space<vmem>>, vector<24x32xbf16>,
    %c24_75 = arith.constant 24 : index
    %c0_76 = arith.constant 0 : index
    %150 = vector.load %arg20[%c24_75, %c0_76] : memref<304x32xbf16, #tpu.memory_space<vmem>>, vector<256x32xbf16>
    tpu.vector_store %arg20[%c24_75, %c0_76], %146 {strides = array<i32>} : memref<304x32xbf16, #tpu.memory_space<vmem>>, vector<256x32xbf16>,
    %c7_77 = arith.constant 7 : index
    %c0_78 = arith.constant 0 : index
    %151 = vector.load %arg20[%c7_77, %c0_78] : memref<304x32xbf16, #tpu.memory_space<vmem>>, vector<256x32xbf16>
    %c0_i32_79 = arith.constant 0 : i32
    %152 = arith.sitofp %c0_i32_79 : i32 to bf16
    %153 = vector.shape_cast %18 : vector<256x1xi1> to vector<256x1xi1>
    %154 = vector.broadcast %153 : vector<256x1xi1> to vector<256x32xi1>
    %155 = vector.broadcast %152 : bf16 to vector<256x32xbf16>
    %156 = arith.select %154, %151, %155 : vector<256x32xi1>, vector<256x32xbf16>
    %c8_80 = arith.constant 8 : index
    %c0_81 = arith.constant 0 : index
    %157 = vector.load %arg20[%c8_80, %c0_81] : memref<304x32xbf16, #tpu.memory_space<vmem>>, vector<256x32xbf16>
    %c9_82 = arith.constant 9 : index
    %c0_83 = arith.constant 0 : index
    %158 = vector.load %arg20[%c9_82, %c0_83] : memref<304x32xbf16, #tpu.memory_space<vmem>>, vector<256x32xbf16>
    %c0_i32_84 = arith.constant 0 : i32
    %159 = arith.sitofp %c0_i32_84 : i32 to bf16
    %160 = vector.shape_cast %20 : vector<256x1xi1> to vector<256x1xi1>
    %161 = vector.broadcast %160 : vector<256x1xi1> to vector<256x32xi1>
    %162 = vector.broadcast %159 : bf16 to vector<256x32xbf16>
    %163 = arith.select %161, %158, %162 : vector<256x32xi1>, vector<256x32xbf16>
    %c23_85 = arith.constant 23 : index
    %c0_86 = arith.constant 0 : index
    %164 = vector.load %arg20[%c23_85, %c0_86] : memref<304x32xbf16, #tpu.memory_space<vmem>>, vector<256x32xbf16>
    %c0_i32_87 = arith.constant 0 : i32
    %165 = arith.sitofp %c0_i32_87 : i32 to bf16
    %166 = vector.shape_cast %18 : vector<256x1xi1> to vector<256x1xi1>
    %167 = vector.broadcast %166 : vector<256x1xi1> to vector<256x32xi1>
    %168 = vector.broadcast %165 : bf16 to vector<256x32xbf16>
    %169 = arith.select %167, %164, %168 : vector<256x32xi1>, vector<256x32xbf16>
    %c24_88 = arith.constant 24 : index
    %c0_89 = arith.constant 0 : index
    %170 = vector.load %arg20[%c24_88, %c0_89] : memref<304x32xbf16, #tpu.memory_space<vmem>>, vector<256x32xbf16>
    %c25_90 = arith.constant 25 : index
    %c0_91 = arith.constant 0 : index
    %171 = vector.load %arg20[%c25_90, %c0_91] : memref<304x32xbf16, #tpu.memory_space<vmem>>, vector<256x32xbf16>
    %c0_i32_92 = arith.constant 0 : i32
    %172 = arith.sitofp %c0_i32_92 : i32 to bf16
    %173 = vector.shape_cast %20 : vector<256x1xi1> to vector<256x1xi1>
    %174 = vector.broadcast %173 : vector<256x1xi1> to vector<256x32xi1>
    %175 = vector.broadcast %172 : bf16 to vector<256x32xbf16>
    %176 = arith.select %174, %171, %175 : vector<256x32xi1>, vector<256x32xbf16>
    %c39_93 = arith.constant 39 : index
    %c0_94 = arith.constant 0 : index
    %177 = vector.load %arg20[%c39_93, %c0_94] : memref<304x32xbf16, #tpu.memory_space<vmem>>, vector<256x32xbf16>
    %c0_i32_95 = arith.constant 0 : i32
    %178 = arith.sitofp %c0_i32_95 : i32 to bf16
    %179 = vector.shape_cast %18 : vector<256x1xi1> to vector<256x1xi1>
    %180 = vector.broadcast %179 : vector<256x1xi1> to vector<256x32xi1>
    %181 = vector.broadcast %178 : bf16 to vector<256x32xbf16>
    %182 = arith.select %180, %177, %181 : vector<256x32xi1>, vector<256x32xbf16>
    %c40_96 = arith.constant 40 : index
    %c0_97 = arith.constant 0 : index
    %183 = vector.load %arg20[%c40_96, %c0_97] : memref<304x32xbf16, #tpu.memory_space<vmem>>, vector<256x32xbf16>
    %c41_98 = arith.constant 41 : index
    %c0_99 = arith.constant 0 : index
    %184 = vector.load %arg20[%c41_98, %c0_99] : memref<304x32xbf16, #tpu.memory_space<vmem>>, vector<256x32xbf16>
    %c0_i32_100 = arith.constant 0 : i32
    %185 = arith.sitofp %c0_i32_100 : i32 to bf16
    %186 = vector.shape_cast %20 : vector<256x1xi1> to vector<256x1xi1>
    %187 = vector.broadcast %186 : vector<256x1xi1> to vector<256x32xi1>
    %188 = vector.broadcast %185 : bf16 to vector<256x32xbf16>
    %189 = arith.select %187, %184, %188 : vector<256x32xi1>, vector<256x32xbf16>
    %190 = tpu.concatenate %156, %157, %163, %169, %170, %176, %182, %183, %189 in 1 : vector<256x32xbf16>, vector<256x32xbf16>, vector<256x32xbf16>, vector<256x32xbf16>, vector<256x32xbf16>, vector<256x32xbf16>, vector<256x32xbf16>, vector<256x32xbf16>, vector<256x32xbf16> -> vector<256x288xbf16>
    %c0_101 = arith.constant 0 : index
    %c0_102 = arith.constant 0 : index
    %191 = vector.load %arg16[%c0_101, %c0_102] : memref<288x32xbf16, #tpu.memory_space<vmem>>, vector<288x32xbf16>
    %cst_103 = arith.constant dense<0.000000e+00> : vector<256x32xf32>
    %192 = tpu.matmul %190, %191, %cst_103 {dimension_numbers = #tpu.dot_dimension_numbers<[1], [0], [0], [1], [0, 0, 1, 1], [], []>} : vector<256x288xbf16>, vector<288x32xbf16>, vector<256x32xf32> -> vector<256x32xf32>
    %c0_104 = arith.constant 0 : index
    %c0_105 = arith.constant 0 : index
    %193 = vector.load %arg17[%c0_104, %c0_105] : memref<1x32xf32, #tpu.memory_space<vmem>>, vector<1x32xf32>
    %194 = vector.broadcast %193 : vector<1x32xf32> to vector<256x32xf32>
    %195 = arith.addf %192, %194 : vector<256x32xf32>
    %196 = vector.extract_strided_slice %195 {offsets = [0, 0], sizes = [256, 3], strides = [1, 1]} : vector<256x32xf32> to vector<256x3xf32>
    %197 = vector.extract_strided_slice %36 {offsets = [0, 6], sizes = [256, 3], strides = [1, 1]} : vector<256x9xf32> to vector<256x3xf32>
    %198 = arith.subf %196, %197 : vector<256x3xf32>
    %199 = arith.mulf %198, %198 : vector<256x3xf32>
    %200 = vector.shape_cast %199 : vector<256x3xf32> to vector<1x256x3xf32>
    %cst_106 = arith.constant dense<0.000000e+00> : vector<1xf32>
    %201 = vector.multi_reduction <add>, %200, %cst_106 [1, 2] : vector<1x256x3xf32> to vector<1xf32>
    %202 = vector.shape_cast %201 : vector<1xf32> to vector<1x1x1xf32>
    %203 = vector.extract %202[0, 0, 0] : f32 from vector<1x1x1xf32>
    %204 = vector.broadcast %203 : f32 to vector<1x1xf32>
    %cst_107 = arith.constant 0.000000e+00 : f32
    %205 = vector.broadcast %cst_107 : f32 to vector<1x1x128xf32>
    %206 = vector.shape_cast %204 : vector<1x1xf32> to vector<1x1x1xf32>
    %207 = vector.broadcast %206 : vector<1x1x1xf32> to vector<1x1x128xf32>
    %208 = arith.addf %205, %207 : vector<1x1x128xf32>
    %c0_108 = arith.constant 0 : index
    %c0_109 = arith.constant 0 : index
    %c0_110 = arith.constant 0 : index
    %209 = vector.load %arg18[%c0_108, %c0_109, %c0_110] : memref<1x1x128xf32, #tpu.memory_space<vmem>>, vector<1x1x128xf32>
    tpu.vector_store %arg18[%c0_108, %c0_109, %c0_110], %208 {strides = array<i32>} : memref<1x1x128xf32, #tpu.memory_space<vmem>>, vector<1x1x128xf32>,
    return
  }
  func.func @transform_0(%arg0: i32) -> (i32, i32) {
    %c0_i32 = arith.constant 0 : i32
    %c0_i32_0 = arith.constant 0 : i32
    %c0_i32_1 = arith.constant 0 : i32
    return %c0_i32, %c0_i32_0 : i32, i32
  }
  func.func @transform_1(%arg0: i32) -> (i32, i32, i32) {
    %c0_i32 = arith.constant 0 : i32
    %c0_i32_0 = arith.constant 0 : i32
    %c0_i32_1 = arith.constant 0 : i32
    return %arg0, %c0_i32, %c0_i32_0 : i32, i32, i32
  }
  func.func @transform_2(%arg0: i32) -> (i32, i32, i32) {
    %c0_i32 = arith.constant 0 : i32
    %c0_i32_0 = arith.constant 0 : i32
    %c0_i32_1 = arith.constant 0 : i32
    return %arg0, %c0_i32, %c0_i32_0 : i32, i32, i32
  }
  func.func @transform_3(%arg0: i32) -> (i32, i32, i32) {
    %c0_i32 = arith.constant 0 : i32
    %c0_i32_0 = arith.constant 0 : i32
    %c0_i32_1 = arith.constant 0 : i32
    return %arg0, %c0_i32, %c0_i32_0 : i32, i32, i32
  }
  func.func @transform_4(%arg0: i32) -> (i32, i32, i32) {
    %c0_i32 = arith.constant 0 : i32
    %c0_i32_0 = arith.constant 0 : i32
    %c0_i32_1 = arith.constant 0 : i32
    return %arg0, %c0_i32, %c0_i32_0 : i32, i32, i32
  }
  func.func @transform_5(%arg0: i32) -> (i32, i32) {
    %c0_i32 = arith.constant 0 : i32
    %c0_i32_0 = arith.constant 0 : i32
    %c0_i32_1 = arith.constant 0 : i32
    return %c0_i32, %c0_i32_0 : i32, i32
  }
  func.func @transform_6(%arg0: i32) -> (i32, i32) {
    %c0_i32 = arith.constant 0 : i32
    %c0_i32_0 = arith.constant 0 : i32
    %c0_i32_1 = arith.constant 0 : i32
    return %c0_i32, %c0_i32_0 : i32, i32
  }
  func.func @transform_7(%arg0: i32) -> (i32, i32) {
    %c0_i32 = arith.constant 0 : i32
    %c0_i32_0 = arith.constant 0 : i32
    %c0_i32_1 = arith.constant 0 : i32
    return %c0_i32, %c0_i32_0 : i32, i32
  }
  func.func @transform_8(%arg0: i32) -> (i32, i32) {
    %c0_i32 = arith.constant 0 : i32
    %c0_i32_0 = arith.constant 0 : i32
    %c0_i32_1 = arith.constant 0 : i32
    return %c0_i32, %c0_i32_0 : i32, i32
  }
  func.func @transform_9(%arg0: i32) -> (i32, i32) {
    %c0_i32 = arith.constant 0 : i32
    %c0_i32_0 = arith.constant 0 : i32
    %c0_i32_1 = arith.constant 0 : i32
    return %c0_i32, %c0_i32_0 : i32, i32
  }
  func.func @transform_10(%arg0: i32) -> (i32, i32) {
    %c0_i32 = arith.constant 0 : i32
    %c0_i32_0 = arith.constant 0 : i32
    %c0_i32_1 = arith.constant 0 : i32
    return %c0_i32, %c0_i32_0 : i32, i32
  }
  func.func @transform_11(%arg0: i32) -> (i32, i32) {
    %c0_i32 = arith.constant 0 : i32
    %c0_i32_0 = arith.constant 0 : i32
    %c0_i32_1 = arith.constant 0 : i32
    return %c0_i32, %c0_i32_0 : i32, i32
  }
  func.func @transform_12(%arg0: i32) -> (i32, i32) {
    %c0_i32 = arith.constant 0 : i32
    %c0_i32_0 = arith.constant 0 : i32
    %c0_i32_1 = arith.constant 0 : i32
    return %c0_i32, %c0_i32_0 : i32, i32
  }
  func.func @transform_13(%arg0: i32) -> (i32, i32) {
    %c0_i32 = arith.constant 0 : i32
    %c0_i32_0 = arith.constant 0 : i32
    %c0_i32_1 = arith.constant 0 : i32
    return %c0_i32, %c0_i32_0 : i32, i32
  }
  func.func @transform_14(%arg0: i32) -> (i32, i32) {
    %c0_i32 = arith.constant 0 : i32
    %c0_i32_0 = arith.constant 0 : i32
    %c0_i32_1 = arith.constant 0 : i32
    return %c0_i32, %c0_i32_0 : i32, i32
  }
  func.func @transform_15(%arg0: i32) -> (i32, i32) {
    %c0_i32 = arith.constant 0 : i32
    %c0_i32_0 = arith.constant 0 : i32
    %c0_i32_1 = arith.constant 0 : i32
    return %c0_i32, %c0_i32_0 : i32, i32
  }
  func.func @transform_16(%arg0: i32) -> (i32, i32) {
    %c0_i32 = arith.constant 0 : i32
    %c0_i32_0 = arith.constant 0 : i32
    %c0_i32_1 = arith.constant 0 : i32
    return %c0_i32, %c0_i32_0 : i32, i32
  }
  func.func @transform_17(%arg0: i32) -> (i32, i32, i32) {
    %c0_i32 = arith.constant 0 : i32
    %c0_i32_0 = arith.constant 0 : i32
    %c0_i32_1 = arith.constant 0 : i32
    return %arg0, %c0_i32, %c0_i32_0 : i32, i32, i32
  }
}

</mosaic_0001>

<bundles_post_ra>
// kernel: forward.21
= control target key start
LH: loop header
LB: loop body
LE: loop exit
PB: predicated region body
PF: predicated region fallthrough
CT: control target
= control target key end

     0   :  { %s12989_s0 = inlined_call_operand.vmem [shape: f32[2,2], index: 0, kind: input, shape index: {}]   ;;  %s12990_s1 = inlined_call_operand.vmem [shape: f32[2,256,9], index: 1, kind: input, shape index: {}]   ;;  %s12991_s2 = inlined_call_operand.vmem [shape: f32[2,1,32], index: 2, kind: input, shape index: {}]   ;;  %s12992_s3 = inlined_call_operand.vmem [shape: f32[2,16,48], index: 3, kind: input, shape index: {}]   ;;  %s12993_s4 = inlined_call_operand.vmem [shape: f32[2,16,32], index: 4, kind: input, shape index: {}]   ;;  %s12994_s5 = inlined_call_operand.vmem [shape: bf16[81,32], index: 5, kind: input, shape index: {}]   ;;  %s12995_s6 = inlined_call_operand.vmem [shape: bf16[48,32], index: 6, kind: input, shape index: {}]   ;;  %s12996_s7 = inlined_call_operand.vmem [shape: f32[1,32], index: 7, kind: input, shape index: {}]   ;;  %s12997_s8 = inlined_call_operand.vmem [shape: bf16[32,32], index: 8, kind: input, shape index: {}]   ;;  %s12998_s9 = inlined_call_operand.vmem [shape: f32[1,32], index: 9, kind: input, shape index: {}]   ;;  %s12999_s10 = inlined_call_operand.vmem [shape: bf16[32,32], index: 10, kind: input, shape index: {}]   ;;  %s13000_s11 = inlined_call_operand.vmem [shape: bf16[32,32], index: 11, kind: input, shape index: {}]   ;;  %s13001_s12 = inlined_call_operand.vmem [shape: bf16[32,32], index: 12, kind: input, shape index: {}]   ;;  %s13002_s13 = inlined_call_operand.vmem [shape: bf16[32,32], index: 13, kind: input, shape index: {}]   ;;  %s13003_s14 = inlined_call_operand.vmem [shape: f32[1,32], index: 14, kind: input, shape index: {}]   ;;  %s13004_s15 = inlined_call_operand.vmem [shape: bf16[288,32], index: 15, kind: input, shape index: {}]   ;;  %s13005_s16 = inlined_call_operand.vmem [shape: f32[1,32], index: 16, kind: input, shape index: {}]   ;;  %s13006_s17 = inlined_call_operand.vmem [shape: f32[2,1,128], index: 17, kind: output, shape index: {}]  }
   0x1   :  { %13151 = sst [smem:[#allocation60_spill]] %s12989_s0 }
   0x2   :  { %13152 = sst [smem:[#allocation61_spill]] %s12990_s1 }
   0x3   :  { %22 = vsyncpa [#allocation5], 0  ;;  %s8962_s24 = smov 0  }
   0x4 LB: > { %s8968_s25 = sadd.s32 4294967295, %s8853_s24   ;;  %p7713_p0 = scmp.ge.s32.totalorder %s8853_s24, 1  ;;  %s8853_s24 = sphi %s8962_s24, %s28_s24  }
   0x5   : > { %p436_p1 = scmp.lt.s32.totalorder %s8853_s24, 3  ;;  %s13153_s28 = sld [smem:[#allocation60_spill]] }
   0x6   : > { %p8447_p3 = scmp.eq.s32.totalorder %s8968_s25, 0 }
   0x7   : > { %p8975_p2 = pnand %p7713_p0, %p436_p1 }
   0x9   : > { %p8443_p4 = pneg %p8975_p2 }
   0xb   : > { %s449_s29 = sshll.u32 %s13153_s28, 4  ;;  %p8444_p5 = pnand %p8447_p3, %p8443_p4  ;;  %s450_s29 = int_to_ptr.vmem [resolvable:$true] %s449_s29 }
   0xc   : > { %s8828_s30 = scalar_lea.vmem %s450_s29, 32  ;;  %p8836_p10 = scmp.lt.s32.totalorder %s450_s29, %s450_s29 }
   0xd   : > { %p8829_p6 = scmp.ne.s32.totalorder %s450_s29, %s8828_s30  ;;  %p8830_p7 = pneg %p8444_p5 }
   0xe   : > { %p8837_p11 = scmp.lt.s32.totalorder %s8828_s30, %s8828_s30 }
   0xf   : > { %p8831_p8 = pnand %p8830_p7, %p8829_p6 }
  0x10   : > { %p8838_p12 = por %p8837_p11, %p8836_p10 }
  0x11   : > { %p8832_p9 = pneg %p8831_p8 }
  0x13   : > { %p8839_p13 = pnand %p8838_p12, %p8832_p9 }
  0x15   : > { %8842 = shalt.err (!%p8839_p13)
}
  0x16   : > { %s8855_s18 = smov [#allocation4]   ;;  %528 = sbr.rel (%p8975_p2) target bundleno = 2723 (0xaa3), region = 88 }
  0x17   : > { %8446 = dma.vmem_to_smem (!%p8444_p5), %s450_s29, 32, %s8855_s18, [#allocation5]  }
  0x1d   : > { %8848 = dma.done.wait (%p8447_p3), [#allocation5], 32  }
  0x1e   : > { %8850 = vsyncadd (%p8447_p3), [#allocation5], 4294967264 }
  0x1f   : > { %534 = sfence }
  0x20   : > { %p592_p0 = scmp.lt.s32.totalorder %s8968_s25, 1  ;;  %v616_v0 = vlaneseq  ;;  %s7724_s19 = sshll.u32 %s8968_s25, 7  ;;  %vm13046_vm0 = vcmask 72704   ;;  %vm1343_vm1 = vcmask 68608   ;;  %v13033_v1 = vmov 0  }
  0x21   : > { %s8992_s1 = sld [smem:[#allocation4 + %s7724_s19]]  ;;  %s1099_s20 = sadd.s32 1, %s7724_s19  ;;  %1344 = vst.msk [vmem:[#allocation2 + $0x8] sm:$0xf] %vm1343_vm1, %v13033_v1  ;;  %vm1345_vm2 = vcmask 72708   ;;  %vm8857_vm5 = vmmov 1  }
  0x22   : > { %1342 = vst.msk [vmem:[#allocation2] sm:$0xff] %vm13046_vm0, %v13033_v1  ;;  %1347 = vst.msk [vmem:[#allocation2 + $0x90] sm:$0xff] %vm13046_vm0, %v13033_v1  ;;  %s13753_s25 = smov (!%p592_p0, %s8968_s25), 1  ;;  %v9003_v2 = vshrl.u32 %v616_v0, 7  ;;  %v1102_v3 = vand.u32 127, %v616_v0  ;;  %s1100_s21 = sld [smem:[#allocation4 + %s1099_s20]] }
  0x23   : > { %1346 = vst.msk [vmem:[#allocation2 + $0x88] sm:$0xf0] %vm1345_vm2, %v13033_v1  ;;  %s7935_s22 = sshll.u32 %s13753_s25, 8  ;;  %s13155_s27 = sld [smem:[#allocation61_spill]]  ;;  %vm9022_vm6 = vmpackc.low %vm8857_vm5, %vm8857_vm5  ;;  %vm13028_vm8 = vcmask 1043456  }
  0x24   : > { %v653_v4 = vand.u32 15, %v9003_v2  ;;  %v619_v5 = vadd.s32 16, %v9003_v2  ;;  %v621_v6 = vadd.s32 32, %v9003_v2  ;;  %v618_v7 = vadd.s32 8, %v9003_v2  ;;  %s8858_s29 = smov 27   ;;  %s8859_s0 = smov 54  }
  0x25   : > { %v620_v8 = vadd.s32 24, %v9003_v2  ;;  %vm1104_vm4 = vcmp.lt.s32.totalorder %v1102_v3, 6  ;;  %vm1103_vm7 = vcmp.lt.s32.totalorder %v1102_v3, 3  ;;  %v9038_v25 = vsel %vm9022_vm6, 65537, %v13033_v1  ;;  %s8860_s30 = smov 9   ;;  %s8861_s18 = smov 18  }
  0x26   : > { %vm9018_vm3 = vcmp.ge.s32.totalorder %v653_v4, 1  ;;  %v667_v11 = vand.u32 15, %v619_v5  ;;  %v681_v15 = vand.u32 15, %v621_v6  ;;  %v660_v16 = vand.u32 15, %v618_v7  ;;  %s8862_s19 = smov 45   ;;  %s8864_s20 = smov 63  }
  0x27   : > { %v1105_v12 = vstv %s8992_s1  ;;  %v674_v17 = vand.u32 15, %v620_v8  ;;  %vm1511_vm10 = vmpackc.low %vm9018_vm3, %vm9018_vm3  ;;  %v9055_v31 = vadd.s32 40, %v9003_v2  ;;  %v9058_v32 = vadd.s32 56, %v9003_v2  ;;  %s8863_s1 = smov 36   ;;  %s13018_s26 = sshll.u32 %s13753_s25, 4 }
  0x28   : > { %v1106_v21 = vstv %s1100_s21  ;;  %vm9040_vm9 = vcmp.ge.s32.totalorder %v667_v11, 1  ;;  %vm9050_vm11 = vcmp.ge.s32.totalorder %v681_v15, 1  ;;  %v1543_v36 = vsel %vm1511_vm10, 65537, %v13033_v1  ;;  %s8865_s21 = smov 72   ;;  %s609_s23 = scalar_lea.vmem %s12993_s4, %s13018_s26 }
  0x29   : > { %s9013_s28 = scalar_lea.vmem %s13155_s27, %s7935_s22  ;;  %v1107_v27 = vsel %vm1104_vm4, %v1105_v12, %v1106_v21  ;;  %vm9066_vm12 = vcmp.lt.s32.totalorder %v660_v16, 15  ;;  %vm9070_vm13 = vcmp.lt.s32.totalorder %v674_v17, 15  ;;  %vm1513_vm14 = vmpackc.low %vm9040_vm9, %vm9040_vm9  ;;  %v7734_v57 = vcombine.low %v1543_v36, %v9038_v25  ;;  %v9099_v0 = vld [vmem:[#allocation2] sm:$0xf0] }
  0x2a   : > { %v1109_v13 = vld [vmem:[%s9013_s28] sm:$0xff]  ;;  %v1110_v14 = vld [vmem:[%s9013_s28 + $0x8] sm:$0xff]  ;;  %v1111_v18 = vld [vmem:[%s9013_s28 + $0x10] sm:$0xff]  ;;  %v9061_v33 = vsel %vm1103_vm7, 1.0, %v1107_v27  ;;  %v1545_v58 = vsel %vm1513_vm14, 65537, %v13033_v1 }
  0x2b   : > { %v1112_v19 = vld [vmem:[%s9013_s28 + $0x18] sm:$0xff]  ;;  %v1113_v20 = vld [vmem:[%s9013_s28 + $0x20] sm:$0xff]  ;;  %v1114_v22 = vld [vmem:[%s9013_s28 + $0x28] sm:$0xff]  ;;  %v1141_v39 = vmul.f32 %v1109_v13, %v9061_v33  ;;  %v1142_v40 = vmul.f32 %v1110_v14, %v9061_v33  ;;  %v1143_v41 = vmul.f32 %v1111_v18, %v9061_v33  ;;  %vm13040_vm15 = vsmask.f32 3328 }
  0x2c   : > { %v1135_v23 = vld [vmem:[%s9013_s28 + $0xd0] sm:$0xff]  ;;  %v1136_v24 = vld [vmem:[%s9013_s28 + $0xd8] sm:$0xff]  ;;  %v1137_v28 = vld [vmem:[%s9013_s28 + $0xe0] sm:$0xff]  ;;  %v1144_v42 = vmul.f32 %v1112_v19, %v9061_v33  ;;  %v1145_v43 = vmul.f32 %v1113_v20, %v9061_v33  ;;  %v1146_v44 = vmul.f32 %v1114_v22, %v9061_v33  ;;  %v1625_v5 = vshrl.u32 %v7734_v57, 16 }
  0x2d   : > { %v1138_v29 = vld [vmem:[%s9013_s28 + $0xe8] sm:$0xff]  ;;  %v1139_v34 = vld [vmem:[%s9013_s28 + $0xf0] sm:$0xff]  ;;  %v1140_v35 = vld [vmem:[%s9013_s28 + $0xf8] sm:$0xff]  ;;  %v1167_v45 = vmul.f32 %v1135_v23, %v9061_v33  ;;  %v1168_v46 = vmul.f32 %v1136_v24, %v9061_v33  ;;  %v1169_v47 = vmul.f32 %v1137_v28, %v9061_v33  ;;  %v1173_v51 = vpack.c.bf16 %v1142_v40, %v1141_v39 }
  0x2e   : > { %v1170_v48 = vmul.f32 %v1138_v29, %v9061_v33  ;;  %v1171_v49 = vmul.f32 %v1139_v34, %v9061_v33  ;;  %v1172_v50 = vmul.f32 %v1140_v35, %v9061_v33  ;;  %v1174_v52 = vpack.c.bf16 %v1144_v42, %v1143_v41  ;;  %vm1515_vm3 = vmpackc.low %vm9050_vm11, %vm9050_vm11  ;;  %v1115_v59 = vld [vmem:[%s9013_s28 + $0x30] sm:$0xff]  ;;  %v1116_v11 = vld [vmem:[%s9013_s28 + $0x38] sm:$0xff] }
  0x2f   : > { %v1175_v53 = vpack.c.bf16 %v1146_v44, %v1145_v43  ;;  %v1186_v54 = vpack.c.bf16 %v1168_v46, %v1167_v45  ;;  %v1365_v60 = vrot.slane %v1173_v51, 4  ;;  %v1628_v6 = vshll.u32 %v7734_v57, 16 }
  0x30   : > { %v1187_v55 = vpack.c.bf16 %v1170_v48, %v1169_v47  ;;  %v1188_v56 = vpack.c.bf16 %v1172_v50, %v1171_v49  ;;  %v1366_v61 = vrot.slane %v1174_v52, 4  ;;  %v7735_v9 = vcombine.low %v1545_v58, %v9038_v25 }
  0x31   : > { %v9095_v62 = vrot.slane %v1175_v53, 4  ;;  %v9097_v63 = vrot.slane %v1186_v54, 4  ;;  %1413 = vst.msk [vmem:[#allocation2 + $0x8] sm:$0xf0] %vm1345_vm2, %v1365_v60  ;;  %v1547_v10 = vsel %vm1515_vm3, 65537, %v13033_v1  ;;  %v1627_v14 = vrot.slane %v1625_v5, 4  ;;  %vm1870_vm2 = vmpackc.low %vm9070_vm13, %vm9070_vm13 }
  0x32   : > { %v1392_v3 = vrot.slane %v1187_v55, 4  ;;  %v1394_v4 = vrot.slane %v1188_v56, 4  ;;  %v1367_v8 = vsel %vm13028_vm8, %v1365_v60, %v1366_v61  ;;  %v1630_v15 = vrot.slane %v1628_v6, 5 }
  0x33   : > { %v1369_v7 = vsel %vm13028_vm8, %v1366_v61, %v9095_v62  ;;  %1414 = vst.msk [vmem:[#allocation2 + $0x10] sm:$0xff] %vm13046_vm0, %v1367_v8  ;;  %v1633_v16 = vshrl.u32 %v7735_v9, 16  ;;  %v1636_v17 = vshll.u32 %v7735_v9, 16  ;;  %v7736_v18 = vcombine.low %v1547_v10, %v9038_v25 }
  0x34   : > { %v1393_v12 = vsel %vm13028_vm8, %v9097_v63, %v1392_v3  ;;  %v1395_v13 = vsel %vm13028_vm8, %v1392_v3, %v1394_v4  ;;  %1429 = vst.msk [vmem:[#allocation2 + $0x88] sm:$0xf] %vm1343_vm1, %v1394_v4  ;;  %v1147_v19 = vmul.f32 %v1115_v59, %v9061_v33  ;;  %vm1868_vm1 = vmpackc.low %vm9066_vm12, %vm9066_vm12  ;;  %v9121_v20 = vor.u32 %v1630_v15, %v1627_v14 }
  0x35   : > { %1415 = vst.msk [vmem:[#allocation2 + $0x18] sm:$0xff] %vm13046_vm0, %v1369_v7  ;;  %1427 = vst.msk [vmem:[#allocation2 + $0x78] sm:$0xff] %vm13046_vm0, %v1393_v12  ;;  %v1148_v21 = vmul.f32 %v1116_v11, %v9061_v33  ;;  %v2237_v22 = vshrl.u32 %v9099_v0, 16  ;;  %v2239_v23 = vshll.u32 %v9099_v0, 16  ;;  %v1635_v24 = vrot.slane %v1633_v16, 4 }
  0x36   : > { %1428 = vst.msk [vmem:[#allocation2 + $0x80] sm:$0xff] %vm13046_vm0, %v1395_v13  ;;  %v1638_v26 = vrot.slane %v1636_v17, 5  ;;  %v1642_v27 = vshrl.u32 %v7736_v18, 16  ;;  %v1645_v28 = vshll.u32 %v7736_v18, 16  ;;  %vm13009_vm4 = vcmp.ne.s16.totalorder %v9121_v20, 0 }
  0x37   : > { %v1176_v29 = vpack.c.bf16 %v1148_v21, %v1147_v19  ;;  %vm13073_vm5 = vsmask.f32 7424  ;;  %v2241_v30 = vrot.slane %v2239_v23, 1  ;;  %v1900_v34 = vsel %vm1868_vm1, 65537, %v13033_v1 }
  0x38   : > { %v1639_v35 = vor.u32 %v1638_v26, %v1635_v24  ;;  %v1644_v36 = vrot.slane %v1642_v27, 4  ;;  %v1647_v37 = vrot.slane %v1645_v28, 5  ;;  %v1902_v39 = vsel %vm1870_vm2, 65537, %v13033_v1  ;;  %v2157_v40 = vld [vmem:[#allocation2 + $0x8] sm:$0xf8] }
  0x39   : > { %v9132_v38 = vrot.slane %v1176_v29, 4  ;;  %v9134_v41 = vld [vmem:[#allocation2 + $0x8] sm:$0xff]  ;;  %v7750_v42 = vcombine.low %v9038_v25, %v1900_v34  ;;  %v7751_v43 = vcombine.low %v9038_v25, %v1902_v39  ;;  %vm13041_vm6 = vsmask.f32 4352 }
  0x3a   : > { %v688_v44 = vand.u32 15, %v9055_v31  ;;  %v2160_v45 = vsel %vm13009_vm4, %v2157_v40, 0  ;;  %v9141_v46 = vld [vmem:[#allocation2 + $0x10] sm:$0xff]  ;;  %v9145_v47 = vsel %vm13040_vm15, %v9121_v20, %v1639_v35  ;;  %v9147_v48 = vor.u32 %v1647_v37, %v1644_v36  ;;  %v2177_v14 = vld [vmem:[#allocation2 + $0x8] sm:$0xf0] }
  0x3b   : > { %v2196_v49 = vld [vmem:[#allocation2 + $0x10] sm:$0xf8]  ;;  %v2244_v50 = vshll.u32 %v9134_v41, 16  ;;  %2507 = vrot.lane.b32.xlu0 %v2160_v45, %s8858_s29  ;;  %vm13008_vm7 = vcmp.ne.s16.totalorder %v9145_v47, 0  ;;  %v1371_v51 = vsel %vm13028_vm8, %v9095_v62, %v9132_v38  ;;  %v1981_v52 = vshrl.u32 %v7750_v42, 16 }
  0x3c   : > { %v9152_v31 = vld [vmem:[#allocation2 + $0x18] sm:$0xff]  ;;  %v702_v53 = vand.u32 15, %v9058_v32  ;;  %v2161_v54 = vsel %vm13008_vm7, %v9141_v46, 0  ;;  %v9163_v55 = vsel %vm13040_vm15, %v1639_v35, %v9147_v48  ;;  %v2199_v56 = vsel %vm13009_vm4, %v2196_v49, 0  ;;  %1416 = vst.msk [vmem:[#allocation2 + $0x20] sm:$0xff] %vm13046_vm0, %v1371_v51 }
  0x3d   : > { %13168 = vst [vmem:[#allocation7_spill] sm:$0xff] %v9163_v55  ;;  %v2242_v57 = vor.u32 %v2241_v30, %v2237_v22  ;;  %2509 = vrot.lane.b32.xlu1 %v2161_v54, %s8858_s29  ;;  %vm13007_vm9 = vcmp.ne.s16.totalorder %v9163_v55, 0  ;;  %v1983_v58 = vrot.slane %v1981_v52, 3  ;;  %v1984_v32 = vshll.u32 %v7750_v42, 16 }
  0x3e   : > { %v1989_v59 = vshrl.u32 %v7751_v43, 16  ;;  %v2162_v60 = vsel %vm13007_vm9, %v9152_v31, 0  ;;  %v9173_v61 = vrot.slane %v2244_v50, 1  ;;  %v1992_v62 = vshll.u32 %v7751_v43, 16 }
  0x3f   : > { %vm1070_vm10 = vcmp.lt.s32.totalorder %v688_v44, 15  ;;  %2511 = vrot.lane.b32.xlu0 %v2162_v60, %s8858_s29  ;;  %v1986_v3 = vrot.slane %v1984_v32, 4  ;;  %vm1072_vm12 = vcmp.lt.s32.totalorder %v702_v53, 15  ;;  %v2200_v5 = vsel %vm13008_vm7, %v9152_v31, 0  ;;  %v9237_v60 = vld [vmem:[#allocation2 + $0x10] sm:$0xf0] }
  0x40   : > { %v1991_v4 = vrot.slane %v1989_v59, 3  ;;  %vm1872_vm11 = vmpackc.low %vm1070_vm10, %vm1070_vm10  ;;  %v1994_v6 = vrot.slane %v1992_v62, 4  ;;  %v2247_v11 = vsel %vm13073_vm5, %v2242_v57, %v9173_v61  ;;  %v2544_v18 = vshll.u32 %v2177_v14, 16  ;;  %v1118_v62 = vld [vmem:[%s9013_s28 + $0x48] sm:$0xff] }
  0x41   : > { %v1904_v7 = vsel %vm1872_vm11, 65537, %v13033_v1  ;;  %vm1874_vm13 = vmpackc.low %vm1072_vm12, %vm1072_vm12  ;;  %2700 = vrot.lane.b32.xlu1 %v2199_v56, %s8859_s0  ;;  %v9181_v8 = vor.u32 %v1986_v3, %v1983_v58  ;;  %vm2422_vm1 = vcmask 1046528   ;;  %v2252_v36 = vshll.u32 %v9141_v46, 16  ;;  %v1117_v58 = vld [vmem:[%s9013_s28 + $0x40] sm:$0xff] }
  0x42   : > { %v7752_v9 = vcombine.low %v9038_v25, %v1904_v7  ;;  %v1906_v10 = vsel %vm1874_vm13, 65537, %v13033_v1  ;;  %v1995_v12 = vor.u32 %v1994_v6, %v1991_v4  ;;  %v2542_v43 = vshrl.u32 %v2177_v14, 16 }
  0x43   : > { %v7753_v13 = vcombine.low %v9038_v25, %v1906_v10  ;;  %2702 = vrot.lane.b32.xlu0 %v2200_v5, %s8859_s0  ;;  %v9189_v15 = vld [vmem:[#allocation2 + $0x20] sm:$0xff]  ;;  %vm13015_vm14 = vcmp.ne.s16.totalorder %v9181_v8, 0  ;;  %v2546_v44 = vrot.slane %v2544_v18, 1  ;;  %v2248_v49 = vshrl.u32 %v9134_v41, 16 }
  0x44   : > { %v1998_v16 = vshrl.u32 %v7752_v9, 16  ;;  %v2001_v17 = vshll.u32 %v7752_v9, 16  ;;  %v2201_v19 = vsel %vm13007_vm9, %v9189_v15, 0  ;;  %v9197_v21 = vsel %vm13041_vm6, %v9181_v8, %v1995_v12 }
  0x45   : > { %13169 = vst [vmem:[#allocation8_spill] sm:$0xff] %v9197_v21  ;;  %v2140_v22 = vsel %vm13015_vm14, %v9099_v0, 0  ;;  %v2007_v23 = vshrl.u32 %v7753_v13, 16  ;;  %2704 = vrot.lane.b32.xlu1 %v2201_v19, %s8859_s0  ;;  %vm13014_vm3 = vcmp.ne.s16.totalorder %v9197_v21, 0  ;;  %v2010_v30 = vshll.u32 %v7753_v13, 16 }
  0x46   : > { %v2423_v24 = vrot.slane %v2140_v22, 1  ;;  %v2000_v26 = vrot.slane %v1998_v16, 3  ;;  %v2003_v27 = vrot.slane %v2001_v17, 4  ;;  %v2141_v28 = vsel %vm13014_vm3, %v9134_v41, 0 }
  0x47   : > { %v2009_v29 = vrot.slane %v2007_v23, 3  ;;  %2371 = vrot.lane.b32.xlu0 %v2247_v11, %s8860_s30  ;;  %v2424_v34 = vrot.slane %v2141_v28, 1  ;;  %v2179_v35 = vsel %vm13015_vm14, %v2177_v14, 0  ;;  %v2012_v37 = vrot.slane %v2010_v30, 4 }
  0x48   : > { %v2004_v0 = vor.u32 %v2003_v27, %v2000_v26  ;;  %v2180_v39 = vsel %vm13014_vm3, %v9141_v46, 0  ;;  %v2616_v51 = vrot.slane %v2179_v35, 1  ;;  %v2254_v57 = vrot.slane %v2252_v36, 1  ;;  %v1119_v35 = vld [vmem:[%s9013_s28 + $0x50] sm:$0xff] }
  0x49   : > { %v2425_v40 = vsel %vm2422_vm1, %v2423_v24, %v2424_v34  ;;  %v9220_v45 = vor.u32 %v2012_v37, %v2009_v29  ;;  %v2617_v52 = vrot.slane %v2180_v39, 1  ;;  %v2547_v41 = vor.u32 %v2546_v44, %v2542_v43  ;;  %v1120_v43 = vld [vmem:[%s9013_s28 + $0x58] sm:$0xff] }
  0x4a   : > { %v9216_v42 = vsel %vm13041_vm6, %v1995_v12, %v2004_v0  ;;  %2456 = vrot.lane.b32.xlu1 %v2425_v40, %s8861_s18  ;;  %v2256_v32 = vshrl.u32 %v9141_v46, 16  ;;  %v2260_v59 = vshll.u32 %v9152_v31, 16  ;;  %v2250_v6 = vor.u32 %v2248_v49, %v9173_v61 }
  0x4b   : > { %13170 = vst [vmem:[#allocation9_spill] sm:$0xff] %v9216_v42  ;;  %vm13013_vm2 = vcmp.ne.s16.totalorder %v9216_v42, 0  ;;  %v9228_v54 = vsel %vm13041_vm6, %v2004_v0, %v9220_v45  ;;  %v2618_v7 = vsel %vm2422_vm1, %v2616_v51, %v2617_v52  ;;  %v2264_v10 = vshrl.u32 %v9152_v31, 16 }
  0x4c   : > { %v2142_v50 = vsel %vm13013_vm2, %v9141_v46, 0  ;;  %13171 = vst [vmem:[#allocation10_spill] sm:$0xff] %v9228_v54  ;;  %v2181_v56 = vsel %vm13013_vm2, %v9152_v31, 0  ;;  %vm13010_vm10 = vcmp.ne.s16.totalorder %v9228_v54, 0  ;;  %v2268_v12 = vshll.u32 %v9189_v15, 16 }
  0x4d   : > { %v2426_v53 = vrot.slane %v2142_v50, 1  ;;  %v9244_v4 = vsel %vm13010_vm10, %v9152_v31, 0  ;;  %v9249_v5 = vsel %vm13010_vm10, %v9189_v15, 0  ;;  %v2619_v9 = vrot.slane %v2181_v56, 1 }
  0x4e   : > { %v2428_v46 = vrot.slane %v9244_v4, 1  ;;  %v2621_v11 = vrot.slane %v9249_v5, 1  ;;  %v1149_v13 = vmul.f32 %v1117_v58, %v9061_v33  ;;  %v1150_v14 = vmul.f32 %v1118_v62, %v9061_v33 }
  0x4f   : > { %v2427_v3 = vsel %vm2422_vm1, %v2424_v34, %v2426_v53  ;;  %v2258_v16 = vor.u32 %v2256_v32, %v2254_v57  ;;  %v9263_v17 = vrot.slane %v2260_v59, 1  ;;  %v2548_v18 = vsel %vm13073_vm5, %v2547_v41, %v2254_v57 }
  0x50   : > { %2458 = vrot.lane.b32.xlu0 %v2427_v3, %s8861_s18  ;;  %v2429_v61 = vsel %vm2422_vm1, %v2426_v53, %v2428_v46  ;;  %v2255_v19 = vsel %vm13073_vm5, %v2250_v6, %v2254_v57  ;;  %v2737_v22 = vshll.u32 %v9237_v60, 16  ;;  %v1177_v23 = vpack.c.bf16 %v1150_v14, %v1149_v13 }
  0x51   : > { %2460 = vrot.lane.b32.xlu1 %v2429_v61, %s8861_s18  ;;  %v2620_v24 = vsel %vm2422_vm1, %v2617_v52, %v2619_v9  ;;  %v2266_v26 = vor.u32 %v2264_v10, %v9263_v17  ;;  %v2735_v27 = vshrl.u32 %v9237_v60, 16  ;;  %v626_v28 = vadd.s32 72, %v9003_v2 }
  0x52   : > { %v2622_v29 = vsel %vm2422_vm1, %v2619_v9, %v2621_v11  ;;  %v2270_v30 = vrot.slane %v2268_v12, 1  ;;  %v9277_v34 = vrot.slane %v1177_v23, 4  ;;  %v628_v0 = vadd.s32 88, %v9003_v2  ;;  %v1121_v12 = vld [vmem:[%s9013_s28 + $0x60] sm:$0xff] }
  0x53   : > { %v2272_v36 = vshrl.u32 %v9189_v15, 16  ;;  %v716_v37 = vand.u32 15, %v626_v28  ;;  %v623_v39 = vadd.s32 48, %v9003_v2  ;;  %v625_v40 = vadd.s32 64, %v9003_v2 }
  0x54   : > { %2649 = vrot.lane.b32.xlu0 %v2618_v7, %s8862_s19  ;;  %v2263_v44 = vsel %vm13073_vm5, %v2258_v16, %v9263_v17  ;;  %v2739_v49 = vrot.slane %v2737_v22, 1  ;;  %v1373_v50 = vsel %vm13028_vm8, %v9132_v38, %v9277_v34  ;;  %v730_v51 = vand.u32 15, %v628_v0 }
  0x55   : > { %2651 = vrot.lane.b32.xlu1 %v2620_v24, %s8862_s19  ;;  %1417 = vst.msk [vmem:[#allocation2 + $0x28] sm:$0xff] %vm13046_vm0, %v1373_v50  ;;  %vm1074_vm11 = vcmp.lt.s32.totalorder %v716_v37, 15  ;;  %v695_v52 = vand.u32 15, %v623_v39  ;;  %v709_v53 = vand.u32 15, %v625_v40  ;;  %v1151_v56 = vmul.f32 %v1119_v35, %v9061_v33  ;;  %v1122_v24 = vld [vmem:[%s9013_s28 + $0x68] sm:$0xff] }
  0x56   : > { %v9295_v57 = vsel %vm13073_vm5, %v2266_v26, %v2270_v30  ;;  %v9300_v58 = vsel %vm13015_vm14, %v9237_v60, 0  ;;  %vm1876_vm12 = vmpackc.low %vm1074_vm11, %vm1074_vm11  ;;  %vm1076_vm13 = vcmp.lt.s32.totalorder %v730_v51, 15  ;;  %v1152_v38 = vmul.f32 %v1120_v43, %v9061_v33 }
  0x57   : > { %v9306_v41 = vsel %vm13014_vm3, %v9152_v31, 0  ;;  %v1908_v32 = vsel %vm1876_vm12, 65537, %v13033_v1  ;;  %vm1878_vm9 = vmpackc.low %vm1076_vm13, %vm1076_vm13  ;;  %vm1039_vm7 = vcmp.ge.s32.totalorder %v695_v52, 1  ;;  %vm9309_vm4 = vcmp.ge.s32.totalorder %v709_v53, 1 }
  0x58   : > { %2653 = vrot.lane.b32.xlu0 %v2622_v29, %s8862_s19  ;;  %v2274_v60 = vor.u32 %v2272_v36, %v2270_v30  ;;  %v7754_v62 = vcombine.low %v9038_v25, %v1908_v32  ;;  %v1910_v3 = vsel %vm1878_vm9, 65537, %v13033_v1  ;;  %vm1517_vm11 = vmpackc.low %vm1039_vm7, %vm1039_vm7  ;;  %v1178_v31 = vpack.c.bf16 %v1152_v38, %v1151_v56 }
  0x59   : > { %2565 = vrot.lane.b32.xlu1 %v2548_v18, %s8863_s1  ;;  %v2740_v6 = vor.u32 %v2739_v49, %v2735_v27  ;;  %v2809_v7 = vrot.slane %v9300_v58, 1  ;;  %v7755_v9 = vcombine.low %v9038_v25, %v1910_v3  ;;  %v1549_v10 = vsel %vm1517_vm11, 65537, %v13033_v1  ;;  %vm1519_vm12 = vmpackc.low %vm9309_vm4, %vm9309_vm4 }
  0x5a   : > { %v2810_v13 = vrot.slane %v9306_v41, 1  ;;  %v2016_v14 = vshrl.u32 %v7754_v62, 16  ;;  %v2019_v61 = vshll.u32 %v7754_v62, 16  ;;  %v1551_v16 = vsel %vm1519_vm12, 65537, %v13033_v1 }
  0x5b   : > { %v9329_v18 = vsel %vm13013_vm2, %v9189_v15, 0  ;;  %v2028_v22 = vshll.u32 %v7755_v9, 16  ;;  %v7737_v23 = vcombine.low %v1549_v10, %v9038_v25  ;;  %v7738_v29 = vcombine.low %v1551_v16, %v9038_v25 }
  0x5c   : > { %2373 = vrot.lane.b32.xlu0 %v2255_v19, %s8860_s30  ;;  %v2025_v19 = vshrl.u32 %v7755_v9, 16  ;;  %v9334_v26 = vld [vmem:[#allocation2 + $0x28] sm:$0xff]  ;;  %v2018_v27 = vrot.slane %v2016_v14, 3  ;;  %v2021_v28 = vrot.slane %v2019_v61, 4  ;;  %v1374_v30 = vrot.slane %v1178_v31, 4 }
  0x5d   : > { %2375 = vrot.lane.b32.xlu1 %v2263_v44, %s8860_s30  ;;  %v2741_v0 = vsel %vm13073_vm5, %v2740_v6, %v9263_v17  ;;  %v2276_v35 = vshll.u32 %v9334_v26, 16  ;;  %v2030_v37 = vrot.slane %v2028_v22, 4  ;;  %v1153_v40 = vmul.f32 %v1121_v12, %v9061_v33 }
  0x5e   : > { %v2027_v36 = vrot.slane %v2025_v19, 3  ;;  %v2022_v39 = vor.u32 %v2021_v28, %v2018_v27  ;;  %v1154_v43 = vmul.f32 %v1122_v24, %v9061_v33  ;;  %v630_v49 = vadd.s32 104, %v9003_v2 }
  0x5f   : > { %v9344_v50 = vrot.slane %v2276_v35, 1  ;;  %v1651_v52 = vshrl.u32 %v7737_v23, 16  ;;  %v9353_v17 = vsel %vm13010_vm10, %v9334_v26, 0  ;;  %v1660_v53 = vshrl.u32 %v7738_v29, 16 }
  0x60   : > { %2567 = vrot.lane.b32.xlu0 %v2263_v44, %s8863_s1  ;;  %v9346_v51 = vor.u32 %v2030_v37, %v2027_v36  ;;  %v1654_v44 = vshll.u32 %v7737_v23, 16  ;;  %v1375_v56 = vsel %vm13028_vm8, %v9277_v34, %v1374_v30  ;;  %v2812_v58 = vrot.slane %v9329_v18, 1 }
  0x61   : > { %2569 = vrot.lane.b32.xlu1 %v9295_v57, %s8863_s1  ;;  %v9361_v38 = vsel %vm13041_vm6, %v9220_v45, %v2022_v39  ;;  %v1663_v41 = vshll.u32 %v7738_v29, 16  ;;  %1418 = vst.msk [vmem:[#allocation2 + $0x30] sm:$0xff] %vm13046_vm0, %v1375_v56  ;;  %v9366_v32 = vsel %vm13073_vm5, %v2274_v60, %v9344_v50  ;;  %v1179_v34 = vpack.c.bf16 %v1154_v43, %v1153_v40  ;;  %v1123_v40 = vld [vmem:[%s9013_s28 + $0x70] sm:$0xff]  ;;  %v1124_v43 = vld [vmem:[%s9013_s28 + $0x78] sm:$0xff] }
  0x62   : > { %13174 = vst [vmem:[#allocation11_spill] sm:$0xff] %v9361_v38  ;;  %v9370_v59 = vsel %vm13041_vm6, %v2022_v39, %v9346_v51  ;;  %v744_v62 = vand.u32 15, %v630_v49  ;;  %v2814_v3 = vrot.slane %v9353_v17, 1  ;;  %v632_v31 = vadd.s32 120, %v9003_v2 }
  0x63   : > { %13175 = vst [vmem:[#allocation12_spill] sm:$0xff] %v9370_v59  ;;  %vm13012_vm4 = vcmp.ne.s16.totalorder %v9361_v38, 0  ;;  %v1653_v45 = vrot.slane %v1651_v52, 4  ;;  %v1656_v6 = vrot.slane %v1654_v44, 5  ;;  %v1662_v9 = vrot.slane %v1660_v53, 4 }
  0x64   : > { %2758 = vrot.lane.b32.xlu0 %v2741_v0, %s8864_s20  ;;  %v2811_v60 = vsel %vm2422_vm1, %v2809_v7, %v2810_v13  ;;  %vm13011_vm7 = vcmp.ne.s16.totalorder %v9370_v59, 0  ;;  %v1665_v10 = vrot.slane %v1663_v41, 5  ;;  %v2813_v12 = vsel %vm2422_vm1, %v2810_v13, %v2812_v58  ;;  %v1125_v41 = vld [vmem:[%s9013_s28 + $0x80] sm:$0xff] }
  0x65   : > { %2760 = vrot.lane.b32.xlu1 %v9295_v57, %s8864_s20  ;;  %v9382_v14 = vrot.slane %v1179_v34, 4  ;;  %vm9384_vm9 = vcmp.lt.s32.totalorder %v744_v62, 15  ;;  %v2144_v16 = vsel %vm13012_vm4, %v9189_v15, 0  ;;  %v758_v18 = vand.u32 15, %v632_v31  ;;  %v1126_v34 = vld [vmem:[%s9013_s28 + $0x88] sm:$0xff] }
  0x66   : > { %v1657_v7 = vor.u32 %v1656_v6, %v1653_v45  ;;  %v9398_v13 = vsel %vm13011_vm7, %v9334_v26, 0  ;;  %v9400_v22 = vor.u32 %v1665_v10, %v1662_v9  ;;  %vm1880_vm13 = vmpackc.low %vm9384_vm9, %vm9384_vm9  ;;  %v2815_v23 = vsel %vm2422_vm1, %v2812_v58, %v2814_v3  ;;  %v1127_v58 = vld [vmem:[%s9013_s28 + $0x90] sm:$0xff] }
  0x67   : > { %v1377_v19 = vsel %vm13028_vm8, %v1374_v30, %v9382_v14  ;;  %v2430_v24 = vrot.slane %v2144_v16, 1  ;;  %v627_v27 = vadd.s32 80, %v9003_v2  ;;  %vm9410_vm11 = vcmp.lt.s32.totalorder %v758_v18, 15 }
  0x68   : > { %2762 = vrot.lane.b32.xlu0 %v9366_v32, %s8864_s20  ;;  %1419 = vst.msk [vmem:[#allocation2 + $0x38] sm:$0xff] %vm13046_vm0, %v1377_v19  ;;  %v2432_v29 = vrot.slane %v9398_v13, 1  ;;  %v9419_v30 = vsel %vm13040_vm15, %v9147_v48, %v1657_v7  ;;  %v9421_v0 = vld [vmem:[#allocation2 + $0x30] sm:$0xff]  ;;  %v1912_v35 = vsel %vm1880_vm13, 65537, %v13033_v1  ;;  %v629_v36 = vadd.s32 96, %v9003_v2  ;;  %vm1882_vm12 = vmpackc.low %vm9410_vm11, %vm9410_vm11 }
  0x69   : > { %2842 = vrot.lane.b32.xlu1 %v2811_v60, %s8865_s21  ;;  %13180 = vst [vmem:[#allocation13_spill] sm:$0xff] %v9419_v30  ;;  %v9428_v37 = vsel %vm13040_vm15, %v1657_v7, %v9400_v22  ;;  %v723_v48 = vand.u32 15, %v627_v27  ;;  %vm13017_vm9 = vcmp.ne.s16.totalorder %v9419_v30, 0  ;;  %v2280_v39 = vshrl.u32 %v9334_v26, 16 }
  0x6a   : > { %13181 = vst [vmem:[#allocation14_spill] sm:$0xff] %v9428_v37  ;;  %vm13016_vm13 = vcmp.ne.s16.totalorder %v9428_v37, 0  ;;  %v2284_v4 = vshll.u32 %v9421_v0, 16  ;;  %v2433_v49 = vsel %vm2422_vm1, %v2430_v24, %v2432_v29  ;;  %v1914_v52 = vsel %vm1882_vm12, 65537, %v13033_v1 }
  0x6b   : > { %v737_v44 = vand.u32 15, %v629_v36  ;;  %v2163_v53 = vsel %vm13017_vm9, %v9189_v15, 0  ;;  %v2183_v56 = vsel %vm13012_vm4, %v9334_v26, 0  ;;  %vm9456_vm11 = vcmp.ge.s32.totalorder %v723_v48, 1 }
  0x6c   : > { %2844 = vrot.lane.b32.xlu0 %v2813_v12, %s8865_s21  ;;  %v2164_v62 = vsel %vm13016_vm13, %v9334_v26, 0  ;;  %v2282_v31 = vor.u32 %v2280_v39, %v9344_v50  ;;  %v1155_v45 = vmul.f32 %v1123_v40, %v9061_v33  ;;  %v1156_v15 = vmul.f32 %v1124_v43, %v9061_v33  ;;  %vm1521_vm12 = vmpackc.low %vm9456_vm11, %vm9456_vm11 }
  0x6d   : > { %2377 = vrot.lane.b32.xlu1 %v9295_v57, %s8860_s30  ;;  %v2431_v57 = vsel %vm2422_vm1, %v2428_v46, %v2430_v24  ;;  %v7756_v46 = vcombine.low %v9038_v25, %v1912_v35  ;;  %v2286_v6 = vrot.slane %v2284_v4, 1  ;;  %v9472_v9 = vsel %vm13011_vm7, %v9421_v0, 0 }
  0x6e   : > { %v7757_v10 = vcombine.low %v9038_v25, %v1914_v52  ;;  %vm9479_vm10 = vcmp.ge.s32.totalorder %v737_v44, 1  ;;  %v1157_v61 = vmul.f32 %v1125_v41, %v9061_v33  ;;  %v1158_v16 = vmul.f32 %v1126_v34, %v9061_v33  ;;  %v1128_v41 = vld [vmem:[%s9013_s28 + $0x98] sm:$0xff] }
  0x6f   : > { %v2034_v60 = vshrl.u32 %v7756_v46, 16  ;;  %v2037_v12 = vshll.u32 %v7756_v46, 16  ;;  %v2623_v18 = vrot.slane %v2183_v56, 1  ;;  %v2625_v7 = vrot.slane %v9472_v9, 1  ;;  %vm1523_vm11 = vmpackc.low %vm9479_vm10, %vm9479_vm10  ;;  %v9499_v4 = vld [vmem:[#allocation2 + $0x38] sm:$0xff] }
  0x70   : > { %2846 = vrot.lane.b32.xlu0 %v2815_v23, %s8865_s21  ;;  %v1180_v19 = vpack.c.bf16 %v1156_v15, %v1155_v45  ;;  %v9488_v23 = vsel %vm13073_vm5, %v2282_v31, %v2286_v6  ;;  %v2043_v24 = vshrl.u32 %v7757_v10, 16  ;;  %v2046_v27 = vshll.u32 %v7757_v10, 16 }
  0x71   : > { %2379 = vrot.lane.b32.xlu1 %v9366_v32, %s8860_s30  ;;  %v1553_v28 = vsel %vm1521_vm12, 65537, %v13033_v1  ;;  %v2036_v35 = vrot.slane %v2034_v60, 3  ;;  %v2039_v36 = vrot.slane %v2037_v12, 4  ;;  %v1181_v48 = vpack.c.bf16 %v1158_v16, %v1157_v61  ;;  %v8474_v61 = vld [vmem:[%s12997_s8] sm:$0xff]  }
  0x72   : > { %v2624_v39 = vsel %vm2422_vm1, %v2621_v11, %v2623_v18  ;;  %v7739_v46 = vcombine.low %v1553_v28, %v9038_v25  ;;  %v1555_v40 = vsel %vm1523_vm11, 65537, %v13033_v1  ;;  %v2288_v5 = vshrl.u32 %v9421_v0, 16 }
  0x73   : > { %v9513_v11 = vsel %vm13012_vm4, %v9421_v0, 0  ;;  %v2048_v52 = vrot.slane %v2046_v27, 4  ;;  %v2292_v44 = vshll.u32 %v9499_v4, 16  ;;  %v2202_v34 = vsel %vm13017_vm9, %v9334_v26, 0 }
  0x74   : > { %2462 = vrot.lane.b32.xlu0 %v2431_v57, %s8861_s18  ;;  %v1378_v57 = vrot.slane %v1180_v19, 4  ;;  %v2203_v31 = vsel %vm13016_vm13, %v9421_v0, 0  ;;  %v2816_v45 = vrot.slane %v9513_v11, 1  ;;  %v1669_v15 = vshrl.u32 %v7739_v46, 16 }
  0x75   : > { %2464 = vrot.lane.b32.xlu1 %v2433_v49, %s8861_s18  ;;  %v2045_v49 = vrot.slane %v2043_v24, 3  ;;  %v1672_v60 = vshll.u32 %v7739_v46, 16  ;;  %v634_v12 = vadd.s32 136, %v9003_v2  ;;  %v1159_v26 = vmul.f32 %v1127_v58, %v9061_v33  ;;  %v8475_v46 = vld [vmem:[%s12997_s8 + $0x8] sm:$0xff]   ;;  %v1129_v58 = vld [vmem:[%s9013_s28 + $0xa0] sm:$0xff] }
  0x76   : > { %v1379_v43 = vsel %vm13028_vm8, %v9382_v14, %v1378_v57  ;;  %v2626_v14 = vsel %vm2422_vm1, %v2623_v18, %v2625_v7  ;;  %v1160_v50 = vmul.f32 %v1128_v41, %v9061_v33  ;;  %v2290_v16 = vor.u32 %v2288_v5, %v2286_v6  ;;  %v9578_v5 = vld [vmem:[%s12994_s5] sm:$0xff]   ;;  %v1130_v41 = vld [vmem:[%s9013_s28 + $0xa8] sm:$0xff] }
  0x77   : > { %1420 = vst.msk [vmem:[#allocation2 + $0x40] sm:$0xff] %vm13046_vm0, %v1379_v43  ;;  %v9535_v10 = vor.u32 %v2048_v52, %v2045_v49  ;;  %v9544_v18 = vrot.slane %v2292_v44, 1  ;;  %v9549_v19 = vsel %vm13011_vm7, %v9499_v4, 0  ;;  %v2817_v11 = vsel %vm2422_vm1, %v2814_v3, %v2816_v45 }
  0x78   : > { %2513 = vrot.lane.b32.xlu0 %v2163_v53, %s8858_s29  ;;  %v2040_v53 = vor.u32 %v2039_v36, %v2036_v35  ;;  %v636_v35 = vadd.s32 152, %v9003_v2  ;;  %v1671_v36 = vrot.slane %v1669_v15, 4  ;;  %v2818_v43 = vrot.slane %v9549_v19, 1  ;;  %v1269_v15 = vld [vmem:[%s609_s23 + $0x8] sm:$0xff] }
  0x79   : > { %2515 = vrot.lane.b32.xlu1 %v2164_v62, %s8858_s29  ;;  %v7740_v62 = vcombine.low %v1555_v40, %v9038_v25  ;;  %v9571_v40 = vsel %vm13073_vm5, %v2290_v16, %v9544_v18  ;;  %v2296_v13 = vshrl.u32 %v9499_v4, 16  ;;  %vm8867_vm13 = vmmov 0  }
  0x7a   : > { %v9553_v24 = vsel %vm13041_vm6, %v9346_v51, %v2040_v53  ;;  %v9562_v6 = vsel %vm13041_vm6, %v2040_v53, %v9535_v10  ;;  %v772_v51 = vand.u32 15, %v634_v12  ;;  %v2819_v3 = vsel %vm2422_vm1, %v2816_v45, %v2818_v43 }
  0x7b   : > { %13186 = vst [vmem:[#allocation15_spill] sm:$0xff] %v9553_v24  ;;  %v1678_v27 = vshrl.u32 %v7740_v62, 16  ;;  %v1681_v28 = vshll.u32 %v7740_v62, 16  ;;  %vm13020_vm10 = vcmp.ne.s16.totalorder %v9553_v24, 0  ;;  %13187 = vst [vmem:[#allocation16_spill] sm:$0xff] %v9562_v6  ;;  %vm13019_vm12 = vcmp.ne.s16.totalorder %v9562_v6, 0 }
  0x7c   : > { %2571 = vrot.lane.b32.xlu0 %v9366_v32, %s8863_s1  ;;  %v9505_v32 = vrot.slane %v1181_v48, 4  ;;  %v13022_v48 = vmov 0.0   ;;  %v2146_v44 = vsel %vm13020_vm10, %v9421_v0, 0  ;;  %vm9589_vm11 = vcmp.lt.s32.totalorder %v772_v51, 15 }
  0x7d   : > { %2573 = vrot.lane.b32.xlu1 %v9488_v23, %s8863_s1  ;;  %8187 = vmatprep.subr.bf16.mxu1 %v13022_v48  ;;  %v1680_v49 = vrot.slane %v1678_v27, 4  ;;  %v1683_v52 = vrot.slane %v1681_v28, 5  ;;  %v9603_v62 = vsel %vm13019_vm12, %v9499_v4, 0  ;;  %vm1884_vm4 = vmpackc.low %vm9589_vm11, %vm9589_vm11  ;;  %v631_v45 = vadd.s32 112, %v9003_v2 }
  0x7e   : > { %v1381_v56 = vsel %vm13028_vm8, %v1378_v57, %v9505_v32  ;;  %v1674_v57 = vrot.slane %v1672_v60, 5  ;;  %8177 = vmatprep.subr.bf16.mxu0 %v13022_v48  ;;  %8188 = vmatpush3.bf16.msra.mxu1 %v8474_v61  ;;  %v633_v12 = vadd.s32 128, %v9003_v2  ;;  %v2436_v61 = vrot.slane %v9603_v62, 1  ;;  %v9639_v16 = vld [vmem:[#allocation2 + $0x40] sm:$0xff] }
  0x7f   : > { %1421 = vst.msk [vmem:[#allocation2 + $0x48] sm:$0xff] %vm13046_vm0, %v1381_v56  ;;  %8189 = vmatprep.subr.bf16.mxu1 %v13022_v48  ;;  %v1916_v27 = vsel %vm1884_vm4, 65537, %v13033_v1  ;;  %v751_v28 = vand.u32 15, %v631_v45  ;;  %v2300_v51 = vshll.u32 %v9639_v16, 16  ;;  %8191 = vmatprep.mubr.msk.bf16.mxu1 %vm8867_vm13, %v13022_v48  ;;  %vm13021_vm9 = vcmask 261120  }
  0x80   : > { %2655 = vrot.lane.b32.xlu0 %v2624_v39, %s8862_s19  ;;  %v1182_v39 = vpack.c.bf16 %v1160_v50, %v1159_v26  ;;  %v1675_v53 = vor.u32 %v1674_v57, %v1671_v36  ;;  %v1161_v50 = vmul.f32 %v1129_v58, %v9061_v33  ;;  %v9688_v58 = vsel %vm13019_vm12, %v9639_v16, 0  ;;  %5347 = vst.msk [vmem:[#allocation3] sm:$0xff] %vm13021_vm9, %v13033_v1 }
  0x81   : > { %2657 = vrot.lane.b32.xlu1 %v2626_v14, %s8862_s19  ;;  %v786_v14 = vand.u32 15, %v636_v35  ;;  %v765_v35 = vand.u32 15, %v633_v12  ;;  %5352 = vst.msk [vmem:[#allocation3 + $0x90] sm:$0xff] %vm13021_vm9, %v13033_v1  ;;  %8183 = vmatprep.mubr.msk.bf16.mxu0 %vm8867_vm13, %v13022_v48  ;;  %vm3407_vm13 = vcmask 1040384  }
  0x82   : > { %v1382_v17 = vrot.slane %v1182_v39, 4  ;;  %8190 = vmatpush3.bf16.msra.mxu1 %v8475_v46  ;;  %v9613_v60 = vsel %vm13040_vm15, %v9400_v22, %v1675_v53  ;;  %v1162_v22 = vmul.f32 %v1130_v41, %v9061_v33  ;;  %v7758_v39 = vcombine.low %v9038_v25, %v1916_v27 }
  0x83   : > { %8195 = vmatprep.subr.bf16.mxu1 %v9578_v5  ;;  %vm9607_vm7 = vcmp.lt.s32.totalorder %v786_v14, 15  ;;  %13192 = vst [vmem:[#allocation17_spill] sm:$0xff] %v9613_v60  ;;  %vm13039_vm2 = vcmp.ne.s16.totalorder %v9613_v60, 0  ;;  %v3409_v19 = vsel %vm3407_vm13, 65535, %v13033_v1 }
  0x84   : > { %2706 = vrot.lane.b32.xlu0 %v2202_v34, %s8859_s0  ;;  %v2434_v34 = vrot.slane %v2146_v44, 1  ;;  %v1383_v26 = vsel %vm13028_vm8, %v9505_v32, %v1382_v17  ;;  %vm1886_vm11 = vmpackc.low %vm9607_vm7, %vm9607_vm7  ;;  %v1183_v36 = vpack.c.bf16 %v1162_v22, %v1161_v50  ;;  %v2165_v46 = vsel %vm13039_vm2, %v9421_v0, 0  ;;  %v8477_v22 = vld [vmem:[%s12994_s5 + $0x8] sm:$0xff]  }
  0x85   : > { %2708 = vrot.lane.b32.xlu1 %v2203_v31, %s8859_s0  ;;  %v9605_v31 = vor.u32 %v1683_v52, %v1680_v49  ;;  %1422 = vst.msk [vmem:[#allocation2 + $0x50] sm:$0xff] %vm13046_vm0, %v1383_v26  ;;  %v2185_v49 = vsel %vm13020_vm10, %v9499_v4, 0  ;;  %vm9669_vm7 = vcmp.ge.s32.totalorder %v751_v28, 1  ;;  %v2298_v44 = vor.u32 %v2296_v13, %v9544_v18  ;;  %v1268_v18 = vld [vmem:[%s609_s23] sm:$0xff] }
  0x86   : > { %v2437_v57 = vsel %vm2422_vm1, %v2434_v34, %v2436_v61  ;;  %v2052_v41 = vshrl.u32 %v7758_v39, 16  ;;  %v2627_v45 = vrot.slane %v2185_v49, 1  ;;  %vm1525_vm3 = vmpackc.low %vm9669_vm7, %vm9669_vm7  ;;  %v2629_v26 = vrot.slane %v9688_v58, 1  ;;  %v9708_v27 = vld [vmem:[#allocation2 + $0x48] sm:$0xff]  ;;  %v8478_v49 = vld [vmem:[%s12994_s5 + $0x10] sm:$0xff]  }
  0x87   : > { %v9637_v32 = vsel %vm13040_vm15, %v1675_v53, %v9605_v31  ;;  %v1270_v50 = vpack.c.bf16 %v1269_v15, %v1268_v18  ;;  %v2308_v9 = vshll.u32 %v9708_v27, 16  ;;  %v2204_v53 = vsel %vm13039_vm2, %v9499_v4, 0 }
  0x88   : > { %2764 = vrot.lane.b32.xlu0 %v9488_v23, %s8864_s20  ;;  %13193 = vst [vmem:[#allocation18_spill] sm:$0xff] %v9637_v32  ;;  %vm13031_vm4 = vcmp.ne.s16.totalorder %v9637_v32, 0  ;;  %v2054_v28 = vrot.slane %v2052_v41, 3  ;;  %v2224_v18 = vsel %vm13020_vm10, %v9639_v16, 0 }
  0x89   : > { %2766 = vrot.lane.b32.xlu1 %v9571_v40, %s8864_s20  ;;  %v2166_v0 = vsel %vm13031_vm4, %v9499_v4, 0  ;;  %8192 = vmatmul.mubr.msk.bf16.vlgmr.msra.gmra.mrb[0].mxu1 %vm13021_vm9, %v1270_v50  ;;  %v2205_v41 = vsel %vm13031_vm4, %v9639_v16, 0  ;;  %v638_v4 = vadd.s32 168, %v9003_v2  ;;  %vm13219_vm4 = vcmp.ne.s16.totalorder %v9163_v55, 0 }
  0x8a   : > { %8196 = vmatpush3.bf16.msra.mxu1 %v9578_v5  ;;  %v2630_v5 = vsel %vm2422_vm1, %v2627_v45, %v2629_v26 }
  0x8b   : > { %8197 = vmatprep.subr.bf16.mxu1 %v8477_v22 }
  0x8c   : > { %2848 = vrot.lane.b32.xlu0 %v2817_v11, %s8865_s21  ;;  %v9658_v11 = vrot.slane %v1183_v36, 4  ;;  %v2628_v36 = vsel %vm2422_vm1, %v2625_v7, %v2627_v45  ;;  %v9761_v45 = vrot.slane %v2308_v9, 1 }
  0x8d   : > { %2381 = vrot.lane.b32.xlu1 %v9488_v23, %s8860_s30  ;;  %v2435_v23 = vsel %vm2422_vm1, %v2432_v29, %v2434_v34  ;;  %v1918_v29 = vsel %vm1886_vm11, 65537, %v13033_v1  ;;  %vm9678_vm11 = vcmp.ge.s32.totalorder %v765_v35, 1  ;;  %v2055_v34 = vshll.u32 %v7758_v39, 16  ;;  %v1132_v35 = vld [vmem:[%s9013_s28 + $0xb8] sm:$0xff] }
  0x8e   : > { %v7759_v52 = vcombine.low %v9038_v25, %v1918_v29  ;;  %v1385_v56 = vsel %vm13028_vm8, %v1382_v17, %v9658_v11  ;;  %vm1527_vm14 = vmpackc.low %vm9678_vm11, %vm9678_vm11  ;;  %v1557_v29 = vsel %vm1525_vm3, 65537, %v13033_v1  ;;  %v1164_v14 = vmul.f32 %v1132_v35, %v9061_v33  ;;  %8198 = vmatpush3.bf16.msra.mxu1 %v8477_v22 }
  0x8f   : > { %1423 = vst.msk [vmem:[#allocation2 + $0x58] sm:$0xff] %vm13046_vm0, %v1385_v56  ;;  %v2057_v13 = vrot.slane %v2055_v34, 4  ;;  %v7741_v7 = vcombine.low %v1557_v29, %v9038_v25  ;;  %8199 = vmatprep.subr.bf16.mxu1 %v8478_v49  ;;  %v2820_v29 = vrot.slane %v2224_v18, 1 }
  0x90   : > { %2850 = vrot.lane.b32.xlu0 %v2819_v3, %s8865_s21  ;;  %v2302_v3 = vrot.slane %v2300_v51, 1  ;;  %v2061_v17 = vshrl.u32 %v7759_v52, 16  ;;  %v2064_v12 = vshll.u32 %v7759_v52, 16  ;;  %v2304_v51 = vshrl.u32 %v9639_v16, 16 }
  0x91   : > { %2383 = vrot.lane.b32.xlu1 %v9571_v40, %s8860_s30 }
  0x92   : > { %v2063_v39 = vrot.slane %v2061_v17, 3  ;;  %v2306_v34 = vor.u32 %v2304_v51, %v2302_v3  ;;  %v1687_v17 = vshrl.u32 %v7741_v7, 16  ;;  %8200 = vmatpush3.bf16.msra.mxu1 %v8478_v49  ;;  %v8481_v49 = vld [vmem:[%s12994_s5 + $0x28] ss:$0 sps:$4 sm:$0x11]  }
  0x94   : > { %2466 = vrot.lane.b32.xlu0 %v2435_v23, %s8861_s18  ;;  %v9706_v23 = vsel %vm13073_vm5, %v2298_v44, %v2302_v3  ;;  %v8479_v3 = vld [vmem:[%s12994_s5 + $0x18] sm:$0xff]  }
  0x95   : > { %2468 = vrot.lane.b32.xlu1 %v2437_v57, %s8861_s18  ;;  %v1559_v57 = vsel %vm1527_vm14, 65537, %v13033_v1  ;;  %8201 = vmatprep.subr.bf16.mxu1 %v8479_v3 }
  0x96   : > { %v7742_v44 = vcombine.low %v1559_v57, %v9038_v25  ;;  %v1689_v57 = vrot.slane %v1687_v17, 4  ;;  %8202 = vmatpush3.bf16.msra.mxu1 %v8479_v3 }
  0x98   : > { %2517 = vrot.lane.b32.xlu0 %v2165_v46, %s8858_s29  ;;  %v2066_v46 = vrot.slane %v2064_v12, 4  ;;  %v1690_v12 = vshll.u32 %v7741_v7, 16  ;;  %v1696_v22 = vshrl.u32 %v7742_v44, 16 }
  0x99   : > { %2519 = vrot.lane.b32.xlu1 %v2166_v0, %s8858_s29  ;;  %v2058_v0 = vor.u32 %v2057_v13, %v2054_v28  ;;  %v1699_v28 = vshll.u32 %v7742_v44, 16 }
  0x9a   : > { %v9758_v15 = vor.u32 %v2066_v46, %v2063_v39  ;;  %v1692_v51 = vrot.slane %v1690_v12, 5  ;;  %v800_v39 = vand.u32 15, %v638_v4  ;;  %v8480_v46 = vld [vmem:[%s12994_s5 + $0x20] sm:$0xff]   ;;  %v1698_v9 = vrot.slane %v1696_v22, 4 }
  0x9b   : > { %v9770_v50 = vsel %vm13041_vm6, %v9535_v10, %v2058_v0  ;;  %v1701_v7 = vrot.slane %v1699_v28, 5  ;;  %8203 = vmatprep.subr.bf16.mxu1 %v8480_v46  ;;  %v637_v12 = vadd.s32 160, %v9003_v2 }
  0x9c   : > { %2575 = vrot.lane.b32.xlu0 %v9571_v40, %s8863_s1  ;;  %v1131_v40 = vld [vmem:[%s9013_s28 + $0xb0] sm:$0xff]  ;;  %13198 = vst [vmem:[#allocation19_spill] sm:$0xff] %v9770_v50  ;;  %v9781_v35 = vsel %vm13041_vm6, %v2058_v0, %v9758_v15  ;;  %vm13027_vm14 = vcmp.ne.s16.totalorder %v9770_v50, 0  ;;  %v1693_v44 = vor.u32 %v1692_v51, %v1689_v57  ;;  %vm9812_vm7 = vcmp.lt.s32.totalorder %v800_v39, 15  ;;  %8204 = vmatpush3.bf16.msra.mxu1 %v8480_v46 }
  0x9d   : > { %2577 = vrot.lane.b32.xlu1 %v9706_v23, %s8863_s1  ;;  %v1163_v52 = vmul.f32 %v1131_v40, %v9061_v33  ;;  %v9777_v40 = vsel %vm13019_vm12, %v9708_v27, 0  ;;  %13199 = vst [vmem:[#allocation20_spill] sm:$0xff] %v9781_v35  ;;  %vm13026_vm3 = vcmp.ne.s16.totalorder %v9781_v35, 0  ;;  %vm1888_vm11 = vmpackc.low %vm9812_vm7, %vm9812_vm7  ;;  %v9855_v51 = vld [vmem:[#allocation2 + $0x50] sm:$0xff]  ;;  %v793_v46 = vand.u32 15, %v637_v12 }
  0x9e   : > { %v9844_v28 = vsel %vm13040_vm15, %v9605_v31, %v1693_v44  ;;  %v1920_v31 = vsel %vm1888_vm11, 65537, %v13033_v1 }
  0x9f   : > { %v1184_v56 = vpack.c.bf16 %v1164_v14, %v1163_v52  ;;  %v2821_v52 = vsel %vm2422_vm1, %v2818_v43, %v2820_v29  ;;  %v2822_v14 = vrot.slane %v9777_v40, 1  ;;  %v9821_v43 = vsel %vm13026_vm3, %v9708_v27, 0  ;;  %13204 = vst [vmem:[#allocation21_spill] sm:$0xff] %v9844_v28 }
  0xa0   : > { %2659 = vrot.lane.b32.xlu0 %v2628_v36, %s8862_s19  ;;  %v640_v36 = vadd.s32 184, %v9003_v2  ;;  %v13025_v22 = vrot.slane %v9821_v43, 1  ;;  %vm13030_vm12 = vcmp.ne.s16.totalorder %v9844_v28, 0  ;;  %vm9889_vm10 = vcmp.ge.s32.totalorder %v793_v46, 1 }
  0xa1   : > { %2661 = vrot.lane.b32.xlu1 %v2630_v5, %s8862_s19  ;;  %v9772_v13 = vrot.slane %v1184_v56, 4  ;;  %v2148_v5 = vsel %vm13027_vm14, %v9639_v16, 0  ;;  %v9823_v56 = vor.u32 %v1701_v7, %v1698_v9  ;;  %v2823_v18 = vsel %vm2422_vm1, %v2820_v29, %v2822_v14  ;;  %v1133_v29 = vld [vmem:[%s9013_s28 + $0xc0] sm:$0xff]  ;;  %vm1531_vm9 = vmpackc.low %vm9889_vm10, %vm9889_vm10 }
  0xa2   : > { %v814_v0 = vand.u32 15, %v640_v36  ;;  %v2438_v17 = vrot.slane %v2148_v5, 1  ;;  %v1134_v36 = vld [vmem:[%s9013_s28 + $0xc8] sm:$0xff]  ;;  %v1165_v7 = vmul.f32 %v1133_v29, %v9061_v33 }
  0xa3   : > { %v1387_v10 = vsel %vm13028_vm8, %v9658_v11, %v9772_v13  ;;  %v9797_v11 = vsel %vm13073_vm5, %v2306_v34, %v9761_v45  ;;  %v3411_v34 = vand.u32 %v8481_v49, %v3409_v19  ;;  %v9853_v57 = vsel %vm13040_vm15, %v1693_v44, %v9823_v56 }
  0xa4   : > { %2710 = vrot.lane.b32.xlu0 %v2204_v53, %s8859_s0  ;;  %1424 = vst.msk [vmem:[#allocation2 + $0x60] sm:$0xff] %vm13046_vm0, %v1387_v10  ;;  %vm9835_vm13 = vcmp.lt.s32.totalorder %v814_v0, 15  ;;  %13205 = vst [vmem:[#allocation22_spill] sm:$0xff] %v9853_v57  ;;  %v2439_v39 = vsel %vm2422_vm1, %v2436_v61, %v2438_v17  ;;  %v1166_v49 = vmul.f32 %v1134_v36, %v9061_v33  ;;  %vm13029_vm11 = vcmp.ne.s16.totalorder %v9853_v57, 0 }
  0xa5   : > { %2712 = vrot.lane.b32.xlu1 %v2205_v41, %s8859_s0  ;;  %v635_v41 = vadd.s32 144, %v9003_v2  ;;  %8205 = vmatprep.subr.bf16.mxu1 %v3411_v34  ;;  %vm1890_vm7 = vmpackc.low %vm9835_vm13, %vm9835_vm13  ;;  %v2441_v62 = vsel %vm2422_vm1, %v2438_v17, %v13025_v22  ;;  %v2312_v61 = vshrl.u32 %v9708_v27, 16  ;;  %v7760_v0 = vcombine.low %v9038_v25, %v1920_v31 }
  0xa6   : > { %8206 = vmatpush3.bf16.msra.mxu1 %v3411_v34  ;;  %v1922_v33 = vsel %vm1890_vm7, 65537, %v13033_v1  ;;  %v1185_v53 = vpack.c.bf16 %v1166_v49, %v1165_v7  ;;  %v2167_v19 = vsel %vm13030_vm12, %v9639_v16, 0  ;;  %v2168_v12 = vsel %vm13029_vm11, %v9708_v27, 0 }
  0xa7   : > { %v2314_v3 = vor.u32 %v2312_v61, %v9761_v45  ;;  %v7761_v29 = vcombine.low %v9038_v25, %v1922_v33  ;;  %v2070_v36 = vshrl.u32 %v7760_v0, 16  ;;  %v9920_v7 = vsel %vm13026_vm3, %v9855_v51, 0 }
  0xa8   : > { %2768 = vrot.lane.b32.xlu0 %v9706_v23, %s8864_s20  ;;  %v1388_v17 = vrot.slane %v1185_v53, 4 }
  0xa9   : > { %2770 = vrot.lane.b32.xlu1 %v9797_v11, %s8864_s20  ;;  %v2072_v33 = vrot.slane %v2070_v36, 3  ;;  %v2206_v36 = vsel %vm13030_vm12, %v9708_v27, 0 }
  0xaa   : > { %v1391_v45 = vsel %vm13028_vm8, %v1388_v17, %v9097_v63  ;;  %v1563_v63 = vsel %vm1531_vm9, 65537, %v13033_v1 }
  0xab   : > { %1426 = vst.msk [vmem:[#allocation2 + $0x70] sm:$0xff] %vm13046_vm0, %v1391_v45 }
  0xac   : > { %2852 = vrot.lane.b32.xlu0 %v2821_v52, %s8865_s21  ;;  %v2316_v52 = vshll.u32 %v9855_v51, 16 }
  0xad   : > { %v9830_v4 = vpop.permute.xlu0 %2507  ;;  %2385 = vrot.lane.b32.xlu1 %v9706_v23, %s8860_s30  ;;  %v779_v23 = vand.u32 15, %v635_v41 }
  0xae   : > { %v2318_v16 = vrot.slane %v2316_v52, 1 }
  0xaf   : > { %v9849_v10 = vpop.permute.xlu1 %2509  ;;  %vm9882_vm13 = vcmp.ge.s32.totalorder %v779_v23, 1  ;;  %v2073_v23 = vshll.u32 %v7760_v0, 16  ;;  %v13024_v0 = vrot.slane %v9920_v7, 1 }
  0xb0   : > { %2854 = vrot.lane.b32.xlu0 %v2823_v18, %s8865_s21  ;;  %v2187_v18 = vsel %vm13027_vm14, %v9708_v27, 0  ;;  %vm1529_vm7 = vmpackc.low %vm9882_vm13, %vm9882_vm13  ;;  %v9930_v61 = vsel %vm13073_vm5, %v2314_v3, %v2318_v16 }
  0xb1   : > { %v9864_v9 = vpop.permute.xlu0 %2511  ;;  %2387 = vrot.lane.b32.xlu1 %v9797_v11, %s8860_s30  ;;  %v2631_v46 = vrot.slane %v2187_v18, 1  ;;  %v1561_v49 = vsel %vm1529_vm7, 65537, %v13033_v1  ;;  %v2075_v44 = vrot.slane %v2073_v23, 4  ;;  %v7744_v18 = vcombine.low %v1563_v63, %v9038_v25 }
  0xb2   : > { %v7743_v41 = vcombine.low %v1561_v49, %v9038_v25  ;;  %v2226_v49 = vsel %vm13027_vm14, %v9855_v51, 0  ;;  %v2207_v63 = vsel %vm13029_vm11, %v9855_v51, 0  ;;  %vm13214_vm7 = vcmp.ne.s16.totalorder %v9121_v20, 0 }
  0xb3   : > { %v9878_v5 = vpop.permute.xlu1 %2700  ;;  %v2632_v53 = vsel %vm2422_vm1, %v2629_v26, %v2631_v46  ;;  %v2634_v58 = vsel %vm2422_vm1, %v2631_v46, %v13024_v0  ;;  %v2320_v26 = vshrl.u32 %v9855_v51, 16  ;;  %v642_v46 = vadd.s32 200, %v9003_v2 }
  0xb4   : > { %2470 = vrot.lane.b32.xlu0 %v2439_v39, %s8861_s18  ;;  %v1389_v39 = vsel %vm13028_vm8, %v9772_v13, %v1388_v17  ;;  %v2079_v13 = vshrl.u32 %v7761_v29, 16  ;;  %v1705_v23 = vshrl.u32 %v7743_v41, 16  ;;  %vm2962_vm14 = vcmask 220160  }
  0xb5   : > { %v9893_v34 = vpop.permute.xlu0 %2702  ;;  %2472 = vrot.lane.b32.xlu1 %v2441_v62, %s8861_s18  ;;  %1425 = vst.msk [vmem:[#allocation2 + $0x68] sm:$0xff] %vm13046_vm0, %v1389_v39  ;;  %v2082_v62 = vshll.u32 %v7761_v29, 16  ;;  %v2076_v29 = vor.u32 %v2075_v44, %v2072_v33  ;;  %v1708_v39 = vshll.u32 %v7743_v41, 16  ;;  %v2322_v27 = vor.u32 %v2320_v26, %v2318_v16 }
  0xb6   : > { %v2081_v17 = vrot.slane %v2079_v13, 3  ;;  %v1714_v13 = vshrl.u32 %v7744_v18, 16  ;;  %v644_v41 = vadd.s32 216, %v9003_v2  ;;  %v1707_v48 = vrot.slane %v1705_v23, 4 }
  0xb7   : > { %v9915_v31 = vpop.permute.xlu1 %2704  ;;  %v1710_v0 = vrot.slane %v1708_v39, 5  ;;  %v828_v26 = vand.u32 15, %v642_v46  ;;  %vm2997_vm8 = vcmask 293888   ;;  %vm13215_vm11 = vcmp.ne.s16.totalorder %v9145_v47, 0 }
  0xb8   : > { %2521 = vrot.lane.b32.xlu0 %v2167_v19, %s8858_s29  ;;  %v9938_v19 = vld [vmem:[#allocation2 + $0x58] sm:$0xff]  ;;  %v1716_v16 = vrot.slane %v1714_v13, 4  ;;  %v842_v23 = vand.u32 15, %v644_v41  ;;  %v641_v1 = vadd.s32 192, %v9003_v2 }
  0xb9   : > { %2523 = vrot.lane.b32.xlu1 %v2168_v12, %s8858_s29  ;;  %v9932_v52 = vpop.permute.xlu0 %2371  ;;  %v2084_v12 = vrot.slane %v2082_v62, 4  ;;  %v2324_v3 = vshll.u32 %v9938_v19, 16  ;;  %v1717_v62 = vshll.u32 %v7744_v18, 16  ;;  %vm10010_vm13 = vcmp.lt.s32.totalorder %v828_v26, 15 }
  0xba   : > { %vm10022_vm12 = vcmp.lt.s32.totalorder %v842_v23, 15  ;;  %v2328_v50 = vshrl.u32 %v9938_v19, 16 }
  0xbb   : > { %v9965_v33 = vor.u32 %v2084_v12, %v2081_v17  ;;  %v9968_v44 = vrot.slane %v2324_v3, 1  ;;  %v9982_v17 = vsel %vm13026_vm3, %v9938_v19, 0  ;;  %v1719_v12 = vrot.slane %v1717_v62, 5  ;;  %v1430_v3 = vld [vmem:[#allocation2] sm:$0xf8] }
  0xbc   : > { %2579 = vrot.lane.b32.xlu0 %v9797_v11, %s8863_s1  ;;  %v9944_v11 = vpop.permute.xlu1 %2456  ;;  %v13032_v13 = vrot.slane %v9982_v17, 1  ;;  %v1711_v62 = vor.u32 %v1710_v0, %v1707_v48  ;;  %v1784_v40 = vsel %vm13214_vm7, %v1430_v3, 0  ;;  %vm2927_vm3 = vcmask 146432  }
  0xbd   : > { %2581 = vrot.lane.b32.xlu1 %v9930_v61, %s8863_s1  ;;  %v639_v48 = vadd.s32 176, %v9003_v2  ;;  %vm3032_vm7 = vcmask 367616  }
  0xc0   : > { %2663 = vrot.lane.b32.xlu0 %v2632_v53, %s8862_s19  ;;  %v9972_v53 = vsel %vm13041_vm6, %v9758_v15, %v2076_v29  ;;  %v9988_v15 = vsel %vm13041_vm6, %v2076_v29, %v9965_v33 }
  0xc1   : > { %2665 = vrot.lane.b32.xlu1 %v2634_v58, %s8862_s19  ;;  %13210 = vst [vmem:[#allocation23_spill] sm:$0xff] %v9972_v53  ;;  %v2824_v58 = vrot.slane %v2226_v49, 1  ;;  %vm13050_vm9 = vcmp.ne.s16.totalorder %v9972_v53, 0  ;;  %13211 = vst [vmem:[#allocation24_spill] sm:$0xff] %v9988_v15  ;;  %vm13049_vm10 = vcmp.ne.s16.totalorder %v9988_v15, 0 }
  0xc2   : > { %v9955_v45 = vpop.permute.xlu0 %2458  ;;  %v2150_v46 = vsel %vm13050_vm9, %v9855_v51, 0  ;;  %v10032_v3 = vsel %vm13049_vm10, %v9938_v19, 0 }
  0xc3   : > { %v9975_v18 = vpop.permute.xlu1 %2460  ;;  %v2825_v49 = vsel %vm2422_vm1, %v2822_v14, %v2824_v58  ;;  %v8767_v14 = vld [vmem:[#allocation2 + $0x8] sm:$0xff]  ;;  %v2442_v26 = vrot.slane %v2150_v46, 1  ;;  %v13225_v41 = vrot.slane %v10032_v3, 1 }
  0xc4   : > { %2714 = vrot.lane.b32.xlu0 %v2206_v36, %s8859_s0  ;;  %v9994_v36 = vsel %vm13073_vm5, %v2322_v27, %v9968_v44  ;;  %v1785_v0 = vsel %vm13215_vm11, %v8767_v14, 0  ;;  %vm1892_vm11 = vmpackc.low %vm10010_vm13, %vm10010_vm13  ;;  %v8768_v14 = vld [vmem:[#allocation2 + $0x10] sm:$0xff]  ;;  %vm3102_vm13 = vcmask 515072  }
  0xc5   : > { %2716 = vrot.lane.b32.xlu1 %v2207_v63, %s8859_s0  ;;  %v10008_v63 = vor.u32 %v1719_v12, %v1716_v16  ;;  %v2827_v12 = vsel %vm2422_vm1, %v2824_v58, %v13032_v13  ;;  %v1786_v58 = vsel %vm13219_vm4, %v8768_v14, 0  ;;  %v10047_v13 = vld [vmem:[#allocation2 + $0x60] sm:$0xff]  ;;  %vm1894_vm4 = vmpackc.low %vm10022_vm12, %vm10022_vm12 }
  0xc6   : > { %v9977_v22 = vpop.permute.xlu0 %2649  ;;  %v2332_v14 = vshll.u32 %v10047_v13, 16 }
  0xc7   : > { %v9996_v39 = vpop.permute.xlu1 %2651  ;;  %v10045_v46 = vsel %vm13040_vm15, %v1711_v62, %v10008_v63 }
  0xc8   : > { %2772 = vrot.lane.b32.xlu0 %v9930_v61, %s8864_s20  ;;  %13220 = vst [vmem:[#allocation26_spill] sm:$0xff] %v10045_v46  ;;  %vm13051_vm6 = vcmp.ne.s16.totalorder %v10045_v46, 0 }
  0xc9   : > { %2774 = vrot.lane.b32.xlu1 %v9994_v36, %s8864_s20 }
  0xca   : > { %v10002_v29 = vpop.permute.xlu0 %2653 }
  0xcb   : > { %v2566_v16 = vpop.permute.xlu1 %2565 }
  0xcc   : > { %2856 = vrot.lane.b32.xlu0 %v2825_v49, %s8865_s21  ;;  %v10036_v49 = vsel %vm13040_vm15, %v9823_v56, %v1711_v62  ;;  %v2878_v56 = vsel %vm13046_vm0, %v1784_v40, %v9932_v52  ;;  %v807_v62 = vand.u32 15, %v639_v48  ;;  %v2189_v52 = vsel %vm13050_vm9, %v9938_v19, 0 }
  0xcd   : > { %13218 = vst [vmem:[#allocation25_spill] sm:$0xff] %v10036_v49  ;;  %2389 = vrot.lane.b32.xlu1 %v9930_v61, %s8860_s30  ;;  %vm13047_vm2 = vcmp.ne.s16.totalorder %v10036_v49, 0  ;;  %v13221_v61 = vmov 0   ;;  %vm3067_vm15 = vcmask 441344   ;;  %v2929_v6 = vsel %vm2927_vm3, %v2878_v56, %v9944_v11 }
  0xce   : > { %v2374_v23 = vpop.permute.xlu0 %2373  ;;  %v1924_v40 = vsel %vm1892_vm11, 65537, %v13221_v61  ;;  %vm3137_vm11 = vcmask 588800   ;;  %v10093_v11 = vsel %vm13049_vm10, %v10047_v13, 0  ;;  %v10167_v56 = vsel %vm13051_vm6, %v10047_v13, 0 }
  0xcf   : > { %v2881_v35 = vsel %vm13046_vm0, %v1785_v0, %v2374_v23  ;;  %v2376_v0 = vpop.permute.xlu1 %2375 }
  0xd0   : > { %2858 = vrot.lane.b32.xlu0 %v2827_v12, %s8865_s21  ;;  %v2931_v48 = vsel %vm2927_vm3, %v2881_v35, %v9955_v45  ;;  %v13222_v12 = vrot.slane %v9821_v43, 1  ;;  %v2884_v27 = vsel %vm13046_vm0, %v1786_v58, %v2376_v0  ;;  %v1926_v35 = vsel %vm1894_vm4, 65537, %v13221_v61 }
  0xd1   : > { %v821_v43 = vand.u32 15, %v641_v1  ;;  %2391 = vrot.lane.b32.xlu1 %v9994_v36, %s8860_s30  ;;  %v2330_v45 = vor.u32 %v2328_v50, %v9968_v44  ;;  %v7762_v58 = vcombine.low %v9038_v25, %v1924_v40  ;;  %vm10096_vm0 = vcmp.ge.s32.totalorder %v807_v62, 1 }
  0xd2   : > { %v2443_v23 = vsel %vm2422_vm1, %v13222_v12, %v2442_v26  ;;  %v2568_v24 = vpop.permute.xlu0 %2567  ;;  %v2966_v1 = vsel %vm2962_vm14, %v2931_v48, %v9849_v10  ;;  %v2445_v50 = vsel %vm2422_vm1, %v2442_v26, %v13225_v41  ;;  %v2169_v44 = vsel %vm13047_vm2, %v9855_v51, 0  ;;  %vm1533_vm12 = vmpackc.low %vm10096_vm0, %vm10096_vm0 }
  0xd3   : > { %v2635_v0 = vrot.slane %v2189_v52, 1  ;;  %v2964_v62 = vsel %vm2962_vm14, %v2929_v6, %v9830_v4  ;;  %v2933_v40 = vsel %vm2927_vm3, %v2884_v27, %v9975_v18  ;;  %v2570_v12 = vpop.permute.xlu1 %2569  ;;  %v2170_v10 = vsel %vm13051_vm6, %v9938_v19, 0 }
  0xd4   : > { %2474 = vrot.lane.b32.xlu0 %v2443_v23, %s8861_s18  ;;  %v7763_v48 = vcombine.low %v9038_v25, %v1926_v35  ;;  %v2999_v26 = vsel %vm2997_vm8, %v2964_v62, %v2566_v16  ;;  %v2334_v41 = vrot.slane %v2332_v14, 1  ;;  %v13048_v51 = vrot.slane %v10093_v11, 1 }
  0xd5   : > { %vm10122_vm4 = vcmp.ge.s32.totalorder %v821_v43, 1  ;;  %v3001_v4 = vsel %vm2997_vm8, %v2966_v1, %v2568_v24  ;;  %2476 = vrot.lane.b32.xlu1 %v2445_v50, %s8861_s18  ;;  %v10131_v18 = vsel %vm13047_vm2, %v9938_v19, 0  ;;  %v2088_v16 = vshrl.u32 %v7762_v58, 16 }
  0xd6   : > { %v2759_v23 = vpop.permute.xlu0 %2758  ;;  %v2091_v14 = vshll.u32 %v7762_v58, 16  ;;  %v2968_v52 = vsel %vm2962_vm14, %v2933_v40, %v9864_v9  ;;  %v13228_v27 = vrot.slane %v9920_v7, 1  ;;  %v2336_v24 = vshrl.u32 %v10047_v13, 16  ;;  %vm1535_vm2 = vmpackc.low %vm10122_vm4, %vm10122_vm4 }
  0xd7   : > { %v10143_v43 = vsel %vm13050_vm9, %v10047_v13, 0  ;;  %v3034_v19 = vsel %vm3032_vm7, %v2999_v26, %v9977_v22  ;;  %v2761_v58 = vpop.permute.xlu1 %2760  ;;  %v2097_v1 = vshrl.u32 %v7763_v48, 16  ;;  %v2100_v50 = vshll.u32 %v7763_v48, 16  ;;  %v10171_v48 = vld [vmem:[#allocation2 + $0x68] sm:$0xff] }
  0xd8   : > { %2525 = vrot.lane.b32.xlu0 %v2169_v44, %s8858_s29  ;;  %v2636_v35 = vsel %vm2422_vm1, %v13228_v27, %v2635_v0  ;;  %v1565_v9 = vsel %vm1533_vm12, 65537, %v13221_v61  ;;  %v3036_v7 = vsel %vm3032_vm7, %v3001_v4, %v9996_v39  ;;  %v10159_v22 = vsel %vm13073_vm5, %v2330_v45, %v2334_v41 }
  0xd9   : > { %v2638_v62 = vsel %vm2422_vm1, %v2635_v0, %v13048_v51  ;;  %v3003_v40 = vsel %vm2997_vm8, %v2968_v52, %v2570_v12  ;;  %2527 = vrot.lane.b32.xlu1 %v2170_v10, %s8858_s29  ;;  %v2828_v39 = vrot.slane %v10143_v43, 1  ;;  %v2090_v26 = vrot.slane %v2088_v16, 3 }
  0xda   : > { %v2763_v44 = vpop.permute.xlu0 %2762  ;;  %v2093_v45 = vrot.slane %v2091_v14, 4  ;;  %v3069_v4 = vsel %vm3067_vm15, %v3034_v19, %v9878_v5  ;;  %vm13052_vm0 = vcmask 662528   ;;  %v2338_v0 = vor.u32 %v2336_v24, %v2334_v41 }
  0xdb   : > { %v7745_v27 = vcombine.low %v1565_v9, %v9038_v25  ;;  %v1567_v12 = vsel %vm1535_vm2, 65537, %v13221_v61  ;;  %v3104_v10 = vsel %vm3102_vm13, %v3069_v4, %v2759_v23  ;;  %v3071_v16 = vsel %vm3067_vm15, %v3036_v7, %v9893_v34  ;;  %v2843_v5 = vpop.permute.xlu1 %2842 }
  0xdc   : > { %2583 = vrot.lane.b32.xlu0 %v9994_v36, %s8863_s1  ;;  %v2099_v14 = vrot.slane %v2097_v1, 3  ;;  %v2102_v52 = vrot.slane %v2100_v50, 4  ;;  %v3038_v36 = vsel %vm3032_vm7, %v3003_v40, %v10002_v29  ;;  %v3106_v41 = vsel %vm3102_vm13, %v3071_v16, %v2761_v58 }
  0xdd   : > { %v3139_v24 = vsel %vm3137_vm11, %v3104_v10, %v2843_v5  ;;  %v2340_v6 = vshll.u32 %v10171_v48, 16  ;;  %2585 = vrot.lane.b32.xlu1 %v10159_v22, %s8863_s1  ;;  %v2094_v23 = vor.u32 %v2093_v45, %v2090_v26  ;;  %v7746_v29 = vcombine.low %v1567_v12, %v9038_v25 }
  0xde   : > { %v2845_v19 = vpop.permute.xlu0 %2844  ;;  %v3190_v9 = vshrl.u32 %v3139_v24, 16  ;;  %v3193_v51 = vshll.u32 %v3139_v24, 16  ;;  %v646_v58 = vadd.s32 232, %v9003_v2  ;;  %v3073_v7 = vsel %vm3067_vm15, %v3038_v36, %v9915_v31 }
  0xdf   : > { %v3141_v34 = vsel %vm3137_vm11, %v3106_v41, %v2845_v19  ;;  %v10201_v10 = vpop.permute.xlu1 %2377  ;;  %v1723_v16 = vshrl.u32 %v7745_v27, 16  ;;  %v3108_v5 = vsel %vm3102_vm13, %v3073_v7, %v2763_v44  ;;  %v1726_v24 = vshll.u32 %v7745_v27, 16 }
  0xe0   : > { %v3197_v1 = vshrl.u32 %v3141_v34, 16  ;;  %v3200_v50 = vshll.u32 %v3141_v34, 16  ;;  %2667 = vrot.lane.b32.xlu0 %v2636_v35, %s8862_s19  ;;  %v3192_v40 = vrot.slane %v3190_v9, 3  ;;  %v3195_v4 = vrot.slane %v3193_v51, 4 }
  0xe1   : > { %2669 = vrot.lane.b32.xlu1 %v2638_v62, %s8862_s19  ;;  %v10206_v12 = vrot.slane %v2340_v6, 1  ;;  %vm13229_vm2 = vsmask.f32 4352  ;;  %v10212_v51 = vor.u32 %v2102_v52, %v2099_v14  ;;  %v10221_v62 = vsel %vm13049_vm10, %v10171_v48, 0 }
  0xe2   : > { %v3199_v41 = vrot.slane %v3197_v1, 3  ;;  %v3202_v26 = vrot.slane %v3200_v50, 4  ;;  %v2847_v45 = vpop.permute.xlu0 %2846  ;;  %v10210_v31 = vsel %vm13229_vm2, %v9965_v33, %v2094_v23  ;;  %v3196_v36 = vor.u32 %v3195_v4, %v3192_v40  ;;  %vm13231_vm12 = vmmov %vm13229_vm2 }
  0xe3   : > { %v3143_v35 = vsel %vm3137_vm11, %v3108_v5, %v2847_v45  ;;  %13230 = vst [vmem:[#allocation27_spill] sm:$0xff] %v10210_v31  ;;  %v10216_v27 = vpop.permute.xlu1 %2379  ;;  %v1732_v6 = vshrl.u32 %v7746_v29, 16  ;;  %v856_v34 = vand.u32 15, %v646_v58  ;;  %v648_v33 = vadd.s32 248, %v9003_v2 }
  0xe4   : > { %v3203_v19 = vor.u32 %v3202_v26, %v3199_v41  ;;  %v3205_v9 = vshrl.u32 %v3143_v35, 16  ;;  %v3208_v44 = vshll.u32 %v3143_v35, 16  ;;  %2718 = vrot.lane.b32.xlu0 %v10131_v18, %s8859_s0  ;;  %v1735_v7 = vshll.u32 %v7746_v29, 16  ;;  %v10314_v26 = vld [vmem:[#allocation2 + $0x78] sm:$0xff] }
  0xe5   : > { %2720 = vrot.lane.b32.xlu1 %v10167_v56, %s8859_s0  ;;  %vm13059_vm4 = vcmp.ne.s16.totalorder %v10210_v31, 0  ;;  %v10233_v18 = vsel %vm13229_vm2, %v2094_v23, %v10212_v51  ;;  %v1725_v58 = vrot.slane %v1723_v16, 4  ;;  %v1728_v40 = vrot.slane %v1726_v24, 5 }
  0xe6   : > { %v3207_v14 = vrot.slane %v3205_v9, 3  ;;  %v3210_v52 = vrot.slane %v3208_v44, 4  ;;  %v10224_v1 = vpop.permute.xlu0 %2462  ;;  %v3204_v50 = vsel %vm13231_vm12, %v3196_v36, %v3203_v19  ;;  %13232 = vst [vmem:[#allocation28_spill] sm:$0xff] %v10233_v18  ;;  %v10241_v29 = vsel %vm13073_vm5, %v2338_v0, %v10206_v12 }
  0xe7   : > { %8207 = vmatprep.mubr.msk.bf16.mxu1 %vm13052_vm0, %v3204_v50  ;;  %v13233_v56 = vrot.slane %v9982_v17, 1  ;;  %v10248_v41 = vpop.permute.xlu1 %2464  ;;  %v13054_v23 = vrot.slane %v10221_v62, 1  ;;  %v1734_v16 = vrot.slane %v1732_v6, 4  ;;  %vm10251_vm12 = vcmp.lt.s32.totalorder %v856_v34, 15 }
  0xe8   : > { %v10235_v4 = vor.u32 %v3210_v52, %v3207_v14  ;;  %2776 = vrot.lane.b32.xlu0 %v10159_v22, %s8864_s20  ;;  %v870_v45 = vand.u32 15, %v648_v33  ;;  %v2152_v17 = vsel %vm13059_vm4, %v10047_v13, 0  ;;  %vm13066_vm10 = vcmp.ne.s16.totalorder %v10233_v18, 0  ;;  %vm1896_vm9 = vmpackc.low %vm10251_vm12, %vm10251_vm12 }
  0xe9   : > { %v2829_v5 = vsel %vm2422_vm1, %v13233_v56, %v2828_v39  ;;  %v1737_v35 = vrot.slane %v1735_v7, 5  ;;  %2778 = vrot.lane.b32.xlu1 %v10241_v29, %s8864_s20  ;;  %v1729_v36 = vor.u32 %v1728_v40, %v1725_v58  ;;  %v2831_v44 = vsel %vm2422_vm1, %v2828_v39, %v13054_v23  ;;  %v10298_v7 = vld [vmem:[#allocation2 + $0x70] sm:$0xff]  ;;  %v8770_v23 = vld [vmem:[#allocation2 + $0x20] sm:$0xff] }
  0xea   : > { %v10255_v24 = vpop.permute.xlu0 %2513  ;;  %v3212_v0 = vsel %vm13229_vm2, %v3203_v19, %v10235_v4  ;;  %v643_v19 = vadd.s32 208, %v9003_v2  ;;  %v2446_v6 = vrot.slane %v2152_v17, 1  ;;  %v10281_v34 = vsel %vm13066_vm10, %v10171_v48, 0 }
  0xeb   : > { %8208 = vmatmul.mubr.msk.bf16.vlgmr.msra.gmra.mrb[4].mxu1 %vm13052_vm0, %v3212_v0  ;;  %v10271_v9 = vpop.permute.xlu1 %2515  ;;  %v10283_v14 = vor.u32 %v1737_v35, %v1734_v16  ;;  %vm10285_vm12 = vcmp.lt.s32.totalorder %v870_v45, 15  ;;  %vm13238_vm2 = vsmask.f32 3328  ;;  %v1928_v39 = vsel %vm1896_vm9, 65537, %v13221_v61 }
  0xec   : > { %2860 = vrot.lane.b32.xlu0 %v2829_v5, %s8865_s21  ;;  %v10293_v43 = vsel %vm13238_vm2, %v10008_v63, %v1729_v36  ;;  %v13053_v50 = vrot.slane %v10281_v34, 1  ;;  %v835_v58 = vand.u32 15, %v643_v19  ;;  %v645_v40 = vadd.s32 224, %v9003_v2  ;;  %vm1898_vm2 = vmpackc.low %vm10285_vm12, %vm10285_vm12 }
  0xed   : > { %2393 = vrot.lane.b32.xlu1 %v10159_v22, %s8860_s30  ;;  %13239 = vst [vmem:[#allocation29_spill] sm:$0xff] %v10293_v43  ;;  %v13240_v5 = vrot.slane %v10032_v3, 1  ;;  %vm13068_vm9 = vcmp.ne.s16.totalorder %v10293_v43, 0  ;;  %vm13241_vm6 = vsmask.f32 3328  ;;  %v7764_v45 = vcombine.low %v9038_v25, %v1928_v39 }
  0xee   : > { %v2572_v33 = vpop.permute.xlu0 %2571  ;;  %v10312_v16 = vsel %vm13241_vm6, %v1729_v36, %v10283_v14  ;;  %v2344_v3 = vshrl.u32 %v10171_v48, 16  ;;  %v2348_v0 = vshll.u32 %v10298_v7, 16  ;;  %v2449_v17 = vsel %vm2422_vm1, %v2446_v6, %v13053_v50 }
  0xef   : > { %v10301_v56 = vpop.permute.xlu1 %2573  ;;  %v2447_v22 = vsel %vm2422_vm1, %v13240_v5, %v2446_v6  ;;  %13242 = vst [vmem:[#allocation30_spill] sm:$0xff] %v10312_v16  ;;  %v1930_v35 = vsel %vm1898_vm2, 65537, %v13221_v61  ;;  %vm10326_vm6 = vcmp.ge.s32.totalorder %v835_v58, 1  ;;  %v849_v19 = vand.u32 15, %v645_v40 }
  0xf0   : > { %2862 = vrot.lane.b32.xlu0 %v2831_v44, %s8865_s21  ;;  %v8769_v44 = vld [vmem:[#allocation2 + $0x18] sm:$0xff]  ;;  %vm13245_vm12 = vcmp.ne.s16.totalorder %v9419_v30, 0  ;;  %v2171_v5 = vsel %vm13068_vm9, %v10047_v13, 0  ;;  %vm13067_vm0 = vcmp.ne.s16.totalorder %v10312_v16, 0  ;;  %v2356_v6 = vshll.u32 %v10314_v26, 16 }
  0xf1   : > { %2395 = vrot.lane.b32.xlu1 %v10241_v29, %s8860_s30  ;;  %v1787_v52 = vsel %vm13245_vm12, %v8769_v44, 0  ;;  %v2191_v58 = vsel %vm13059_vm4, %v10171_v48, 0  ;;  %v10343_v40 = vsel %vm13066_vm10, %v10298_v7, 0  ;;  %v2106_v44 = vshrl.u32 %v7764_v45, 16  ;;  %vm1537_vm12 = vmpackc.low %vm10326_vm6, %vm10326_vm6 }
  0xf2   : > { %v2656_v63 = vpop.permute.xlu0 %2655  ;;  %v2109_v50 = vshll.u32 %v7764_v45, 16  ;;  %vm13246_vm2 = vcmp.ne.s16.totalorder %v9428_v37, 0  ;;  %v2346_v15 = vor.u32 %v2344_v3, %v10206_v12  ;;  %v7765_v53 = vcombine.low %v9038_v25, %v1930_v35 }
  0xf3   : > { %v2658_v39 = vpop.permute.xlu1 %2657  ;;  %v1788_v13 = vsel %vm13246_vm2, %v8770_v23, 0  ;;  %vm13247_vm4 = vcmask 72704   ;;  %v2172_v45 = vsel %vm13067_vm0, %v10171_v48, 0  ;;  %v2350_v23 = vrot.slane %v2348_v0, 1 }
  0xf4   : > { %2478 = vrot.lane.b32.xlu0 %v2447_v22, %s8861_s18  ;;  %v2887_v59 = vsel %vm13247_vm4, %v1787_v52, %v10201_v10  ;;  %vm10359_vm2 = vcmp.ge.s32.totalorder %v849_v19, 1  ;;  %v2639_v35 = vrot.slane %v2191_v58, 1  ;;  %v2641_v36 = vrot.slane %v10343_v40, 1 }
  0xf5   : > { %2480 = vrot.lane.b32.xlu1 %v2449_v17, %s8861_s18  ;;  %v2935_v12 = vsel %vm2927_vm3, %v2887_v59, %v10224_v1  ;;  %v10366_v37 = vrot.slane %v2356_v6, 1  ;;  %v2111_v38 = vrot.slane %v2109_v50, 4  ;;  %v1569_v0 = vsel %vm1537_vm12, 65537, %v13221_v61  ;;  %vm1539_vm4 = vmpackc.low %vm10359_vm2, %vm10359_vm2 }
  0xf6   : > { %v2707_v22 = vpop.permute.xlu0 %2706  ;;  %v2970_v10 = vsel %vm2962_vm14, %v2935_v12, %v10255_v24  ;;  %v2210_v59 = vsel %vm13068_vm9, %v10171_v48, 0  ;;  %v2115_v1 = vshrl.u32 %v7765_v53, 16  ;;  %v2118_v58 = vshll.u32 %v7765_v53, 16 }
  0xf7   : > { %v2709_v3 = vpop.permute.xlu1 %2708  ;;  %v3005_v19 = vsel %vm2997_vm8, %v2970_v10, %v2572_v33  ;;  %vm13250_vm6 = vcmask 72704   ;;  %v10385_v33 = vsel %vm13073_vm5, %v2346_v15, %v2350_v23  ;;  %v2352_v6 = vshrl.u32 %v10298_v7, 16 }
  0xf8   : > { %2529 = vrot.lane.b32.xlu0 %v2171_v5, %s8858_s29  ;;  %v2108_v5 = vrot.slane %v2106_v44, 3  ;;  %v2890_v24 = vsel %vm13250_vm6, %v1788_v13, %v10216_v27  ;;  %v3040_v50 = vsel %vm3032_vm7, %v3005_v19, %v2656_v63  ;;  %v7747_v63 = vcombine.low %v1569_v0, %v9038_v25 }
  0xf9   : > { %2531 = vrot.lane.b32.xlu1 %v2172_v45, %s8858_s29  ;;  %v2937_v53 = vsel %vm2927_vm3, %v2890_v24, %v10248_v41  ;;  %v3075_v48 = vsel %vm3067_vm15, %v3040_v50, %v2707_v22  ;;  %v13251_v45 = vrot.slane %v10093_v11, 1  ;;  %v1571_v12 = vsel %vm1539_vm4, 65537, %v13221_v61 }
  0xfa   : > { %v2765_v52 = vpop.permute.xlu0 %2764  ;;  %v2112_v17 = vor.u32 %v2111_v38, %v2108_v5  ;;  %v2117_v22 = vrot.slane %v2115_v1, 3  ;;  %v2120_v10 = vrot.slane %v2118_v58, 4  ;;  %v2642_v38 = vsel %vm2422_vm1, %v2639_v35, %v2641_v36 }
  0xfb   : > { %v2767_v44 = vpop.permute.xlu1 %2766  ;;  %v2640_v27 = vsel %vm2422_vm1, %v13251_v45, %v2639_v35  ;;  %v3110_v15 = vsel %vm3102_vm13, %v3075_v48, %v2765_v52  ;;  %v2211_v5 = vsel %vm13067_vm0, %v10298_v7, 0  ;;  %vm13252_vm12 = vcmp.ne.s16.totalorder %v10210_v31, 0 }
  0xfc   : > { %2587 = vrot.lane.b32.xlu0 %v10241_v29, %s8863_s1  ;;  %v2972_v29 = vsel %vm2962_vm14, %v2937_v53, %v10271_v9  ;;  %v7748_v1 = vcombine.low %v1571_v12, %v9038_v25  ;;  %vm13253_vm2 = vsmask.f32 4352  ;;  %v10426_v48 = vor.u32 %v2120_v10, %v2117_v22 }
  0xfd   : > { %v3007_v41 = vsel %vm2997_vm8, %v2972_v29, %v10301_v56  ;;  %2589 = vrot.lane.b32.xlu1 %v10385_v33, %s8863_s1  ;;  %v1741_v45 = vshrl.u32 %v7747_v63, 16  ;;  %vm13256_vm6 = vmmov %vm13253_vm2  ;;  %vm13271_vm9 = vcmp.ne.s16.totalorder %v9637_v32, 0 }
  0xfe   : > { %v2849_v13 = vpop.permute.xlu0 %2848  ;;  %v3042_v0 = vsel %vm3032_vm7, %v3007_v41, %v2658_v39  ;;  %v2230_v39 = vsel %vm13252_vm12, %v10298_v7, 0  ;;  %13255 = vst [vmem:[#allocation32_spill] sm:$0xff] %v10426_v48  ;;  %vm13257_vm12 = vcmask 662528  }
  0xff   : > { %v3145_v11 = vsel %vm3137_vm11, %v3110_v15, %v2849_v13  ;;  %v3077_v52 = vsel %vm3067_vm15, %v3042_v0, %v2709_v3  ;;  %v10410_v56 = vpop.permute.xlu1 %2381  ;;  %v10422_v3 = vsel %vm13253_vm2, %v10212_v51, %v2112_v17  ;;  %v2832_v41 = vrot.slane %v2230_v39, 1 }
 0x100   : > { %v3213_v19 = vshrl.u32 %v3145_v11, 16  ;;  %v3216_v9 = vshll.u32 %v3145_v11, 16  ;;  %2671 = vrot.lane.b32.xlu0 %v2640_v27, %s8862_s19  ;;  %v3112_v58 = vsel %vm3102_vm13, %v3077_v52, %v2767_v44  ;;  %13254 = vst [vmem:[#allocation31_spill] sm:$0xff] %v10422_v3  ;;  %v1744_v27 = vshll.u32 %v7747_v63, 16 }
 0x101   : > { %2673 = vrot.lane.b32.xlu1 %v2642_v38, %s8862_s19  ;;  %v2354_v44 = vor.u32 %v2352_v6, %v2350_v23  ;;  %v10434_v51 = vsel %vm13066_vm10, %v10314_v26, 0  ;;  %vm13071_vm4 = vcmp.ne.s16.totalorder %v10422_v3, 0  ;;  %v1750_v11 = vshrl.u32 %v7748_v1, 16 }
 0x102   : > { %v3215_v24 = vrot.slane %v3213_v19, 3  ;;  %v3218_v50 = vrot.slane %v3216_v9, 4  ;;  %v2851_v53 = vpop.permute.xlu0 %2850  ;;  %v10445_v23 = vsel %vm13253_vm2, %v2112_v17, %v10426_v48  ;;  %v1743_v6 = vrot.slane %v1741_v45, 4 }
 0x103   : > { %v3147_v35 = vsel %vm3137_vm11, %v3112_v58, %v2851_v53  ;;  %v10429_v12 = vpop.permute.xlu1 %2383  ;;  %13258 = vst [vmem:[#allocation33_spill] sm:$0xff] %v10445_v23  ;;  %v1746_v19 = vrot.slane %v1744_v27, 5  ;;  %v10453_v38 = vsel %vm13073_vm5, %v2354_v44, %v10366_v37  ;;  %v13259_v52 = vrot.slane %v10221_v62, 1 }
 0x104   : > { %v3219_v29 = vor.u32 %v3218_v50, %v3215_v24  ;;  %v3221_v15 = vshrl.u32 %v3147_v35, 16  ;;  %v3224_v13 = vshll.u32 %v3147_v35, 16  ;;  %2722 = vrot.lane.b32.xlu0 %v2210_v59, %s8859_s0  ;;  %v1753_v59 = vshll.u32 %v7748_v1, 16 }
 0x105   : > { %2724 = vrot.lane.b32.xlu1 %v2211_v5, %s8859_s0  ;;  %v2833_v5 = vsel %vm2422_vm1, %v13259_v52, %v2832_v41  ;;  %v2834_v17 = vrot.slane %v10434_v51, 1  ;;  %v2154_v39 = vsel %vm13071_vm4, %v10298_v7, 0  ;;  %v1752_v24 = vrot.slane %v1750_v11, 4  ;;  %v10490_v11 = vld [vmem:[#allocation2 + $0x80] sm:$0xff] }
 0x106   : > { %v3223_v22 = vrot.slane %v3221_v15, 3  ;;  %v3226_v10 = vrot.slane %v3224_v13, 4  ;;  %v10437_v63 = vpop.permute.xlu0 %2466  ;;  %v3220_v0 = vsel %vm13256_vm6, %v10235_v4, %v3219_v29  ;;  %vm13260_vm6 = vmmov %vm13253_vm2  ;;  %v1755_v50 = vrot.slane %v1753_v59, 5 }
 0x107   : > { %8211 = vmatprep.mubr.msk.bf16.mxu1 %vm13257_vm12, %v3220_v0  ;;  %v10455_v4 = vpop.permute.xlu1 %2468  ;;  %vm13070_vm12 = vcmp.ne.s16.totalorder %v10445_v23, 0  ;;  %vm13261_vm2 = vcmask 662528   ;;  %v1747_v62 = vor.u32 %v1746_v19, %v1743_v6  ;;  %v2835_v35 = vsel %vm2422_vm1, %v2832_v41, %v2834_v17  ;;  %v8771_v19 = vld [vmem:[#allocation2 + $0x28] sm:$0xff] }
 0x108   : > { %v10447_v9 = vor.u32 %v3226_v10, %v3223_v22  ;;  %2780 = vrot.lane.b32.xlu0 %v10385_v33, %s8864_s20  ;;  %v2450_v45 = vrot.slane %v2154_v39, 1  ;;  %v10477_v27 = vsel %vm13070_vm12, %v10314_v26, 0  ;;  %v10479_v15 = vor.u32 %v1755_v50, %v1752_v24  ;;  %v10554_v50 = vld [vmem:[#allocation2 + $0x88] sm:$0xff] }
 0x109   : > { %2782 = vrot.lane.b32.xlu1 %v10453_v38, %s8864_s20  ;;  %v647_v13 = vadd.s32 240, %v9003_v2  ;;  %v2452_v41 = vrot.slane %v10477_v27, 1  ;;  %v13264_v10 = vrot.slane %v10281_v34, 1  ;;  %v2550_v6 = vshll.u32 %v10490_v11, 16 }
 0x10a   : > { %v2518_v1 = vpop.permute.xlu0 %2517  ;;  %v3228_v58 = vsel %vm13260_vm6, %v3219_v29, %v10447_v9  ;;  %vm13262_vm6 = vsmask.f32 3328  ;;  %v2193_v24 = vsel %vm13071_vm4, %v10314_v26, 0 }
 0x10b   : > { %8212 = vmatmul.mubr.msk.bf16.gmra.mrb[8].mxu1 %vm13261_vm2, %v3228_v58  ;;  %v2520_v53 = vpop.permute.xlu1 %2519  ;;  %v10486_v44 = vsel %vm13262_vm6, %v10283_v14, %v1747_v62  ;;  %v2451_v0 = vsel %vm2422_vm1, %v13264_v10, %v2450_v45  ;;  %vm13265_vm10 = vmmov %vm13262_vm6  ;;  %v863_v14 = vand.u32 15, %v647_v13  ;;  %v2453_v34 = vsel %vm2422_vm1, %v2450_v45, %v2452_v41  ;;  %v8772_v10 = vld [vmem:[#allocation2 + $0x30] sm:$0xff] }
 0x10c   : > { %2864 = vrot.lane.b32.xlu0 %v2833_v5, %s8865_s21  ;;  %13263 = vst [vmem:[#allocation34_spill] sm:$0xff] %v10486_v44  ;;  %vm1780_vm2 = vcmp.ne.s16.totalorder %v10486_v44, 0  ;;  %v10498_v2 = vsel %vm13265_vm10, %v1747_v62, %v10479_v15  ;;  %vm13267_vm6 = vcmp.ne.s16.totalorder %v9613_v60, 0 }
 0x10d   : > { %2397 = vrot.lane.b32.xlu1 %v10385_v33, %s8860_s30  ;;  %13266 = vst [vmem:[#allocation35_spill] sm:$0xff] %v10498_v2  ;;  %v2360_v33 = vshrl.u32 %v10314_v26, 16  ;;  %v1789_v52 = vsel %vm13267_vm6, %v8771_v19, 0  ;;  %v2173_v39 = vsel %vm1780_vm2, %v10298_v7, 0  ;;  %vm1781_vm10 = vcmp.ne.s16.totalorder %v10498_v2, 0 }
 0x10e   : > { %v2576_v29 = vpop.permute.xlu0 %2575  ;;  %vm10517_vm0 = vcmp.ge.s32.totalorder %v863_v14, 1  ;;  %vm13270_vm6 = vcmask 72704   ;;  %v2174_v13 = vsel %vm1781_vm10, %v10314_v26, 0 }
 0x10f   : > { %v2578_v22 = vpop.permute.xlu1 %2577  ;;  %v10523_v62 = vor.u32 %v2360_v33, %v10366_v37  ;;  %v2893_v45 = vsel %vm13270_vm6, %v1789_v52, %v10410_v56  ;;  %v2643_v37 = vrot.slane %v2193_v24, 1  ;;  %v10538_v33 = vsel %vm13070_vm12, %v10490_v11, 0  ;;  %vm1541_vm6 = vmpackc.low %vm10517_vm0, %vm10517_vm0 }
 0x110   : > { %2866 = vrot.lane.b32.xlu0 %v2835_v35, %s8865_s21  ;;  %v2552_v35 = vrot.slane %v2550_v6, 1  ;;  %v2939_v14 = vsel %vm2927_vm3, %v2893_v45, %v10437_v63  ;;  %v13069_v24 = vrot.slane %v10538_v33, 1  ;;  %vm13273_vm0 = vsmask.f32 4352 }
 0x111   : > { %2399 = vrot.lane.b32.xlu1 %v10453_v38, %s8860_s30  ;;  %v2974_v56 = vsel %vm2962_vm14, %v2939_v14, %v2518_v1  ;;  %v1573_v1 = vsel %vm1541_vm6, 65537, %v13221_v61  ;;  %vm13274_vm6 = vcmask 662528  }
 0x112   : > { %v2660_v59 = vpop.permute.xlu0 %2659  ;;  %v3009_v19 = vsel %vm2997_vm8, %v2974_v56, %v2576_v29  ;;  %v2553_v63 = vsel %vm13073_vm5, %v10523_v62, %v2552_v35  ;;  %v10570_v56 = vld [vmem:[#allocation2 + $0x80] sm:$0xf]  ;;  %v7749_v40 = vcombine.low %v1573_v1, %v9038_v25  ;;  %v2213_v25 = vsel %vm1781_vm10, %v10490_v11, 0 }
 0x113   : > { %v2662_v5 = vpop.permute.xlu1 %2661 }
 0x114   : > { %2482 = vrot.lane.b32.xlu0 %v2451_v0, %s8861_s18  ;;  %v1790_v0 = vsel %vm13271_vm9, %v8772_v10, 0  ;;  %vm13272_vm9 = vcmask 72704  }
 0x115   : > { %2484 = vrot.lane.b32.xlu1 %v2453_v34, %s8861_s18  ;;  %v2896_v52 = vsel %vm13272_vm9, %v1790_v0, %v10429_v12  ;;  %v2644_v12 = vsel %vm2422_vm1, %v2641_v36, %v2643_v37  ;;  %v2554_v0 = vshrl.u32 %v10490_v11, 16  ;;  %vm13072_vm9 = vcmp.ne.s16.totalorder %v10426_v48, 0 }
 0x116   : > { %v2711_v58 = vpop.permute.xlu0 %2710  ;;  %v2941_v29 = vsel %vm2927_vm3, %v2896_v52, %v10455_v4 }
 0x117   : > { %v2713_v34 = vpop.permute.xlu1 %2712 }
 0x118   : > { %2533 = vrot.lane.b32.xlu0 %v2173_v39, %s8858_s29  ;;  %v3044_v39 = vsel %vm3032_vm7, %v3009_v19, %v2660_v59  ;;  %v2976_v59 = vsel %vm2962_vm14, %v2941_v29, %v2520_v53 }
 0x119   : > { %2535 = vrot.lane.b32.xlu1 %v2174_v13, %s8858_s29  ;;  %v3079_v45 = vsel %vm3067_vm15, %v3044_v39, %v2711_v58  ;;  %v3011_v14 = vsel %vm2997_vm8, %v2976_v59, %v2578_v22  ;;  %v2743_v58 = vshll.u32 %v10554_v50, 16  ;;  %v2646_v22 = vsel %vm2422_vm1, %v2643_v37, %v13069_v24 }
 0x11a   : > { %v2769_v6 = vpop.permute.xlu0 %2768  ;;  %v3046_v36 = vsel %vm3032_vm7, %v3011_v14, %v2662_v5  ;;  %v2212_v39 = vsel %vm1780_vm2, %v10314_v26, 0  ;;  %v2232_v5 = vsel %vm13071_vm4, %v10490_v11, 0  ;;  %v10594_v26 = vor.u32 %v2554_v0, %v2552_v35  ;;  %v1802_v0 = vld [vmem:[#allocation2 + $0x80] sm:$0x1f] }
 0x11b   : > { %v2771_v13 = vpop.permute.xlu1 %2770  ;;  %v1759_v59 = vshrl.u32 %v7749_v40, 16  ;;  %v10606_v35 = vsel %vm13070_vm12, %v10554_v50, 0  ;;  %vm13279_vm4 = vcmask 72704  }
 0x11c   : > { %2591 = vrot.lane.b32.xlu0 %v10453_v38, %s8863_s1  ;;  %v3114_v38 = vsel %vm3102_vm13, %v3079_v45, %v2769_v6  ;;  %v3081_v6 = vsel %vm3067_vm15, %v3046_v36, %v2713_v34  ;;  %v2364_v34 = vshll.u32 %v10570_v56, 16  ;;  %v10597_v36 = vrot.slane %v2743_v58, 1 }
 0x11d   : > { %2593 = vrot.lane.b32.xlu1 %v2553_v63, %s8863_s1  ;;  %v3116_v1 = vsel %vm3102_vm13, %v3081_v6, %v2771_v13  ;;  %v1761_v58 = vrot.slane %v1759_v59, 4 }
 0x11e   : > { %v2853_v10 = vpop.permute.xlu0 %2852 }
 0x11f   : > { %v3149_v4 = vsel %vm3137_vm11, %v3114_v38, %v2853_v10  ;;  %v10579_v52 = vpop.permute.xlu1 %2385  ;;  %v1762_v38 = vshll.u32 %v7749_v40, 16 }
 0x120   : > { %v3229_v53 = vshrl.u32 %v3149_v4, 16  ;;  %v3232_v19 = vshll.u32 %v3149_v4, 16  ;;  %2675 = vrot.lane.b32.xlu0 %v2644_v12, %s8862_s19 }
 0x121   : > { %2677 = vrot.lane.b32.xlu1 %v2646_v22, %s8862_s19  ;;  %v1764_v40 = vrot.slane %v1762_v38, 5 }
 0x122   : > { %v3231_v29 = vrot.slane %v3229_v53, 3  ;;  %v3234_v37 = vrot.slane %v3232_v19, 4  ;;  %v2855_v45 = vpop.permute.xlu0 %2854  ;;  %v2836_v53 = vrot.slane %v2232_v5, 1  ;;  %v2366_v5 = vrot.slane %v2364_v34, 1 }
 0x123   : > { %v3151_v12 = vsel %vm3137_vm11, %v3116_v1, %v2855_v45  ;;  %v10599_v13 = vpop.permute.xlu1 %2387  ;;  %v10628_v34 = vor.u32 %v1764_v40, %v1761_v58  ;;  %v8773_v58 = vld [vmem:[#allocation2 + $0x38] sm:$0xff] }
 0x124   : > { %v3235_v10 = vor.u32 %v3234_v37, %v3231_v29  ;;  %v3237_v14 = vshrl.u32 %v3151_v12, 16  ;;  %v3240_v4 = vshll.u32 %v3151_v12, 16  ;;  %2726 = vrot.lane.b32.xlu0 %v2212_v39, %s8859_s0  ;;  %v2838_v29 = vrot.slane %v10606_v35, 1  ;;  %v8482_v35 = vld [vmem:[%s12995_s6] sm:$0xff]  }
 0x125   : > { %2728 = vrot.lane.b32.xlu1 %v2213_v25, %s8859_s0  ;;  %v2837_v25 = vsel %vm2422_vm1, %v2834_v17, %v2836_v53  ;;  %v2156_v12 = vsel %vm13072_vm9, %v1802_v0, 0  ;;  %13275 = vst [vmem:[#allocation36_spill] sm:$0xff] %v10628_v34  ;;  %v2367_v51 = vsel %vm13073_vm5, %v10523_v62, %v2366_v5  ;;  %v2178_v0 = vld [vmem:[#allocation2 + $0x88] sm:$0x1f]  ;;  %vm1783_vm12 = vcmp.ne.s16.totalorder %v10628_v34, 0  ;;  %8178 = vmatpush3.bf16.msra.mxu0 %v8482_v35 }
 0x126   : > { %v3239_v19 = vrot.slane %v3237_v14, 3  ;;  %v3242_v6 = vrot.slane %v3240_v4, 4  ;;  %v2471_v24 = vpop.permute.xlu0 %2470  ;;  %v3236_v22 = vsel %vm13273_vm0, %v10447_v9, %v3235_v10  ;;  %v2746_v9 = vsel %vm13073_vm5, %v10594_v26, %v10597_v36  ;;  %v2159_v14 = vld [vmem:[#allocation2 + $0x88] sm:$0xf] }
 0x127   : > { %8215 = vmatprep.mubr.msk.bf16.mxu1 %vm13274_vm6, %v3236_v22  ;;  %v2473_v1 = vpop.permute.xlu1 %2472  ;;  %v2839_v59 = vsel %vm2422_vm1, %v2836_v53, %v2838_v29  ;;  %v2454_v38 = vrot.slane %v2156_v12, 1  ;;  %v2558_v22 = vshll.u32 %v2159_v14, 16  ;;  %v2176_v12 = vsel %vm1783_vm12, %v2159_v14, 0 }
 0x128   : > { %v10611_v39 = vor.u32 %v3242_v6, %v3239_v19  ;;  %2784 = vrot.lane.b32.xlu0 %v2553_v63, %s8864_s20  ;;  %v2368_v63 = vshrl.u32 %v10570_v56, 16 }
 0x129   : > { %2786 = vrot.lane.b32.xlu1 %v2746_v9, %s8864_s20  ;;  %v2455_v62 = vsel %vm2422_vm1, %v2452_v41, %v2454_v38  ;;  %v2560_v41 = vrot.slane %v2558_v22, 1 }
 0x12a   : > { %v2522_v37 = vpop.permute.xlu0 %2521  ;;  %v3244_v45 = vsel %vm13273_vm0, %v3235_v10, %v10611_v39  ;;  %v2370_v4 = vor.u32 %v2368_v63, %v2366_v5  ;;  %vm13276_vm0 = vsmask.f32 3328  ;;  %v2195_v5 = vsel %vm13072_vm9, %v2178_v0, 0  ;;  %v8774_v63 = vld [vmem:[#allocation2 + $0x40] sm:$0xff] }
 0x12b   : > { %8216 = vmatmul.mubr.msk.bf16.gmra.mrb[12].mxu1 %vm13274_vm6, %v3244_v45  ;;  %v2524_v17 = vpop.permute.xlu1 %2523  ;;  %v10640_v19 = vsel %vm13276_vm0, %v10479_v15, %v10628_v34  ;;  %vm13278_vm0 = vcmp.ne.s16.totalorder %v9844_v28, 0 }
 0x12c   : > { %2868 = vrot.lane.b32.xlu0 %v2837_v25, %s8865_s21  ;;  %13277 = vst [vmem:[#allocation37_spill] sm:$0xff] %v10640_v19  ;;  %vm1782_vm6 = vcmp.ne.s16.totalorder %v10640_v19, 0  ;;  %v1791_v15 = vsel %vm13278_vm0, %v8773_v58, 0  ;;  %v2562_v25 = vshrl.u32 %v2159_v14, 16  ;;  %vm13280_vm0 = vcmp.ne.s16.totalorder %v9853_v57, 0 }
 0x12d   : > { %2401 = vrot.lane.b32.xlu1 %v2367_v51, %s8860_s30  ;;  %v2175_v27 = vsel %vm1782_vm6, %v10490_v11, 0  ;;  %v2899_v45 = vsel %vm13279_vm4, %v1791_v15, %v10579_v52  ;;  %v1792_v11 = vsel %vm13280_vm0, %v8774_v63, 0  ;;  %vm13282_vm0 = vsmask.f32 4352 }
 0x12e   : > { %v2580_v10 = vpop.permute.xlu0 %2579  ;;  %v2943_v51 = vsel %vm2927_vm3, %v2899_v45, %v2471_v24  ;;  %v2564_v14 = vor.u32 %v2562_v25, %v2560_v41  ;;  %v2902_v58 = vsel %vm13279_vm4, %v1792_v11, %v10599_v13  ;;  %v2747_v45 = vshrl.u32 %v10554_v50, 16 }
 0x12f   : > { %v2582_v6 = vpop.permute.xlu1 %2581  ;;  %v2978_v22 = vsel %vm2962_vm14, %v2943_v51, %v2522_v37  ;;  %v13281_v37 = vrot.slane %v10538_v33, 1  ;;  %vm13283_vm4 = vcmask 662528  }
 0x130   : > { %2870 = vrot.lane.b32.xlu0 %v2839_v59, %s8865_s21  ;;  %v3013_v0 = vsel %vm2997_vm8, %v2978_v22, %v2580_v10 }
 0x131   : > { %2403 = vrot.lane.b32.xlu1 %v2370_v4, %s8860_s30  ;;  %v2561_v4 = vsel %vm13073_vm5, %v10594_v26, %v2560_v41  ;;  %v2945_v26 = vsel %vm2927_vm3, %v2902_v58, %v2473_v1  ;;  %s612_s30 = scalar_lea.vmem %s13006_s17, %s13753_s25 }
 0x132   : > { %v2664_v53 = vpop.permute.xlu0 %2663  ;;  %v2980_v41 = vsel %vm2962_vm14, %v2945_v26, %v2524_v17  ;;  %v2214_v17 = vsel %vm1782_vm6, %v10554_v50, 0 }
 0x133   : > { %v2666_v40 = vpop.permute.xlu1 %2665  ;;  %v3048_v15 = vsel %vm3032_vm7, %v3013_v0, %v2664_v53  ;;  %v3015_v53 = vsel %vm2997_vm8, %v2980_v41, %v2582_v6  ;;  %v2749_v6 = vor.u32 %v2747_v45, %v10597_v36 }
 0x134   : > { %2486 = vrot.lane.b32.xlu0 %v2455_v62, %s8861_s18  ;;  %v2198_v62 = vld [vmem:[#allocation2 + $0x90] sm:$0xf] }
 0x135   : > { %2488 = vrot.lane.b32.xlu1 %v2454_v38, %s8861_s18  ;;  %v2647_v38 = vrot.slane %v2195_v5, 1  ;;  %v2751_v24 = vshll.u32 %v2198_v62, 16  ;;  %v2755_v58 = vshrl.u32 %v2198_v62, 16  ;;  %v2215_v50 = vsel %vm1783_vm12, %v2198_v62, 0  ;;  %s8868_s18 = smov 96  }
 0x136   : > { %v2715_v9 = vpop.permute.xlu0 %2714 }
 0x137   : > { %v2717_v59 = vpop.permute.xlu1 %2716  ;;  %v2648_v10 = vsel %vm2422_vm1, %v13281_v37, %v2647_v38 }
 0x138   : > { %2537 = vrot.lane.b32.xlu0 %v2175_v27, %s8858_s29  ;;  %v3083_v27 = vsel %vm3067_vm15, %v3048_v15, %v2715_v9  ;;  %v3050_v9 = vsel %vm3032_vm7, %v3015_v53, %v2666_v40 }
 0x139   : > { %2539 = vrot.lane.b32.xlu1 %v2176_v12, %s8858_s29  ;;  %v2217_v12 = vld [vmem:[#allocation2 + $0x90] sm:$0x1f]  ;;  %v3085_v11 = vsel %vm3067_vm15, %v3050_v9, %v2717_v59 }
 0x13a   : > { %v2773_v52 = vpop.permute.xlu0 %2772  ;;  %v2234_v40 = vsel %vm13072_vm9, %v2217_v12, 0  ;;  %vm13284_vm9 = vmmov %vm13282_vm0 }
 0x13b   : > { %v2775_v5 = vpop.permute.xlu1 %2774  ;;  %v3118_v13 = vsel %vm3102_vm13, %v3083_v27, %v2773_v52 }
 0x13c   : > { %2595 = vrot.lane.b32.xlu0 %v2561_v4, %s8863_s1  ;;  %v2753_v4 = vrot.slane %v2751_v24, 1  ;;  %v3120_v22 = vsel %vm3102_vm13, %v3085_v11, %v2775_v5  ;;  %v2840_v5 = vrot.slane %v2234_v40, 1  ;;  %v8775_v11 = vld [vmem:[#allocation2 + $0x48] sm:$0xff] }
 0x13d   : > { %2597 = vrot.lane.b32.xlu1 %v2564_v14, %s8863_s1  ;;  %s8870_s1 = smov 32  }
 0x13e   : > { %v2857_v25 = vpop.permute.xlu0 %2856  ;;  %v2754_v24 = vsel %vm13073_vm5, %v2749_v6, %v2753_v4  ;;  %v2757_v41 = vor.u32 %v2755_v58, %v2753_v4 }
 0x13f   : > { %v3153_v1 = vsel %vm3137_vm11, %v3118_v13, %v2857_v25  ;;  %v2390_v51 = vpop.permute.xlu1 %2389  ;;  %v2841_v25 = vsel %vm2422_vm1, %v2838_v29, %v2840_v5 }
 0x140   : > { %v3245_v63 = vshrl.u32 %v3153_v1, 16  ;;  %v3248_v33 = vshll.u32 %v3153_v1, 16  ;;  %2679 = vrot.lane.b32.xlu0 %v2648_v10, %s8862_s19 }
 0x141   : > { %2681 = vrot.lane.b32.xlu1 %v2647_v38, %s8862_s19  ;;  %s8869_s19 = smov 64  }
 0x142   : > { %v3247_v52 = vrot.slane %v3245_v63, 3  ;;  %v3250_v0 = vrot.slane %v3248_v33, 4  ;;  %v2859_v14 = vpop.permute.xlu0 %2858  ;;  %v13286_v63 = vmov 0.0   ;;  %v8483_v33 = vld [vmem:[%s12995_s6 + $0x8] sm:$0xff]  }
 0x143   : > { %v3155_v59 = vsel %vm3137_vm11, %v3120_v22, %v2859_v14  ;;  %v2392_v36 = vpop.permute.xlu1 %2391  ;;  %8179 = vmatprep.subr.bf16.mxu0 %v13286_v63 }
 0x144   : > { %v3251_v15 = vor.u32 %v3250_v0, %v3247_v52  ;;  %v3253_v26 = vshrl.u32 %v3155_v59, 16  ;;  %v3256_v27 = vshll.u32 %v3155_v59, 16  ;;  %2730 = vrot.lane.b32.xlu0 %v2214_v17, %s8859_s0  ;;  %8180 = vmatpush3.bf16.msra.mxu0 %v8483_v33  ;;  %v8484_v52 = vld [vmem:[%s12995_s6 + $0x10] sm:$0xff]  }
 0x145   : > { %2732 = vrot.lane.b32.xlu1 %v2215_v50, %s8859_s0  ;;  %8181 = vmatprep.subr.bf16.mxu0 %v13286_v63  ;;  %v8776_v0 = vld [vmem:[#allocation2 + $0x50] sm:$0xff] }
 0x146   : > { %v3255_v37 = vrot.slane %v3253_v26, 3  ;;  %v3258_v10 = vrot.slane %v3256_v27, 4  ;;  %v2475_v45 = vpop.permute.xlu0 %2474  ;;  %v3252_v38 = vsel %vm13282_vm0, %v10611_v39, %v3251_v15  ;;  %vm13285_vm0 = vmmov %vm13283_vm4 }
 0x147   : > { %8219 = vmatprep.mubr.msk.bf16.mxu1 %vm13283_vm4, %v3252_v38  ;;  %v2477_v62 = vpop.permute.xlu1 %2476  ;;  %vm13288_vm4 = vcmask 72704  }
 0x148   : > { %v10706_v13 = vor.u32 %v3258_v10, %v3255_v37  ;;  %2788 = vrot.lane.b32.xlu0 %v2754_v24, %s8864_s20  ;;  %8182 = vmatpush3.bf16.msra.mxu0 %v8484_v52  ;;  %v8485_v24 = vld [vmem:[%s12999_s10] sm:$0xff]  }
 0x149   : > { %2790 = vrot.lane.b32.xlu1 %v2757_v41, %s8864_s20  ;;  %s13290_s20 = sshll.u32 %s13753_s25, 4  ;;  %8239 = vmatprep.subr.bf16.mxu0 %v8485_v24 }
 0x14a   : > { %v2526_v53 = vpop.permute.xlu0 %2525  ;;  %v3260_v1 = vsel %vm13284_vm9, %v3251_v15, %v10706_v13  ;;  %vm13287_vm9 = vcmp.ne.s16.totalorder %v10036_v49, 0  ;;  %s604_s27 = scalar_lea.vmem %s12992_s3, %s13290_s20  ;;  %s599_s20 = scalar_lea.vmem %s12991_s2, %s13753_s25 }
 0x14b   : > { %8220 = vmatmul.mubr.msk.bf16.gmra.mrb[16].mxu1 %vm13285_vm0, %v3260_v1  ;;  %v2528_v39 = vpop.permute.xlu1 %2527  ;;  %v1793_v17 = vsel %vm13287_vm9, %v8775_v11, 0  ;;  %vm13289_vm0 = vcmp.ne.s16.totalorder %v10045_v46, 0  ;;  %v1190_v26 = vld [vmem:[%s604_s27 + $0x8] sm:$0xff]  ;;  %vm13291_vm9 = vmmov %vm13288_vm4 }
 0x14c   : > { %2872 = vrot.lane.b32.xlu0 %v2841_v25, %s8865_s21  ;;  %v2905_v22 = vsel %vm13288_vm4, %v1793_v17, %v2390_v51  ;;  %v1794_v14 = vsel %vm13289_vm0, %v8776_v0, 0  ;;  %v1189_v51 = vld [vmem:[%s604_s27] sm:$0xff]  ;;  %vm1223_vm4 = vcmask 392192   ;;  %vm13292_vm0 = vsmask.f32 4352 }
 0x14d   : > { %2874 = vrot.lane.b32.xlu1 %v2840_v5, %s8865_s21  ;;  %v2947_v40 = vsel %vm2927_vm3, %v2905_v22, %v2475_v45  ;;  %v1191_v50 = vpack.c.bf16 %v1190_v26, %v1189_v51  ;;  %v2908_v5 = vsel %vm13291_vm9, %v1794_v14, %v2392_v36  ;;  %vm13293_vm9 = vcmask 662528  }
 0x14e   : > { %v2584_v12 = vpop.permute.xlu0 %2583  ;;  %v2982_v58 = vsel %vm2962_vm14, %v2947_v40, %v2526_v53  ;;  %v2949_v10 = vsel %vm2927_vm3, %v2908_v5, %v2477_v62  ;;  %vm13295_vm5 = vmmov %vm13293_vm9  ;;  %v7730_v5 = vld [vmem:[%s12998_s9] ss:$0 sm:$0xff] }
 0x14f   : > { %v2586_v9 = vpop.permute.xlu1 %2585  ;;  %v3017_v27 = vsel %vm2997_vm8, %v2982_v58, %v2584_v12  ;;  %8184 = vmatmul.mubr.msk.bf16.vlgmr.msra.gmra.mrb[0].mxu0 %vm1223_vm4, %v1191_v50  ;;  %v2984_v41 = vsel %vm2962_vm14, %v2949_v10, %v2528_v39  ;;  %v8486_v12 = vld [vmem:[%s12999_s10 + $0x8] sm:$0xff]   ;;  %vm13294_vm4 = vmmov %vm13292_vm0 }
 0x150   : > { %8240 = vmatpush3.bf16.msra.mxu0 %v8485_v24  ;;  %v3019_v1 = vsel %vm2997_vm8, %v2984_v41, %v2586_v9 }
 0x151   : > { %8241 = vmatprep.subr.bf16.mxu0 %v8486_v12 }
 0x152   : > { %v2668_v29 = vpop.permute.xlu0 %2667 }
 0x153   : > { %v2670_v6 = vpop.permute.xlu1 %2669  ;;  %v3052_v37 = vsel %vm3032_vm7, %v3017_v27, %v2668_v29 }
 0x154   : > { %v3054_v62 = vsel %vm3032_vm7, %v3019_v1, %v2670_v6  ;;  %8242 = vmatpush3.bf16.msra.mxu0 %v8486_v12  ;;  %v8777_v1 = vld [vmem:[#allocation2 + $0x58] sm:$0xff] }
 0x156   : > { %v2719_v4 = vpop.permute.xlu0 %2718 }
 0x157   : > { %v2721_v59 = vpop.permute.xlu1 %2720  ;;  %v3087_v45 = vsel %vm3067_vm15, %v3052_v37, %v2719_v4 }
 0x158   : > { %v3089_v63 = vsel %vm3067_vm15, %v3054_v62, %v2721_v59 }
 0x15a   : > { %v2777_v15 = vpop.permute.xlu0 %2776 }
 0x15b   : > { %v2779_v38 = vpop.permute.xlu1 %2778  ;;  %v3122_v25 = vsel %vm3102_vm13, %v3087_v45, %v2777_v15 }
 0x15c   : > { %v3124_v39 = vsel %vm3102_vm13, %v3089_v63, %v2779_v38  ;;  %v1332_v37 = vpop.f32.mrb[0].mxu1  ;;  %v8778_v63 = vld [vmem:[#allocation2 + $0x60] sm:$0xff] }
 0x15d   : > { %v1333_v45 = vadd.f32 %v7730_v5, %v1332_v37  ;;  %v8193_v38 = vpop.f32.mrb[1].mxu1 }
 0x15e   : > { %v2861_v53 = vpop.permute.xlu0 %2860  ;;  %v1335_v41 = vpop.f32.mrb[2].mxu1 }
 0x15f   : > { %v3157_v36 = vsel %vm3137_vm11, %v3122_v25, %v2861_v53  ;;  %v2394_v33 = vpop.permute.xlu1 %2393  ;;  %v1336_v25 = vadd.f32 %v7730_v5, %v1335_v41  ;;  %v8194_v53 = vpop.f32.mrb[3].mxu1 }
 0x160   : > { %v3261_v35 = vshrl.u32 %v3157_v36, 16  ;;  %v3264_v29 = vshll.u32 %v3157_v36, 16 }
 0x161   : > { %v10770_v62 = vpack.c.bf16 %v1336_v25, %v1333_v45 }
 0x162   : > { %v3263_v11 = vrot.slane %v3261_v35, 3  ;;  %v3266_v17 = vrot.slane %v3264_v29, 4  ;;  %v2863_v4 = vpop.permute.xlu0 %2862 }
 0x163   : > { %v3159_v9 = vsel %vm3137_vm11, %v3124_v39, %v2863_v4  ;;  %v2396_v14 = vpop.permute.xlu1 %2395 }
 0x164   : > { %v3267_v22 = vor.u32 %v3266_v17, %v3263_v11  ;;  %v3269_v52 = vshrl.u32 %v3159_v9, 16  ;;  %v3272_v0 = vshll.u32 %v3159_v9, 16 }
 0x166   : > { %v3271_v40 = vrot.slane %v3269_v52, 3  ;;  %v3274_v6 = vrot.slane %v3272_v0, 4  ;;  %v2479_v58 = vpop.permute.xlu0 %2478  ;;  %v3268_v59 = vsel %vm13292_vm0, %v10706_v13, %v3267_v22  ;;  %vm13296_vm0 = vcmp.ne.s16.totalorder %v10293_v43, 0 }
 0x167   : > { %8223 = vmatprep.mubr.msk.bf16.mxu1 %vm13293_vm9, %v3268_v59  ;;  %v2481_v51 = vpop.permute.xlu1 %2480  ;;  %v1795_v36 = vsel %vm13296_vm0, %v8777_v1, 0  ;;  %vm13298_vm9 = vcmp.ne.s16.totalorder %v10312_v16, 0  ;;  %vm13300_vm0 = vsmask.f32 4352 }
 0x168   : > { %v3275_v15 = vor.u32 %v3274_v6, %v3271_v40  ;;  %v1796_v39 = vsel %vm13298_vm9, %v8778_v63, 0  ;;  %vm13302_vm9 = vmmov %vm13300_vm0 }
 0x16a   : > { %v2530_v26 = vpop.permute.xlu0 %2529  ;;  %v3276_v27 = vsel %vm13294_vm4, %v3267_v22, %v3275_v15 }
 0x16b   : > { %8224 = vmatmul.mubr.msk.bf16.gmra.mrb[20].mxu1 %vm13295_vm5, %v3276_v27  ;;  %v2532_v50 = vpop.permute.xlu1 %2531  ;;  %vm13297_vm5 = vcmask 72704  }
 0x16c   : > { %v2911_v29 = vsel %vm13297_vm5, %v1795_v36, %v2394_v33  ;;  %vm13299_vm4 = vmmov %vm13297_vm5  ;;  %vm13301_vm5 = vcmask 662528  }
 0x16d   : > { %v2951_v11 = vsel %vm2927_vm3, %v2911_v29, %v2479_v58  ;;  %v2914_v52 = vsel %vm13299_vm4, %v1796_v39, %v2396_v14  ;;  %vm13303_vm4 = vmmov %vm13301_vm5 }
 0x16e   : > { %v2588_v24 = vpop.permute.xlu0 %2587  ;;  %v2986_v4 = vsel %vm2962_vm14, %v2951_v11, %v2530_v26  ;;  %v2953_v40 = vsel %vm2927_vm3, %v2914_v52, %v2481_v51 }
 0x16f   : > { %v2590_v10 = vpop.permute.xlu1 %2589  ;;  %v3021_v22 = vsel %vm2997_vm8, %v2986_v4, %v2588_v24  ;;  %v2988_v59 = vsel %vm2962_vm14, %v2953_v40, %v2532_v50  ;;  %v8779_v40 = vld [vmem:[#allocation2 + $0x68] sm:$0xff] }
 0x170   : > { %v3023_v5 = vsel %vm2997_vm8, %v2988_v59, %v2590_v10 }
 0x172   : > { %v2672_v13 = vpop.permute.xlu0 %2671 }
 0x173   : > { %v2674_v12 = vpop.permute.xlu1 %2673  ;;  %v3056_v0 = vsel %vm3032_vm7, %v3021_v22, %v2672_v13 }
 0x174   : > { %v3058_v24 = vsel %vm3032_vm7, %v3023_v5, %v2674_v12 }
 0x176   : > { %v2723_v35 = vpop.permute.xlu0 %2722 }
 0x177   : > { %v2725_v17 = vpop.permute.xlu1 %2724  ;;  %v3091_v33 = vsel %vm3067_vm15, %v3056_v0, %v2723_v35 }
 0x178   : > { %v3093_v45 = vsel %vm3067_vm15, %v3058_v24, %v2725_v17 }
 0x17a   : > { %v2781_v9 = vpop.permute.xlu0 %2780 }
 0x17b   : > { %v2783_v6 = vpop.permute.xlu1 %2782  ;;  %v3126_v27 = vsel %vm3102_vm13, %v3091_v33, %v2781_v9  ;;  %v1797_v33 = vsel %vm1780_vm2, %v8779_v40, 0 }
 0x17c   : > { %v3128_v51 = vsel %vm3102_vm13, %v3093_v45, %v2783_v6 }
 0x17e   : > { %v2865_v58 = vpop.permute.xlu0 %2864 }
 0x17f   : > { %v3161_v26 = vsel %vm3137_vm11, %v3126_v27, %v2865_v58  ;;  %v2398_v38 = vpop.permute.xlu1 %2397  ;;  %v1798_v27 = vsel %vm1781_vm10, %v10298_v7, 0 }
 0x180   : > { %v3277_v37 = vshrl.u32 %v3161_v26, 16  ;;  %v3280_v14 = vshll.u32 %v3161_v26, 16 }
 0x182   : > { %v3279_v13 = vrot.slane %v3277_v37, 3  ;;  %v3282_v41 = vrot.slane %v3280_v14, 4  ;;  %v2867_v25 = vpop.permute.xlu0 %2866 }
 0x183   : > { %v3163_v50 = vsel %vm3137_vm11, %v3128_v51, %v2867_v25  ;;  %v2400_v10 = vpop.permute.xlu1 %2399 }
 0x184   : > { %v3283_v53 = vor.u32 %v3282_v41, %v3279_v13  ;;  %v3285_v1 = vshrl.u32 %v3163_v50, 16  ;;  %v3288_v36 = vshll.u32 %v3163_v50, 16 }
 0x186   : > { %v3287_v35 = vrot.slane %v3285_v1, 3  ;;  %v3290_v29 = vrot.slane %v3288_v36, 4  ;;  %v2483_v63 = vpop.permute.xlu0 %2482  ;;  %v3284_v12 = vsel %vm13300_vm0, %v3275_v15, %v3283_v53  ;;  %vm13304_vm0 = vcmask 72704  }
 0x187   : > { %8227 = vmatprep.mubr.msk.bf16.mxu1 %vm13301_vm5, %v3284_v12  ;;  %v2485_v11 = vpop.permute.xlu1 %2484  ;;  %v2917_v15 = vsel %vm13304_vm0, %v1797_v33, %v2398_v38  ;;  %vm13305_vm5 = vmmov %vm13304_vm0 }
 0x188   : > { %v3291_v39 = vor.u32 %v3290_v29, %v3287_v35  ;;  %v2955_v58 = vsel %vm2927_vm3, %v2917_v15, %v2483_v63  ;;  %v2920_v14 = vsel %vm13305_vm5, %v1798_v27, %v2400_v10  ;;  %vm13306_vm0 = vmmov %vm13302_vm9 }
 0x189   : > { %v2957_v51 = vsel %vm2927_vm3, %v2920_v14, %v2485_v11  ;;  %vm13307_vm5 = vmmov %vm13303_vm4 }
 0x18a   : > { %v2534_v17 = vpop.permute.xlu0 %2533  ;;  %v3292_v4 = vsel %vm13302_vm9, %v3283_v53, %v3291_v39 }
 0x18b   : > { %8228 = vmatmul.mubr.msk.bf16.gmra.mrb[24].mxu1 %vm13303_vm4, %v3292_v4  ;;  %v2536_v9 = vpop.permute.xlu1 %2535  ;;  %v2990_v26 = vsel %vm2962_vm14, %v2955_v58, %v2534_v17 }
 0x18c   : > { %v2992_v41 = vsel %vm2962_vm14, %v2957_v51, %v2536_v9 }
 0x18e   : > { %v2592_v22 = vpop.permute.xlu0 %2591 }
 0x18f   : > { %v2594_v52 = vpop.permute.xlu1 %2593  ;;  %v3025_v37 = vsel %vm2997_vm8, %v2990_v26, %v2592_v22 }
 0x190   : > { %v3027_v50 = vsel %vm2997_vm8, %v2992_v41, %v2594_v52  ;;  %v1800_v41 = vsel %vm1783_vm12, %v10570_v56, 0 }
 0x192   : > { %v2676_v0 = vpop.permute.xlu0 %2675 }
 0x193   : > { %v2678_v6 = vpop.permute.xlu1 %2677  ;;  %v3060_v45 = vsel %vm3032_vm7, %v3025_v37, %v2676_v0 }
 0x194   : > { %v3062_v1 = vsel %vm3032_vm7, %v3027_v50, %v2678_v6 }
 0x196   : > { %v2727_v59 = vpop.permute.xlu0 %2726 }
 0x197   : > { %v2729_v5 = vpop.permute.xlu1 %2728  ;;  %v3095_v38 = vsel %vm3067_vm15, %v3060_v45, %v2727_v59  ;;  %v8780_v45 = vld [vmem:[#allocation2 + $0x78] sm:$0xff] }
 0x198   : > { %v3097_v35 = vsel %vm3067_vm15, %v3062_v1, %v2729_v5  ;;  %v1799_v51 = vsel %vm1782_vm6, %v8780_v45, 0 }
 0x19a   : > { %v2785_v24 = vpop.permute.xlu0 %2784 }
 0x19b   : > { %v2787_v13 = vpop.permute.xlu1 %2786  ;;  %v3130_v7 = vsel %vm3102_vm13, %v3095_v38, %v2785_v24 }
 0x19c   : > { %v3132_v63 = vsel %vm3102_vm13, %v3097_v35, %v2787_v13 }
 0x19e   : > { %v2869_v25 = vpop.permute.xlu0 %2868 }
 0x19f   : > { %v3165_v53 = vsel %vm3137_vm11, %v3130_v7, %v2869_v25  ;;  %v2402_v29 = vpop.permute.xlu1 %2401 }
 0x1a0   : > { %v3293_v36 = vshrl.u32 %v3165_v53, 16  ;;  %v3296_v10 = vshll.u32 %v3165_v53, 16 }
 0x1a2   : > { %v3295_v12 = vrot.slane %v3293_v36, 3  ;;  %v3298_v11 = vrot.slane %v3296_v10, 4  ;;  %v2871_v17 = vpop.permute.xlu0 %2870 }
 0x1a3   : > { %v3167_v4 = vsel %vm3137_vm11, %v3132_v63, %v2871_v17  ;;  %v2404_v52 = vpop.permute.xlu1 %2403 }
 0x1a4   : > { %v3299_v9 = vor.u32 %v3298_v11, %v3295_v12  ;;  %v3301_v22 = vshrl.u32 %v3167_v4, 16  ;;  %v3304_v0 = vshll.u32 %v3167_v4, 16 }
 0x1a6   : > { %v3303_v40 = vrot.slane %v3301_v22, 3  ;;  %v3306_v33 = vrot.slane %v3304_v0, 4  ;;  %v2487_v59 = vpop.permute.xlu0 %2486  ;;  %v3300_v6 = vsel %vm13302_vm9, %v3291_v39, %v3299_v9  ;;  %vm13308_vm9 = vcmask 72704  }
 0x1a7   : > { %8231 = vmatprep.mubr.msk.bf16.mxu1 %vm13303_vm4, %v3300_v6  ;;  %v2489_v27 = vpop.permute.xlu1 %2488  ;;  %v2923_v13 = vsel %vm13308_vm9, %v1799_v51, %v2402_v29  ;;  %vm13309_vm4 = vmmov %vm13308_vm9  ;;  %v10835_v29 = vld [vmem:[%s599_s20] ss:$0 sm:$0xff] }
 0x1a8   : > { %v3307_v15 = vor.u32 %v3306_v33, %v3303_v40  ;;  %v2959_v7 = vsel %vm2927_vm3, %v2923_v13, %v2487_v59  ;;  %v2926_v1 = vsel %vm13309_vm4, %v1800_v41, %v2404_v52 }
 0x1a9   : > { %v2961_v10 = vsel %vm2927_vm3, %v2926_v1, %v2489_v27  ;;  %vm13313_vm3 = vmmov %vm13307_vm5 }
 0x1aa   : > { %v2538_v58 = vpop.permute.xlu0 %2537  ;;  %v3308_v5 = vsel %vm13306_vm0, %v3299_v9, %v3307_v15 }
 0x1ab   : > { %8232 = vmatmul.mubr.msk.bf16.gmra.mrb[28].mxu1 %vm13307_vm5, %v3308_v5  ;;  %v2540_v26 = vpop.permute.xlu1 %2539  ;;  %v2994_v50 = vsel %vm2962_vm14, %v2959_v7, %v2538_v58 }
 0x1ac   : > { %v2996_v56 = vsel %vm2962_vm14, %v2961_v10, %v2540_v26  ;;  %vm13312_vm14 = vmmov %vm13306_vm0 }
 0x1ae   : > { %v2596_v24 = vpop.permute.xlu0 %2595 }
 0x1af   : > { %v2598_v37 = vpop.permute.xlu1 %2597  ;;  %v3029_v36 = vsel %vm2997_vm8, %v2994_v50, %v2596_v24 }
 0x1b0   : > { %v3031_v11 = vsel %vm2997_vm8, %v2996_v56, %v2598_v37  ;;  %vm13310_vm8 = vmmov %vm13306_vm0 }
 0x1b2   : > { %v2680_v14 = vpop.permute.xlu0 %2679 }
 0x1b3   : > { %v2682_v38 = vpop.permute.xlu1 %2681  ;;  %v3064_v35 = vsel %vm3032_vm7, %v3029_v36, %v2680_v14 }
 0x1b4   : > { %v3066_v22 = vsel %vm3032_vm7, %v3031_v11, %v2682_v38  ;;  %vm13314_vm7 = vcmask 261120  }
 0x1b5   : > { %vm13317_vm0 = vmmov %vm13314_vm7 }
 0x1b6   : > { %v2731_v39 = vpop.permute.xlu0 %2730  ;;  %vm13321_vm9 = vmmov %vm13317_vm0 }
 0x1b7   : > { %v2733_v25 = vpop.permute.xlu1 %2732  ;;  %v3099_v63 = vsel %vm3067_vm15, %v3064_v35, %v2731_v39  ;;  %vm13326_vm4 = vmmov %vm13317_vm0 }
 0x1b8   : > { %v3101_v33 = vsel %vm3067_vm15, %v3066_v22, %v2733_v25  ;;  %vm13311_vm15 = vmmov %vm13307_vm5 }
 0x1b9   : > { %vm13320_vm5 = vmmov %vm13317_vm0 }
 0x1ba   : > { %v2789_v53 = vpop.permute.xlu0 %2788 }
 0x1bb   : > { %v2791_v12 = vpop.permute.xlu1 %2790  ;;  %v3134_v17 = vsel %vm3102_vm13, %v3099_v63, %v2789_v53 }
 0x1bc   : > { %v3136_v5 = vsel %vm3102_vm13, %v3101_v33, %v2791_v12  ;;  %vm13315_vm13 = vmmov %vm13314_vm7 }
 0x1be   : > { %v2873_v4 = vpop.permute.xlu0 %2872  ;;  %v8209_v9 = vpop.f32.mrb[4].mxu1 }
 0x1bf   : > { %v3169_v0 = vsel %vm3137_vm11, %v3134_v17, %v2873_v4  ;;  %v3456_v52 = vadd.f32 %v8209_v9, %v10835_v29  ;;  %v3447_v40 = vpop.f32.mrb[5].mxu1  ;;  %v2875_v24 = vpop.permute.xlu1 %2874 }
 0x1c0   : > { %v3309_v59 = vshrl.u32 %v3169_v0, 16  ;;  %v3312_v6 = vshll.u32 %v3169_v0, 16  ;;  %v3448_v27 = vadd.f32 %v10835_v29, %v3447_v40  ;;  %v8210_v58 = vpop.f32.mrb[6].mxu1  ;;  %v3171_v38 = vsel %vm3137_vm11, %v3136_v5, %v2875_v24  ;;  %vm13316_vm11 = vmmov %vm13314_vm7 }
 0x1c1   : > { %v7791_v26 = vmul.f32 -1.442695, %v3456_v52  ;;  %v3459_v37 = vadd.f32 %v8210_v58, %v10835_v29  ;;  %v3450_v14 = vpop.f32.mrb[7].mxu1  ;;  %v3317_v13 = vshrl.u32 %v3171_v38, 16  ;;  %v3320_v41 = vshll.u32 %v3171_v38, 16 }
 0x1c2   : > { %v3311_v45 = vrot.slane %v3309_v59, 3  ;;  %v3314_v51 = vrot.slane %v3312_v6, 4  ;;  %v7789_v39 = vmul.f32 -1.442695, %v3448_v27  ;;  %v3451_v50 = vadd.f32 %v10835_v29, %v3450_v14 }
 0x1c3   : > { %8511 = vpow2.f32 %v7791_v26  ;;  %v7792_v7 = vmul.f32 -1.442695, %v3459_v37  ;;  %v3319_v53 = vrot.slane %v3317_v13, 3  ;;  %v3322_v1 = vrot.slane %v3320_v41, 4 }
 0x1c4   : > { %v3315_v25 = vor.u32 %v3314_v51, %v3311_v45  ;;  %8513 = vpow2.f32 %v7789_v39  ;;  %v7790_v36 = vmul.f32 -1.442695, %v3451_v50 }
 0x1c5   : > { %8515 = vpow2.f32 %v7792_v7  ;;  %v3323_v35 = vor.u32 %v3322_v1, %v3319_v53 }
 0x1c6   : > { %v3316_v10 = vsel %vm13310_vm8, %v3307_v15, %v3315_v25  ;;  %8517 = vpow2.f32 %v7790_v36  ;;  %vm13327_vm8 = vmmov %vm13317_vm0 }
 0x1c7   : > { %8235 = vmatprep.mubr.msk.bf16.mxu1 %vm13311_vm15, %v3316_v10  ;;  %v3324_v56 = vsel %vm13312_vm14, %v3315_v25, %v3323_v35  ;;  %vm13332_vm15 = vmmov %vm13317_vm0 }
 0x1c8   : > { %8236 = vmatmul.mubr.msk.bf16.gmra.mrb[32].mxu1 %vm13313_vm3, %v3324_v56  ;;  %vm13333_vm14 = vmmov %vm13317_vm0 }
 0x1c9   : > { %vm13338_vm3 = vmmov %vm13317_vm0 }
 0x1cd   : > { %v8512_v63 = vpop.eup %8511 }
 0x1ce   : > { %v8514_v12 = vpop.eup %8513  ;;  %v3672_v4 = vadd.f32 1.0, %v8512_v63 }
 0x1cf   : > { %v8516_v11 = vpop.eup %8515  ;;  %v3670_v17 = vadd.f32 1.0, %v8514_v12 }
 0x1d0   : > { %v3673_v9 = vadd.f32 1.0, %v8516_v11  ;;  %v8518_v22 = vpop.eup %8517 }
 0x1d1   : > { %v3671_v0 = vadd.f32 1.0, %v8518_v22 }
 0x1d2   : > { %8519 = vrcp.f32 %v3673_v9 }
 0x1d3   : > { %8521 = vrcp.f32 %v3670_v17 }
 0x1d4   : > { %8523 = vrcp.f32 %v3672_v4 }
 0x1d5   : > { %8525 = vrcp.f32 %v3671_v0 }
 0x1dc   : > { %v8520_v15 = vpop.eup %8519 }
 0x1dd   : > { %v8522_v40 = vpop.eup %8521  ;;  %v10854_v58 = vmul.f32 %v8520_v15, %v3459_v37 }
 0x1de   : > { %v8524_v33 = vpop.eup %8523  ;;  %v8213_v59 = vpop.f32.mrb[8].mxu1  ;;  %v10857_v24 = vmul.f32 %v8522_v40, %v3448_v27 }
 0x1df   : > { %v8526_v6 = vpop.eup %8525  ;;  %v3472_v5 = vadd.f32 %v8213_v59, %v10835_v29  ;;  %v3463_v26 = vpop.f32.mrb[9].mxu1  ;;  %v10862_v38 = vmul.f32 %v8524_v33, %v3456_v52 }
 0x1e0   : > { %v10859_v14 = vmul.f32 %v8526_v6, %v3451_v50  ;;  %v3464_v45 = vadd.f32 %v10835_v29, %v3463_v26  ;;  %v8214_v51 = vpop.f32.mrb[10].mxu1 }
 0x1e1   : > { %v7795_v39 = vmul.f32 -1.442695, %v3472_v5  ;;  %v3475_v13 = vadd.f32 %v8214_v51, %v10835_v29  ;;  %v3466_v41 = vpop.f32.mrb[11].mxu1  ;;  %v3799_v27 = vpack.c.bf16 %v10854_v58, %v10862_v38 }
 0x1e2   : > { %v3798_v37 = vpack.c.bf16 %v10859_v14, %v10857_v24  ;;  %v7793_v7 = vmul.f32 -1.442695, %v3464_v45  ;;  %v3467_v25 = vadd.f32 %v10835_v29, %v3466_v41 }
 0x1e3   : > { %8527 = vpow2.f32 %v7795_v39  ;;  %v7796_v50 = vmul.f32 -1.442695, %v3475_v13 }
 0x1e4   : > { %8529 = vpow2.f32 %v7793_v7  ;;  %v7794_v53 = vmul.f32 -1.442695, %v3467_v25  ;;  %8243 = vmatprep.mubr.msk.bf16.mxu0 %vm13314_vm7, %v3798_v37  ;;  %vm13339_vm7 = vmmov %vm13317_vm0 }
 0x1e5   : > { %8531 = vpow2.f32 %v7796_v50  ;;  %8244 = vmatmul.mubr.msk.bf16.vlgmr.msra.gmra.mrb[4].mxu0 %vm13315_vm13, %v3799_v27  ;;  %vm13344_vm13 = vmmov %vm13317_vm0 }
 0x1e6   : > { %8533 = vpow2.f32 %v7794_v53 }
 0x1ed   : > { %v8528_v52 = vpop.eup %8527 }
 0x1ee   : > { %v8530_v1 = vpop.eup %8529  ;;  %v3676_v36 = vadd.f32 1.0, %v8528_v52 }
 0x1ef   : > { %v8532_v10 = vpop.eup %8531  ;;  %v3674_v35 = vadd.f32 1.0, %v8530_v1 }
 0x1f0   : > { %v8534_v56 = vpop.eup %8533  ;;  %8535 = vrcp.f32 %v3676_v36  ;;  %v3677_v63 = vadd.f32 1.0, %v8532_v10 }
 0x1f1   : > { %8537 = vrcp.f32 %v3674_v35  ;;  %v3675_v12 = vadd.f32 1.0, %v8534_v56 }
 0x1f2   : > { %8539 = vrcp.f32 %v3677_v63 }
 0x1f3   : > { %8541 = vrcp.f32 %v3675_v12 }
 0x1fa   : > { %v8536_v11 = vpop.eup %8535 }
 0x1fb   : > { %v8538_v17 = vpop.eup %8537  ;;  %v10878_v33 = vmul.f32 %v8536_v11, %v3472_v5 }
 0x1fc   : > { %v8540_v4 = vpop.eup %8539  ;;  %v10874_v0 = vmul.f32 %v8538_v17, %v3464_v45 }
 0x1fd   : > { %v8542_v9 = vpop.eup %8541  ;;  %v10872_v22 = vmul.f32 %v8540_v4, %v3475_v13 }
 0x1fe   : > { %v10876_v15 = vmul.f32 %v8542_v9, %v3467_v25  ;;  %v8217_v40 = vpop.f32.mrb[12].mxu1 }
 0x1ff   : > { %v3488_v59 = vadd.f32 %v8217_v40, %v10835_v29  ;;  %v3479_v6 = vpop.f32.mrb[13].mxu1  ;;  %v3801_v13 = vpack.c.bf16 %v10872_v22, %v10878_v33 }
 0x200   : > { %v3800_v26 = vpack.c.bf16 %v10876_v15, %v10874_v0  ;;  %v3480_v51 = vadd.f32 %v10835_v29, %v3479_v6  ;;  %v8218_v39 = vpop.f32.mrb[14].mxu1 }
 0x201   : > { %v7799_v41 = vmul.f32 -1.442695, %v3488_v59  ;;  %v3491_v45 = vadd.f32 %v8218_v39, %v10835_v29  ;;  %v3482_v37 = vpop.f32.mrb[15].mxu1 }
 0x202   : > { %v7797_v7 = vmul.f32 -1.442695, %v3480_v51  ;;  %v3483_v5 = vadd.f32 %v10835_v29, %v3482_v37  ;;  %8247 = vmatprep.mubr.msk.bf16.mxu0 %vm13316_vm11, %v3800_v26  ;;  %vm13345_vm11 = vmmov %vm13317_vm0 }
 0x203   : > { %8543 = vpow2.f32 %v7799_v41  ;;  %v7800_v25 = vmul.f32 -1.442695, %v3491_v45  ;;  %8248 = vmatmul.mubr.msk.bf16.gmra.mrb[8].mxu0 %vm13317_vm0, %v3801_v13 }
 0x204   : > { %8545 = vpow2.f32 %v7797_v7  ;;  %v7798_v27 = vmul.f32 -1.442695, %v3483_v5 }
 0x205   : > { %8547 = vpow2.f32 %v7800_v25 }
 0x206   : > { %8549 = vpow2.f32 %v7798_v27 }
 0x20d   : > { %v8544_v50 = vpop.eup %8543 }
 0x20e   : > { %v8546_v53 = vpop.eup %8545  ;;  %v3680_v52 = vadd.f32 1.0, %v8544_v50 }
 0x20f   : > { %v8548_v1 = vpop.eup %8547  ;;  %v3678_v36 = vadd.f32 1.0, %v8546_v53 }
 0x210   : > { %v8550_v10 = vpop.eup %8549  ;;  %8551 = vrcp.f32 %v3680_v52  ;;  %v3681_v35 = vadd.f32 1.0, %v8548_v1 }
 0x211   : > { %8553 = vrcp.f32 %v3678_v36  ;;  %v3679_v56 = vadd.f32 1.0, %v8550_v10 }
 0x212   : > { %8555 = vrcp.f32 %v3681_v35 }
 0x213   : > { %8557 = vrcp.f32 %v3679_v56 }
 0x21a   : > { %v8552_v63 = vpop.eup %8551 }
 0x21b   : > { %v8554_v12 = vpop.eup %8553  ;;  %v10896_v26 = vmul.f32 %v8552_v63, %v3488_v59 }
 0x21c   : > { %v8556_v11 = vpop.eup %8555  ;;  %v10892_v9 = vmul.f32 %v8554_v12, %v3480_v51 }
 0x21d   : > { %v8558_v17 = vpop.eup %8557  ;;  %v10890_v4 = vmul.f32 %v8556_v11, %v3491_v45 }
 0x21e   : > { %v10894_v40 = vmul.f32 %v8558_v17, %v3483_v5  ;;  %v8221_v6 = vpop.f32.mrb[16].mxu1 }
 0x21f   : > { %13318 = vst [vmem:[#allocation38_spill] sm:$0xff] %v10890_v4  ;;  %v3504_v39 = vadd.f32 %v8221_v6, %v10835_v29  ;;  %v3495_v13 = vpop.f32.mrb[17].mxu1  ;;  %v3803_v45 = vpack.c.bf16 %v10890_v4, %v10896_v26 }
 0x220   : > { %13319 = vst [vmem:[#allocation39_spill] sm:$0xff] %v10894_v40  ;;  %v3802_v41 = vpack.c.bf16 %v10894_v40, %v10892_v9  ;;  %v3496_v37 = vadd.f32 %v10835_v29, %v3495_v13  ;;  %v8222_v7 = vpop.f32.mrb[18].mxu1 }
 0x221   : > { %v7803_v25 = vmul.f32 -1.442695, %v3504_v39  ;;  %v3507_v51 = vadd.f32 %v8222_v7, %v10835_v29  ;;  %v3498_v5 = vpop.f32.mrb[19].mxu1 }
 0x222   : > { %v7801_v27 = vmul.f32 -1.442695, %v3496_v37  ;;  %v3499_v59 = vadd.f32 %v10835_v29, %v3498_v5  ;;  %8251 = vmatprep.mubr.msk.bf16.mxu0 %vm13320_vm5, %v3802_v41  ;;  %v1261_v11 = vpop.f32.mrb[0].mxu0  ;;  %vm13350_vm5 = vmmov %vm13317_vm0 }
 0x223   : > { %8559 = vpow2.f32 %v7803_v25  ;;  %v7804_v50 = vmul.f32 -1.442695, %v3507_v51  ;;  %8252 = vmatmul.mubr.msk.bf16.gmra.mrb[12].mxu0 %vm13321_vm9, %v3803_v45  ;;  %v8185_v17 = vpop.f32.mrb[1].mxu0  ;;  %vm13351_vm9 = vmmov %vm13317_vm0 }
 0x224   : > { %8561 = vpow2.f32 %v7801_v27  ;;  %v7802_v53 = vmul.f32 -1.442695, %v3499_v59  ;;  %v1264_v6 = vpop.f32.mrb[2].mxu0 }
 0x225   : > { %8563 = vpow2.f32 %v7804_v50  ;;  %v8186_v13 = vpop.f32.mrb[3].mxu0 }
 0x226   : > { %8565 = vpow2.f32 %v7802_v53 }
 0x22d   : > { %v8560_v52 = vpop.eup %8559 }
 0x22e   : > { %v8562_v1 = vpop.eup %8561  ;;  %v3684_v36 = vadd.f32 1.0, %v8560_v52 }
 0x22f   : > { %v8564_v10 = vpop.eup %8563  ;;  %v3682_v35 = vadd.f32 1.0, %v8562_v1 }
 0x230   : > { %v8566_v56 = vpop.eup %8565  ;;  %8567 = vrcp.f32 %v3684_v36  ;;  %v3685_v63 = vadd.f32 1.0, %v8564_v10  ;;  %v7725_v10 = vld [vmem:[%s12996_s7] ss:$0 sm:$0xff] }
 0x231   : > { %8569 = vrcp.f32 %v3682_v35  ;;  %v3683_v12 = vadd.f32 1.0, %v8566_v56  ;;  %v8487_v35 = vld [vmem:[%s13000_s11] sm:$0xff]   ;;  %v1262_v56 = vadd.f32 %v7725_v10, %v1261_v11  ;;  %v8488_v11 = vld [vmem:[%s13000_s11 + $0x8] sm:$0xff]  }
 0x232   : > { %8571 = vrcp.f32 %v3685_v63  ;;  %8275 = vmatprep.subr.bf16.mxu0 %v8487_v35 }
 0x233   : > { %8573 = vrcp.f32 %v3683_v12  ;;  %8276 = vmatpush3.bf16.msra.mxu0 %v8487_v35 }
 0x234   : > { %8277 = vmatprep.subr.bf16.mxu0 %v8488_v11 }
 0x237   : > { %8278 = vmatpush3.bf16.msra.mxu0 %v8488_v11 }
 0x23a   : > { %v8568_v41 = vpop.eup %8567 }
 0x23b   : > { %v8570_v7 = vpop.eup %8569  ;;  %v10914_v52 = vmul.f32 %v8568_v41, %v3504_v39  ;;  %v1265_v39 = vadd.f32 %v7725_v10, %v1264_v6 }
 0x23c   : > { %v8572_v45 = vpop.eup %8571  ;;  %v10910_v27 = vmul.f32 %v8570_v7, %v3496_v37 }
 0x23d   : > { %v8574_v25 = vpop.eup %8573  ;;  %v10908_v5 = vmul.f32 %v8572_v45, %v3507_v51  ;;  %13325 = vst [vmem:[#allocation43_spill] sm:$0xff] %v10914_v52  ;;  %v10931_v45 = vpack.c.bf16 %v1265_v39, %v1262_v56 }
 0x23e   : > { %13323 = vst [vmem:[#allocation41_spill] sm:$0xff] %v10910_v27  ;;  %v10912_v50 = vmul.f32 %v8574_v25, %v3499_v59  ;;  %v8225_v53 = vpop.f32.mrb[20].mxu1 }
 0x23f   : > { %13322 = vst [vmem:[#allocation40_spill] sm:$0xff] %v10908_v5  ;;  %v3520_v1 = vadd.f32 %v8225_v53, %v10835_v29  ;;  %v3511_v36 = vpop.f32.mrb[21].mxu1  ;;  %v3805_v63 = vpack.c.bf16 %v10908_v5, %v10914_v52  ;;  %v10940_v53 = vld [vmem:[%s13001_s12] sm:$0xff]  }
 0x240   : > { %13324 = vst [vmem:[#allocation42_spill] sm:$0xff] %v10912_v50  ;;  %v3804_v37 = vpack.c.bf16 %v10912_v50, %v10910_v27  ;;  %v3512_v51 = vadd.f32 %v10835_v29, %v3511_v36  ;;  %v8226_v59 = vpop.f32.mrb[22].mxu1  ;;  %8283 = vmatprep.subr.bf16.mxu0 %v10940_v53 }
 0x241   : > { %v7807_v12 = vmul.f32 -1.442695, %v3520_v1  ;;  %v3523_v17 = vadd.f32 %v8226_v59, %v10835_v29  ;;  %v3514_v13 = vpop.f32.mrb[23].mxu1 }
 0x242   : > { %v7805_v41 = vmul.f32 -1.442695, %v3512_v51  ;;  %v3515_v7 = vadd.f32 %v10835_v29, %v3514_v13  ;;  %8255 = vmatprep.mubr.msk.bf16.mxu0 %vm13326_vm4, %v3804_v37  ;;  %vm13352_vm4 = vmmov %vm13317_vm0 }
 0x243   : > { %8575 = vpow2.f32 %v7807_v12  ;;  %v7808_v6 = vmul.f32 -1.442695, %v3523_v17  ;;  %8256 = vmatmul.mubr.msk.bf16.gmra.mrb[16].mxu0 %vm13327_vm8, %v3805_v63  ;;  %vm13353_vm8 = vmmov %vm13317_vm0 }
 0x244   : > { %8577 = vpow2.f32 %v7805_v41  ;;  %v7806_v25 = vmul.f32 -1.442695, %v3515_v7 }
 0x245   : > { %8579 = vpow2.f32 %v7808_v6 }
 0x246   : > { %8581 = vpow2.f32 %v7806_v25 }
 0x24d   : > { %v8576_v36 = vpop.eup %8575 }
 0x24e   : > { %v8578_v10 = vpop.eup %8577  ;;  %v3688_v35 = vadd.f32 1.0, %v8576_v36 }
 0x24f   : > { %v8580_v37 = vpop.eup %8579  ;;  %v3686_v59 = vadd.f32 1.0, %v8578_v10 }
 0x250   : > { %v8582_v56 = vpop.eup %8581  ;;  %8583 = vrcp.f32 %v3688_v35  ;;  %v3689_v39 = vadd.f32 1.0, %v8580_v37 }
 0x251   : > { %8585 = vrcp.f32 %v3686_v59  ;;  %v3687_v63 = vadd.f32 1.0, %v8582_v56 }
 0x252   : > { %8587 = vrcp.f32 %v3689_v39 }
 0x253   : > { %8589 = vrcp.f32 %v3687_v63 }
 0x25a   : > { %v8584_v12 = vpop.eup %8583 }
 0x25b   : > { %v8586_v13 = vpop.eup %8585  ;;  %v10949_v19 = vmul.f32 %v8584_v12, %v3520_v1 }
 0x25c   : > { %v8588_v41 = vpop.eup %8587  ;;  %v10945_v25 = vmul.f32 %v8586_v13, %v3512_v51 }
 0x25d   : > { %v8590_v11 = vpop.eup %8589  ;;  %v10943_v6 = vmul.f32 %v8588_v41, %v3523_v17  ;;  %13331 = vst [vmem:[#allocation47_spill] sm:$0xff] %v10949_v19 }
 0x25e   : > { %13329 = vst [vmem:[#allocation45_spill] sm:$0xff] %v10945_v25  ;;  %v10947_v34 = vmul.f32 %v8590_v11, %v3515_v7  ;;  %v8229_v36 = vpop.f32.mrb[24].mxu1 }
 0x25f   : > { %13328 = vst [vmem:[#allocation44_spill] sm:$0xff] %v10943_v6  ;;  %v3536_v10 = vadd.f32 %v8229_v36, %v10835_v29  ;;  %v3527_v35 = vpop.f32.mrb[25].mxu1  ;;  %v3807_v17 = vpack.c.bf16 %v10943_v6, %v10949_v19 }
 0x260   : > { %13330 = vst [vmem:[#allocation46_spill] sm:$0xff] %v10947_v34  ;;  %v3806_v37 = vpack.c.bf16 %v10947_v34, %v10945_v25  ;;  %v3528_v59 = vadd.f32 %v10835_v29, %v3527_v35  ;;  %v8230_v56 = vpop.f32.mrb[26].mxu1 }
 0x261   : > { %v7811_v39 = vmul.f32 -1.442695, %v3536_v10  ;;  %v3539_v51 = vadd.f32 %v8230_v56, %v10835_v29  ;;  %v3530_v7 = vpop.f32.mrb[27].mxu1 }
 0x262   : > { %v7809_v63 = vmul.f32 -1.442695, %v3528_v59  ;;  %v3531_v1 = vadd.f32 %v10835_v29, %v3530_v7  ;;  %8259 = vmatprep.mubr.msk.bf16.mxu0 %vm13332_vm15, %v3806_v37  ;;  %vm13354_vm15 = vmmov %vm13317_vm0 }
 0x263   : > { %8591 = vpow2.f32 %v7811_v39  ;;  %v7812_v12 = vmul.f32 -1.442695, %v3539_v51  ;;  %8260 = vmatmul.mubr.msk.bf16.gmra.mrb[20].mxu0 %vm13333_vm14, %v3807_v17  ;;  %vm13355_vm14 = vmmov %vm13317_vm0 }
 0x264   : > { %8593 = vpow2.f32 %v7809_v63  ;;  %v7810_v13 = vmul.f32 -1.442695, %v3531_v1 }
 0x265   : > { %8595 = vpow2.f32 %v7812_v12 }
 0x266   : > { %8597 = vpow2.f32 %v7810_v13 }
 0x26d   : > { %v8592_v41 = vpop.eup %8591 }
 0x26e   : > { %v8594_v11 = vpop.eup %8593  ;;  %v3692_v36 = vadd.f32 1.0, %v8592_v41 }
 0x26f   : > { %v8596_v35 = vpop.eup %8595  ;;  %v3690_v2 = vadd.f32 1.0, %v8594_v11 }
 0x270   : > { %v8598_v56 = vpop.eup %8597  ;;  %8599 = vrcp.f32 %v3692_v36  ;;  %v3693_v23 = vadd.f32 1.0, %v8596_v35 }
 0x271   : > { %8601 = vrcp.f32 %v3690_v2  ;;  %v3691_v7 = vadd.f32 1.0, %v8598_v56 }
 0x272   : > { %8603 = vrcp.f32 %v3693_v23 }
 0x273   : > { %8605 = vrcp.f32 %v3691_v7 }
 0x27a   : > { %v8600_v37 = vpop.eup %8599 }
 0x27b   : > { %v8602_v39 = vpop.eup %8601  ;;  %v10967_v48 = vmul.f32 %v8600_v37, %v3536_v10 }
 0x27c   : > { %v8604_v44 = vpop.eup %8603  ;;  %v10963_v12 = vmul.f32 %v8602_v39, %v3528_v59 }
 0x27d   : > { %v8606_v17 = vpop.eup %8605  ;;  %v10961_v63 = vmul.f32 %v8604_v44, %v3539_v51  ;;  %13337 = vst [vmem:[#allocation51_spill] sm:$0xff] %v10967_v48 }
 0x27e   : > { %13335 = vst [vmem:[#allocation49_spill] sm:$0xff] %v10963_v12  ;;  %v10965_v13 = vmul.f32 %v8606_v17, %v3531_v1  ;;  %v8233_v41 = vpop.f32.mrb[28].mxu1 }
 0x27f   : > { %13334 = vst [vmem:[#allocation48_spill] sm:$0xff] %v10961_v63  ;;  %v3552_v11 = vadd.f32 %v8233_v41, %v10835_v29  ;;  %v3543_v36 = vpop.f32.mrb[29].mxu1  ;;  %v3809_v44 = vpack.c.bf16 %v10961_v63, %v10967_v48 }
 0x280   : > { %13336 = vst [vmem:[#allocation50_spill] sm:$0xff] %v10965_v13  ;;  %v3808_v23 = vpack.c.bf16 %v10965_v13, %v10963_v12  ;;  %v3544_v2 = vadd.f32 %v10835_v29, %v3543_v36  ;;  %v8234_v35 = vpop.f32.mrb[30].mxu1 }
 0x281   : > { %v7815_v51 = vmul.f32 -1.442695, %v3552_v11  ;;  %v3555_v59 = vadd.f32 %v8234_v35, %v10835_v29  ;;  %v3546_v1 = vpop.f32.mrb[31].mxu1 }
 0x282   : > { %v7813_v56 = vmul.f32 -1.442695, %v3544_v2  ;;  %v3547_v10 = vadd.f32 %v10835_v29, %v3546_v1  ;;  %8263 = vmatprep.mubr.msk.bf16.mxu0 %vm13338_vm3, %v3808_v23  ;;  %vm13356_vm3 = vmmov %vm13317_vm0 }
 0x283   : > { %8607 = vpow2.f32 %v7815_v51  ;;  %v7816_v7 = vmul.f32 -1.442695, %v3555_v59  ;;  %8264 = vmatmul.mubr.msk.bf16.gmra.mrb[24].mxu0 %vm13339_vm7, %v3809_v44  ;;  %vm13357_vm7 = vmmov %vm13317_vm0 }
 0x284   : > { %8609 = vpow2.f32 %v7813_v56  ;;  %v7814_v37 = vmul.f32 -1.442695, %v3547_v10 }
 0x285   : > { %8611 = vpow2.f32 %v7816_v7 }
 0x286   : > { %8613 = vpow2.f32 %v7814_v37 }
 0x28d   : > { %v8608_v39 = vpop.eup %8607 }
 0x28e   : > { %v8610_v17 = vpop.eup %8609  ;;  %v3696_v41 = vadd.f32 1.0, %v8608_v39 }
 0x28f   : > { %v8612_v36 = vpop.eup %8611  ;;  %v3694_v16 = vadd.f32 1.0, %v8610_v17 }
 0x290   : > { %v8614_v35 = vpop.eup %8613  ;;  %8615 = vrcp.f32 %v3696_v41  ;;  %v3697_v43 = vadd.f32 1.0, %v8612_v36 }
 0x291   : > { %8617 = vrcp.f32 %v3694_v16  ;;  %v3695_v1 = vadd.f32 1.0, %v8614_v35 }
 0x292   : > { %8619 = vrcp.f32 %v3697_v43 }
 0x293   : > { %8621 = vrcp.f32 %v3695_v1 }
 0x29a   : > { %v8616_v23 = vpop.eup %8615 }
 0x29b   : > { %v8618_v51 = vpop.eup %8617  ;;  %v8237_v7 = vpop.f32.mrb[32].mxu1  ;;  %v10986_v41 = vmul.f32 %v8616_v23, %v3552_v11 }
 0x29c   : > { %v8620_v46 = vpop.eup %8619  ;;  %v10981_v37 = vmul.f32 %v8618_v51, %v3544_v2  ;;  %v3568_v39 = vadd.f32 %v8237_v7, %v10835_v29  ;;  %v3559_v17 = vpop.f32.mrb[33].mxu1 }
 0x29d   : > { %v8622_v44 = vpop.eup %8621  ;;  %v10979_v56 = vmul.f32 %v8620_v46, %v3555_v59  ;;  %13343 = vst [vmem:[#allocation55_spill] sm:$0xff] %v10986_v41  ;;  %v3560_v16 = vadd.f32 %v10835_v29, %v3559_v17  ;;  %v8238_v43 = vpop.f32.mrb[34].mxu1 }
 0x29e   : > { %13341 = vst [vmem:[#allocation53_spill] sm:$0xff] %v10981_v37  ;;  %v10983_v49 = vmul.f32 %v8622_v44, %v3547_v10  ;;  %v7819_v35 = vmul.f32 -1.442695, %v3568_v39  ;;  %v3571_v46 = vadd.f32 %v8238_v43, %v10835_v29  ;;  %v3562_v59 = vpop.f32.mrb[35].mxu1 }
 0x29f   : > { %13340 = vst [vmem:[#allocation52_spill] sm:$0xff] %v10979_v56  ;;  %v3811_v2 = vpack.c.bf16 %v10979_v56, %v10986_v41  ;;  %v7817_v10 = vmul.f32 -1.442695, %v3560_v16  ;;  %v3563_v1 = vadd.f32 %v10835_v29, %v3562_v59 }
 0x2a0   : > { %13342 = vst [vmem:[#allocation54_spill] sm:$0xff] %v10983_v49  ;;  %v3810_v36 = vpack.c.bf16 %v10983_v49, %v10981_v37  ;;  %8623 = vpow2.f32 %v7819_v35  ;;  %v7820_v51 = vmul.f32 -1.442695, %v3571_v46 }
 0x2a1   : > { %8625 = vpow2.f32 %v7817_v10  ;;  %v7818_v11 = vmul.f32 -1.442695, %v3563_v1 }
 0x2a2   : > { %8267 = vmatprep.mubr.msk.bf16.mxu0 %vm13344_vm13, %v3810_v36  ;;  %8627 = vpow2.f32 %v7820_v51  ;;  %vm13358_vm13 = vmmov %vm13317_vm0 }
 0x2a3   : > { %8268 = vmatmul.mubr.msk.bf16.gmra.mrb[28].mxu0 %vm13345_vm11, %v3811_v2  ;;  %8629 = vpow2.f32 %v7818_v11  ;;  %vm13359_vm11 = vmmov %vm13317_vm0 }
 0x2aa   : > { %v8624_v23 = vpop.eup %8623 }
 0x2ab   : > { %v8626_v44 = vpop.eup %8625  ;;  %v3700_v7 = vadd.f32 1.0, %v8624_v23 }
 0x2ac   : > { %v8628_v17 = vpop.eup %8627  ;;  %v3698_v43 = vadd.f32 1.0, %v8626_v44 }
 0x2ad   : > { %v8630_v3 = vpop.eup %8629  ;;  %8631 = vrcp.f32 %v3700_v7  ;;  %v3701_v18 = vadd.f32 1.0, %v8628_v17 }
 0x2ae   : > { %8633 = vrcp.f32 %v3698_v43  ;;  %v3699_v29 = vadd.f32 1.0, %v8630_v3 }
 0x2af   : > { %8635 = vrcp.f32 %v3701_v18 }
 0x2b0   : > { %8637 = vrcp.f32 %v3699_v29 }
 0x2b7   : > { %v8632_v36 = vpop.eup %8631 }
 0x2b8   : > { %v10997_v35 = vpop.f32.mrb[4].mxu0  ;;  %v8634_v10 = vpop.eup %8633  ;;  %v11009_v3 = vmul.f32 %v8632_v36, %v3568_v39  ;;  %v8490_v39 = vld [vmem:[%s13001_s12 + $0x8] sm:$0xff]  }
 0x2b9   : > { %v3912_v59 = vpop.f32.mrb[5].mxu0  ;;  %v8636_v51 = vpop.eup %8635  ;;  %v11005_v17 = vmul.f32 %v8634_v10, %v3560_v16 }
 0x2ba   : > { %v10999_v2 = vpop.f32.mrb[6].mxu0  ;;  %v8638_v44 = vpop.eup %8637  ;;  %v11003_v57 = vmul.f32 %v8636_v51, %v3571_v46  ;;  %13349 = vst [vmem:[#allocation59_spill] sm:$0xff] %v11009_v3 }
 0x2bb   : > { %v3915_v23 = vpop.f32.mrb[7].mxu0  ;;  %13347 = vst [vmem:[#allocation57_spill] sm:$0xff] %v11005_v17  ;;  %v11007_v18 = vmul.f32 %v8638_v44, %v3563_v1 }
 0x2bc   : > { %13346 = vst [vmem:[#allocation56_spill] sm:$0xff] %v11003_v57  ;;  %v4175_v7 = vpack.c.bf16 %v3915_v23, %v3912_v59  ;;  %v3813_v29 = vpack.c.bf16 %v11003_v57, %v11009_v3 }
 0x2bd   : > { %13348 = vst [vmem:[#allocation58_spill] sm:$0xff] %v11007_v18  ;;  %v3812_v43 = vpack.c.bf16 %v11007_v18, %v11005_v17 }
 0x2be   : > { %8295 = vmatprep.mubr.msk.bf16.mxu1 %vm13317_vm0, %v4175_v7 }
 0x2bf   : > { %8271 = vmatprep.mubr.msk.bf16.mxu0 %vm13350_vm5, %v3812_v43  ;;  %vm13361_vm5 = vmmov %vm13317_vm0 }
 0x2c0   : > { %8272 = vmatmul.mubr.msk.bf16.gmra.mrb[32].mxu0 %vm13351_vm9, %v3813_v29  ;;  %vm13363_vm9 = vmmov %vm13317_vm0 }
 0x2c1   : > { %8279 = vmatprep.mubr.msk.bf16.mxu0 %vm13352_vm4, %v10931_v45  ;;  %vm13364_vm4 = vmmov %vm13317_vm0 }
 0x2c8   : > { %8280 = vmatmul.mubr.msk.bf16.vlgmr.msra.gmra.mrb[36].mxu0 %vm13353_vm8, %v10770_v62  ;;  %vm13365_vm8 = vmmov %vm13317_vm0 }
 0x2c9   : > { %8284 = vmatpush3.bf16.msra.mxu0 %v10940_v53  ;;  %8287 = vmatprep.mubr.msk.bf16.mxu0 %vm13354_vm15, %v10931_v45  ;;  %vm13366_vm15 = vmmov %vm13317_vm0 }
 0x2ca   : > { %8285 = vmatprep.subr.bf16.mxu0 %v8490_v39 }
 0x2cd   : > { %8286 = vmatpush3.bf16.msra.mxu0 %v8490_v39 }
 0x2d0   : > { %8288 = vmatmul.mubr.msk.bf16.vlgmr.msra.gmra.mrb[40].mxu0 %vm13355_vm14, %v10770_v62  ;;  %vm13367_vm14 = vmmov %vm13317_vm0 }
 0x2d6   : > { %v11030_v16 = vpop.f32.mrb[8].mxu0 }
 0x2d7   : > { %v11032_v46 = vpop.f32.mrb[9].mxu0 }
 0x2d8   : > { %v11034_v1 = vpop.f32.mrb[10].mxu0 }
 0x2d9   : > { %v3931_v59 = vpop.f32.mrb[11].mxu0 }
 0x2da   : > { %v4177_v53 = vpack.c.bf16 %v3931_v59, %v11032_v46 }
 0x2f6   : > { %v11039_v10 = vpop.f32.mrb[12].mxu0 }
 0x2f7   : > { %v3944_v45 = vpop.f32.mrb[13].mxu0 }
 0x2f8   : > { %v8254_v51 = vpop.f32.mrb[14].mxu0 }
 0x2f9   : > { %v4180_v23 = vpack.c.bf16 %v8254_v51, %v11039_v10  ;;  %v3947_v44 = vpop.f32.mrb[15].mxu0 }
 0x2fa   : > { %v4179_v62 = vpack.c.bf16 %v3947_v44, %v3944_v45 }
 0x316   : > { %v8257_v7 = vpop.f32.mrb[16].mxu0 }
 0x317   : > { %v3960_v43 = vpop.f32.mrb[17].mxu0 }
 0x318   : > { %v8258_v29 = vpop.f32.mrb[18].mxu0 }
 0x319   : > { %v4182_v39 = vpack.c.bf16 %v8258_v29, %v8257_v7  ;;  %v3963_v11 = vpop.f32.mrb[19].mxu0 }
 0x31a   : > { %v4181_v18 = vpack.c.bf16 %v3963_v11, %v3960_v43 }
 0x336   : > { %v8261_v57 = vpop.f32.mrb[20].mxu0 }
 0x337   : > { %v3976_v17 = vpop.f32.mrb[21].mxu0 }
 0x338   : > { %v8262_v36 = vpop.f32.mrb[22].mxu0 }
 0x339   : > { %v4184_v3 = vpack.c.bf16 %v8262_v36, %v8261_v57  ;;  %v3979_v28 = vpop.f32.mrb[23].mxu0 }
 0x33a   : > { %v4183_v46 = vpack.c.bf16 %v3979_v28, %v3976_v17 }
 0x356   : > { %v8265_v59 = vpop.f32.mrb[24].mxu0 }
 0x357   : > { %v3992_v31 = vpop.f32.mrb[25].mxu0 }
 0x358   : > { %v8266_v32 = vpop.f32.mrb[26].mxu0 }
 0x359   : > { %v4186_v60 = vpack.c.bf16 %v8266_v32, %v8265_v59  ;;  %v3995_v49 = vpop.f32.mrb[27].mxu0 }
 0x35a   : > { %v4185_v10 = vpack.c.bf16 %v3995_v49, %v3992_v31 }
 0x376   : > { %v8269_v51 = vpop.f32.mrb[28].mxu0 }
 0x377   : > { %v4008_v45 = vpop.f32.mrb[29].mxu0 }
 0x378   : > { %v8270_v44 = vpop.f32.mrb[30].mxu0 }
 0x379   : > { %v4188_v56 = vpack.c.bf16 %v8270_v44, %v8269_v51  ;;  %v4011_v37 = vpop.f32.mrb[31].mxu0 }
 0x37a   : > { %v4187_v7 = vpack.c.bf16 %v4011_v37, %v4008_v45 }
 0x393   : > { %v8273_v29 = vpop.f32.mrb[32].mxu0 }
 0x394   : > { %v4024_v11 = vpop.f32.mrb[33].mxu0 }
 0x395   : > { %v8274_v43 = vpop.f32.mrb[34].mxu0 }
 0x396   : > { %v4190_v41 = vpack.c.bf16 %v8274_v43, %v8273_v29  ;;  %v4027_v13 = vpop.f32.mrb[35].mxu0  ;;  %v13362_v29 = vpack.c.bf16 %v11034_v1, %v11030_v16 }
 0x397   : > { %v4189_v57 = vpack.c.bf16 %v4027_v13, %v4024_v11 }
 0x39b   : > { %v8281_v36 = vpop.f32.mrb[36].mxu0 }
 0x39c   : > { %v4095_v28 = vpop.f32.mrb[37].mxu0 }
 0x39d   : > { %v8282_v17 = vpop.f32.mrb[38].mxu0 }
 0x39e   : > { %v4192_v63 = vpack.c.bf16 %v8282_v17, %v8281_v36  ;;  %v4098_v12 = vpop.f32.mrb[39].mxu0 }
 0x39f   : > { %v4191_v32 = vpack.c.bf16 %v4098_v12, %v4095_v28  ;;  %v13360_v12 = vpack.c.bf16 %v10999_v2, %v10997_v35 }
 0x3a0   : > { %v4245_v13 = vsel %vm13359_vm11, %v4192_v63, 0  ;;  %vm13371_vm11 = vmmov %vm13317_vm0 }
 0x3a1   : > { %v4242_v49 = vsel %vm13356_vm3, %v4191_v32, 0  ;;  %8435 = vmatprep.subr.msk.bf16.mxu1 %vm13357_vm7, %v4191_v32  ;;  %vm13368_vm3 = vmmov %vm13317_vm0 }
 0x3a2   : > { %8292 = vmatpush3.bf16.xpose.msra.mxu1 %v4242_v49  ;;  %vm13369_vm7 = vmmov %vm13317_vm0 }
 0x3a3   : > { %v8289_v31 = vpop.f32.mrb[40].mxu0  ;;  %8436 = vmatprep.subr.msk.bf16.mxu1 %vm13358_vm13, %v4192_v63  ;;  %vm13370_vm13 = vmmov %vm13317_vm0 }
 0x3a4   : > { %v4160_v37 = vpop.f32.mrb[41].mxu0 }
 0x3a5   : > { %v8290_v59 = vpop.f32.mrb[42].mxu0 }
 0x3a6   : > { %v4809_v51 = vpack.c.bf16 %v8290_v59, %v8289_v31  ;;  %v4163_v45 = vpop.f32.mrb[43].mxu0 }
 0x3a7   : > { %v4808_v44 = vpack.c.bf16 %v4163_v45, %v4160_v37 }
 0x3a9   : > { %8327 = vmatprep.subr.bf16.mxu0 %v4808_v44 }
 0x3aa   : > { %8294 = vmatpush3.bf16.xpose.msra.mxu1 %v4245_v13  ;;  %8328 = vmatpush3.bf16.msra.mxu0 %v4808_v44 }
 0x3ab   : > { %8329 = vmatprep.subr.bf16.mxu0 %v4809_v51 }
 0x3ae   : > { %8330 = vmatpush3.bf16.msra.mxu0 %v4809_v51 }
 0x3b1   : > { %8296 = vmatmul.mubr.msk.bf16.vlgmr.msra.gmra.mrb[36].mxu1 %vm13317_vm0, %v13360_v12 }
 0x3b2   : > { %8299 = vmatprep.mubr.msk.bf16.mxu1 %vm13361_vm5, %v4177_v53  ;;  %vm13372_vm5 = vmmov %vm13317_vm0 }
 0x3b9   : > { %8300 = vmatmul.mubr.msk.bf16.gmra.mrb[40].mxu1 %vm13363_vm9, %v13362_v29  ;;  %vm13373_vm9 = vmmov %vm13317_vm0 }
 0x3ba   : > { %8303 = vmatprep.mubr.msk.bf16.mxu1 %vm13364_vm4, %v4179_v62  ;;  %vm13374_vm4 = vmmov %vm13317_vm0 }
 0x3c1   : > { %8304 = vmatmul.mubr.msk.bf16.gmra.mrb[44].mxu1 %vm13365_vm8, %v4180_v23  ;;  %vm13375_vm8 = vmmov %vm13317_vm0 }
 0x3c2   : > { %8307 = vmatprep.mubr.msk.bf16.mxu1 %vm13366_vm15, %v4181_v18  ;;  %vm13376_vm15 = vmmov %vm13317_vm0 }
 0x3c9   : > { %8308 = vmatmul.mubr.msk.bf16.gmra.mrb[48].mxu1 %vm13367_vm14, %v4182_v39  ;;  %vm13377_vm14 = vmmov %vm13317_vm0 }
 0x3ca   : > { %8311 = vmatprep.mubr.msk.bf16.mxu1 %vm13368_vm3, %v4183_v46  ;;  %vm13378_vm3 = vmmov %vm13317_vm0 }
 0x3d1   : > { %8312 = vmatmul.mubr.msk.bf16.gmra.mrb[52].mxu1 %vm13369_vm7, %v4184_v3  ;;  %vm13379_vm7 = vmmov %vm13317_vm0 }
 0x3d2   : > { %8315 = vmatprep.mubr.msk.bf16.mxu1 %vm13370_vm13, %v4185_v10  ;;  %vm13380_vm13 = vmmov %vm13317_vm0 }
 0x3d9   : > { %8316 = vmatmul.mubr.msk.bf16.gmra.mrb[56].mxu1 %vm13371_vm11, %v4186_v60  ;;  %vm13381_vm11 = vmmov %vm13317_vm0 }
 0x3da   : > { %8319 = vmatprep.mubr.msk.bf16.mxu1 %vm13317_vm0, %v4187_v7 }
 0x3e1   : > { %8320 = vmatmul.mubr.msk.bf16.gmra.mrb[60].mxu1 %vm13372_vm5, %v4188_v56  ;;  %vm13382_vm5 = vmmov %vm13317_vm0 }
 0x3e2   : > { %8323 = vmatprep.mubr.msk.bf16.mxu1 %vm13373_vm9, %v4189_v57  ;;  %vm13383_vm9 = vmmov %vm13317_vm0 }
 0x3e9   : > { %8324 = vmatmul.mubr.msk.bf16.gmra.mrb[64].mxu1 %vm13374_vm4, %v4190_v41  ;;  %vm13384_vm4 = vmmov %vm13317_vm0 }
 0x484   : > { %v8297_v63 = vpop.f32.mrb[36].mxu1 }
 0x485   : > { %v4281_v35 = vpop.f32.mrb[37].mxu1  ;;  %v11069_v1 = vmul.f32 0.17677669, %v8297_v63 }
 0x486   : > { %v11067_v2 = vmul.f32 0.17677669, %v4281_v35  ;;  %v8298_v18 = vpop.f32.mrb[38].mxu1 }
 0x487   : > { %v4284_v16 = vpop.f32.mrb[39].mxu1  ;;  %v11077_v53 = vmul.f32 0.17677669, %v8298_v18  ;;  %v4446_v23 = vsel %vm13377_vm14, %v11069_v1, -inf  ;;  %vm13387_vm14 = vmmov %vm13317_vm0 }
 0x488   : > { %v11071_v3 = vmul.f32 0.17677669, %v4284_v16  ;;  %v4440_v60 = vsel %vm13375_vm8, %v11067_v2, -inf  ;;  %vm13385_vm8 = vmmov %vm13317_vm0 }
 0x489   : > { %4441 = vmax.xlane.f32.xlu0 %v4440_v60  ;;  %v4449_v43 = vsel %vm13378_vm3, %v11077_v53, -inf  ;;  %vm13388_vm3 = vmmov %vm13317_vm0 }
 0x48a   : > { %v4443_v56 = vsel %vm13376_vm15, %v11071_v3, -inf  ;;  %vm13386_vm15 = vmmov %vm13317_vm0 }
 0x48b   : > { %4444 = vmax.xlane.f32.xlu1 %v4443_v56 }
 0x48c   : > { %v8301_v41 = vpop.f32.mrb[40].mxu1 }
 0x48d   : > { %4447 = vmax.xlane.f32.xlu0 %v4446_v23  ;;  %v4297_v62 = vpop.f32.mrb[41].mxu1  ;;  %v11083_v7 = vmul.f32 0.17677669, %v8301_v41 }
 0x48e   : > { %v11081_v39 = vmul.f32 0.17677669, %v4297_v62  ;;  %v8302_v46 = vpop.f32.mrb[42].mxu1 }
 0x48f   : > { %v4300_v10 = vpop.f32.mrb[43].mxu1  ;;  %v11091_v36 = vmul.f32 0.17677669, %v8302_v46  ;;  %v4458_v17 = vsel %vm13380_vm13, %v11083_v7, -inf  ;;  %vm13390_vm13 = vmmov %vm13317_vm0 }
 0x490   : > { %v11085_v11 = vmul.f32 0.17677669, %v4300_v10  ;;  %v4452_v57 = vsel %vm13379_vm7, %v11081_v39, -inf  ;;  %vm13389_vm7 = vmmov %vm13317_vm0 }
 0x491   : > { %4450 = vmax.xlane.f32.xlu0 %v4449_v43  ;;  %4453 = vmax.xlane.f32.xlu1 %v4452_v57  ;;  %v4461_v44 = vsel %vm13317_vm0, %v11091_v36, -inf }
 0x492   : > { %v4455_v32 = vsel %vm13381_vm11, %v11085_v11, -inf  ;;  %vm13391_vm11 = vmmov %vm13317_vm0 }
 0x494   : > { %v8305_v28 = vpop.f32.mrb[44].mxu1 }
 0x495   : > { %4459 = vmax.xlane.f32.xlu1 %v4458_v17  ;;  %4456 = vmax.xlane.f32.xlu0 %v4455_v32  ;;  %v4313_v49 = vpop.f32.mrb[45].mxu1  ;;  %v11099_v51 = vmul.f32 0.17677669, %v8305_v28 }
 0x496   : > { %v11097_v31 = vmul.f32 0.17677669, %v4313_v49  ;;  %v8306_v37 = vpop.f32.mrb[46].mxu1 }
 0x497   : > { %v4316_v59 = vpop.f32.mrb[47].mxu1  ;;  %v11107_v12 = vmul.f32 0.17677669, %v8306_v37  ;;  %v4470_v63 = vsel %vm13383_vm9, %v11099_v51, -inf  ;;  %vm13393_vm9 = vmmov %vm13317_vm0 }
 0x498   : > { %v11101_v45 = vmul.f32 0.17677669, %v4316_v59  ;;  %v4464_v13 = vsel %vm13382_vm5, %v11097_v31, -inf  ;;  %vm13392_vm5 = vmmov %vm13317_vm0 }
 0x499   : > { %4462 = vmax.xlane.f32.xlu0 %v4461_v44  ;;  %4465 = vmax.xlane.f32.xlu1 %v4464_v13  ;;  %v4473_v62 = vsel %vm13385_vm8, %v11107_v12, -inf  ;;  %vm13395_vm8 = vmmov %vm13317_vm0 }
 0x49a   : > { %v4467_v35 = vsel %vm13384_vm4, %v11101_v45, -inf  ;;  %vm13394_vm4 = vmmov %vm13317_vm0 }
 0x49c   : > { %v8309_v29 = vpop.f32.mrb[48].mxu1 }
 0x49d   : > { %4471 = vmax.xlane.f32.xlu1 %v4470_v63  ;;  %4468 = vmax.xlane.f32.xlu0 %v4467_v35  ;;  %v4329_v18 = vpop.f32.mrb[49].mxu1  ;;  %v11115_v41 = vmul.f32 0.17677669, %v8309_v29 }
 0x49e   : > { %v11113_v16 = vmul.f32 0.17677669, %v4329_v18  ;;  %v8310_v60 = vpop.f32.mrb[50].mxu1 }
 0x49f   : > { %v4332_v56 = vpop.f32.mrb[51].mxu1  ;;  %v11123_v10 = vmul.f32 0.17677669, %v8310_v60  ;;  %v4482_v57 = vsel %vm13387_vm14, %v11115_v41, -inf  ;;  %vm13397_vm14 = vmmov %vm13317_vm0 }
 0x4a0   : > { %v11117_v23 = vmul.f32 0.17677669, %v4332_v56  ;;  %v4476_v46 = vsel %vm13386_vm15, %v11113_v16, -inf  ;;  %vm13396_vm15 = vmmov %vm13317_vm0 }
 0x4a1   : > { %4474 = vmax.xlane.f32.xlu0 %v4473_v62  ;;  %4477 = vmax.xlane.f32.xlu1 %v4476_v46  ;;  %v4485_v13 = vsel %vm13389_vm7, %v11123_v10, -inf  ;;  %vm13399_vm7 = vmmov %vm13317_vm0 }
 0x4a2   : > { %v4479_v28 = vsel %vm13388_vm3, %v11117_v23, -inf  ;;  %vm13398_vm3 = vmmov %vm13317_vm0 }
 0x4a4   : > { %v8313_v43 = vpop.f32.mrb[52].mxu1 }
 0x4a5   : > { %4483 = vmax.xlane.f32.xlu1 %v4482_v57  ;;  %4480 = vmax.xlane.f32.xlu0 %v4479_v28  ;;  %v4345_v17 = vpop.f32.mrb[53].mxu1  ;;  %v11131_v59 = vmul.f32 0.17677669, %v8313_v43 }
 0x4a6   : > { %v11129_v32 = vmul.f32 0.17677669, %v4345_v17  ;;  %v8314_v49 = vpop.f32.mrb[54].mxu1 }
 0x4a7   : > { %v4348_v37 = vpop.f32.mrb[55].mxu1  ;;  %v11139_v63 = vmul.f32 0.17677669, %v8314_v49  ;;  %v4494_v18 = vsel %vm13391_vm11, %v11131_v59, -inf  ;;  %vm13401_vm11 = vmmov %vm13317_vm0 }
 0x4a8   : > { %v11133_v44 = vmul.f32 0.17677669, %v4348_v37  ;;  %v4488_v29 = vsel %vm13390_vm13, %v11129_v32, -inf  ;;  %vm13400_vm13 = vmmov %vm13317_vm0 }
 0x4a9   : > { %4486 = vmax.xlane.f32.xlu0 %v4485_v13  ;;  %4489 = vmax.xlane.f32.xlu1 %v4488_v29  ;;  %v4497_v17 = vsel %vm13392_vm5, %v11139_v63, -inf  ;;  %vm13402_vm5 = vmmov %vm13317_vm0 }
 0x4aa   : > { %v4491_v60 = vsel %vm13317_vm0, %v11133_v44, -inf }
 0x4ac   : > { %v8317_v35 = vpop.f32.mrb[56].mxu1 }
 0x4ad   : > { %4495 = vmax.xlane.f32.xlu1 %v4494_v18  ;;  %4492 = vmax.xlane.f32.xlu0 %v4491_v60  ;;  %v4361_v56 = vpop.f32.mrb[57].mxu1  ;;  %v11147_v57 = vmul.f32 0.17677669, %v8317_v35 }
 0x4ae   : > { %v11145_v62 = vmul.f32 0.17677669, %v4361_v56  ;;  %v8318_v46 = vpop.f32.mrb[58].mxu1 }
 0x4af   : > { %v4364_v43 = vpop.f32.mrb[59].mxu1  ;;  %v11155_v37 = vmul.f32 0.17677669, %v8318_v46  ;;  %v4506_v29 = vsel %vm13394_vm4, %v11147_v57, -inf  ;;  %vm13404_vm4 = vmmov %vm13317_vm0 }
 0x4b0   : > { %v11149_v28 = vmul.f32 0.17677669, %v4364_v43  ;;  %v4500_v49 = vsel %vm13393_vm9, %v11145_v62, -inf  ;;  %vm13403_vm9 = vmmov %vm13317_vm0 }
 0x4b1   : > { %4498 = vmax.xlane.f32.xlu0 %v4497_v17  ;;  %4501 = vmax.xlane.f32.xlu1 %v4500_v49  ;;  %v4509_v48 = vsel %vm13397_vm14, %v11155_v37, -inf  ;;  %vm13407_vm14 = vmmov %vm13317_vm0 }
 0x4b2   : > { %v4503_v35 = vsel %vm13395_vm8, %v11149_v28, -inf  ;;  %vm13405_vm8 = vmmov %vm13317_vm0 }
 0x4b4   : > { %v8321_v13 = vpop.f32.mrb[60].mxu1 }
 0x4b5   : > { %v11161_v18 = vmul.f32 0.17677669, %v8321_v13  ;;  %4507 = vmax.xlane.f32.xlu1 %v4506_v29  ;;  %4504 = vmax.xlane.f32.xlu0 %v4503_v35  ;;  %v4377_v60 = vpop.f32.mrb[61].mxu1 }
 0x4b6   : > { %v8322_v56 = vpop.f32.mrb[62].mxu1  ;;  %v11165_v49 = vmul.f32 0.17677669, %v4377_v60 }
 0x4b7   : > { %v4380_v43 = vpop.f32.mrb[63].mxu1  ;;  %v4518_v17 = vsel %vm13396_vm15, %v11161_v18, -inf  ;;  %v11167_v46 = vmul.f32 0.17677669, %v8322_v56  ;;  %vm13406_vm15 = vmmov %vm13317_vm0 }
 0x4b8   : > { %v11171_v30 = vmul.f32 0.17677669, %v4380_v43  ;;  %v4512_v29 = vsel %vm13398_vm3, %v11165_v49, -inf  ;;  %vm13408_vm3 = vmmov %vm13317_vm0 }
 0x4b9   : > { %4510 = vmax.xlane.f32.xlu0 %v4509_v48  ;;  %4519 = vmax.xlane.f32.xlu1 %v4518_v17  ;;  %v4521_v35 = vsel %vm13399_vm7, %v11167_v46, -inf  ;;  %vm13409_vm7 = vmmov %vm13317_vm0 }
 0x4ba   : > { %v4515_v43 = vsel %vm13400_vm13, %v11171_v30, -inf  ;;  %vm13410_vm13 = vmmov %vm13317_vm0 }
 0x4bc   : > { %v11173_v13 = vpop.f32.mrb[64].mxu1 }
 0x4bd   : > { %4513 = vmax.xlane.f32.xlu1 %v4512_v29  ;;  %4522 = vmax.xlane.f32.xlu0 %v4521_v35  ;;  %v4393_v60 = vpop.f32.mrb[65].mxu1 }
 0x4be   : > { %v11179_v56 = vmul.f32 0.17677669, %v4393_v60  ;;  %v11181_v34 = vpop.f32.mrb[66].mxu1 }
 0x4bf   : > { %v4396_v6 = vpop.f32.mrb[67].mxu1 }
 0x4c0   : > { %v11183_v48 = vmul.f32 0.17677669, %v4396_v6  ;;  %v4524_v17 = vsel %vm13401_vm11, %v11179_v56, -inf  ;;  %vm13411_vm11 = vmmov %vm13317_vm0 }
 0x4c1   : > { %4516 = vmax.xlane.f32.xlu0 %v4515_v43  ;;  %4525 = vmax.xlane.f32.xlu1 %v4524_v17 }
 0x4c2   : > { %v4527_v29 = vsel %vm13317_vm0, %v11183_v48, -inf }
 0x4c5   : > { %4528 = vmax.xlane.f32.xlu0 %v4527_v29 }
 0x516   : > { %v4442_v35 = vpop.xlane.xlu0 %4441 }
 0x517   : > { %v4536_v60 = vsub.f32 %v11067_v2, %v4442_v35 }
 0x518   : > { %v4445_v25 = vpop.xlane.xlu1 %4444 }
 0x519   : > { %v4568_v54 = vmul.f32 1.442695, %v4536_v60  ;;  %v4537_v50 = vsub.f32 %v11071_v3, %v4445_v25 }
 0x51a   : > { %v4448_v19 = vpop.xlane.xlu0 %4447 }
 0x51b   : > { %v4538_v6 = vsub.f32 %v11069_v1, %v4448_v19  ;;  %v4570_v17 = vmul.f32 1.442695, %v4537_v50 }
 0x51d   : > { %v4572_v5 = vmul.f32 1.442695, %v4538_v6 }
 0x51e   : > { %v4451_v55 = vpop.xlane.xlu0 %4450  ;;  %v4454_v27 = vpop.xlane.xlu1 %4453 }
 0x51f   : > { %8639 = vpow2.f32 %v4572_v5  ;;  %v4539_v43 = vsub.f32 %v11077_v53, %v4451_v55  ;;  %v4540_v29 = vsub.f32 %v11081_v39, %v4454_v27 }
 0x520   : > { %8641 = vpow2.f32 %v4568_v54 }
 0x521   : > { %v4574_v52 = vmul.f32 1.442695, %v4539_v43  ;;  %v4576_v19 = vmul.f32 1.442695, %v4540_v29 }
 0x522   : > { %v4460_v42 = vpop.xlane.xlu1 %4459  ;;  %v4457_v2 = vpop.xlane.xlu0 %4456 }
 0x523   : > { %8643 = vpow2.f32 %v4574_v52  ;;  %v4542_v35 = vsub.f32 %v11083_v7, %v4460_v42  ;;  %v4541_v25 = vsub.f32 %v11085_v11, %v4457_v2 }
 0x524   : > { %8645 = vpow2.f32 %v4570_v17 }
 0x525   : > { %v4580_v1 = vmul.f32 1.442695, %v4542_v35  ;;  %v4578_v5 = vmul.f32 1.442695, %v4541_v25 }
 0x526   : > { %v4463_v3 = vpop.xlane.xlu0 %4462  ;;  %v4466_v60 = vpop.xlane.xlu1 %4465 }
 0x527   : > { %8647 = vpow2.f32 %v4580_v1  ;;  %v4543_v55 = vsub.f32 %v11091_v36, %v4463_v3  ;;  %v4544_v50 = vsub.f32 %v11097_v31, %v4466_v60 }
 0x528   : > { %8649 = vpow2.f32 %v4576_v19 }
 0x529   : > { %v11199_v54 = vpop.eup %8639  ;;  %v4582_v27 = vmul.f32 1.442695, %v4543_v55  ;;  %v4584_v36 = vmul.f32 1.442695, %v4544_v50 }
 0x52a   : > { %v4472_v52 = vpop.xlane.xlu1 %4471  ;;  %v4469_v53 = vpop.xlane.xlu0 %4468  ;;  %v4638_v42 = vsel %vm13402_vm5, %v11199_v54, 0.0  ;;  %vm13412_vm5 = vmmov %vm13317_vm0 }
 0x52b   : > { %v11204_v39 = vpop.eup %8641  ;;  %8651 = vpow2.f32 %v4582_v27  ;;  %4639 = vadd.xlane.f32.xlu1 %v4638_v42  ;;  %v4546_v7 = vsub.f32 %v11099_v51, %v4472_v52  ;;  %v4545_v6 = vsub.f32 %v11101_v45, %v4469_v53  ;;  %v11231_v53 = vmul.f32 0.17677669, %v11173_v13 }
 0x52c   : > { %8653 = vpow2.f32 %v4578_v5  ;;  %v4632_v31 = vsel %vm13403_vm9, %v11204_v39, 0.0  ;;  %vm13413_vm9 = vmmov %vm13317_vm0 }
 0x52d   : > { %v11207_v11 = vpop.eup %8643  ;;  %v4588_v35 = vmul.f32 1.442695, %v4546_v7  ;;  %8655 = vpow2.f32 %v4584_v36  ;;  %v4586_v1 = vmul.f32 1.442695, %v4545_v6 }
 0x52e   : > { %v4475_v43 = vpop.xlane.xlu0 %4474  ;;  %v4478_v17 = vpop.xlane.xlu1 %4477  ;;  %v4641_v29 = vsel %vm13404_vm4, %v11207_v11, 0.0  ;;  %vm13414_vm4 = vmmov %vm13317_vm0 }
 0x52f   : > { %v11214_v2 = vpop.eup %8645  ;;  %4633 = vadd.xlane.f32.xlu1 %v4632_v31  ;;  %4642 = vadd.xlane.f32.xlu0 %v4641_v29  ;;  %v4547_v51 = vsub.f32 %v11107_v12, %v4475_v43  ;;  %v4548_v45 = vsub.f32 %v11113_v16, %v4478_v17  ;;  %8657 = vpow2.f32 %v4588_v35  ;;  %v11242_v31 = vmul.f32 0.17677669, %v11181_v34 }
 0x530   : > { %v4635_v55 = vsel %vm13406_vm15, %v11214_v2, 0.0  ;;  %8659 = vpow2.f32 %v4586_v1  ;;  %vm13416_vm15 = vmmov %vm13317_vm0 }
 0x531   : > { %v11217_v19 = vpop.eup %8647  ;;  %v4590_v12 = vmul.f32 1.442695, %v4547_v51  ;;  %v4592_v16 = vmul.f32 1.442695, %v4548_v45  ;;  %v4530_v51 = vsel %vm13409_vm7, %v11231_v53, -inf  ;;  %vm13419_vm7 = vmmov %vm13317_vm0 }
 0x532   : > { %v4484_v25 = vpop.xlane.xlu1 %4483  ;;  %v4481_v3 = vpop.xlane.xlu0 %4480  ;;  %v4650_v60 = vsel %vm13405_vm8, %v11217_v19, 0.0  ;;  %vm13415_vm8 = vmmov %vm13317_vm0 }
 0x533   : > { %v11224_v5 = vpop.eup %8649  ;;  %4651 = vadd.xlane.f32.xlu1 %v4650_v60  ;;  %4636 = vadd.xlane.f32.xlu0 %v4635_v55  ;;  %v4550_v27 = vsub.f32 %v11115_v41, %v4484_v25  ;;  %v4549_v52 = vsub.f32 %v11117_v23, %v4481_v3  ;;  %8661 = vpow2.f32 %v4590_v12 }
 0x534   : > { %v4644_v36 = vsel %vm13407_vm14, %v11224_v5, 0.0  ;;  %8663 = vpow2.f32 %v4592_v16  ;;  %vm13417_vm14 = vmmov %vm13317_vm0 }
 0x535   : > { %v11227_v50 = vpop.eup %8651  ;;  %v4596_v41 = vmul.f32 1.442695, %v4550_v27  ;;  %v4594_v23 = vmul.f32 1.442695, %v4549_v52  ;;  %v4533_v27 = vsel %vm13317_vm0, %v11242_v31, -inf }
 0x536   : > { %v4487_v42 = vpop.xlane.xlu0 %4486  ;;  %v4490_v7 = vpop.xlane.xlu1 %4489  ;;  %v4653_v6 = vsel %vm13408_vm3, %v11227_v50, 0.0  ;;  %vm13418_vm3 = vmmov %vm13317_vm0 }
 0x537   : > { %v11237_v43 = vpop.eup %8653  ;;  %4645 = vadd.xlane.f32.xlu1 %v4644_v36  ;;  %4654 = vadd.xlane.f32.xlu0 %v4653_v6  ;;  %v4551_v17 = vsub.f32 %v11123_v10, %v4487_v42  ;;  %v4552_v13 = vsub.f32 %v11129_v32, %v4490_v7  ;;  %8665 = vpow2.f32 %v4596_v41 }
 0x538   : > { %v4647_v1 = vsel %vm13410_vm13, %v11237_v43, 0.0  ;;  %v11248_v45 = vpop.eup %8655  ;;  %8667 = vpow2.f32 %v4594_v23  ;;  %vm13420_vm13 = vmmov %vm13317_vm0 }
 0x539   : > { %v4598_v10 = vmul.f32 1.442695, %v4551_v17  ;;  %v4600_v32 = vmul.f32 1.442695, %v4552_v13  ;;  %v11252_v3 = vpop.eup %8657  ;;  %v4656_v12 = vsel %vm13411_vm11, %v11248_v45, 0.0  ;;  %vm13421_vm11 = vmmov %vm13317_vm0 }
 0x53a   : > { %v4496_v29 = vpop.xlane.xlu1 %4495  ;;  %v4493_v35 = vpop.xlane.xlu0 %4492  ;;  %v4662_v41 = vsel %vm13412_vm5, %v11252_v3, 0.0  ;;  %vm13422_vm5 = vmmov %vm13317_vm0 }
 0x53b   : > { %4531 = vmax.xlane.f32.xlu1 %v4530_v51  ;;  %4648 = vadd.xlane.f32.xlu0 %v4647_v1  ;;  %v4554_v25 = vsub.f32 %v11131_v59, %v4496_v29  ;;  %v4553_v34 = vsub.f32 %v11133_v44, %v4493_v35  ;;  %v11258_v16 = vpop.eup %8659  ;;  %8669 = vpow2.f32 %v4598_v10 }
 0x53c   : > { %8671 = vpow2.f32 %v4600_v32  ;;  %v4659_v17 = vsel %vm13413_vm9, %v11258_v16, 0.0  ;;  %vm13423_vm9 = vmmov %vm13317_vm0 }
 0x53d   : > { %v4604_v59 = vmul.f32 1.442695, %v4554_v25  ;;  %v4602_v44 = vmul.f32 1.442695, %v4553_v34  ;;  %v11262_v7 = vpop.eup %8661 }
 0x53e   : > { %v4499_v60 = vpop.xlane.xlu0 %4498  ;;  %v4502_v55 = vpop.xlane.xlu1 %4501  ;;  %v4665_v25 = vsel %vm13415_vm8, %v11262_v7, 0.0  ;;  %vm13425_vm8 = vmmov %vm13317_vm0 }
 0x53f   : > { %4657 = vadd.xlane.f32.xlu1 %v4656_v12  ;;  %4534 = vmax.xlane.f32.xlu0 %v4533_v27  ;;  %v4555_v52 = vsub.f32 %v11139_v63, %v4499_v60  ;;  %v4556_v42 = vsub.f32 %v11145_v62, %v4502_v55  ;;  %v11268_v23 = vpop.eup %8663  ;;  %8673 = vpow2.f32 %v4604_v59 }
 0x540   : > { %8675 = vpow2.f32 %v4602_v44  ;;  %v4668_v10 = vsel %vm13414_vm4, %v11268_v23, 0.0  ;;  %vm13424_vm4 = vmmov %vm13317_vm0 }
 0x541   : > { %v4606_v63 = vmul.f32 1.442695, %v4555_v52  ;;  %v4608_v62 = vmul.f32 1.442695, %v4556_v42  ;;  %v11272_v35 = vpop.eup %8665 }
 0x542   : > { %v4508_v36 = vpop.xlane.xlu1 %4507  ;;  %v4505_v6 = vpop.xlane.xlu0 %4504  ;;  %v4674_v27 = vsel %vm13416_vm15, %v11272_v35, 0.0  ;;  %vm13426_vm15 = vmmov %vm13317_vm0 }
 0x543   : > { %4663 = vadd.xlane.f32.xlu1 %v4662_v41  ;;  %4660 = vadd.xlane.f32.xlu0 %v4659_v17  ;;  %v4558_v13 = vsub.f32 %v11147_v57, %v4508_v36  ;;  %v4557_v29 = vsub.f32 %v11149_v28, %v4505_v6  ;;  %v11278_v32 = vpop.eup %8667  ;;  %8677 = vpow2.f32 %v4606_v63 }
 0x544   : > { %8679 = vpow2.f32 %v4608_v62  ;;  %v4671_v59 = vsel %vm13417_vm14, %v11278_v32, 0.0  ;;  %vm13427_vm14 = vmmov %vm13317_vm0 }
 0x545   : > { %v4612_v57 = vmul.f32 1.442695, %v4558_v13  ;;  %v4610_v28 = vmul.f32 1.442695, %v4557_v29  ;;  %v11281_v60 = vpop.eup %8669 }
 0x546   : > { %v4511_v51 = vpop.xlane.xlu0 %4510  ;;  %v4520_v1 = vpop.xlane.xlu1 %4519  ;;  %v4677_v13 = vsel %vm13419_vm7, %v11281_v60, 0.0  ;;  %vm13429_vm7 = vmmov %vm13317_vm0 }
 0x547   : > { %4669 = vadd.xlane.f32.xlu1 %v4668_v10  ;;  %4666 = vadd.xlane.f32.xlu0 %v4665_v25  ;;  %v4559_v34 = vsub.f32 %v11155_v37, %v4511_v51  ;;  %v11287_v52 = vpop.eup %8671  ;;  %8681 = vpow2.f32 %v4612_v57  ;;  %v4562_v42 = vsub.f32 %v11161_v18, %v4520_v1 }
 0x548   : > { %8683 = vpow2.f32 %v4610_v28  ;;  %v4680_v63 = vsel %vm13418_vm3, %v11287_v52, 0.0  ;;  %vm13428_vm3 = vmmov %vm13317_vm0 }
 0x549   : > { %v4614_v37 = vmul.f32 1.442695, %v4559_v34  ;;  %v11291_v6 = vpop.eup %8673  ;;  %v4620_v18 = vmul.f32 1.442695, %v4562_v42 }
 0x54a   : > { %v4514_v55 = vpop.xlane.xlu1 %4513  ;;  %v4523_v12 = vpop.xlane.xlu0 %4522  ;;  %v4686_v57 = vsel %vm13420_vm13, %v11291_v6, 0.0  ;;  %vm13430_vm13 = vmmov %vm13317_vm0 }
 0x54b   : > { %v4560_v44 = vsub.f32 %v11165_v49, %v4514_v55  ;;  %4675 = vadd.xlane.f32.xlu1 %v4674_v27  ;;  %4672 = vadd.xlane.f32.xlu0 %v4671_v59  ;;  %v11297_v62 = vpop.eup %8675  ;;  %8685 = vpow2.f32 %v4614_v37  ;;  %v4563_v29 = vsub.f32 %v11167_v46, %v4523_v12 }
 0x54c   : > { %v4683_v34 = vsel %vm13421_vm11, %v11297_v62, 0.0  ;;  %vm13431_vm11 = vmmov %vm13317_vm0 }
 0x54d   : > { %v4616_v36 = vmul.f32 1.442695, %v4560_v44  ;;  %v11302_v10 = vpop.eup %8677  ;;  %v4622_v28 = vmul.f32 1.442695, %v4563_v29 }
 0x54e   : > { %v4517_v41 = vpop.xlane.xlu0 %4516  ;;  %v4526_v17 = vpop.xlane.xlu1 %4525  ;;  %v4689_v27 = vsel %vm13422_vm5, %v11302_v10, 0.0  ;;  %vm13432_vm5 = vmmov %vm13317_vm0 }
 0x54f   : > { %v4561_v49 = vsub.f32 %v11171_v30, %v4517_v41  ;;  %4681 = vadd.xlane.f32.xlu1 %v4680_v63  ;;  %4678 = vadd.xlane.f32.xlu0 %v4677_v13  ;;  %8687 = vpow2.f32 %v4616_v36  ;;  %v4564_v1 = vsub.f32 %v11179_v56, %v4526_v17  ;;  %v11308_v30 = vpop.eup %8679 }
 0x550   : > { %8689 = vpow2.f32 %v4620_v18  ;;  %v4692_v12 = vsel %vm13317_vm0, %v11308_v30, 0.0 }
 0x551   : > { %v4618_v51 = vmul.f32 1.442695, %v4561_v49  ;;  %v4624_v46 = vmul.f32 1.442695, %v4564_v1  ;;  %v11311_v56 = vpop.eup %8681 }
 0x552   : > { %v4529_v25 = vpop.xlane.xlu0 %4528  ;;  %v11317_v59 = vpop.eup %8683 }
 0x553   : > { %4687 = vadd.xlane.f32.xlu1 %v4686_v57  ;;  %4684 = vadd.xlane.f32.xlu0 %v4683_v34  ;;  %8691 = vpow2.f32 %v4618_v51  ;;  %v4565_v55 = vsub.f32 %v11183_v48, %v4529_v25  ;;  %v4698_v48 = vsel %vm13423_vm9, %v11311_v56, 0.0  ;;  %v4695_v42 = vsel %vm13424_vm4, %v11317_v59, 0.0  ;;  %vm13433_vm9 = vmmov %vm13317_vm0 }
 0x554   : > { %8693 = vpow2.f32 %v4622_v28  ;;  %vm13434_vm4 = vmmov %vm13317_vm0 }
 0x555   : > { %8695 = vpow2.f32 %v4624_v46  ;;  %v4626_v44 = vmul.f32 1.442695, %v4565_v55  ;;  %v11319_v37 = vpop.eup %8685 }
 0x556   : > { %v4701_v63 = vsel %vm13426_vm15, %v11319_v37, 0.0  ;;  %vm13436_vm15 = vmmov %vm13317_vm0 }
 0x557   : > { %4693 = vadd.xlane.f32.xlu1 %v4692_v12  ;;  %4690 = vadd.xlane.f32.xlu0 %v4689_v27  ;;  %8697 = vpow2.f32 %v4626_v44 }
 0x559   : > { %v11325_v36 = vpop.eup %8687 }
 0x55a   : > { %v11327_v41 = vpop.eup %8689  ;;  %v4704_v17 = vsel %vm13425_vm8, %v11325_v36, 0.0  ;;  %vm13435_vm8 = vmmov %vm13317_vm0 }
 0x55b   : > { %4699 = vadd.xlane.f32.xlu1 %v4698_v48  ;;  %4696 = vadd.xlane.f32.xlu0 %v4695_v42  ;;  %v4710_v18 = vsel %vm13427_vm14, %v11327_v41, 0.0  ;;  %vm13437_vm14 = vmmov %vm13317_vm0 }
 0x55d   : > { %v11333_v13 = vpop.eup %8691 }
 0x55e   : > { %v11335_v49 = vpop.eup %8693  ;;  %v4707_v29 = vsel %vm13428_vm3, %v11333_v13, 0.0  ;;  %vm13438_vm3 = vmmov %vm13317_vm0 }
 0x55f   : > { %4705 = vadd.xlane.f32.xlu1 %v4704_v17  ;;  %4702 = vadd.xlane.f32.xlu0 %v4701_v63  ;;  %v11341_v51 = vpop.eup %8695  ;;  %v4713_v25 = vsel %vm13430_vm13, %v11335_v49, 0.0  ;;  %vm13440_vm13 = vmmov %vm13317_vm0 }
 0x560   : > { %v4716_v1 = vsel %vm13429_vm7, %v11341_v51, 0.0  ;;  %vm13439_vm7 = vmmov %vm13317_vm0 }
 0x561   : > { %v11347_v57 = vpop.eup %8697 }
 0x562   : > { %v4719_v34 = vsel %vm13431_vm11, %v11347_v57, 0.0  ;;  %vm13441_vm11 = vmmov %vm13317_vm0 }
 0x563   : > { %4711 = vadd.xlane.f32.xlu1 %v4710_v18  ;;  %4708 = vadd.xlane.f32.xlu0 %v4707_v29 }
 0x567   : > { %4717 = vadd.xlane.f32.xlu1 %v4716_v1  ;;  %4714 = vadd.xlane.f32.xlu0 %v4713_v25 }
 0x56b   : > { %4720 = vadd.xlane.f32.xlu0 %v4719_v34 }
 0x5b8   : > { %v4640_v28 = vpop.xlane.xlu1 %4639 }
 0x5bc   : > { %v4634_v46 = vpop.xlane.xlu1 %4633  ;;  %v4643_v55 = vpop.xlane.xlu0 %4642 }
 0x5bd   : > { %8699 = vrcp.f32 %v4643_v55 }
 0x5be   : > { %8701 = vrcp.f32 %v4634_v46 }
 0x5bf   : > { %8703 = vrcp.f32 %v4640_v28 }
 0x5c0   : > { %v4652_v12 = vpop.xlane.xlu1 %4651  ;;  %v4637_v27 = vpop.xlane.xlu0 %4636 }
 0x5c1   : > { %8705 = vrcp.f32 %v4637_v27 }
 0x5c4   : > { %v4646_v44 = vpop.xlane.xlu1 %4645  ;;  %v4655_v48 = vpop.xlane.xlu0 %4654 }
 0x5c5   : > { %8707 = vrcp.f32 %v4646_v44 }
 0x5c6   : > { %8709 = vrcp.f32 %v4655_v48 }
 0x5c7   : > { %8711 = vrcp.f32 %v4652_v12  ;;  %v8700_v63 = vpop.eup %8699 }
 0x5c8   : > { %v4532_v42 = vpop.xlane.xlu1 %4531  ;;  %v4649_v17 = vpop.xlane.xlu0 %4648  ;;  %v4763_v46 = vmul.f32 %v8700_v63, %v11207_v11 }
 0x5c9   : > { %v4566_v18 = vsub.f32 %v11231_v53, %v4532_v42  ;;  %8713 = vrcp.f32 %v4649_v17  ;;  %v8702_v29 = vpop.eup %8701 }
 0x5ca   : > { %v8704_v1 = vpop.eup %8703  ;;  %v4760_v44 = vmul.f32 %v8702_v29, %v11204_v39 }
 0x5cb   : > { %v4628_v25 = vmul.f32 1.442695, %v4566_v18  ;;  %v8706_v34 = vpop.eup %8705  ;;  %v4762_v48 = vmul.f32 %v8704_v1, %v11199_v54 }
 0x5cc   : > { %v4658_v55 = vpop.xlane.xlu1 %4657  ;;  %v4535_v28 = vpop.xlane.xlu0 %4534  ;;  %v4761_v12 = vmul.f32 %v8706_v34, %v11214_v2 }
 0x5cd   : > { %8715 = vpow2.f32 %v4628_v25  ;;  %v4567_v27 = vsub.f32 %v11242_v31, %v4535_v28  ;;  %v4793_v21 = vpack.c.bf16 %v4763_v46, %v4762_v48 }
 0x5ce   : > { %v4792_v53 = vpack.c.bf16 %v4761_v12, %v4760_v44  ;;  %8717 = vrcp.f32 %v4658_v55 }
 0x5cf   : > { %v4630_v40 = vmul.f32 1.442695, %v4567_v27  ;;  %v8708_v42 = vpop.eup %8707 }
 0x5d0   : > { %v4664_v17 = vpop.xlane.xlu1 %4663  ;;  %v4661_v18 = vpop.xlane.xlu0 %4660  ;;  %8331 = vmatprep.mubr.msk.bf16.mxu0 %vm13317_vm0, %v4792_v53  ;;  %v4764_v54 = vmul.f32 %v8708_v42, %v11224_v5 }
 0x5d1   : > { %v8710_v4 = vpop.eup %8709  ;;  %8719 = vpow2.f32 %v4630_v40  ;;  %8332 = vmatmul.mubr.msk.bf16.vlgmr.msra.gmra.mrb[44].mxu0 %vm13432_vm5, %v4793_v21  ;;  %vm13442_vm5 = vmmov %vm13317_vm0 }
 0x5d2   : > { %v8712_v11 = vpop.eup %8711  ;;  %8721 = vrcp.f32 %v4661_v18  ;;  %v4767_v29 = vmul.f32 %v8710_v4, %v11227_v50 }
 0x5d3   : > { %v8714_v31 = vpop.eup %8713  ;;  %8723 = vrcp.f32 %v4664_v17  ;;  %v4766_v40 = vmul.f32 %v8712_v11, %v11217_v19 }
 0x5d4   : > { %v4670_v39 = vpop.xlane.xlu1 %4669  ;;  %v4667_v2 = vpop.xlane.xlu0 %4666  ;;  %v4765_v63 = vmul.f32 %v8714_v31, %v11237_v43 }
 0x5d5   : > { %8725 = vrcp.f32 %v4667_v2  ;;  %v4795_v55 = vpack.c.bf16 %v4767_v29, %v4766_v40 }
 0x5d6   : > { %v4794_v1 = vpack.c.bf16 %v4765_v63, %v4764_v54  ;;  %8727 = vrcp.f32 %v4670_v39 }
 0x5d7   : > { %v11363_v25 = vpop.eup %8715 }
 0x5d8   : > { %v4676_v34 = vpop.xlane.xlu1 %4675  ;;  %v4673_v21 = vpop.xlane.xlu0 %4672  ;;  %8335 = vmatprep.mubr.msk.bf16.mxu0 %vm13433_vm9, %v4794_v1  ;;  %v4722_v46 = vsel %vm13434_vm4, %v11363_v25, 0.0  ;;  %vm13443_vm9 = vmmov %vm13317_vm0 }
 0x5d9   : > { %4723 = vadd.xlane.f32.xlu1 %v4722_v46  ;;  %v8718_v5 = vpop.eup %8717  ;;  %8729 = vrcp.f32 %v4673_v21  ;;  %8336 = vmatmul.mubr.msk.bf16.gmra.mrb[48].mxu0 %vm13435_vm8, %v4795_v55  ;;  %vm13444_vm4 = vmmov %vm13317_vm0 }
 0x5da   : > { %8731 = vrcp.f32 %v4676_v34  ;;  %v4768_v44 = vmul.f32 %v8718_v5, %v11248_v45  ;;  %vm13445_vm8 = vmmov %vm13317_vm0 }
 0x5db   : > { %v11369_v4 = vpop.eup %8719 }
 0x5dc   : > { %v4682_v19 = vpop.xlane.xlu1 %4681  ;;  %v4679_v50 = vpop.xlane.xlu0 %4678  ;;  %v4725_v43 = vsel %vm13436_vm15, %v11369_v4, 0.0  ;;  %vm13446_vm15 = vmmov %vm13317_vm0 }
 0x5dd   : > { %v8722_v28 = vpop.eup %8721  ;;  %4726 = vadd.xlane.f32.xlu0 %v4725_v43  ;;  %8733 = vrcp.f32 %v4679_v50 }
 0x5de   : > { %v8724_v27 = vpop.eup %8723  ;;  %v4769_v12 = vmul.f32 %v8722_v28, %v11258_v16  ;;  %8735 = vrcp.f32 %v4682_v19 }
 0x5df   : > { %v8726_v48 = vpop.eup %8725  ;;  %v4770_v18 = vmul.f32 %v8724_v27, %v11252_v3 }
 0x5e0   : > { %v4688_v53 = vpop.xlane.xlu1 %4687  ;;  %v4685_v42 = vpop.xlane.xlu0 %4684  ;;  %v4796_v17 = vpack.c.bf16 %v4769_v12, %v4768_v44  ;;  %v4771_v11 = vmul.f32 %v8726_v48, %v11262_v7 }
 0x5e1   : > { %v8728_v31 = vpop.eup %8727  ;;  %8737 = vrcp.f32 %v4685_v42 }
 0x5e2   : > { %8339 = vmatprep.mubr.msk.bf16.mxu0 %vm13437_vm14, %v4796_v17  ;;  %v4797_v39 = vpack.c.bf16 %v4771_v11, %v4770_v18  ;;  %8739 = vrcp.f32 %v4688_v53  ;;  %v4772_v16 = vmul.f32 %v8728_v31, %v11268_v23  ;;  %vm13447_vm14 = vmmov %vm13317_vm0 }
 0x5e3   : > { %v8730_v2 = vpop.eup %8729 }
 0x5e4   : > { %v4694_v54 = vpop.xlane.xlu1 %4693  ;;  %v4691_v45 = vpop.xlane.xlu0 %4690  ;;  %8340 = vmatmul.mubr.msk.bf16.gmra.mrb[52].mxu0 %vm13438_vm3, %v4797_v39  ;;  %v4773_v63 = vmul.f32 %v8730_v2, %v11278_v32  ;;  %vm13448_vm3 = vmmov %vm13317_vm0 }
 0x5e5   : > { %v8732_v29 = vpop.eup %8731  ;;  %8741 = vrcp.f32 %v4691_v45 }
 0x5e6   : > { %v4798_v3 = vpack.c.bf16 %v4773_v63, %v4772_v16  ;;  %8743 = vrcp.f32 %v4694_v54  ;;  %v4774_v34 = vmul.f32 %v8732_v29, %v11272_v35 }
 0x5e7   : > { %v8734_v1 = vpop.eup %8733 }
 0x5e8   : > { %v4700_v7 = vpop.xlane.xlu1 %4699  ;;  %v4697_v40 = vpop.xlane.xlu0 %4696  ;;  %8343 = vmatprep.mubr.msk.bf16.mxu0 %vm13439_vm7, %v4798_v3  ;;  %v4775_v21 = vmul.f32 %v8734_v1, %v11281_v60  ;;  %vm13449_vm7 = vmmov %vm13317_vm0 }
 0x5e9   : > { %v8736_v46 = vpop.eup %8735  ;;  %8745 = vrcp.f32 %v4697_v40 }
 0x5ea   : > { %v4799_v55 = vpack.c.bf16 %v4775_v21, %v4774_v34  ;;  %8747 = vrcp.f32 %v4700_v7  ;;  %v4776_v19 = vmul.f32 %v8736_v46, %v11287_v52 }
 0x5eb   : > { %v8738_v5 = vpop.eup %8737 }
 0x5ec   : > { %v4706_v23 = vpop.xlane.xlu1 %4705  ;;  %v4703_v32 = vpop.xlane.xlu0 %4702  ;;  %8344 = vmatmul.mubr.msk.bf16.gmra.mrb[56].mxu0 %vm13440_vm13, %v4799_v55  ;;  %v4777_v50 = vmul.f32 %v8738_v5, %v11297_v62  ;;  %vm13450_vm13 = vmmov %vm13317_vm0 }
 0x5ed   : > { %v8740_v43 = vpop.eup %8739  ;;  %8749 = vrcp.f32 %v4703_v32 }
 0x5ee   : > { %v4800_v28 = vpack.c.bf16 %v4777_v50, %v4776_v19  ;;  %8751 = vrcp.f32 %v4706_v23  ;;  %v4778_v44 = vmul.f32 %v8740_v43, %v11291_v6 }
 0x5ef   : > { %v8742_v27 = vpop.eup %8741 }
 0x5f0   : > { %v4712_v35 = vpop.xlane.xlu1 %4711  ;;  %v4709_v60 = vpop.xlane.xlu0 %4708  ;;  %8347 = vmatprep.mubr.msk.bf16.mxu0 %vm13441_vm11, %v4800_v28  ;;  %v4779_v12 = vmul.f32 %v8742_v27, %v11302_v10  ;;  %vm13451_vm11 = vmmov %vm13317_vm0 }
 0x5f1   : > { %v8744_v48 = vpop.eup %8743  ;;  %8753 = vrcp.f32 %v4709_v60 }
 0x5f2   : > { %v4801_v53 = vpack.c.bf16 %v4779_v12, %v4778_v44  ;;  %8755 = vrcp.f32 %v4712_v35  ;;  %v4780_v17 = vmul.f32 %v8744_v48, %v11308_v30  ;;  %v8491_v30 = vld [vmem:[%s13002_s13] sm:$0xff]  }
 0x5f3   : > { %v8746_v42 = vpop.eup %8745  ;;  %8363 = vmatprep.subr.bf16.mxu1 %v8491_v30 }
 0x5f4   : > { %v4718_v52 = vpop.xlane.xlu1 %4717  ;;  %v4715_v62 = vpop.xlane.xlu0 %4714  ;;  %8348 = vmatmul.mubr.msk.bf16.gmra.mrb[60].mxu0 %vm13317_vm0, %v4801_v53  ;;  %v4781_v18 = vmul.f32 %v8746_v42, %v11317_v59  ;;  %8364 = vmatpush3.bf16.msra.mxu1 %v8491_v30 }
 0x5f5   : > { %v8748_v11 = vpop.eup %8747  ;;  %8757 = vrcp.f32 %v4715_v62 }
 0x5f6   : > { %8759 = vrcp.f32 %v4718_v52  ;;  %v4802_v31 = vpack.c.bf16 %v4781_v18, %v4780_v17  ;;  %v4782_v10 = vmul.f32 %v8748_v11, %v11311_v56 }
 0x5f7   : > { %v8750_v6 = vpop.eup %8749 }
 0x5f8   : > { %v4721_v39 = vpop.xlane.xlu0 %4720  ;;  %8351 = vmatprep.mubr.msk.bf16.mxu0 %vm13442_vm5, %v4802_v31  ;;  %v4783_v2 = vmul.f32 %v8750_v6, %v11319_v37  ;;  %v8752_v54 = vpop.eup %8751  ;;  %vm13452_vm5 = vmmov %vm13317_vm0 }
 0x5f9   : > { %8761 = vrcp.f32 %v4721_v39  ;;  %v4784_v16 = vmul.f32 %v8752_v54, %v11325_v36 }
 0x5fa   : > { %v4803_v45 = vpack.c.bf16 %v4783_v2, %v4782_v10 }
 0x5fb   : > { %v8754_v59 = vpop.eup %8753 }
 0x5fc   : > { %8352 = vmatmul.mubr.msk.bf16.gmra.mrb[64].mxu0 %vm13443_vm9, %v4803_v45  ;;  %v4785_v63 = vmul.f32 %v8754_v59, %v11333_v13  ;;  %v8756_v29 = vpop.eup %8755  ;;  %v8492_v13 = vld [vmem:[%s13002_s13 + $0x8] sm:$0xff]   ;;  %vm13453_vm9 = vmmov %vm13317_vm0 }
 0x5fd   : > { %v4786_v37 = vmul.f32 %v8756_v29, %v11327_v41  ;;  %8365 = vmatprep.subr.bf16.mxu1 %v8492_v13 }
 0x5fe   : > { %v4804_v3 = vpack.c.bf16 %v4785_v63, %v4784_v16  ;;  %8366 = vmatpush3.bf16.msra.mxu1 %v8492_v13  ;;  %v8493_v13 = vld [vmem:[%s13004_s15 + $0x80] sm:$0xff]  }
 0x5ff   : > { %v8758_v56 = vpop.eup %8757  ;;  %8399 = vmatprep.subr.bf16.mxu1 %v8493_v13 }
 0x600   : > { %v8760_v1 = vpop.eup %8759  ;;  %8355 = vmatprep.mubr.msk.bf16.mxu0 %vm13444_vm4, %v4804_v3  ;;  %v4787_v7 = vmul.f32 %v8758_v56, %v11335_v49  ;;  %vm13454_vm4 = vmmov %vm13317_vm0 }
 0x601   : > { %v4788_v21 = vmul.f32 %v8760_v1, %v11341_v51 }
 0x602   : > { %v4805_v34 = vpack.c.bf16 %v4787_v7, %v4786_v37 }
 0x603   : > { %v8762_v40 = vpop.eup %8761 }
 0x604   : > { %v4789_v46 = vmul.f32 %v8762_v40, %v11347_v57  ;;  %8356 = vmatmul.mubr.msk.bf16.gmra.mrb[68].mxu0 %vm13445_vm8, %v4805_v34  ;;  %vm13455_vm8 = vmmov %vm13317_vm0 }
 0x606   : > { %v4806_v36 = vpack.c.bf16 %v4789_v46, %v4788_v21 }
 0x608   : > { %8359 = vmatprep.mubr.msk.bf16.mxu0 %vm13446_vm15, %v4806_v36  ;;  %vm13456_vm15 = vmmov %vm13317_vm0 }
 0x666   : > { %v4724_v41 = vpop.xlane.xlu1 %4723 }
 0x667   : > { %8763 = vrcp.f32 %v4724_v41  ;;  %v8494_v41 = vld [vmem:[%s13004_s15 + $0x88] sm:$0xff]  }
 0x66a   : > { %v4727_v49 = vpop.xlane.xlu0 %4726 }
 0x66b   : > { %8765 = vrcp.f32 %v4727_v49 }
 0x671   : > { %v8764_v55 = vpop.eup %8763 }
 0x672   : > { %v4790_v51 = vmul.f32 %v8764_v55, %v11363_v25 }
 0x675   : > { %v8766_v5 = vpop.eup %8765 }
 0x676   : > { %v4791_v57 = vmul.f32 %v8766_v5, %v11369_v4 }
 0x678   : > { %v4807_v23 = vpack.c.bf16 %v4791_v57, %v4790_v51 }
 0x67a   : > { %8360 = vmatmul.mubr.msk.bf16.gmra.mrb[72].mxu0 %vm13447_vm14, %v4807_v23  ;;  %vm13457_vm14 = vmmov %vm13317_vm0 }
 0x6a4   : > { %v8333_v32 = vpop.f32.mrb[44].mxu0 }
 0x6a5   : > { %v4892_v19 = vpop.f32.mrb[45].mxu0 }
 0x6a6   : > { %v8334_v50 = vpop.f32.mrb[46].mxu0 }
 0x6a7   : > { %v5020_v43 = vpack.c.bf16 %v8334_v50, %v8333_v32  ;;  %v4895_v28 = vpop.f32.mrb[47].mxu0  ;;  %v11445_v50 = vld [vmem:[%s13003_s14] ss:$0 sm:$0xff] }
 0x6a8   : > { %v5019_v27 = vpack.c.bf16 %v4895_v28, %v4892_v19 }
 0x6aa   : > { %8367 = vmatprep.mubr.msk.bf16.mxu1 %vm13448_vm3, %v5019_v27  ;;  %vm13458_vm3 = vmmov %vm13317_vm0 }
 0x6ab   : > { %8368 = vmatmul.mubr.msk.bf16.vlgmr.msra.gmra.mrb[68].mxu1 %vm13449_vm7, %v5020_v43  ;;  %vm13459_vm7 = vmmov %vm13317_vm0 }
 0x6ac   : > { %v8337_v35 = vpop.f32.mrb[48].mxu0  ;;  %8400 = vmatpush3.bf16.msra.mxu1 %v8493_v13 }
 0x6ad   : > { %v4908_v60 = vpop.f32.mrb[49].mxu0  ;;  %8401 = vmatprep.subr.bf16.mxu1 %v8494_v41 }
 0x6ae   : > { %v8338_v44 = vpop.f32.mrb[50].mxu0 }
 0x6af   : > { %v5022_v12 = vpack.c.bf16 %v8338_v44, %v8337_v35  ;;  %v4911_v25 = vpop.f32.mrb[51].mxu0 }
 0x6b0   : > { %v5021_v48 = vpack.c.bf16 %v4911_v25, %v4908_v60  ;;  %8402 = vmatpush3.bf16.msra.mxu1 %v8494_v41 }
 0x6b2   : > { %8371 = vmatprep.mubr.msk.bf16.mxu1 %vm13450_vm13, %v5021_v48  ;;  %vm13460_vm13 = vmmov %vm13317_vm0 }
 0x6b3   : > { %8372 = vmatmul.mubr.msk.bf16.gmra.mrb[72].mxu1 %vm13451_vm11, %v5022_v12  ;;  %vm5350_vm11 = vcmask 261124  }
 0x6b4   : > { %5351 = vst.msk [vmem:[#allocation3 + $0x88] sm:$0xf0] %vm5350_vm11, %v13221_v61 }
 0x6b7   : > { %v8341_v4 = vpop.f32.mrb[52].mxu0 }
 0x6b8   : > { %v4924_v53 = vpop.f32.mrb[53].mxu0 }
 0x6b9   : > { %v8342_v42 = vpop.f32.mrb[54].mxu0 }
 0x6ba   : > { %v5024_v52 = vpack.c.bf16 %v8342_v42, %v8341_v4  ;;  %v4927_v62 = vpop.f32.mrb[55].mxu0  ;;  %v5468_v42 = vld [vmem:[#allocation3] sm:$0xf0] }
 0x6bb   : > { %v5023_v17 = vpack.c.bf16 %v4927_v62, %v4924_v53 }
 0x6bd   : > { %8375 = vmatprep.mubr.msk.bf16.mxu1 %vm13317_vm0, %v5023_v17  ;;  %vm5348_vm0 = vcmask 257024  }
 0x6be   : > { %8376 = vmatmul.mubr.msk.bf16.gmra.mrb[76].mxu1 %vm13452_vm5, %v5024_v52  ;;  %5349 = vst.msk [vmem:[#allocation3 + $0x8] sm:$0xf] %vm5348_vm0, %v13221_v61  ;;  %vm13461_vm5 = vmmov %vm13458_vm3 }
 0x6bf   : > { %v8345_v18 = vpop.f32.mrb[56].mxu0 }
 0x6c0   : > { %v4940_v11 = vpop.f32.mrb[57].mxu0 }
 0x6c1   : > { %v8346_v31 = vpop.f32.mrb[58].mxu0 }
 0x6c2   : > { %v5026_v6 = vpack.c.bf16 %v8346_v31, %v8345_v18  ;;  %v4943_v39 = vpop.f32.mrb[59].mxu0  ;;  %v5568_v31 = vshll.u32 %v5468_v42, 16 }
 0x6c3   : > { %v5025_v10 = vpack.c.bf16 %v4943_v39, %v4940_v11 }
 0x6c5   : > { %8379 = vmatprep.mubr.msk.bf16.mxu1 %vm13453_vm9, %v5025_v10  ;;  %vm13462_vm9 = vmmov %vm13458_vm3 }
 0x6c6   : > { %8380 = vmatmul.mubr.msk.bf16.gmra.mrb[80].mxu1 %vm13454_vm4, %v5026_v6  ;;  %vm13463_vm4 = vcmask 1043456  }
 0x6c7   : > { %v8349_v2 = vpop.f32.mrb[60].mxu0 }
 0x6c8   : > { %v4956_v54 = vpop.f32.mrb[61].mxu0 }
 0x6c9   : > { %v8350_v30 = vpop.f32.mrb[62].mxu0 }
 0x6ca   : > { %v5028_v45 = vpack.c.bf16 %v8350_v30, %v8349_v2  ;;  %v4959_v59 = vpop.f32.mrb[63].mxu0  ;;  %v5570_v30 = vrot.slane %v5568_v31, 1 }
 0x6cb   : > { %v5027_v16 = vpack.c.bf16 %v4959_v59, %v4956_v54 }
 0x6cd   : > { %8383 = vmatprep.mubr.msk.bf16.mxu1 %vm13455_vm8, %v5027_v16  ;;  %vm13464_vm8 = vmmov %vm13458_vm3 }
 0x6ce   : > { %8384 = vmatmul.mubr.msk.bf16.gmra.mrb[84].mxu1 %vm13456_vm15, %v5028_v45  ;;  %vm13465_vm15 = vcmp.ne.s16.totalorder %v9181_v8, 0 }
 0x6cf   : > { %v8353_v63 = vpop.f32.mrb[64].mxu0  ;;  %v5470_v59 = vsel %vm13465_vm15, %v5468_v42, 0 }
 0x6d0   : > { %v4972_v29 = vpop.f32.mrb[65].mxu0 }
 0x6d1   : > { %v8354_v3 = vpop.f32.mrb[66].mxu0 }
 0x6d2   : > { %v5030_v56 = vpack.c.bf16 %v8354_v3, %v8353_v63  ;;  %v4975_v1 = vpop.f32.mrb[67].mxu0 }
 0x6d3   : > { %v5029_v37 = vpack.c.bf16 %v4975_v1, %v4972_v29 }
 0x6d5   : > { %8387 = vmatprep.mubr.msk.bf16.mxu1 %vm13457_vm14, %v5029_v37  ;;  %vm13466_vm14 = vmmov %vm13463_vm4 }
 0x6d6   : > { %8388 = vmatmul.mubr.msk.bf16.gmra.mrb[88].mxu1 %vm13458_vm3, %v5030_v56  ;;  %v5751_v56 = vrot.slane %v5470_v59, 1  ;;  %vm13467_vm3 = vmmov %vm13463_vm4 }
 0x6d7   : > { %v8357_v7 = vpop.f32.mrb[68].mxu0 }
 0x6d8   : > { %v4988_v40 = vpop.f32.mrb[69].mxu0 }
 0x6d9   : > { %v8358_v34 = vpop.f32.mrb[70].mxu0 }
 0x6da   : > { %v5032_v21 = vpack.c.bf16 %v8358_v34, %v8357_v7  ;;  %v4991_v46 = vpop.f32.mrb[71].mxu0 }
 0x6db   : > { %v5031_v36 = vpack.c.bf16 %v4991_v46, %v4988_v40 }
 0x6dd   : > { %8391 = vmatprep.mubr.msk.bf16.mxu1 %vm13459_vm7, %v5031_v36  ;;  %vm13468_vm7 = vcmp.ne.s16.totalorder %v9121_v20, 0 }
 0x6de   : > { %8392 = vmatmul.mubr.msk.bf16.gmra.mrb[92].mxu1 %vm13460_vm13, %v5032_v21  ;;  %vm13469_vm13 = vmmov %vm13461_vm5 }
 0x74d   : > { %v8361_v49 = vpop.f32.mrb[72].mxu0 }
 0x74e   : > { %v5004_v55 = vpop.f32.mrb[73].mxu0 }
 0x74f   : > { %v8362_v5 = vpop.f32.mrb[74].mxu0 }
 0x750   : > { %v5034_v51 = vpack.c.bf16 %v8362_v5, %v8361_v49  ;;  %v5007_v57 = vpop.f32.mrb[75].mxu0 }
 0x751   : > { %v5033_v23 = vpack.c.bf16 %v5007_v57, %v5004_v55  ;;  %v13474_v57 = vld [vmem:[#allocation38_spill] sm:$0xff] }
 0x753   : > { %8395 = vmatprep.mubr.msk.bf16.mxu1 %vm13461_vm5, %v5033_v23 }
 0x754   : > { %8396 = vmatmul.mubr.msk.bf16.gmra.mrb[96].mxu1 %vm13462_vm9, %v5034_v51  ;;  %vm13472_vm9 = vmmov %vm13468_vm7 }
 0x77e   : > { %v8369_v61 = vpop.f32.mrb[68].mxu1 }
 0x77f   : > { %v5262_v32 = vadd.f32 %v8369_v61, %v10862_v38  ;;  %v5133_v19 = vpop.f32.mrb[69].mxu1  ;;  %v13475_v61 = vld [vmem:[#allocation8_spill] sm:$0xff] }
 0x780   : > { %v5260_v43 = vadd.f32 %v5133_v19, %v10857_v24  ;;  %v8370_v28 = vpop.f32.mrb[70].mxu1 }
 0x781   : > { %v5263_v27 = vadd.f32 %v8370_v28, %v10854_v58  ;;  %v5136_v35 = vpop.f32.mrb[71].mxu1  ;;  %v5301_v44 = vadd.f32 %v11445_v50, %v5262_v32  ;;  %v13477_v28 = vld [vmem:[#allocation39_spill] sm:$0xff] }
 0x782   : > { %v5261_v60 = vadd.f32 %v5136_v35, %v10859_v14  ;;  %v5299_v38 = vadd.f32 %v11445_v50, %v5260_v43 }
 0x783   : > { %v5302_v12 = vadd.f32 %v11445_v50, %v5263_v27 }
 0x784   : > { %v5300_v25 = vadd.f32 %v11445_v50, %v5261_v60 }
 0x785   : > { %v5332_v48 = vpack.c.bf16 %v5302_v12, %v5301_v44 }
 0x786   : > { %v5331_v4 = vpack.c.bf16 %v5300_v25, %v5299_v38  ;;  %v8373_v53 = vpop.f32.mrb[72].mxu1  ;;  %v13479_v25 = vld [vmem:[#allocation9_spill] sm:$0xff] }
 0x787   : > { %v5370_v52 = vrot.slane %v5332_v48, 4  ;;  %v5266_v24 = vadd.f32 %v8373_v53, %v10878_v33  ;;  %v5149_v62 = vpop.f32.mrb[73].mxu1 }
 0x788   : > { %v5369_v58 = vrot.slane %v5331_v4, 4  ;;  %v5264_v17 = vadd.f32 %v5149_v62, %v10874_v0  ;;  %v8374_v14 = vpop.f32.mrb[74].mxu1 }
 0x789   : > { %v5267_v18 = vadd.f32 %v8374_v14, %v10872_v22  ;;  %v5152_v11 = vpop.f32.mrb[75].mxu1  ;;  %v5305_v10 = vadd.f32 %v11445_v50, %v5266_v24  ;;  %v5566_v22 = vshrl.u32 %v5468_v42, 16 }
 0x78a   : > { %v5371_v6 = vsel %vm13463_vm4, %v5369_v58, %v5370_v52  ;;  %5417 = vst.msk [vmem:[#allocation3 + $0x8] sm:$0xf0] %vm5350_vm11, %v5369_v58  ;;  %v5265_v39 = vadd.f32 %v5152_v11, %v10876_v15  ;;  %v5303_v2 = vadd.f32 %v11445_v50, %v5264_v17  ;;  %vm13470_vm11 = vmmov %vm13461_vm5  ;;  %vm13471_vm5 = vcmp.ne.s16.totalorder %v9145_v47, 0 }
 0x78b   : > { %5418 = vst.msk [vmem:[#allocation3 + $0x10] sm:$0xff] %vm13464_vm8, %v5371_v6  ;;  %v5306_v33 = vadd.f32 %v11445_v50, %v5267_v18  ;;  %v5571_v1 = vor.u32 %v5570_v30, %v5566_v22  ;;  %vm13473_vm4 = vmmov %vm13465_vm15  ;;  %vm13476_vm8 = vcmp.ne.s16.totalorder %v13475_v61, 0 }
 0x78c   : > { %v5304_v0 = vadd.f32 %v11445_v50, %v5265_v39  ;;  %vm13478_vm15 = vmmov %vm13476_vm8 }
 0x78d   : > { %v5334_v54 = vpack.c.bf16 %v5306_v33, %v5305_v10  ;;  %v13482_v33 = vld [vmem:[#allocation43_spill] sm:$0xff] }
 0x78e   : > { %v5333_v45 = vpack.c.bf16 %v5304_v0, %v5303_v2 }
 0x78f   : > { %v11467_v16 = vrot.slane %v5334_v54, 4 }
 0x790   : > { %v5372_v15 = vrot.slane %v5333_v45, 4 }
 0x791   : > { %v8377_v63 = vpop.f32.mrb[76].mxu1  ;;  %v5487_v29 = vld [vmem:[#allocation3 + $0x8] sm:$0xf8] }
 0x792   : > { %v5507_v3 = vld [vmem:[#allocation3 + $0x8] sm:$0xf0]  ;;  %v5373_v37 = vsel %vm13466_vm14, %v5370_v52, %v5372_v15  ;;  %v5375_v7 = vsel %vm13467_vm3, %v5372_v15, %v11467_v16  ;;  %v5270_v40 = vadd.f32 %v8377_v63, %v10896_v26  ;;  %v5165_v34 = vpop.f32.mrb[77].mxu1  ;;  %v5490_v21 = vsel %vm13468_vm7, %v5487_v29, 0  ;;  %v11475_v46 = vld [vmem:[#allocation3 + $0x10] sm:$0xff]  ;;  %vm13481_vm3 = vmmov %vm13473_vm4 }
 0x793   : > { %v5526_v36 = vld [vmem:[#allocation3 + $0x10] sm:$0xf8]  ;;  %v5435_v13 = vld [vmem:[#allocation3 + $0x8] sm:$0xff]  ;;  %5419 = vst.msk [vmem:[#allocation3 + $0x18] sm:$0xff] %vm13469_vm13, %v5373_v37  ;;  %v5268_v41 = vadd.f32 %v5165_v34, %v10892_v9  ;;  %5835 = vrot.lane.b32.xlu0 %v5490_v21, %s8868_s18  ;;  %v8378_v49 = vpop.f32.mrb[78].mxu1  ;;  %v5491_v26 = vsel %vm13471_vm5, %v11475_v46, 0 }
 0x794   : > { %5420 = vst.msk [vmem:[#allocation3 + $0x20] sm:$0xff] %vm13470_vm11, %v5375_v7  ;;  %v5529_v55 = vsel %vm13472_vm9, %v5526_v36, 0  ;;  %v5509_v5 = vsel %vm13473_vm4, %v5507_v3, 0  ;;  %v5309_v51 = vadd.f32 %v11445_v50, %v5270_v40  ;;  %v5271_v23 = vadd.f32 %v8378_v49, %v13474_v57  ;;  %5837 = vrot.lane.b32.xlu1 %v5491_v26, %s8868_s18  ;;  %v5168_v9 = vpop.f32.mrb[79].mxu1  ;;  %v11504_v4 = vld [vmem:[#allocation3 + $0x10] sm:$0xf0] }
 0x795   : > { %v5510_v32 = vsel %vm13476_vm8, %v11475_v46, 0  ;;  %v5910_v19 = vrot.slane %v5509_v5, 1  ;;  %v5307_v43 = vadd.f32 %v11445_v50, %v5268_v41  ;;  %v5269_v27 = vadd.f32 %v5168_v9, %v13477_v28  ;;  %v13484_v15 = vld [vmem:[#allocation41_spill] sm:$0xff]  ;;  %v13485_v29 = vld [vmem:[#allocation7_spill] sm:$0xff]  ;;  %v13488_v37 = vld [vmem:[#allocation40_spill] sm:$0xff] }
 0x796   : > { %v5911_v35 = vrot.slane %v5510_v32, 1  ;;  %v5471_v60 = vsel %vm13478_vm15, %v5435_v13, 0  ;;  %v5310_v44 = vadd.f32 %v11445_v50, %v5271_v23  ;;  %v5573_v38 = vshll.u32 %v5435_v13, 16  ;;  %v13491_v49 = vld [vmem:[#allocation42_spill] sm:$0xff] }
 0x797   : > { %v5752_v12 = vrot.slane %v5471_v60, 1  ;;  %vm13480_vm14 = vcmp.ne.s16.totalorder %v13479_v25, 0  ;;  %v5308_v53 = vadd.f32 %v11445_v50, %v5269_v27  ;;  %5994 = vrot.lane.b32.xlu0 %v5529_v55, %s8869_s19  ;;  %v5577_v24 = vshrl.u32 %v5435_v13, 16  ;;  %v13497_v28 = vld [vmem:[#allocation10_spill] sm:$0xff] }
 0x798   : > { %v11502_v48 = vsel %vm13480_vm14, %v11475_v46, 0  ;;  %v5912_v42 = vsel %vm2422_vm1, %v5910_v19, %v5911_v35  ;;  %v5336_v62 = vpack.c.bf16 %v5310_v44, %v5309_v51  ;;  %v5575_v17 = vrot.slane %v5573_v38, 1  ;;  %vm13487_vm11 = vmmov %vm13480_vm14 }
 0x799   : > { %v5754_v52 = vrot.slane %v11502_v48, 1  ;;  %5943 = vrot.lane.b32.xlu1 %v5912_v42, %s8870_s1  ;;  %v5753_v58 = vsel %vm2422_vm1, %v5751_v56, %v5752_v12  ;;  %v5581_v14 = vshll.u32 %v11475_v46, 16  ;;  %v5335_v18 = vpack.c.bf16 %v5308_v53, %v5307_v43  ;;  %v8381_v11 = vpop.f32.mrb[80].mxu1  ;;  %v8496_v53 = vld [vmem:[%s13004_s15] sm:$0xff]  }
 0x79a   : > { %v5548_v6 = vsel %vm13481_vm3, %v11504_v4, 0  ;;  %v6029_v39 = vshrl.u32 %v11504_v4, 16  ;;  %v11520_v10 = vrot.slane %v5336_v62, 4  ;;  %v5274_v2 = vadd.f32 %v8381_v11, %v13482_v33  ;;  %v5181_v0 = vpop.f32.mrb[81].mxu1  ;;  %v11526_v30 = vld [vmem:[#allocation3 + $0x18] sm:$0xff]  ;;  %vm13496_vm3 = vmmov %vm13487_vm11  ;;  %v13501_v11 = vld [vmem:[#allocation45_spill] sm:$0xff] }
 0x79b   : > { %v5755_v31 = vsel %vm2422_vm1, %v5752_v12, %v5754_v52  ;;  %vm13483_vm7 = vsmask.f32 7424  ;;  %v11524_v22 = vld [vmem:[#allocation3 + $0x20] sm:$0xff]  ;;  %v5579_v45 = vor.u32 %v5577_v24, %v5575_v17  ;;  %v5376_v59 = vrot.slane %v5335_v18, 4  ;;  %5784 = vrot.lane.b32.xlu0 %v5753_v58, %s8869_s19  ;;  %v8382_v8 = vpop.f32.mrb[82].mxu1  ;;  %v13500_v24 = vld [vmem:[#allocation47_spill] sm:$0xff] }
 0x79c   : > { %v5576_v54 = vsel %vm13483_vm7, %v5571_v1, %v5575_v17  ;;  %v5272_v63 = vadd.f32 %v5181_v0, %v13484_v15  ;;  %vm13486_vm13 = vcmp.ne.s16.totalorder %v13485_v29, 0  ;;  %v11536_v56 = vsel %vm13487_vm11, %v11526_v30, 0  ;;  %v5184_v40 = vpop.f32.mrb[83].mxu1  ;;  %vm13494_vm15 = vmmov %vm13483_vm7 }
 0x79d   : > { %v5531_v3 = vsel %vm13486_vm13, %v11524_v22, 0  ;;  %v5313_v1 = vadd.f32 %v11445_v50, %v5274_v2  ;;  %v5275_v7 = vadd.f32 %v8382_v8, %v13488_v37  ;;  %5700 = vrot.lane.b32.xlu1 %v5576_v54, %s8870_s1  ;;  %v5913_v34 = vrot.slane %v11536_v56, 1  ;;  %v13502_v54 = vld [vmem:[#allocation44_spill] sm:$0xff]  ;;  %v13504_v37 = vld [vmem:[#allocation46_spill] sm:$0xff]  ;;  %v8499_v56 = vld [vmem:[%s13004_s15 + $0x50] sm:$0xff]  }
 0x79e   : > { %v11542_v21 = vrot.slane %v5581_v14, 1  ;;  %vm13489_vm5 = vcmask 1043456   ;;  %v5311_v41 = vadd.f32 %v11445_v50, %v5272_v63  ;;  %v5273_v26 = vadd.f32 %v5184_v40, %v13491_v49 }
 0x79f   : > { %v5377_v36 = vsel %vm13489_vm5, %v11467_v16, %v5376_v59  ;;  %vm13490_vm9 = vmmov %vm13489_vm5  ;;  %vm13492_vm4 = vcmask 261120   ;;  %v5314_v55 = vadd.f32 %v11445_v50, %v5275_v7  ;;  %v5914_v5 = vsel %vm2422_vm1, %v5911_v35, %v5913_v34  ;;  %5998 = vrot.lane.b32.xlu0 %v5531_v3, %s8869_s19  ;;  %v8495_v35 = vld [vmem:[%s13004_s15 + $0x40] sm:$0xff]  }
 0x7a0   : > { %v5379_v13 = vsel %vm13490_vm9, %v5376_v59, %v11520_v10  ;;  %5421 = vst.msk [vmem:[#allocation3 + $0x28] sm:$0xff] %vm13492_vm4, %v5377_v36  ;;  %vm13493_vm8 = vmmov %vm13492_vm4  ;;  %v5584_v16 = vsel %vm13494_vm15, %v5579_v45, %v11542_v21  ;;  %vm13495_vm14 = vcmp.ne.s16.totalorder %v13475_v61, 0  ;;  %v5312_v57 = vadd.f32 %v11445_v50, %v5273_v26  ;;  %8047 = vmatprep.subr.bf16.mxu0 %v8495_v35  ;;  %v8498_v26 = vld [vmem:[%s13004_s15 + $0x8] sm:$0xff]  }
 0x7a1   : > { %5422 = vst.msk [vmem:[#allocation3 + $0x30] sm:$0xff] %vm13493_vm8, %v5379_v13  ;;  %v5549_v51 = vsel %vm13495_vm14, %v11526_v30, 0  ;;  %v11566_v23 = vsel %vm13496_vm3, %v11524_v22, 0  ;;  %v6103_v9 = vrot.slane %v5548_v6, 1  ;;  %v5338_v19 = vpack.c.bf16 %v5314_v55, %v5313_v1  ;;  %5786 = vrot.lane.b32.xlu1 %v5755_v31, %s8869_s19  ;;  %v8385_v44 = vpop.f32.mrb[84].mxu1  ;;  %8048 = vmatpush3.bf16.msra.mxu0 %v8496_v53  ;;  %vm13503_vm11 = vmmov %vm13489_vm5 }
 0x7a2   : > { %v6104_v32 = vrot.slane %v5549_v51, 1  ;;  %v6106_v43 = vrot.slane %v11566_v23, 1  ;;  %vm13498_vm7 = vcmp.ne.s16.totalorder %v13497_v28, 0  ;;  %vm13499_vm13 = vcmp.ne.s16.totalorder %v9145_v47, 0  ;;  %v5197_v58 = vpop.f32.mrb[85].mxu1  ;;  %vm13505_vm9 = vmmov %vm13492_vm4 }
 0x7a3   : > { %v11573_v61 = vsel %vm13498_vm7, %v11524_v22, 0  ;;  %v5530_v27 = vsel %vm13499_vm13, %v11526_v30, 0  ;;  %v5337_v60 = vpack.c.bf16 %v5312_v57, %v5311_v41  ;;  %v5589_v25 = vshll.u32 %v11526_v30, 16  ;;  %5945 = vrot.lane.b32.xlu0 %v5914_v5, %s8870_s1  ;;  %v8386_v6 = vpop.f32.mrb[86].mxu1  ;;  %vm13512_vm13 = vmmov %vm13492_vm4 }
 0x7a4   : > { %v6105_v12 = vsel %vm2422_vm1, %v6103_v9, %v6104_v32  ;;  %v5915_v38 = vrot.slane %v11573_v61, 1  ;;  %v11587_v42 = vrot.slane %v5338_v19, 4  ;;  %v5278_v62 = vadd.f32 %v8385_v44, %v13500_v24  ;;  %v5200_v59 = vpop.f32.mrb[87].mxu1  ;;  %v13507_v44 = vld [vmem:[#allocation13_spill] sm:$0xff]  ;;  %v8505_v61 = vld [vmem:[%s13004_s15 + $0x68] sm:$0xff]  }
 0x7a5   : > { %v6107_v17 = vsel %vm2422_vm1, %v6104_v32, %v6106_v43  ;;  %v6450_v14 = vshrl.u32 %v6105_v12, 16  ;;  %v5380_v18 = vrot.slane %v5337_v60, 4  ;;  %v5276_v31 = vadd.f32 %v5197_v58, %v13501_v11  ;;  %5702 = vrot.lane.b32.xlu1 %v5584_v16, %s8870_s1 }
 0x7a6   : > { %v6453_v33 = vshll.u32 %v6105_v12, 16  ;;  %v6458_v2 = vshrl.u32 %v6107_v17, 16  ;;  %v5317_v0 = vadd.f32 %v11445_v50, %v5278_v62  ;;  %v5279_v45 = vadd.f32 %v8386_v6, %v13502_v54  ;;  %v13511_v62 = vld [vmem:[#allocation51_spill] sm:$0xff]  ;;  %v8501_v54 = vld [vmem:[%s13004_s15 + $0x58] sm:$0xff]  }
 0x7a7   : > { %v6452_v15 = vrot.slane %v6450_v14, 3  ;;  %v6461_v63 = vshll.u32 %v6107_v17, 16  ;;  %v5381_v8 = vsel %vm13503_vm11, %v11520_v10, %v5380_v18  ;;  %v5383_v3 = vsel %vm13489_vm5, %v5380_v18, %v11587_v42  ;;  %v11607_v49 = vld [vmem:[#allocation3 + $0x28] sm:$0xff]  ;;  %v8497_v10 = vld [vmem:[%s13004_s15 + $0x48] sm:$0xff]   ;;  %v8500_v18 = vld [vmem:[%s13004_s15 + $0x10] sm:$0xff]  }
 0x7a8   : > { %v5315_v1 = vadd.f32 %v11445_v50, %v5276_v31  ;;  %v5277_v7 = vadd.f32 %v5200_v59, %v13504_v37  ;;  %5423 = vst.msk [vmem:[#allocation3 + $0x38] sm:$0xff] %vm13505_vm9, %v5381_v8  ;;  %v5318_v40 = vadd.f32 %v11445_v50, %v5279_v45  ;;  %v6455_v36 = vrot.slane %v6453_v33, 4  ;;  %8049 = vmatprep.subr.bf16.mxu0 %v8497_v10  ;;  %v13513_v31 = vld [vmem:[#allocation49_spill] sm:$0xff]  ;;  %v13514_v59 = vld [vmem:[#allocation48_spill] sm:$0xff]  ;;  %v13515_v8 = vld [vmem:[#allocation11_spill] sm:$0xff] }
 0x7a9   : > { %5424 = vst.msk [vmem:[#allocation3 + $0x40] sm:$0xff] %vm13492_vm4, %v5383_v3  ;;  %v6460_v13 = vrot.slane %v6458_v2, 3  ;;  %v6463_v41 = vrot.slane %v6461_v63, 4  ;;  %v5916_v5 = vsel %vm2422_vm1, %v5913_v34, %v5915_v38  ;;  %v11621_v16 = vrot.slane %v5589_v25, 1  ;;  %5996 = vrot.lane.b32.xlu1 %v5530_v27, %s8869_s19  ;;  %v8389_v35 = vpop.f32.mrb[88].mxu1  ;;  %v11640_v27 = vld [vmem:[#allocation3 + $0x30] sm:$0xff]  ;;  %8050 = vmatpush3.bf16.msra.mxu0 %v8498_v26 }
 0x7aa   : > { %v5316_v55 = vadd.f32 %v11445_v50, %v5277_v7  ;;  %v6031_v51 = vshll.u32 %v11504_v4, 16  ;;  %v5340_v57 = vpack.c.bf16 %v5318_v40, %v5317_v0  ;;  %v6456_v9 = vor.u32 %v6455_v36, %v6452_v15  ;;  %5947 = vrot.lane.b32.xlu0 %v5916_v5, %s8870_s1  ;;  %v5213_v17 = vpop.f32.mrb[89].mxu1  ;;  %8051 = vmatprep.subr.bf16.mxu0 %v8499_v56  ;;  %v13517_v4 = vld [vmem:[#allocation14_spill] sm:$0xff]  ;;  %v8502_v26 = vld [vmem:[%s13004_s15 + $0x18] sm:$0xff]  }
 0x7ab   : > { %v11624_v32 = vor.u32 %v6463_v41, %v6460_v13  ;;  %vm13506_vm8 = vcmp.ne.s16.totalorder %v13485_v29, 0  ;;  %vm13508_vm15 = vcmp.ne.s16.totalorder %v13507_v44, 0  ;;  %vm13510_vm3 = vsmask.f32 4352  ;;  %v8390_v2 = vpop.f32.mrb[90].mxu1  ;;  %v13524_v13 = vld [vmem:[#allocation50_spill] sm:$0xff] }
 0x7ac   : > { %v5492_v19 = vsel %vm13506_vm8, %v11526_v30, 0  ;;  %v5339_v34 = vpack.c.bf16 %v5316_v55, %v5315_v1  ;;  %v6033_v60 = vrot.slane %v6031_v51, 1  ;;  %v5532_v12 = vsel %vm13508_vm15, %v11607_v49, 0  ;;  %vm13509_vm14 = vmmov %vm13508_vm15  ;;  %v5216_v63 = vpop.f32.mrb[91].mxu1 }
 0x7ad   : > { %v5493_v25 = vsel %vm13509_vm14, %v11524_v22, 0  ;;  %v11642_v53 = vrot.slane %v5340_v57, 4  ;;  %v6465_v24 = vsel %vm13510_vm3, %v6456_v9, %v11624_v32  ;;  %v5282_v58 = vadd.f32 %v8389_v35, %v13511_v62  ;;  %5839 = vrot.lane.b32.xlu1 %v5492_v19, %s8868_s18  ;;  %vm13522_vm15 = vmmov %vm13512_vm13  ;;  %8052 = vmatpush3.bf16.msra.mxu0 %v8500_v18 }
 0x7ae   : > { %v5551_v14 = vsel %vm13498_vm7, %v11607_v49, 0  ;;  %v5384_v11 = vrot.slane %v5339_v34, 4  ;;  %8403 = vmatprep.mubr.msk.bf16.mxu1 %vm13512_vm13, %v6465_v24  ;;  %v5280_v6 = vadd.f32 %v5213_v17, %v13513_v31  ;;  %v6034_v33 = vor.u32 %v6033_v60, %v6029_v39  ;;  %vm13523_vm14 = vmmov %vm13512_vm13  ;;  %8053 = vmatprep.subr.bf16.mxu0 %v8501_v54 }
 0x7af   : > { %v6108_v0 = vrot.slane %v5551_v14, 1  ;;  %v5321_v45 = vadd.f32 %v11445_v50, %v5282_v58  ;;  %v5283_v15 = vadd.f32 %v8390_v2, %v13514_v59  ;;  %vm13516_vm11 = vcmp.ne.s16.totalorder %v13515_v8, 0  ;;  %vm13525_vm3 = vmmov %vm13498_vm7  ;;  %v13527_v58 = vld [vmem:[#allocation55_spill] sm:$0xff] }
 0x7b0   : > { %v11666_v3 = vsel %vm13516_vm11, %v11640_v27, 0  ;;  %vm13518_vm5 = vcmp.ne.s16.totalorder %v13517_v4, 0  ;;  %vm13519_vm9 = vcmask 1043456   ;;  %v5319_v7 = vadd.f32 %v11445_v50, %v5280_v6  ;;  %vm13526_vm7 = vmmov %vm13516_vm11 }
 0x7b1   : > { %v5533_v39 = vsel %vm13518_vm5, %v11640_v27, 0  ;;  %v5385_v1 = vsel %vm13519_vm9, %v11587_v42, %v5384_v11  ;;  %vm13520_vm4 = vmmov %vm13519_vm9  ;;  %vm13521_vm8 = vsmask.f32 7424  ;;  %v5322_v36 = vadd.f32 %v11445_v50, %v5283_v15  ;;  %5841 = vrot.lane.b32.xlu1 %v5493_v25, %s8868_s18  ;;  %v8393_v28 = vpop.f32.mrb[92].mxu1  ;;  %8054 = vmatpush3.bf16.msra.mxu0 %v8502_v26 }
 0x7b2   : > { %v5387_v37 = vsel %vm13520_vm4, %v5384_v11, %v11642_v53  ;;  %v6035_v40 = vsel %vm13521_vm8, %v6034_v33, %v11621_v16  ;;  %5425 = vst.msk [vmem:[#allocation3 + $0x48] sm:$0xff] %vm13522_vm15, %v5385_v1  ;;  %v5281_v41 = vadd.f32 %v5216_v63, %v13524_v13  ;;  %v6109_v42 = vsel %vm2422_vm1, %v6106_v43, %v6108_v0  ;;  %v5229_v14 = vpop.f32.mrb[93].mxu1  ;;  %v13528_v11 = vld [vmem:[#allocation53_spill] sm:$0xff]  ;;  %v11732_v13 = vld [vmem:[#allocation3 + $0x40] sm:$0xff]  ;;  %vm13532_vm11 = vmmov %vm13520_vm4 }
 0x7b3   : > { %5426 = vst.msk [vmem:[#allocation3 + $0x50] sm:$0xff] %vm13523_vm14, %v5387_v37  ;;  %6052 = vrot.lane.b32.xlu0 %v6035_v40, %s8868_s18  ;;  %v6110_v10 = vrot.slane %v11666_v3, 1  ;;  %v6483_v55 = vshrl.u32 %v6109_v42, 16  ;;  %v6486_v5 = vshll.u32 %v6109_v42, 16  ;;  %v11693_v51 = vsel %vm13525_vm3, %v11526_v30, 0  ;;  %v8394_v2 = vpop.f32.mrb[94].mxu1  ;;  %vm13533_vm5 = vmmov %vm13520_vm4 }
 0x7b4   : > { %v11698_v23 = vsel %vm13526_vm7, %v11607_v49, 0  ;;  %v5342_v43 = vpack.c.bf16 %v5322_v36, %v5321_v45  ;;  %v5320_v57 = vadd.f32 %v11445_v50, %v5281_v41  ;;  %v5756_v19 = vrot.slane %v11693_v51, 1  ;;  %v13529_v45 = vld [vmem:[#allocation52_spill] sm:$0xff]  ;;  %v5232_v59 = vpop.f32.mrb[95].mxu1  ;;  %v11730_v36 = vld [vmem:[#allocation3 + $0x38] sm:$0xff]  ;;  %vm13534_vm9 = vmmov %vm13523_vm14 }
 0x7b5   : > { %v6111_v9 = vsel %vm2422_vm1, %v6108_v0, %v6110_v10  ;;  %v6485_v56 = vrot.slane %v6483_v55, 3  ;;  %v6488_v34 = vrot.slane %v6486_v5, 4  ;;  %v5286_v17 = vadd.f32 %v8393_v28, %v13527_v58  ;;  %v8503_v0 = vld [vmem:[%s13004_s15 + $0x60] sm:$0xff]   ;;  %vm13535_vm4 = vmmov %vm13526_vm7  ;;  %v13540_v51 = vld [vmem:[#allocation12_spill] sm:$0xff] }
 0x7b6   : > { %v6508_v35 = vshrl.u32 %v6111_v9, 16  ;;  %v6511_v60 = vshll.u32 %v6111_v9, 16  ;;  %v11706_v24 = vrot.slane %v5342_v43, 4  ;;  %v5341_v62 = vpack.c.bf16 %v5320_v57, %v5319_v7  ;;  %v13531_v7 = vld [vmem:[#allocation54_spill] sm:$0xff]  ;;  %8055 = vmatprep.subr.bf16.mxu0 %v8503_v0  ;;  %vm13536_vm8 = vmmov %vm13534_vm9  ;;  %v13542_v43 = vld [vmem:[#allocation15_spill] sm:$0xff] }
 0x7b7   : > { %6000 = vrot.lane.b32.xlu0 %v5532_v12, %s8869_s19  ;;  %v5757_v25 = vsel %vm2422_vm1, %v5754_v52, %v5756_v19  ;;  %v6489_v18 = vor.u32 %v6488_v34, %v6485_v56  ;;  %v5284_v31 = vadd.f32 %v5229_v14, %v13528_v11  ;;  %v8504_v12 = vld [vmem:[%s13004_s15 + $0x20] sm:$0xff]   ;;  %v5325_v48 = vadd.f32 %v11445_v50, %v5286_v17  ;;  %vm13537_vm15 = vmmov %vm13536_vm8 }
 0x7b8   : > { %v6510_v6 = vrot.slane %v6508_v35, 3  ;;  %v6513_v33 = vrot.slane %v6511_v60, 4  ;;  %v5388_v54 = vrot.slane %v5341_v62, 4  ;;  %v5287_v52 = vadd.f32 %v8394_v2, %v13529_v45  ;;  %5788 = vrot.lane.b32.xlu1 %v5757_v25, %s8869_s19  ;;  %8056 = vmatpush3.bf16.msra.mxu0 %v8504_v12  ;;  %vm13539_vm3 = vmmov %vm13536_vm8 }
 0x7b9   : > { %v5917_v15 = vrot.slane %v11698_v23, 1  ;;  %vm13530_vm13 = vsmask.f32 4352  ;;  %v5323_v1 = vadd.f32 %v11445_v50, %v5284_v31  ;;  %v5285_v40 = vadd.f32 %v5232_v59, %v13531_v7  ;;  %8057 = vmatprep.subr.bf16.mxu0 %v8505_v61  ;;  %v11799_v2 = vld [vmem:[#allocation3 + $0x48] sm:$0xff] }
 0x7ba   : > { %v6490_v63 = vsel %vm13530_vm13, %v11624_v32, %v6489_v18  ;;  %v11727_v37 = vor.u32 %v6513_v33, %v6510_v6  ;;  %v5389_v41 = vsel %vm13532_vm11, %v11642_v53, %v5388_v54  ;;  %v5391_v42 = vsel %vm13533_vm5, %v5388_v54, %v11706_v24  ;;  %vm13538_vm14 = vmmov %vm13530_vm13 }
 0x7bb   : > { %8404 = vmatmul.mubr.msk.bf16.vlgmr.msra.gmra.mrb[100].mxu1 %vm13534_vm9, %v6490_v63  ;;  %6002 = vrot.lane.b32.xlu0 %v5533_v39, %s8869_s19  ;;  %v5326_v32 = vadd.f32 %v11445_v50, %v5287_v52  ;;  %v11744_v26 = vsel %vm13535_vm4, %v11524_v22, 0  ;;  %5427 = vst.msk [vmem:[#allocation3 + $0x58] sm:$0xff] %vm13536_vm8, %v5389_v41  ;;  %v5324_v55 = vadd.f32 %v11445_v50, %v5285_v40  ;;  %vm13541_vm7 = vcmp.ne.s16.totalorder %v13540_v51, 0  ;;  %vm13545_vm9 = vmmov %vm13533_vm5  ;;  %v8508_v63 = vld [vmem:[%s13004_s15 + $0x30] sm:$0xff]   ;;  %v13549_v40 = vld [vmem:[#allocation16_spill] sm:$0xff] }
 0x7bc   : > { %5428 = vst.msk [vmem:[#allocation3 + $0x60] sm:$0xff] %vm13537_vm15, %v5391_v42  ;;  %v6515_v53 = vsel %vm13538_vm14, %v6489_v18, %v11727_v37  ;;  %v5918_v39 = vsel %vm2422_vm1, %v5915_v38, %v5917_v15  ;;  %v5758_v5 = vrot.slane %v11744_v26, 1  ;;  %v5553_v23 = vsel %vm13541_vm7, %v11730_v36, 0  ;;  %vm13544_vm11 = vmmov %vm13541_vm7  ;;  %v8506_v38 = vld [vmem:[%s13004_s15 + $0x28] sm:$0xff]   ;;  %v13551_v42 = vld [vmem:[#allocation19_spill] sm:$0xff] }
 0x7bd   : > { %8407 = vmatprep.mubr.msk.bf16.mxu1 %vm13539_vm3, %v6515_v53  ;;  %v5344_v8 = vpack.c.bf16 %v5326_v32, %v5325_v48  ;;  %vm13543_vm13 = vcmp.ne.s16.totalorder %v13542_v43, 0  ;;  %v11767_v50 = vsel %vm13544_vm11, %v11640_v27, 0  ;;  %v5343_v9 = vpack.c.bf16 %v5324_v55, %v5323_v1  ;;  %8058 = vmatpush3.bf16.msra.mxu0 %v8506_v38  ;;  %vm13546_vm4 = vmmov %vm13539_vm3  ;;  %v8509_v38 = vld [vmem:[%s13004_s15 + $0x78] sm:$0xff]  }
 0x7be   : > { %v11762_v57 = vsel %vm13543_vm13, %v11732_v13, 0  ;;  %v5759_v28 = vsel %vm2422_vm1, %v5756_v19, %v5758_v5  ;;  %v6112_v56 = vrot.slane %v5553_v23, 1  ;;  %v5919_v60 = vrot.slane %v11767_v50, 1  ;;  %vm13547_vm8 = vmmov %vm13539_vm3 }
 0x7bf   : > { %v6114_v34 = vrot.slane %v11762_v57, 1  ;;  %v11779_v35 = vrot.slane %v5344_v8, 4  ;;  %5949 = vrot.lane.b32.xlu0 %v5918_v39, %s8870_s1  ;;  %5790 = vrot.lane.b32.xlu1 %v5759_v28, %s8869_s19  ;;  %v5585_v62 = vshrl.u32 %v11475_v46, 16  ;;  %v5597_v58 = vshll.u32 %v11524_v22, 16  ;;  %vm13555_vm11 = vmmov %vm13546_vm4 }
 0x7c0   : > { %v5392_v17 = vrot.slane %v5343_v9, 4  ;;  %v6113_v19 = vsel %vm2422_vm1, %v6110_v10, %v6112_v56  ;;  %v5601_v25 = vshrl.u32 %v11524_v22, 16  ;;  %v5920_v3 = vsel %vm2422_vm1, %v5917_v15, %v5919_v60  ;;  %v11801_v22 = vld [vmem:[#allocation3 + $0x50] sm:$0xff]  ;;  %v8507_v15 = vld [vmem:[%s13004_s15 + $0x70] sm:$0xff]   ;;  %v8510_v9 = vld [vmem:[%s13004_s15 + $0x38] sm:$0xff]  }
 0x7c1   : > { %v6115_v14 = vsel %vm2422_vm1, %v6112_v56, %v6114_v34  ;;  %v6533_v18 = vshrl.u32 %v6113_v19, 16  ;;  %v6536_v11 = vshll.u32 %v6113_v19, 16  ;;  %v5587_v10 = vor.u32 %v5585_v62, %v11542_v21  ;;  %8059 = vmatprep.subr.bf16.mxu0 %v8507_v15 }
 0x7c2   : > { %v6558_v31 = vshrl.u32 %v6115_v14, 16  ;;  %v6561_v6 = vshll.u32 %v6115_v14, 16  ;;  %v5393_v46 = vsel %vm13533_vm5, %v11706_v24, %v5392_v17  ;;  %v5395_v33 = vsel %vm13545_vm9, %v5392_v17, %v11779_v35  ;;  %8060 = vmatpush3.bf16.msra.mxu0 %v8508_v63  ;;  %v11846_v62 = vld [vmem:[#allocation3 + $0x58] sm:$0xff] }
 0x7c3   : > { %5429 = vst.msk [vmem:[#allocation3 + $0x68] sm:$0xff] %vm13546_vm4, %v5393_v46  ;;  %v6535_v0 = vrot.slane %v6533_v18, 3  ;;  %v6538_v12 = vrot.slane %v6536_v11, 4  ;;  %5951 = vrot.lane.b32.xlu0 %v5920_v3, %s8870_s1  ;;  %vm13548_vm15 = vsmask.f32 7424  ;;  %v5599_v45 = vrot.slane %v5597_v58, 1  ;;  %8061 = vmatprep.subr.bf16.mxu0 %v8509_v38 }
 0x7c4   : > { %5430 = vst.msk [vmem:[#allocation3 + $0x70] sm:$0xff] %vm13547_vm8, %v5395_v33  ;;  %v6560_v24 = vrot.slane %v6558_v31, 3  ;;  %v6563_v54 = vrot.slane %v6561_v6, 4  ;;  %v11808_v48 = vsel %vm13548_vm15, %v5587_v10, %v11621_v16  ;;  %v5605_v52 = vshll.u32 %v11607_v49, 16  ;;  %vm13556_vm5 = vmmov %vm13548_vm15  ;;  %v11856_v11 = vld [vmem:[#allocation3 + $0x60] sm:$0xff] }
 0x7c5   : > { %v5593_v59 = vshrl.u32 %v11526_v30, 16  ;;  %v6539_v1 = vor.u32 %v6538_v12, %v6535_v0  ;;  %5704 = vrot.lane.b32.xlu1 %v11808_v48, %s8870_s1  ;;  %vm13550_vm14 = vcmp.ne.s16.totalorder %v13549_v40, 0  ;;  %vm13552_vm3 = vcmp.ne.s16.totalorder %v13551_v42, 0  ;;  %vm13557_vm9 = vmmov %vm13556_vm5  ;;  %v13558_v46 = vld [vmem:[#allocation20_spill] sm:$0xff] }
 0x7c6   : > { %v6564_v7 = vor.u32 %v6563_v54, %v6560_v24  ;;  %v5555_v41 = vsel %vm13550_vm14, %v11799_v2, 0  ;;  %v5556_v30 = vsel %vm13552_vm3, %v11801_v22, 0  ;;  %v5603_v32 = vor.u32 %v5601_v25, %v5599_v45  ;;  %8062 = vmatpush3.bf16.msra.mxu0 %v8510_v9  ;;  %vm13560_vm15 = vmmov %vm13556_vm5  ;;  %v13561_v54 = vld [vmem:[#allocation17_spill] sm:$0xff] }
 0x7c7   : > { %v5607_v53 = vrot.slane %v5605_v52, 1  ;;  %v5595_v55 = vor.u32 %v5593_v59, %v11621_v16  ;;  %v6116_v39 = vrot.slane %v5555_v41, 1  ;;  %vm13553_vm7 = vsmask.f32 4352  ;;  %v13563_v52 = vld [vmem:[#allocation23_spill] sm:$0xff] }
 0x7c8   : > { %v6540_v8 = vsel %vm13553_vm7, %v11727_v37, %v6539_v1  ;;  %vm13554_vm13 = vmmov %vm13553_vm7  ;;  %v6118_v57 = vrot.slane %v5556_v30, 1  ;;  %v5609_v61 = vshrl.u32 %v11607_v49, 16  ;;  %v5613_v56 = vshll.u32 %v11640_v27, 16 }
 0x7c9   : > { %v6565_v23 = vsel %vm13554_vm13, %v6539_v1, %v6564_v7  ;;  %8408 = vmatmul.mubr.msk.bf16.gmra.mrb[104].mxu1 %vm13555_vm11, %v6540_v8  ;;  %v11839_v16 = vsel %vm13556_vm5, %v5603_v32, %v5607_v53  ;;  %v11842_v37 = vsel %vm13557_vm9, %v5595_v55, %v5599_v45  ;;  %v6117_v28 = vsel %vm2422_vm1, %v6114_v34, %v6116_v39  ;;  %vm13567_vm5 = vmmov %vm13546_vm4 }
 0x7ca   : > { %8411 = vmatprep.mubr.msk.bf16.mxu1 %vm13546_vm4, %v6565_v23  ;;  %6056 = vrot.lane.b32.xlu0 %v11839_v16, %s8868_s18  ;;  %v6583_v58 = vshrl.u32 %v6117_v28, 16  ;;  %v6586_v17 = vshll.u32 %v6117_v28, 16  ;;  %v6119_v19 = vsel %vm2422_vm1, %v6116_v39, %v6118_v57  ;;  %v5611_v14 = vor.u32 %v5609_v61, %v5607_v53  ;;  %v11873_v15 = vld [vmem:[#allocation3 + $0x68] sm:$0xff]  ;;  %vm13568_vm9 = vmmov %vm13554_vm13 }
 0x7cb   : > { %6054 = vrot.lane.b32.xlu1 %v11842_v37, %s8868_s18  ;;  %v6608_v25 = vshrl.u32 %v6119_v19, 16  ;;  %v6611_v18 = vshll.u32 %v6119_v19, 16  ;;  %v11854_v34 = vrot.slane %v5613_v56, 1  ;;  %vm13559_vm8 = vcmp.ne.s16.totalorder %v13558_v46, 0  ;;  %v11885_v8 = vld [vmem:[#allocation3 + $0x70] sm:$0xff] }
 0x7cc   : > { %v6585_v31 = vrot.slane %v6583_v58, 3  ;;  %v6588_v6 = vrot.slane %v6586_v17, 4  ;;  %v5557_v33 = vsel %vm13559_vm8, %v11846_v62, 0  ;;  %vm13562_vm14 = vcmp.ne.s16.totalorder %v13561_v54, 0  ;;  %v13573_v17 = vld [vmem:[#allocation18_spill] sm:$0xff] }
 0x7cd   : > { %v6610_v3 = vrot.slane %v6608_v25, 3  ;;  %v6613_v10 = vrot.slane %v6611_v18, 4  ;;  %v11863_v0 = vsel %vm13560_vm15, %v5611_v14, %v11854_v34  ;;  %v6120_v12 = vrot.slane %v5557_v33, 1  ;;  %vm13572_vm15 = vmmov %vm13567_vm5  ;;  %v13576_v25 = vld [vmem:[#allocation27_spill] sm:$0xff] }
 0x7ce   : > { %v6589_v24 = vor.u32 %v6588_v6, %v6585_v31  ;;  %6058 = vrot.lane.b32.xlu0 %v11863_v0, %s8868_s18  ;;  %v5534_v45 = vsel %vm13562_vm14, %v11730_v36, 0  ;;  %vm13564_vm3 = vcmp.ne.s16.totalorder %v13563_v52, 0  ;;  %vm13565_vm7 = vcmp.ne.s16.totalorder %v13517_v4, 0 }
 0x7cf   : > { %v5558_v59 = vsel %vm13564_vm3, %v11856_v11, 0  ;;  %v6614_v63 = vor.u32 %v6613_v10, %v6610_v3  ;;  %5706 = vrot.lane.b32.xlu1 %v11842_v37, %s8870_s1  ;;  %v5494_v1 = vsel %vm13565_vm7, %v11607_v49, 0  ;;  %v6121_v41 = vsel %vm2422_vm1, %v6118_v57, %v6120_v12 }
 0x7d0   : > { %v6122_v30 = vrot.slane %v5558_v59, 1  ;;  %v6590_v32 = vsel %vm13554_vm13, %v6564_v7, %v6589_v24  ;;  %v6633_v53 = vshrl.u32 %v6121_v41, 16  ;;  %v6636_v55 = vshll.u32 %v6121_v41, 16  ;;  %v13570_v7 = vld [vmem:[#allocation24_spill] sm:$0xff] }
 0x7d1   : > { %vm13566_vm11 = vcmp.ne.s16.totalorder %v13542_v43, 0  ;;  %8412 = vmatmul.mubr.msk.bf16.gmra.mrb[108].mxu1 %vm13567_vm5, %v6590_v32  ;;  %v6615_v23 = vsel %vm13568_vm9, %v6589_v24, %v6614_v63  ;;  %vm13569_vm4 = vcmp.ne.s16.totalorder %v13540_v51, 0  ;;  %vm13571_vm8 = vcmp.ne.s16.totalorder %v13570_v7, 0 }
 0x7d2   : > { %v5515_v39 = vsel %vm13566_vm11, %v11730_v36, 0  ;;  %v6123_v61 = vsel %vm2422_vm1, %v6120_v12, %v6122_v30  ;;  %v5475_v57 = vsel %vm13569_vm4, %v11607_v49, 0  ;;  %v5559_v38 = vsel %vm13571_vm8, %v11873_v15, 0  ;;  %8415 = vmatprep.mubr.msk.bf16.mxu1 %vm13572_vm15, %v6615_v23  ;;  %6004 = vrot.lane.b32.xlu0 %v5534_v45, %s8869_s19  ;;  %vm13579_vm11 = vmmov %vm13568_vm9 }
 0x7d3   : > { %v6635_v9 = vrot.slane %v6633_v53, 3  ;;  %v6638_v28 = vrot.slane %v6636_v55, 4  ;;  %v6658_v56 = vshrl.u32 %v6123_v61, 16  ;;  %v6661_v58 = vshll.u32 %v6123_v61, 16  ;;  %5843 = vrot.lane.b32.xlu1 %v5494_v1, %s8868_s18  ;;  %vm13581_vm4 = vmmov %vm13572_vm15 }
 0x7d4   : > { %vm13574_vm14 = vcmp.ne.s16.totalorder %v13573_v17, 0  ;;  %vm13575_vm3 = vcmp.ne.s16.totalorder %v13561_v54, 0  ;;  %v6124_v14 = vrot.slane %v5559_v38, 1  ;;  %vm13577_vm7 = vcmp.ne.s16.totalorder %v13576_v25, 0  ;;  %vm13582_vm8 = vmmov %vm13581_vm4 }
 0x7d5   : > { %v5535_v19 = vsel %vm13574_vm14, %v11732_v13, 0  ;;  %v5495_v51 = vsel %vm13575_vm3, %v11640_v27, 0  ;;  %v11908_v18 = vsel %vm13577_vm7, %v11885_v8, 0  ;;  %v6639_v31 = vor.u32 %v6638_v28, %v6635_v9  ;;  %vm13583_vm15 = vmmov %vm13568_vm9 }
 0x7d6   : > { %v6660_v6 = vrot.slane %v6658_v56, 3  ;;  %v6663_v33 = vrot.slane %v6661_v58, 4  ;;  %v13140_v3 = vrot.slane %v11908_v18, 1  ;;  %v5921_v10 = vrot.slane %v5515_v39, 1  ;;  %6006 = vrot.lane.b32.xlu0 %v5535_v19, %s8869_s19  ;;  %vm13584_vm14 = vmmov %vm13568_vm9 }
 0x7d7   : > { %v5760_v12 = vrot.slane %v5475_v57, 1  ;;  %v6125_v24 = vsel %vm2422_vm1, %v6122_v30, %v6124_v14  ;;  %vm13578_vm13 = vcmp.ne.s16.totalorder %v13549_v40, 0  ;;  %v6640_v59 = vsel %vm13579_vm11, %v6614_v63, %v6639_v31  ;;  %5845 = vrot.lane.b32.xlu1 %v5495_v51, %s8868_s18  ;;  %vm13585_vm3 = vmmov %vm13581_vm4 }
 0x7d8   : > { %v11915_v45 = vsel %vm13578_vm13, %v11732_v13, 0  ;;  %v6664_v1 = vor.u32 %v6663_v33, %v6660_v6  ;;  %v6683_v41 = vshrl.u32 %v6125_v24, 16  ;;  %v6686_v32 = vshll.u32 %v6125_v24, 16  ;;  %vm13587_vm13 = vmmov %vm13585_vm3 }
 0x7d9   : > { %v6127_v53 = vsel %vm2422_vm1, %v6124_v14, %v13140_v3  ;;  %vm13580_vm5 = vcmp.ne.s16.totalorder %v13542_v43, 0  ;;  %8416 = vmatmul.mubr.msk.bf16.gmra.mrb[112].mxu1 %vm13581_vm4, %v6640_v59  ;;  %v5922_v61 = vsel %vm2422_vm1, %v5919_v60, %v5921_v10  ;;  %v5761_v57 = vsel %vm2422_vm1, %v5758_v5, %v5760_v12 }
 0x7da   : > { %v11926_v30 = vsel %vm13580_vm5, %v11640_v27, 0  ;;  %v6665_v55 = vsel %vm13568_vm9, %v6639_v31, %v6664_v1  ;;  %v6685_v39 = vrot.slane %v6683_v41, 3  ;;  %v6688_v63 = vrot.slane %v6686_v32, 4  ;;  %5953 = vrot.lane.b32.xlu0 %v5922_v61, %s8870_s1 }
 0x7db   : > { %v6708_v23 = vshrl.u32 %v6127_v53, 16  ;;  %v6711_v38 = vshll.u32 %v6127_v53, 16  ;;  %v5923_v43 = vrot.slane %v11915_v45, 1  ;;  %8419 = vmatprep.mubr.msk.bf16.mxu1 %vm13582_vm8, %v6665_v55  ;;  %v5762_v56 = vrot.slane %v11926_v30, 1  ;;  %5792 = vrot.lane.b32.xlu1 %v5761_v57, %s8869_s19 }
 0x7dc   : > { %v6689_v9 = vor.u32 %v6688_v63, %v6685_v39  ;;  %v5621_v58 = vshll.u32 %v11730_v36, 16  ;;  %v5617_v5 = vshrl.u32 %v11640_v27, 16  ;;  %v5625_v33 = vshrl.u32 %v11730_v36, 16  ;;  %v13593_v63 = vld [vmem:[#allocation21_spill] sm:$0xff] }
 0x7dd   : > { %v6710_v28 = vrot.slane %v6708_v23, 3  ;;  %v6713_v50 = vrot.slane %v6711_v38, 4  ;;  %v5924_v26 = vsel %vm2422_vm1, %v5921_v10, %v5923_v43  ;;  %v5763_v14 = vsel %vm2422_vm1, %v5760_v12, %v5762_v56 }
 0x7de   : > { %v5623_v19 = vrot.slane %v5621_v58, 1  ;;  %v6690_v51 = vsel %vm13583_vm15, %v6664_v1, %v6689_v9  ;;  %5955 = vrot.lane.b32.xlu0 %v5924_v26, %s8870_s1  ;;  %v5619_v6 = vor.u32 %v5617_v5, %v11854_v34  ;;  %v5629_v10 = vshll.u32 %v11732_v13, 16  ;;  %v13596_v26 = vld [vmem:[#allocation22_spill] sm:$0xff] }
 0x7df   : > { %v11942_v60 = vor.u32 %v6713_v50, %v6710_v28  ;;  %5794 = vrot.lane.b32.xlu1 %v5763_v14, %s8869_s19  ;;  %vm13586_vm7 = vsmask.f32 7424  ;;  %vm13588_vm11 = vcmp.ne.s16.totalorder %v13558_v46, 0  ;;  %vm13590_vm9 = vcmp.ne.s16.totalorder %v13563_v52, 0 }
 0x7e0   : > { %v11959_v27 = vsel %vm13586_vm7, %v5619_v6, %v5623_v19  ;;  %v5627_v24 = vor.u32 %v5625_v33, %v5623_v19  ;;  %v11966_v12 = vrot.slane %v5629_v10, 1  ;;  %v11971_v34 = vsel %vm13588_vm11, %v11799_v2, 0  ;;  %vm13589_vm5 = vmmov %vm13586_vm7 }
 0x7e1   : > { %v6715_v31 = vsel %vm13584_vm14, %v6689_v9, %v11942_v60  ;;  %8420 = vmatmul.mubr.msk.bf16.gmra.mrb[116].mxu1 %vm13585_vm3, %v6690_v51  ;;  %v5768_v1 = vrot.slane %v11971_v34, 1  ;;  %v5480_v41 = vsel %vm13590_vm9, %v11801_v22, 0  ;;  %v5653_v32 = vshll.u32 %v11846_v62, 16 }
 0x7e2   : > { %8423 = vmatprep.mubr.msk.bf16.mxu1 %vm13587_vm13, %v6715_v31  ;;  %6060 = vrot.lane.b32.xlu0 %v11959_v27, %s8868_s18  ;;  %v11975_v59 = vsel %vm13589_vm5, %v5627_v24, %v11966_v12  ;;  %v5770_v53 = vrot.slane %v5480_v41, 1  ;;  %vm13591_vm4 = vcmp.ne.s16.totalorder %v13551_v42, 0  ;;  %vm13592_vm8 = vcmp.ne.s16.totalorder %v13549_v40, 0  ;;  %vm13599_vm13 = vmmov %vm13588_vm11  ;;  %v13604_v42 = vld [vmem:[#allocation28_spill] sm:$0xff] }
 0x7e3   : > { %5708 = vrot.lane.b32.xlu1 %v11839_v16, %s8870_s1  ;;  %v5517_v30 = vsel %vm13591_vm4, %v11799_v2, 0  ;;  %v5477_v55 = vsel %vm13592_vm8, %v11730_v36, 0  ;;  %v11992_v39 = vrot.slane %v5653_v32, 1  ;;  %vm13594_vm15 = vcmp.ne.s16.totalorder %v13593_v63, 0  ;;  %vm13600_vm11 = vmmov %vm13591_vm4 }
 0x7e4   : > { %v5536_v23 = vsel %vm13594_vm15, %v11799_v2, 0  ;;  %v12000_v61 = vsel %vm2422_vm1, %v5768_v1, %v5770_v53  ;;  %v5657_v57 = vshrl.u32 %v11846_v62, 16  ;;  %v5661_v38 = vshll.u32 %v11856_v11, 16  ;;  %vm13598_vm7 = vmmov %vm13594_vm15 }
 0x7e5   : > { %vm13595_vm14 = vcmp.ne.s16.totalorder %v13573_v17, 0  ;;  %v5925_v9 = vrot.slane %v5517_v30, 1  ;;  %v5764_v28 = vrot.slane %v5477_v55, 1  ;;  %vm13597_vm3 = vcmp.ne.s16.totalorder %v13596_v26, 0 }
 0x7e6   : > { %6062 = vrot.lane.b32.xlu0 %v11975_v59, %s8868_s18  ;;  %v5496_v40 = vsel %vm13595_vm14, %v11730_v36, 0  ;;  %v5659_v58 = vor.u32 %v5657_v57, %v11992_v39  ;;  %v5663_v50 = vrot.slane %v5661_v38, 1  ;;  %v5537_v5 = vsel %vm13597_vm3, %v11801_v22, 0 }
 0x7e7   : > { %5710 = vrot.lane.b32.xlu1 %v11863_v0, %s8870_s1  ;;  %v5497_v19 = vsel %vm13598_vm7, %v11732_v13, 0  ;;  %v12019_v51 = vsel %vm13599_vm13, %v11801_v22, 0  ;;  %v12024_v36 = vsel %vm13600_vm11, %v11732_v13, 0  ;;  %vm13602_vm9 = vcmp.ne.s16.totalorder %v13576_v25, 0  ;;  %vm13610_vm7 = vmmov %vm13589_vm5 }
 0x7e8   : > { %v12027_v14 = vsel %vm13589_vm5, %v5659_v58, %v5663_v50  ;;  %v12032_v31 = vsel %vm13602_vm9, %v11873_v15, 0  ;;  %vm13603_vm4 = vcmp.ne.s16.totalorder %v13570_v7, 0  ;;  %vm13605_vm8 = vcmp.ne.s16.totalorder %v13604_v42, 0  ;;  %vm13606_vm15 = vmmov %vm13602_vm9 }
 0x7e9   : > { %13601 = vst [vmem:[#allocation38_spill] sm:$0xff] %v12027_v14  ;;  %v5481_v6 = vsel %vm13603_vm4, %v11846_v62, 0  ;;  %v5933_v46 = vrot.slane %v12032_v31, 1  ;;  %v12042_v10 = vsel %vm13605_vm8, %v11885_v8, 0  ;;  %v5482_v24 = vsel %vm13606_vm15, %v11856_v11, 0  ;;  %vm13607_vm14 = vmmov %vm13605_vm8 }
 0x7ea   : > { %6008 = vrot.lane.b32.xlu0 %v5536_v23, %s8869_s19  ;;  %v5772_v33 = vrot.slane %v5481_v6, 1  ;;  %v5926_v41 = vsel %vm2422_vm1, %v5923_v43, %v5925_v9  ;;  %v5765_v32 = vsel %vm2422_vm1, %v5762_v56, %v5764_v28  ;;  %v13141_v30 = vrot.slane %v12042_v10, 1  ;;  %vm13611_vm13 = vmmov %vm13589_vm5 }
 0x7eb   : > { %5847 = vrot.lane.b32.xlu1 %v5496_v40, %s8868_s18  ;;  %v5774_v55 = vrot.slane %v5482_v24, 1  ;;  %v5927_v23 = vrot.slane %v12019_v51, 1  ;;  %v5665_v38 = vshrl.u32 %v11856_v11, 16  ;;  %v5669_v25 = vshll.u32 %v11873_v15, 16  ;;  %vm13612_vm11 = vmmov %vm13589_vm5 }
 0x7ec   : > { %v12055_v57 = vsel %vm2422_vm1, %v5770_v53, %v5772_v33  ;;  %v5637_v40 = vshll.u32 %v11799_v2, 16  ;;  %v12065_v45 = vsel %vm2422_vm1, %v5933_v46, %v13141_v30  ;;  %v5677_v56 = vshll.u32 %v11885_v8, 16 }
 0x7ed   : > { %v12068_v43 = vsel %vm2422_vm1, %v5772_v33, %v5774_v55  ;;  %v5766_v53 = vrot.slane %v12024_v36, 1  ;;  %v5667_v58 = vor.u32 %v5665_v38, %v5663_v50  ;;  %v5483_v6 = vsel %vm13607_vm14, %v11873_v15, 0  ;;  %v13608_v33 = vld [vmem:[#allocation31_spill] sm:$0xff] }
 0x7ee   : > { %6010 = vrot.lane.b32.xlu0 %v5537_v5, %s8869_s19  ;;  %v5671_v5 = vrot.slane %v5669_v25, 1  ;;  %v12075_v51 = vrot.slane %v5677_v56, 1  ;;  %vm13609_vm3 = vcmp.ne.s16.totalorder %v13608_v33, 0  ;;  %v5776_v36 = vrot.slane %v5483_v6, 1 }
 0x7ef   : > { %5849 = vrot.lane.b32.xlu1 %v5497_v19, %s8868_s18  ;;  %v5673_v19 = vshrl.u32 %v11873_v15, 16  ;;  %v12083_v24 = vsel %vm13609_vm3, %v11885_v8, 0  ;;  %v5633_v25 = vshrl.u32 %v11732_v13, 16  ;;  %v5639_v56 = vrot.slane %v5637_v40, 1 }
 0x7f0   : > { %v13142_v38 = vrot.slane %v12083_v24, 1  ;;  %v5767_v3 = vsel %vm2422_vm1, %v5764_v28, %v5766_v53  ;;  %v5645_v28 = vshll.u32 %v11801_v22, 16  ;;  %vm13616_vm4 = vcmp.ne.s16.totalorder %v13596_v26, 0 }
 0x7f1   : > { %v5675_v50 = vor.u32 %v5673_v19, %v5671_v5  ;;  %v5635_v13 = vor.u32 %v5633_v25, %v11966_v12  ;;  %vm13617_vm8 = vcmp.ne.s16.totalorder %v13563_v52, 0  ;;  %vm13621_vm3 = vcmp.ne.s16.totalorder %v13570_v7, 0 }
 0x7f2   : > { %5957 = vrot.lane.b32.xlu0 %v5926_v41, %s8870_s1  ;;  %v12086_v41 = vsel %vm13610_vm7, %v5667_v58, %v5671_v5  ;;  %v12098_v58 = vsel %vm2422_vm1, %v5774_v55, %v5776_v36  ;;  %v12103_v5 = vsel %vm2422_vm1, %v5776_v36, %v13142_v38  ;;  %v5647_v55 = vrot.slane %v5645_v28, 1  ;;  %vm13622_vm7 = vmmov %vm13589_vm5 }
 0x7f3   : > { %5796 = vrot.lane.b32.xlu1 %v5765_v32, %s8869_s19  ;;  %v5928_v32 = vsel %vm2422_vm1, %v5925_v9, %v5927_v23  ;;  %v12095_v30 = vsel %vm13611_vm13, %v5675_v50, %v12075_v51  ;;  %v5641_v9 = vshrl.u32 %v11799_v2, 16  ;;  %v12110_v40 = vsel %vm13612_vm11, %v5635_v13, %v5639_v56 }
 0x7f4   : > { %v5498_v50 = vsel %vm13616_vm4, %v11799_v2, 0  ;;  %v5519_v36 = vsel %vm13617_vm8, %v11846_v62, 0  ;;  %v5520_v2 = vsel %vm13621_vm3, %v11856_v11, 0  ;;  %v5769_v28 = vsel %vm2422_vm1, %v5766_v53, %v5768_v1 }
 0x7f5   : > { %v5643_v19 = vor.u32 %v5641_v9, %v5639_v56  ;;  %v5929_v56 = vrot.slane %v5519_v36, 1  ;;  %v5931_v9 = vrot.slane %v5520_v2, 1  ;;  %vm13630_vm4 = vcmp.ne.s16.totalorder %v9121_v20, 0 }
 0x7f6   : > { %5959 = vrot.lane.b32.xlu0 %v5928_v32, %s8870_s1  ;;  %v13618_v32 = vld [vmem:[#allocation26_spill] sm:$0xff]  ;;  %vm13631_vm8 = vcmp.ne.s16.totalorder %v9145_v47, 0 }
 0x7f7   : > { %5798 = vrot.lane.b32.xlu1 %v5767_v3, %s8869_s19  ;;  %v12117_v6 = vsel %vm13589_vm5, %v5643_v19, %v5647_v55  ;;  %v13614_v3 = vld [vmem:[#allocation25_spill] sm:$0xff]  ;;  %vm13619_vm15 = vcmp.ne.s16.totalorder %v13618_v32, 0  ;;  %v5930_v52 = vsel %vm2422_vm1, %v5927_v23, %v5929_v56  ;;  %v5932_v7 = vsel %vm2422_vm1, %v5929_v56, %v5931_v9 }
 0x7f8   : > { %13613 = vst [vmem:[#allocation8_spill] sm:$0xff] %v12117_v6  ;;  %vm13615_vm9 = vcmp.ne.s16.totalorder %v13614_v3, 0  ;;  %v5539_v25 = vsel %vm13619_vm15, %v11856_v11, 0  ;;  %vm13626_vm11 = vmmov %vm13619_vm15  ;;  %vm13632_vm15 = vcmask 261120   ;;  %v13638_v32 = vld [vmem:[#allocation57_spill] sm:$0xff] }
 0x7f9   : > { %v5538_v12 = vsel %vm13615_vm9, %v11846_v62, 0  ;;  %vm13620_vm14 = vmmov %vm13615_vm9  ;;  %v5500_v56 = vsel %vm13626_vm11, %v11846_v62, 0  ;;  %vm13637_vm11 = vsmask.f32 7424 }
 0x7fa   : > { %6064 = vrot.lane.b32.xlu0 %v12110_v40, %s8868_s18  ;;  %v5499_v13 = vsel %vm13620_vm14, %v11801_v22, 0  ;;  %vm6187_vm14 = vcmask 523264   ;;  %vm13633_vm3 = vmmov %vm13632_vm15 }
 0x7fb   : > { %5712 = vrot.lane.b32.xlu1 %v11959_v27, %s8870_s1 }
 0x7fe   : > { %6066 = vrot.lane.b32.xlu0 %v12117_v6, %s8868_s18 }
 0x7ff   : > { %5714 = vrot.lane.b32.xlu1 %v11975_v59, %s8870_s1 }
 0x802   : > { %6012 = vrot.lane.b32.xlu0 %v5538_v12, %s8869_s19 }
 0x803   : > { %5851 = vrot.lane.b32.xlu1 %v5498_v50, %s8868_s18  ;;  %v5649_v50 = vshrl.u32 %v11801_v22, 16 }
 0x805   : > { %v12151_v19 = vpop.permute.xlu0 %5835  ;;  %v5651_v23 = vor.u32 %v5649_v50, %v5647_v55 }
 0x806   : > { %6014 = vrot.lane.b32.xlu0 %v5539_v25, %s8869_s19  ;;  %v12153_v12 = vpop.permute.xlu1 %5837 }
 0x807   : > { %5853 = vrot.lane.b32.xlu1 %v5499_v13, %s8868_s18  ;;  %v12164_v1 = vsel %vm13622_vm7, %v5651_v23, %v11992_v39  ;;  %v13624_v39 = vld [vmem:[#allocation29_spill] sm:$0xff]  ;;  %v5934_v23 = vsel %vm2422_vm1, %v5931_v9, %v5933_v46  ;;  %vm6222_vm7 = vcmask 785408  }
 0x808   : > { %13623 = vst [vmem:[#allocation39_spill] sm:$0xff] %v12164_v1  ;;  %vm13625_vm13 = vcmp.ne.s16.totalorder %v13624_v39, 0  ;;  %v8782_v39 = vld [vmem:[#allocation3 + $0x8] sm:$0xff] }
 0x809   : > { %v12160_v36 = vpop.permute.xlu0 %5994  ;;  %v5540_v25 = vsel %vm13625_vm13, %v11873_v15, 0  ;;  %vm13629_vm9 = vmmov %vm13625_vm13  ;;  %v5452_v46 = vsel %vm13631_vm8, %v8782_v39, 0  ;;  %vm13645_vm8 = vcmp.ne.s16.totalorder %v13507_v44, 0  ;;  %v8786_v44 = vld [vmem:[#allocation3 + $0x20] sm:$0xff] }
 0x80a   : > { %5961 = vrot.lane.b32.xlu0 %v5930_v52, %s8870_s1  ;;  %v13627_v52 = vld [vmem:[#allocation30_spill] sm:$0xff] }
 0x80b   : > { %5800 = vrot.lane.b32.xlu1 %v5769_v28, %s8869_s19  ;;  %v5944_v34 = vpop.permute.xlu1 %5943  ;;  %vm13628_vm5 = vcmp.ne.s16.totalorder %v13627_v52, 0 }
 0x80c   : > { %v5541_v28 = vsel %vm13628_vm5, %v11885_v8, 0  ;;  %vm13639_vm5 = vmmov %vm13633_vm3 }
 0x80d   : > { %v5785_v22 = vpop.permute.xlu0 %5784 }
 0x80e   : > { %5963 = vrot.lane.b32.xlu0 %v5932_v7, %s8870_s1  ;;  %v5501_v7 = vsel %vm13629_vm9, %v11856_v11, 0  ;;  %vm13641_vm9 = vcmp.ne.s16.totalorder %v13627_v52, 0 }
 0x80f   : > { %5802 = vrot.lane.b32.xlu1 %v12000_v61, %s8869_s19  ;;  %v5701_v53 = vpop.permute.xlu1 %5700 }
 0x811   : > { %v12174_v61 = vpop.permute.xlu0 %5998 }
 0x812   : > { %6068 = vrot.lane.b32.xlu0 %v12164_v1, %s8868_s18 }
 0x813   : > { %5716 = vrot.lane.b32.xlu1 %v12110_v40, %s8870_s1  ;;  %v5787_v55 = vpop.permute.xlu1 %5786 }
 0x815   : > { %v12184_v13 = vpop.permute.xlu0 %5945 }
 0x816   : > { %6070 = vrot.lane.b32.xlu0 %v12027_v14, %s8868_s18 }
 0x817   : > { %5718 = vrot.lane.b32.xlu1 %v12117_v6, %s8870_s1  ;;  %v5703_v2 = vpop.permute.xlu1 %5702 }
 0x81a   : > { %6016 = vrot.lane.b32.xlu0 %v5540_v25, %s8869_s19  ;;  %v8781_v25 = vld [vmem:[#allocation3 + $0x8] sm:$0xf0] }
 0x81b   : > { %5855 = vrot.lane.b32.xlu1 %v5500_v56, %s8868_s18  ;;  %v12196_v62 = vpop.permute.xlu1 %5996  ;;  %v5872_v56 = vshll.u32 %v8781_v25, 16  ;;  %v5870_v9 = vshrl.u32 %v8781_v25, 16  ;;  %v13634_v25 = vld [vmem:[#allocation59_spill] sm:$0xff] }
 0x81c   : > { %v12194_v50 = vpop.permute.xlu0 %5947 }
 0x81d   : > { %v5874_v11 = vrot.slane %v5872_v56, 1 }
 0x81e   : > { %6018 = vrot.lane.b32.xlu0 %v5541_v28, %s8869_s19  ;;  %v5434_v28 = vld [vmem:[#allocation3] sm:$0xf8] }
 0x81f   : > { %5857 = vrot.lane.b32.xlu1 %v5501_v7, %s8868_s18  ;;  %v12204_v38 = vpop.permute.xlu1 %5839  ;;  %v5451_v31 = vsel %vm13630_vm4, %v5434_v28, 0  ;;  %v5875_v56 = vor.u32 %v5874_v11, %v5870_v9  ;;  %v5547_v28 = vld [vmem:[#allocation3 + $0x90] sm:$0x1f]  ;;  %vm13644_vm4 = vcmp.ne.s16.totalorder %v13485_v29, 0 }
 0x821   : > { %v5876_v9 = vsel %vm13637_vm11, %v5875_v56, %v11542_v21  ;;  %v13642_v56 = vld [vmem:[#allocation58_spill] sm:$0xff] }
 0x822   : > { %5965 = vrot.lane.b32.xlu0 %v5934_v23, %s8870_s1 }
 0x823   : > { %5804 = vrot.lane.b32.xlu1 %v12055_v57, %s8869_s19  ;;  %v6141_v57 = vsel %vm13632_vm15, %v5452_v46, %v5703_v2  ;;  %v12215_v23 = vpop.permute.xlu1 %5841  ;;  %vm13646_vm15 = vcmp.ne.s16.totalorder %v13517_v4, 0 }
 0x824   : > { %v6191_v47 = vsel %vm6187_vm14, %v6141_v57, %v5787_v55 }
 0x825   : > { %v6053_v7 = vpop.permute.xlu0 %6052  ;;  %v6226_v55 = vsel %vm6222_vm7, %v6191_v47, %v12153_v12  ;;  %v5502_v12 = vsel %vm13641_vm9, %v11873_v15, 0 }
 0x826   : > { %5967 = vrot.lane.b32.xlu0 %v12065_v45, %s8870_s1  ;;  %v6138_v45 = vsel %vm13633_vm3, %v5451_v31, %v5701_v53  ;;  %v13635_v31 = vld [vmem:[#allocation32_spill] sm:$0xff]  ;;  %vm13647_vm3 = vcmp.ne.s16.totalorder %v13561_v54, 0 }
 0x827   : > { %5806 = vrot.lane.b32.xlu1 %v12068_v43, %s8869_s19  ;;  %v8397_v39 = vpop.f32.mrb[96].mxu1  ;;  %v6189_v2 = vsel %vm6187_vm14, %v6138_v45, %v5785_v22  ;;  %vm13636_vm13 = vcmp.ne.s16.totalorder %v13635_v31, 0  ;;  %v6259_v45 = vsel %vm13639_vm5, %v5876_v9, %v5944_v34  ;;  %v8783_v34 = vld [vmem:[%s13003_s14] ss:$0 sm:$0xff] }
 0x828   : > { %v5290_v11 = vadd.f32 %v8397_v39, %v13634_v25  ;;  %v5245_v53 = vpop.f32.mrb[97].mxu1  ;;  %v5564_v46 = vsel %vm13636_vm13, %v5547_v28, 0  ;;  %v13640_v28 = vld [vmem:[#allocation56_spill] sm:$0xff]  ;;  %v6224_v21 = vsel %vm6222_vm7, %v6189_v2, %v12151_v19  ;;  %vm13648_vm13 = vcmask 1043456  }
 0x829   : > { %v12220_v20 = vpop.permute.xlu0 %6000  ;;  %v5288_v3 = vadd.f32 %v5245_v53, %v13638_v32  ;;  %v8398_v22 = vpop.f32.mrb[98].mxu1  ;;  %v12250_v26 = vrot.slane %v5564_v46, 1  ;;  %v6426_v32 = vshrl.u32 %v6226_v55, 16  ;;  %v6429_v53 = vshll.u32 %v6226_v55, 16  ;;  %vm13649_vm11 = vmmov %vm13648_vm13 }
 0x82a   : > { %6072 = vrot.lane.b32.xlu0 %v12086_v41, %s8868_s18  ;;  %v12225_v43 = vpop.permute.xlu1 %5788  ;;  %v5291_v39 = vadd.f32 %v8398_v22, %v13640_v28  ;;  %v5248_v25 = vpop.f32.mrb[99].mxu1  ;;  %v5329_v9 = vadd.f32 %v8783_v34, %v5290_v11  ;;  %v6309_v28 = vsel %vm6187_vm14, %v6259_v45, %v12160_v36  ;;  %v5503_v46 = vsel %vm1780_vm2, %v11885_v8, 0  ;;  %v8785_v36 = vld [vmem:[#allocation3 + $0x18] sm:$0xff] }
 0x82b   : > { %5720 = vrot.lane.b32.xlu1 %v12164_v1, %s8870_s1  ;;  %v5289_v47 = vadd.f32 %v5248_v25, %v13642_v56  ;;  %v5327_v19 = vadd.f32 %v8783_v34, %v5288_v3  ;;  %v6419_v56 = vshrl.u32 %v6224_v21, 16  ;;  %v6422_v55 = vshll.u32 %v6224_v21, 16  ;;  %v8784_v1 = vld [vmem:[#allocation3 + $0x10] sm:$0xff] }
 0x82c   : > { %v5330_v22 = vadd.f32 %v8783_v34, %v5291_v39  ;;  %v6343_v52 = vsel %vm6222_vm7, %v6309_v28, %v6053_v7  ;;  %v5453_v3 = vsel %vm13644_vm4, %v8784_v1, 0  ;;  %v12268_v45 = vsel %vm13645_vm8, %v8785_v36, 0 }
 0x82d   : > { %v12237_v57 = vpop.permute.xlu0 %6002  ;;  %v5328_v15 = vadd.f32 %v8783_v34, %v5289_v47  ;;  %v6833_v47 = vshrl.u32 %v12250_v26, 16  ;;  %v6428_v34 = vrot.slane %v6426_v32, 3  ;;  %v6431_v6 = vrot.slane %v6429_v53, 4 }
 0x82e   : > { %6074 = vrot.lane.b32.xlu0 %v12095_v30, %s8868_s18  ;;  %v5346_v11 = vpack.c.bf16 %v5330_v22, %v5329_v9  ;;  %v6836_v7 = vshll.u32 %v12250_v26, 16  ;;  %v6434_v28 = vshrl.u32 %v6343_v52, 16  ;;  %v6421_v29 = vrot.slane %v6419_v56, 3 }
 0x82f   : > { %5722 = vrot.lane.b32.xlu1 %v12027_v14, %s8870_s1  ;;  %v5345_v39 = vpack.c.bf16 %v5328_v15, %v5327_v19  ;;  %v5681_v19 = vshrl.u32 %v11885_v8, 16  ;;  %v6424_v1 = vrot.slane %v6422_v55, 4  ;;  %v12277_v32 = vsel %vm13646_vm15, %v8786_v44, 0 }
 0x830   : > { %v5398_v21 = vrot.slane %v5346_v11, 4  ;;  %v12282_v53 = vsel %vm13647_vm3, %v11607_v49, 0  ;;  %v12292_v55 = vrot.slane %v6833_v47, 3  ;;  %v12294_v4 = vor.u32 %v6431_v6, %v6428_v34 }
 0x831   : > { %v5950_v2 = vpop.permute.xlu0 %5949  ;;  %v12257_v14 = vpop.permute.xlu1 %5790  ;;  %v5396_v9 = vrot.slane %v5345_v39, 4  ;;  %v12302_v54 = vrot.slane %v6836_v7, 4  ;;  %v12304_v11 = vrot.slane %v6434_v28, 3  ;;  %v6425_v36 = vor.u32 %v6424_v1, %v6421_v29 }
 0x832   : > { %5433 = vst.msk [vmem:[#allocation3 + $0x88] sm:$0xf] %vm5348_vm0, %v5398_v21  ;;  %vm13650_vm0 = vmmov %vm13639_vm5 }
 0x833   : > { %5859 = vrot.lane.b32.xlu1 %v5502_v12, %s8868_s18  ;;  %v6437_v12 = vshll.u32 %v6343_v52, 16  ;;  %v12284_v52 = vld [vmem:[#allocation3 + $0x90] sm:$0xf]  ;;  %v5397_v8 = vsel %vm13648_vm13, %v11779_v35, %v5396_v9  ;;  %v5399_v15 = vsel %vm13649_vm11, %v5396_v9, %v5398_v21  ;;  %v6265_v49 = vsel %vm13650_vm0, %v11842_v37, %v12194_v50  ;;  %vm13651_vm5 = vmmov %vm13650_vm0 }
 0x834   : > { %5431 = vst.msk [vmem:[#allocation3 + $0x78] sm:$0xff] %vm13651_vm5, %v5397_v8  ;;  %vm13652_vm9 = vmmov %vm13650_vm0  ;;  %v6045_v39 = vshll.u32 %v12284_v52, 16  ;;  %v6313_v21 = vsel %vm6187_vm14, %v6265_v49, %v12174_v61  ;;  %vm13657_vm13 = vsmask.f32 4352 }
 0x835   : > { %v5952_v22 = vpop.permute.xlu0 %5951  ;;  %5432 = vst.msk [vmem:[#allocation3 + $0x80] sm:$0xff] %vm13652_vm9, %v5399_v15  ;;  %vm13653_vm4 = vmmov %vm13650_vm0  ;;  %vm13662_vm9 = vcmp.ne.s16.totalorder %v13608_v33, 0 }
 0x836   : > { %vm13654_vm8 = vmmov %vm13650_vm0 }
 0x837   : > { %5861 = vrot.lane.b32.xlu1 %v5503_v46, %s8868_s18  ;;  %v5705_v56 = vpop.permute.xlu1 %5704  ;;  %v12290_v46 = vor.u32 %v5681_v19, %v12075_v51  ;;  %v12306_v51 = vrot.slane %v6437_v12, 4  ;;  %v6262_v37 = vsel %vm13654_vm8, %v11808_v48, %v12184_v13  ;;  %vm13655_vm15 = vmmov %vm13650_vm0 }
 0x838   : > { %v6144_v35 = vsel %vm13653_vm4, %v5453_v3, %v5705_v56  ;;  %v6268_v50 = vsel %vm13655_vm15, %v11839_v16, %v5950_v2  ;;  %vm13656_vm3 = vmmov %vm13650_vm0  ;;  %v6311_v48 = vsel %vm6187_vm14, %v6262_v37, %v12196_v62 }
 0x839   : > { %v6193_v6 = vsel %vm6187_vm14, %v6144_v35, %v12225_v43  ;;  %v6271_v47 = vsel %vm13656_vm3, %v11863_v0, %v5952_v22  ;;  %v6440_v0 = vor.u32 %v12306_v51, %v12304_v11  ;;  %v6315_v61 = vsel %vm6187_vm14, %v6268_v50, %v12220_v20  ;;  %v12335_v12 = vld [vmem:[#allocation3 + $0x88] sm:$0xff]  ;;  %vm13663_vm4 = vmmov %vm13657_vm13 }
 0x83a   : > { %v6228_v3 = vsel %vm6222_vm7, %v6193_v6, %v12204_v38  ;;  %v6433_v38 = vsel %vm13657_vm13, %v6425_v36, %v12294_v4  ;;  %v12342_v19 = vsel %vm6187_vm14, %v6271_v47, %v12237_v57  ;;  %v6037_v51 = vshll.u32 %v12335_v12, 16  ;;  %vm13664_vm8 = vmmov %vm13663_vm4 }
 0x83b   : > { %5808 = vrot.lane.b32.xlu1 %v12098_v58, %s8869_s19  ;;  %v6466_v43 = vshrl.u32 %v6228_v3, 16  ;;  %v6469_v34 = vshll.u32 %v6228_v3, 16  ;;  %v6839_v58 = vor.u32 %v12302_v54, %v12292_v55  ;;  %v12344_v56 = vld [vmem:[#allocation3 + $0x78] sm:$0xff]  ;;  %vm13665_vm15 = vmmov %vm13663_vm4  ;;  %vm13666_vm3 = vcmp.ne.s16.totalorder %v13604_v42, 0 }
 0x83c   : > { %v6057_v7 = vpop.permute.xlu0 %6056  ;;  %v5542_v35 = vsel %vm1780_vm2, %v12344_v56, 0  ;;  %v12350_v11 = vld [vmem:[#allocation3 + $0x80] sm:$0xff]  ;;  %vm13667_vm13 = vmmov %vm13662_vm9 }
 0x83d   : > { %v6347_v16 = vsel %vm6222_vm7, %v6313_v21, %v6057_v7  ;;  %v6055_v13 = vpop.permute.xlu1 %6054  ;;  %v6468_v62 = vrot.slane %v6466_v43, 3  ;;  %v6471_v9 = vrot.slane %v6469_v34, 4  ;;  %6020 = vrot.lane.b32.xlu0 %v5542_v35, %s8869_s19 }
 0x83e   : > { %v6474_v2 = vshrl.u32 %v6347_v16, 16  ;;  %v6477_v28 = vshll.u32 %v6347_v16, 16  ;;  %v6345_v22 = vsel %vm6222_vm7, %v6311_v48, %v6055_v13  ;;  %v5543_v13 = vsel %vm1781_vm10, %v12350_v11, 0 }
 0x83f   : > { %5810 = vrot.lane.b32.xlu1 %v12103_v5, %s8869_s19  ;;  %v6441_v44 = vshrl.u32 %v6345_v22, 16  ;;  %v6444_v8 = vshll.u32 %v6345_v22, 16  ;;  %v13658_v5 = vld [vmem:[#allocation33_spill] sm:$0xff]  ;;  %v12363_v43 = vor.u32 %v6471_v9, %v6468_v62 }
 0x840   : > { %v6476_v29 = vrot.slane %v6474_v2, 3  ;;  %v6479_v1 = vrot.slane %v6477_v28, 4  ;;  %v6059_v15 = vpop.permute.xlu0 %6058  ;;  %vm13659_vm11 = vcmp.ne.s16.totalorder %v13658_v5, 0 }
 0x841   : > { %v6349_v20 = vsel %vm6222_vm7, %v6315_v61, %v6059_v15  ;;  %v5707_v49 = vpop.permute.xlu1 %5706  ;;  %v12355_v57 = vsel %vm13659_vm11, %v12335_v12, 0  ;;  %v6443_v36 = vrot.slane %v6441_v44, 3  ;;  %v6446_v37 = vrot.slane %v6444_v8, 4  ;;  %vm13660_vm5 = vmmov %vm13659_vm11  ;;  %6022 = vrot.lane.b32.xlu0 %v5543_v13, %s8869_s19 }
 0x842   : > { %v6480_v6 = vor.u32 %v6479_v1, %v6476_v29  ;;  %v6499_v50 = vshrl.u32 %v6349_v20, 16  ;;  %v6502_v3 = vshll.u32 %v6349_v20, 16  ;;  %v6147_v47 = vsel %vm13650_vm0, %v12268_v45, %v5707_v49  ;;  %vm13670_vm11 = vmmov %vm13660_vm5 }
 0x843   : > { %5724 = vrot.lane.b32.xlu1 %v12086_v41, %s8870_s1  ;;  %v12368_v34 = vsel %vm13660_vm5, %v12344_v56, 0  ;;  %v6447_v21 = vor.u32 %v6446_v37, %v6443_v36  ;;  %v6195_v7 = vsel %vm6187_vm14, %v6147_v47, %v12257_v14  ;;  %v5504_v45 = vsel %vm1781_vm10, %v12344_v56, 0 }
 0x844   : > { %v12372_v48 = vpop.permute.xlu0 %6004  ;;  %v6501_v2 = vrot.slane %v6499_v50, 3  ;;  %v6504_v28 = vrot.slane %v6502_v3, 4  ;;  %v6230_v61 = vsel %vm6222_vm7, %v6195_v7, %v12215_v23  ;;  %v5523_v14 = vsel %vm13662_vm9, %v12344_v56, 0  ;;  %vm13674_vm9 = vmmov %vm13663_vm4 }
 0x845   : > { %v12382_v62 = vpop.permute.xlu1 %5843  ;;  %v6491_v9 = vshrl.u32 %v6230_v61, 16  ;;  %v6494_v22 = vshll.u32 %v6230_v61, 16  ;;  %v6448_v29 = vsel %vm13663_vm4, %v6440_v0, %v6447_v21  ;;  %v5780_v1 = vrot.slane %v12368_v34, 1  ;;  %v5469_v0 = vld [vmem:[#allocation3 + $0x80] sm:$0x1f] }
 0x846   : > { %7061 = vmatprep.mubr.bf16.mxu0 %v6448_v29  ;;  %v6481_v23 = vsel %vm13664_vm8, %v6447_v21, %v6480_v6  ;;  %v6473_v44 = vsel %vm13665_vm15, %v12294_v4, %v12363_v43  ;;  %v5937_v8 = vrot.slane %v5523_v14, 1  ;;  %v5561_v15 = vsel %vm13666_vm3, %v12344_v56, 0  ;;  %vm13678_vm3 = vmmov %vm13664_vm8 }
 0x847   : > { %5726 = vrot.lane.b32.xlu1 %v12095_v30, %s8870_s1  ;;  %v6493_v20 = vrot.slane %v6491_v9, 3  ;;  %v6496_v49 = vrot.slane %v6494_v22, 4  ;;  %7062 = vmatmul.mubr.bf16.vlgmr.msra.gmra.mrb[76].mxu0 %v6433_v38  ;;  %v6128_v36 = vrot.slane %v5561_v15, 1  ;;  %v5562_v37 = vsel %vm13667_vm13, %v12350_v11, 0 }
 0x848   : > { %v12399_v35 = vpop.permute.xlu0 %6006  ;;  %v12404_v50 = vor.u32 %v6504_v28, %v6501_v2  ;;  %7069 = vmatprep.mubr.bf16.mxu0 %v6481_v23  ;;  %v13668_v3 = vrot.slane %v12042_v10, 1  ;;  %v6130_v47 = vrot.slane %v5562_v37, 1  ;;  %v5685_v34 = vshll.u32 %v12344_v56, 16 }
 0x849   : > { %v12406_v4 = vpop.permute.xlu1 %5845  ;;  %v13669_v38 = vrot.slane %v11908_v18, 1  ;;  %v12419_v33 = vsel %vm13670_vm11, %v12350_v11, 0  ;;  %v12421_v7 = vor.u32 %v6496_v49, %v6493_v20  ;;  %vm13671_vm0 = vcmp.ne.s16.totalorder %v13635_v31, 0  ;;  %v5508_v49 = vld [vmem:[#allocation3 + $0x88] sm:$0x1f]  ;;  %vm13680_vm11 = vmmov %vm13678_vm3 }
 0x84a   : > { %v5938_v42 = vsel %vm2422_vm1, %v13668_v3, %v5937_v8  ;;  %v12425_v10 = vsel %vm13671_vm0, %v5469_v0, 0  ;;  %v6131_v28 = vsel %vm2422_vm1, %v6128_v36, %v6130_v47  ;;  %v5687_v18 = vrot.slane %v5685_v34, 1  ;;  %vm13677_vm15 = vmmov %vm13671_vm0 }
 0x84b   : > { %5969 = vrot.lane.b32.xlu0 %v5938_v42, %s8870_s1  ;;  %v6129_v21 = vsel %vm2422_vm1, %v13669_v38, %v6128_v36  ;;  %5863 = vrot.lane.b32.xlu1 %v5504_v45, %s8868_s18  ;;  %v13672_v14 = vrot.slane %v12083_v24, 1  ;;  %v6758_v9 = vshrl.u32 %v6131_v28, 16  ;;  %v6761_v22 = vshll.u32 %v6131_v28, 16 }
 0x84c   : > { %v6733_v13 = vshrl.u32 %v6129_v21, 16  ;;  %v6736_v2 = vshll.u32 %v6129_v21, 16  ;;  %v5954_v61 = vpop.permute.xlu0 %5953  ;;  %v5939_v29 = vrot.slane %v12419_v33, 1  ;;  %vm13673_vm5 = vcmask 261120  }
 0x84d   : > { %v5781_v5 = vsel %vm2422_vm1, %v13672_v14, %v5780_v1  ;;  %v6274_v23 = vsel %vm13673_vm5, %v11959_v27, %v5954_v61  ;;  %v5793_v15 = vpop.permute.xlu1 %5792  ;;  %v6506_v45 = vsel %vm13674_vm9, %v6480_v6, %v12404_v50  ;;  %v6760_v36 = vrot.slane %v6758_v9, 3  ;;  %vm13679_vm13 = vmmov %vm13673_vm5 }
 0x84e   : > { %v6735_v0 = vrot.slane %v6733_v13, 3  ;;  %v6738_v20 = vrot.slane %v6736_v2, 4  ;;  %v6763_v37 = vrot.slane %v6761_v22, 4  ;;  %v5940_v24 = vsel %vm2422_vm1, %v5937_v8, %v5939_v29  ;;  %v12460_v2 = vld [vmem:[#allocation3 + $0x80] sm:$0xf]  ;;  %vm13681_vm0 = vmmov %vm13673_vm5 }
 0x84f   : > { %v5782_v3 = vrot.slane %v12425_v10, 1  ;;  %5812 = vrot.lane.b32.xlu1 %v5781_v5, %s8869_s19  ;;  %vm13675_vm4 = vsmask.f32 7424  ;;  %5971 = vrot.lane.b32.xlu0 %v5940_v24, %s8870_s1  ;;  %v6498_v27 = vsel %vm13664_vm8, %v12363_v43, %v12421_v7  ;;  %v6132_v6 = vrot.slane %v12355_v57, 1  ;;  %vm13682_vm5 = vmmov %vm13681_vm0 }
 0x850   : > { %v6739_v42 = vor.u32 %v6738_v20, %v6735_v0  ;;  %v12442_v34 = vsel %vm13675_vm4, %v12290_v46, %v5687_v18  ;;  %7070 = vmatmul.mubr.bf16.gmra.mrb[80].mxu0 %v6473_v44  ;;  %v12449_v38 = vpop.permute.xlu0 %5955  ;;  %v6764_v8 = vor.u32 %v6763_v37, %v6760_v36  ;;  %v6319_v21 = vsel %vm6187_vm14, %v6274_v23, %v12372_v48  ;;  %vm13685_vm4 = vmmov %vm13681_vm0 }
 0x851   : > { %v5505_v46 = vsel %vm1782_vm6, %v12350_v11, 0  ;;  %v12458_v13 = vsel %vm13677_vm15, %v5508_v49, 0  ;;  %7077 = vmatprep.mubr.bf16.mxu0 %v6506_v45  ;;  %v5795_v43 = vpop.permute.xlu1 %5794  ;;  %v5783_v44 = vsel %vm2422_vm1, %v5780_v1, %v5782_v3  ;;  %v6133_v48 = vsel %vm2422_vm1, %v6130_v47, %v6132_v6  ;;  %vm13686_vm8 = vmmov %vm13681_vm0 }
 0x852   : > { %v6740_v57 = vsel %vm13678_vm3, %v11942_v60, %v6739_v42  ;;  %v6135_v28 = vsel %vm2422_vm1, %v6132_v6, %v12250_v26  ;;  %v6765_v31 = vsel %vm13680_vm11, %v6739_v42, %v6764_v8  ;;  %v6783_v61 = vshrl.u32 %v6133_v48, 16  ;;  %vm13687_vm15 = vmmov %vm13681_vm0 }
 0x853   : > { %8424 = vmatmul.mubr.msk.bf16.gmra.mrb[120].mxu1 %vm13679_vm13, %v6740_v57  ;;  %v6786_v14 = vshll.u32 %v6133_v48, 16  ;;  %v6808_v5 = vshrl.u32 %v6135_v28, 16  ;;  %5728 = vrot.lane.b32.xlu1 %v12442_v34, %s8870_s1  ;;  %v6811_v60 = vshll.u32 %v6135_v28, 16  ;;  %v5941_v1 = vrot.slane %v12458_v13, 1 }
 0x854   : > { %8427 = vmatprep.mubr.msk.bf16.mxu1 %vm13681_vm0, %v6765_v31  ;;  %v5689_v47 = vshrl.u32 %v12344_v56, 16  ;;  %v5693_v9 = vshll.u32 %v12460_v2, 16  ;;  %v6061_v26 = vpop.permute.xlu0 %6060  ;;  %6076 = vrot.lane.b32.xlu0 %v12442_v34, %s8868_s18  ;;  %v6785_v22 = vrot.slane %v6783_v61, 3  ;;  %v5878_v0 = vshll.u32 %v12350_v11, 16 }
 0x855   : > { %v6788_v23 = vrot.slane %v6786_v14, 4  ;;  %v6810_v45 = vrot.slane %v6808_v5, 3  ;;  %v6351_v20 = vsel %vm6222_vm7, %v12342_v19, %v6061_v26  ;;  %v5709_v49 = vpop.permute.xlu1 %5708  ;;  %v6813_v36 = vrot.slane %v6811_v60, 4 }
 0x856   : > { %v5942_v37 = vsel %vm2422_vm1, %v5939_v29, %v5941_v1  ;;  %v5691_v24 = vor.u32 %v5689_v47, %v5687_v18  ;;  %v6524_v42 = vshrl.u32 %v6351_v20, 16  ;;  %v6527_v6 = vshll.u32 %v6351_v20, 16  ;;  %vm13683_vm1 = vmmov %vm13678_vm3 }
 0x857   : > { %v6150_v57 = vsel %vm13682_vm5, %v12277_v32, %v5709_v49  ;;  %v6789_v48 = vor.u32 %v6788_v23, %v6785_v22  ;;  %5814 = vrot.lane.b32.xlu1 %v5783_v44, %s8869_s19  ;;  %v6814_v31 = vor.u32 %v6813_v36, %v6810_v45  ;;  %v5695_v61 = vrot.slane %v5693_v9, 1  ;;  %vm13684_vm9 = vmmov %vm13683_vm1 }
 0x858   : > { %v6197_v28 = vsel %vm6187_vm14, %v6150_v57, %v5793_v15  ;;  %v5880_v19 = vrot.slane %v5878_v0, 1  ;;  %v6526_v14 = vrot.slane %v6524_v42, 3  ;;  %v6529_v5 = vrot.slane %v6527_v6, 4  ;;  %7078 = vmatmul.mubr.bf16.gmra.mrb[84].mxu0 %v6498_v27  ;;  %v6063_v18 = vpop.permute.xlu0 %6062  ;;  %5973 = vrot.lane.b32.xlu0 %v5942_v37, %s8870_s1  ;;  %vm13689_vm13 = vmmov %vm13683_vm1  ;;  %v12518_v57 = vld [vmem:[#allocation3 + $0x88] sm:$0xf] }
 0x859   : > { %v6232_v60 = vsel %vm6222_vm7, %v6197_v28, %v12382_v62  ;;  %v6790_v29 = vsel %vm13683_vm1, %v6764_v8, %v6789_v48  ;;  %v6353_v15 = vsel %vm6222_vm7, %v6319_v21, %v6063_v18  ;;  %v5711_v26 = vpop.permute.xlu1 %5710  ;;  %v6815_v44 = vsel %vm13684_vm9, %v6789_v48, %v6814_v31  ;;  %vm13691_vm0 = vmmov %vm13683_vm1 }
 0x85a   : > { %v6516_v32 = vshrl.u32 %v6232_v60, 16  ;;  %v6519_v47 = vshll.u32 %v6232_v60, 16  ;;  %v6530_v9 = vor.u32 %v6529_v5, %v6526_v14  ;;  %v6549_v22 = vshrl.u32 %v6353_v15, 16  ;;  %vm13692_vm5 = vmmov %vm13691_vm0 }
 0x85b   : > { %v6552_v23 = vshll.u32 %v6353_v15, 16  ;;  %v6153_v45 = vsel %vm13685_vm4, %v12282_v53, %v5711_v26  ;;  %8428 = vmatmul.mubr.msk.bf16.gmra.mrb[124].mxu1 %vm13686_vm8, %v6790_v29  ;;  %5865 = vrot.lane.b32.xlu1 %v5505_v46, %s8868_s18  ;;  %vm13688_vm3 = vsmask.f32 7424  ;;  %v5544_v6 = vsel %vm1782_vm6, %v12335_v12, 0  ;;  %vm13693_vm1 = vmmov %vm13691_vm0 }
 0x85c   : > { %v6518_v62 = vrot.slane %v6516_v32, 3  ;;  %v6521_v27 = vrot.slane %v6519_v47, 4  ;;  %v6199_v8 = vsel %vm6187_vm14, %v6153_v45, %v5795_v43  ;;  %8431 = vmatprep.mubr.msk.bf16.mxu1 %vm13687_vm15, %v6815_v44  ;;  %v12503_v21 = vsel %vm13688_vm3, %v5691_v24, %v5880_v19  ;;  %v12507_v36 = vpop.permute.xlu0 %6008  ;;  %vm13690_vm11 = vmmov %vm13688_vm3 }
 0x85d   : > { %v6551_v0 = vrot.slane %v6549_v22, 3  ;;  %v6554_v20 = vrot.slane %v6552_v23, 4  ;;  %v6234_v49 = vsel %vm6222_vm7, %v6199_v8, %v12406_v4  ;;  %v6531_v53 = vsel %vm13689_vm13, %v12404_v50, %v6530_v9  ;;  %6078 = vrot.lane.b32.xlu0 %v12503_v21, %s8868_s18  ;;  %v12513_v46 = vpop.permute.xlu1 %5847  ;;  %vm13694_vm9 = vmmov %vm13685_vm4  ;;  %v8787_v8 = vld [vmem:[#allocation3 + $0x30] sm:$0xff] }
 0x85e   : > { %v6541_v43 = vshrl.u32 %v6234_v49, 16  ;;  %v6544_v37 = vshll.u32 %v6234_v49, 16  ;;  %7085 = vmatprep.mubr.bf16.mxu0 %v6531_v53  ;;  %v6522_v42 = vor.u32 %v6521_v27, %v6518_v62  ;;  %v5696_v48 = vsel %vm13690_vm11, %v5691_v24, %v5695_v61  ;;  %vm13695_vm4 = vmmov %vm13688_vm3 }
 0x85f   : > { %v12520_v4 = vor.u32 %v6554_v20, %v6551_v0  ;;  %v5697_v50 = vshrl.u32 %v12460_v2, 16  ;;  %v5882_v28 = vshrl.u32 %v12350_v11, 16  ;;  %5730 = vrot.lane.b32.xlu1 %v5696_v48, %s8870_s1  ;;  %v6039_v18 = vrot.slane %v6037_v51, 1  ;;  %vm13696_vm8 = vmmov %vm13688_vm3 }
 0x860   : > { %v6543_v14 = vrot.slane %v6541_v43, 3  ;;  %v6546_v5 = vrot.slane %v6544_v37, 4  ;;  %v6523_v60 = vsel %vm13691_vm0, %v12421_v7, %v6522_v42  ;;  %v12530_v29 = vpop.permute.xlu0 %6010  ;;  %v5886_v11 = vshll.u32 %v12518_v57, 16  ;;  %vm13697_vm15 = vmmov %vm13691_vm0  ;;  %v8788_v37 = vld [vmem:[%s9013_s28 + $0x8] sm:$0xff] }
 0x861   : > { %7086 = vmatmul.mubr.bf16.gmra.mrb[88].mxu0 %v6523_v60  ;;  %v6556_v24 = vsel %vm13692_vm5, %v6530_v9, %v12520_v4  ;;  %6024 = vrot.lane.b32.xlu0 %v5544_v6, %s8869_s19  ;;  %v5884_v32 = vor.u32 %v5882_v28, %v5880_v19  ;;  %v12536_v47 = vpop.permute.xlu1 %5849  ;;  %v6840_v7 = vsel %vm13693_vm1, %v6814_v31, %v6839_v58  ;;  %v6041_v15 = vshrl.u32 %v12335_v12, 16  ;;  %vm13698_vm13 = vmmov %vm13694_vm9 }
 0x862   : > { %7093 = vmatprep.mubr.bf16.mxu0 %v6556_v24  ;;  %v5699_v51 = vor.u32 %v5697_v50, %v5695_v61  ;;  %v12544_v26 = vrot.slane %v5886_v11, 1  ;;  %v12547_v19 = vor.u32 %v6546_v5, %v6543_v14  ;;  %v6047_v22 = vrot.slane %v6045_v39, 1  ;;  %vm13700_vm11 = vmmov %vm13694_vm9  ;;  %v8789_v5 = vld [vmem:[#allocation3 + $0x38] sm:$0xff] }
 0x863   : > { %8432 = vmatmul.mubr.msk.bf16.gmra.mrb[128].mxu1 %vm13694_vm9, %v6840_v7  ;;  %v6040_v44 = vsel %vm13695_vm4, %v5884_v32, %v6039_v18  ;;  %v6043_v9 = vor.u32 %v6041_v15, %v6039_v18  ;;  %v6277_v39 = vsel %vm13698_vm13, %v11975_v59, %v12449_v38  ;;  %v5506_v10 = vsel %vm1783_vm12, %v12518_v57, 0  ;;  %vm13702_vm5 = vmmov %vm13694_vm9 }
 0x864   : > { %5732 = vrot.lane.b32.xlu1 %v5699_v51, %s8870_s1  ;;  %v5958_v55 = vpop.permute.xlu0 %5957  ;;  %v12555_v54 = vsel %vm13696_vm8, %v5884_v32, %v12544_v26  ;;  %v6548_v12 = vsel %vm13697_vm15, %v6522_v42, %v12547_v19  ;;  %v6321_v62 = vsel %vm6187_vm14, %v6277_v39, %v12399_v35  ;;  %vm13701_vm0 = vcmp.ne.s16.totalorder %v13573_v17, 0  ;;  %vm13704_vm9 = vmmov %vm13702_vm5  ;;  %v8790_v51 = vld [vmem:[%s9013_s28 + $0x18] sm:$0xff] }
 0x865   : > { %6080 = vrot.lane.b32.xlu0 %v6040_v44, %s8868_s18  ;;  %v5797_v58 = vpop.permute.xlu1 %5796  ;;  %v6048_v31 = vsel %vm13688_vm3, %v6043_v9, %v6047_v22  ;;  %v6280_v59 = vsel %vm13700_vm11, %v12110_v40, %v5958_v55  ;;  %v5457_v0 = vsel %vm13701_vm0, %v8787_v8, 0  ;;  %v5545_v49 = vsel %vm1783_vm12, %v12284_v52, 0  ;;  %vm13705_vm4 = vmmov %vm13697_vm15 }
 0x866   : > { %v6323_v6 = vsel %vm6187_vm14, %v6280_v59, %v12507_v36  ;;  %vm13703_vm1 = vcmp.ne.s16.totalorder %v13593_v63, 0  ;;  %vm13706_vm8 = vmmov %vm13705_vm4 }
 0x867   : > { %v5458_v60 = vsel %vm13703_vm1, %v8789_v5, 0  ;;  %vm13707_vm15 = vmmov %vm13705_vm4 }
 0x868   : > { %5816 = vrot.lane.b32.xlu1 %v5782_v3, %s8869_s19  ;;  %v12563_v61 = vpop.permute.xlu0 %5959  ;;  %v6049_v3 = vshrl.u32 %v12284_v52, 16  ;;  %vm13708_vm3 = vmmov %vm13705_vm4 }
 0x869   : > { %7094 = vmatmul.mubr.bf16.gmra.mrb[92].mxu0 %v6548_v12  ;;  %6082 = vrot.lane.b32.xlu0 %v6048_v31, %s8868_s18  ;;  %v5799_v23 = vpop.permute.xlu1 %5798  ;;  %vm13710_vm13 = vmmov %vm13702_vm5 }
 0x86a   : > { %vm13712_vm11 = vmmov %vm13702_vm5 }
 0x86c   : > { %5867 = vrot.lane.b32.xlu1 %v5506_v10, %s8868_s18  ;;  %v6065_v27 = vpop.permute.xlu0 %6064 }
 0x86d   : > { %5975 = vrot.lane.b32.xlu0 %v5941_v1, %s8870_s1  ;;  %v6355_v38 = vsel %vm6222_vm7, %v6321_v62, %v6065_v27  ;;  %v5713_v20 = vpop.permute.xlu1 %5712  ;;  %v6051_v1 = vor.u32 %v6049_v3, %v6047_v22  ;;  %s8871_s1 = smov 122   ;;  %v8791_v3 = vld [vmem:[%s9013_s28 + $0x28] sm:$0xff]  ;;  %v8792_v27 = vld [vmem:[%s9013_s28] sm:$0xff] }
 0x86e   : > { %v6574_v35 = vshrl.u32 %v6355_v38, 16  ;;  %v6577_v53 = vshll.u32 %v6355_v38, 16  ;;  %v6156_v43 = vsel %vm13702_vm5, %v5457_v0, %v5713_v20  ;;  %v8794_v0 = vld [vmem:[%s9013_s28 + $0x10] sm:$0xff] }
 0x86f   : > { %v6201_v13 = vsel %vm6187_vm14, %v6156_v43, %v5797_v58  ;;  %v8796_v43 = vld [vmem:[%s9013_s28 + $0x20] sm:$0xff] }
 0x870   : > { %7385 = vrot.lane.b32.xlu1 %v8788_v37, %s8871_s1  ;;  %v6576_v40 = vrot.slane %v6574_v35, 3  ;;  %v6579_v42 = vrot.slane %v6577_v53, 4  ;;  %v6236_v17 = vsel %vm6222_vm7, %v6201_v13, %v12513_v46  ;;  %v6067_v52 = vpop.permute.xlu0 %6066  ;;  %v8795_v35 = vld [vmem:[%s9013_s28 + $0x48] sm:$0xff]  ;;  %v13709_v13 = vld [vmem:[#allocation8_spill] sm:$0xff] }
 0x871   : > { %6026 = vrot.lane.b32.xlu0 %v5545_v49, %s8869_s19  ;;  %v6566_v48 = vshrl.u32 %v6236_v17, 16  ;;  %v6569_v50 = vshll.u32 %v6236_v17, 16  ;;  %v6357_v28 = vsel %vm6222_vm7, %v6323_v6, %v6067_v52  ;;  %v5715_v14 = vpop.permute.xlu1 %5714  ;;  %v8798_v6 = vld [vmem:[%s9013_s28 + $0x30] sm:$0xff] }
 0x872   : > { %v6580_v18 = vor.u32 %v6579_v42, %v6576_v40  ;;  %v6599_v24 = vshrl.u32 %v6357_v28, 16  ;;  %v6602_v32 = vshll.u32 %v6357_v28, 16  ;;  %v6159_v46 = vsel %vm13704_vm9, %v5458_v60, %v5715_v14  ;;  %v8797_v40 = vld [vmem:[%s9013_s28 + $0x58] sm:$0xff]  ;;  %v13711_v52 = vld [vmem:[#allocation39_spill] sm:$0xff]  ;;  %vm13717_vm9 = vmmov %vm13702_vm5 }
 0x873   : > { %v6568_v11 = vrot.slane %v6566_v48, 3  ;;  %v6571_v36 = vrot.slane %v6569_v50, 4  ;;  %v6203_v7 = vsel %vm6187_vm14, %v6159_v46, %v5799_v23  ;;  %v8799_v28 = vld [vmem:[#allocation3 + $0x40] sm:$0xff] }
 0x874   : > { %7389 = vrot.lane.b32.xlu1 %v8790_v51, %s8871_s1  ;;  %v6601_v15 = vrot.slane %v6599_v24, 3  ;;  %v6604_v44 = vrot.slane %v6602_v32, 4  ;;  %v6238_v9 = vsel %vm6222_vm7, %v6203_v7, %v12536_v47  ;;  %v6013_v63 = vpop.permute.xlu0 %6012  ;;  %v6581_v22 = vsel %vm13705_vm4, %v12520_v4, %v6580_v18  ;;  %v8800_v32 = vld [vmem:[%s9013_s28 + $0x68] sm:$0xff]  ;;  %vm13718_vm4 = vmmov %vm13708_vm3 }
 0x875   : > { %6084 = vrot.lane.b32.xlu0 %v6051_v1, %s8868_s18  ;;  %v6591_v55 = vshrl.u32 %v6238_v9, 16  ;;  %v6594_v58 = vshll.u32 %v6238_v9, 16  ;;  %7101 = vmatprep.mubr.bf16.mxu0 %v6581_v22  ;;  %v5852_v12 = vpop.permute.xlu1 %5851  ;;  %v6572_v31 = vor.u32 %v6571_v36, %v6568_v11  ;;  %v6283_v1 = vsel %vm13710_vm13, %v13709_v13, %v12563_v61  ;;  %v13713_v61 = vld [vmem:[#allocation22_spill] sm:$0xff]  ;;  %vm13722_vm13 = vmmov %vm13702_vm5 }
 0x876   : > { %v12608_v39 = vor.u32 %v6604_v44, %v6601_v15  ;;  %v6325_v42 = vsel %vm6187_vm14, %v6283_v1, %v12530_v29  ;;  %vm13714_vm0 = vcmp.ne.s16.totalorder %v13713_v61, 0  ;;  %v8801_v15 = vld [vmem:[%s9013_s28 + $0x40] sm:$0xff] }
 0x877   : > { %v6593_v23 = vrot.slane %v6591_v55, 3  ;;  %v6596_v10 = vrot.slane %v6594_v58, 4  ;;  %v6573_v47 = vsel %vm13706_vm8, %v12547_v19, %v6572_v31  ;;  %v8793_v19 = vld [vmem:[%s9013_s28 + $0x38] sm:$0xff]  ;;  %v5459_v14 = vsel %vm13714_vm0, %v8799_v28, 0  ;;  %v8802_v58 = vld [vmem:[#allocation3 + $0x48] sm:$0xff]  ;;  %vm13719_vm8 = vmmov %vm13708_vm3 }
 0x878   : > { %7393 = vrot.lane.b32.xlu1 %v8791_v3, %s8871_s1  ;;  %7102 = vmatmul.mubr.bf16.gmra.mrb[96].mxu0 %v6573_v47  ;;  %v12614_v4 = vpop.permute.xlu0 %6014  ;;  %v6606_v62 = vsel %vm13707_vm15, %v6580_v18, %v12608_v39  ;;  %vm13720_vm15 = vmmov %vm13708_vm3  ;;  %v8806_v61 = vld [vmem:[%s9013_s28 + $0x60] sm:$0xff] }
 0x879   : > { %7383 = vrot.lane.b32.xlu0 %v8792_v27, %s8871_s1  ;;  %7109 = vmatprep.mubr.bf16.mxu0 %v6606_v62  ;;  %v5854_v59 = vpop.permute.xlu1 %5853  ;;  %v12620_v38 = vor.u32 %v6596_v10, %v6593_v23 }
 0x87b   : > { %v6598_v49 = vsel %vm13708_vm3, %v6572_v31, %v12620_v38  ;;  %v13715_v31 = vld [vmem:[#allocation25_spill] sm:$0xff] }
 0x87c   : > { %7397 = vrot.lane.b32.xlu1 %v8793_v19, %s8871_s1  ;;  %v5962_v8 = vpop.permute.xlu0 %5961  ;;  %vm13716_vm1 = vcmp.ne.s16.totalorder %v13715_v31, 0  ;;  %v8803_v19 = vld [vmem:[%s9013_s28 + $0x78] sm:$0xff]  ;;  %v8812_v31 = vld [vmem:[%s9013_s28 + $0x90] sm:$0xff] }
 0x87d   : > { %7387 = vrot.lane.b32.xlu0 %v8794_v0, %s8871_s1  ;;  %v5801_v20 = vpop.permute.xlu1 %5800  ;;  %v6286_v48 = vsel %vm13712_vm11, %v13711_v52, %v5962_v8  ;;  %v5460_v23 = vsel %vm13716_vm1, %v8802_v58, 0  ;;  %vm13723_vm11 = vmmov %vm13702_vm5 }
 0x87e   : > { %v6327_v7 = vsel %vm6187_vm14, %v6286_v48, %v6013_v63 }
 0x880   : > { %7401 = vrot.lane.b32.xlu1 %v8795_v35, %s8871_s1  ;;  %7110 = vmatmul.mubr.bf16.gmra.mrb[100].mxu0 %v6598_v49  ;;  %v12630_v53 = vpop.permute.xlu0 %5963 }
 0x881   : > { %7391 = vrot.lane.b32.xlu0 %v8796_v43, %s8871_s1  ;;  %v5803_v37 = vpop.permute.xlu1 %5802  ;;  %v8804_v43 = vld [vmem:[%s9013_s28 + $0x50] sm:$0xff] }
 0x884   : > { %7405 = vrot.lane.b32.xlu1 %v8797_v40, %s8871_s1  ;;  %v6069_v17 = vpop.permute.xlu0 %6068 }
 0x885   : > { %7395 = vrot.lane.b32.xlu0 %v8798_v6, %s8871_s1  ;;  %v6359_v50 = vsel %vm6222_vm7, %v6325_v42, %v6069_v17  ;;  %v5717_v5 = vpop.permute.xlu1 %5716 }
 0x886   : > { %v6624_v60 = vshrl.u32 %v6359_v50, 16  ;;  %v6627_v18 = vshll.u32 %v6359_v50, 16  ;;  %v6162_v24 = vsel %vm13702_vm5, %v5459_v14, %v5717_v5 }
 0x887   : > { %v6205_v29 = vsel %vm6187_vm14, %v6162_v24, %v5801_v20  ;;  %v8807_v24 = vld [vmem:[%s9013_s28 + $0x98] sm:$0xff] }
 0x888   : > { %7409 = vrot.lane.b32.xlu1 %v8800_v32, %s8871_s1  ;;  %v6626_v46 = vrot.slane %v6624_v60, 3  ;;  %v6629_v11 = vrot.slane %v6627_v18, 4  ;;  %v6240_v36 = vsel %vm6222_vm7, %v6205_v29, %v5852_v12  ;;  %v6071_v51 = vpop.permute.xlu0 %6070  ;;  %v8808_v32 = vld [vmem:[%s9013_s28 + $0x70] sm:$0xff] }
 0x889   : > { %7399 = vrot.lane.b32.xlu0 %v8801_v15, %s8871_s1  ;;  %v6616_v44 = vshrl.u32 %v6240_v36, 16  ;;  %v6619_v9 = vshll.u32 %v6240_v36, 16  ;;  %v6361_v22 = vsel %vm6222_vm7, %v6327_v7, %v6071_v51  ;;  %v5719_v55 = vpop.permute.xlu1 %5718  ;;  %v8810_v7 = vld [vmem:[%s9013_s28 + $0x80] sm:$0xff]  ;;  %v13721_v51 = vld [vmem:[#allocation38_spill] sm:$0xff] }
 0x88a   : > { %v6630_v10 = vor.u32 %v6629_v11, %v6626_v46  ;;  %v6649_v47 = vshrl.u32 %v6361_v22, 16  ;;  %v6652_v12 = vshll.u32 %v6361_v22, 16  ;;  %v6165_v63 = vsel %vm13717_vm9, %v5460_v23, %v5719_v55  ;;  %v8809_v11 = vld [vmem:[%s9013_s28 + $0xa8] sm:$0xff]  ;;  %vm13728_vm9 = vmmov %vm13702_vm5 }
 0x88b   : > { %v6618_v3 = vrot.slane %v6616_v44, 3  ;;  %v6621_v62 = vrot.slane %v6619_v9, 4  ;;  %v6207_v27 = vsel %vm6187_vm14, %v6165_v63, %v5803_v37  ;;  %v6289_v15 = vsel %vm13722_vm13, %v13721_v51, %v12630_v53  ;;  %v8811_v9 = vld [vmem:[%s9013_s28 + $0xb8] sm:$0xff] }
 0x88c   : > { %7413 = vrot.lane.b32.xlu1 %v8803_v19, %s8871_s1  ;;  %v6651_v8 = vrot.slane %v6649_v47, 3  ;;  %v6654_v0 = vrot.slane %v6652_v12, 4  ;;  %v6242_v20 = vsel %vm6222_vm7, %v6207_v27, %v5854_v59  ;;  %v12664_v49 = vpop.permute.xlu0 %6016  ;;  %v6631_v35 = vsel %vm13718_vm4, %v12608_v39, %v6630_v10  ;;  %v8805_v39 = vld [vmem:[%s9013_s28 + $0x88] sm:$0xff]  ;;  %vm13729_vm4 = vmmov %vm13708_vm3 }
 0x88d   : > { %7403 = vrot.lane.b32.xlu0 %v8804_v43, %s8871_s1  ;;  %v6641_v13 = vshrl.u32 %v6242_v20, 16  ;;  %v6644_v1 = vshll.u32 %v6242_v20, 16  ;;  %7117 = vmatprep.mubr.bf16.mxu0 %v6631_v35  ;;  %v5856_v37 = vpop.permute.xlu1 %5855  ;;  %v6622_v40 = vor.u32 %v6621_v62, %v6618_v3  ;;  %v6329_v55 = vsel %vm6187_vm14, %v6289_v15, %v12614_v4  ;;  %v8813_v47 = vld [vmem:[#allocation3 + $0x50] sm:$0xff] }
 0x88e   : > { %v12670_v42 = vor.u32 %v6654_v0, %v6651_v8  ;;  %v12672_v52 = vpop.f32.mrb[100].mxu1  ;;  %v13724_v12 = vld [vmem:[#allocation26_spill] sm:$0xff] }
 0x88f   : > { %v6643_v17 = vrot.slane %v6641_v13, 3  ;;  %v6646_v6 = vrot.slane %v6644_v1, 4  ;;  %v6623_v59 = vsel %vm13719_vm8, %v12620_v38, %v6622_v40  ;;  %v12680_v50 = vpop.f32.mrb[101].mxu1  ;;  %vm13725_vm0 = vcmp.ne.s16.totalorder %v13724_v12, 0  ;;  %v8814_v0 = vld [vmem:[%s9013_s28 + $0xc8] sm:$0xff]  ;;  %vm13730_vm8 = vmmov %vm13708_vm3 }
 0x890   : > { %7417 = vrot.lane.b32.xlu1 %v8805_v39, %s8871_s1  ;;  %7118 = vmatmul.mubr.bf16.gmra.mrb[104].mxu0 %v6623_v59  ;;  %v12678_v48 = vpop.permute.xlu0 %6018  ;;  %v6656_v28 = vsel %vm13720_vm15, %v6630_v10, %v12670_v42  ;;  %v12688_v38 = vpop.f32.mrb[102].mxu1  ;;  %v5461_v63 = vsel %vm13725_vm0, %v8813_v47, 0  ;;  %vm13731_vm15 = vmmov %vm13708_vm3 }
 0x891   : > { %7407 = vrot.lane.b32.xlu0 %v8806_v61, %s8871_s1  ;;  %7125 = vmatprep.mubr.bf16.mxu0 %v6656_v28  ;;  %v12686_v14 = vpop.permute.xlu1 %5857  ;;  %v12690_v5 = vor.u32 %v6646_v6, %v6643_v17  ;;  %v12692_v60 = vpop.f32.mrb[103].mxu1  ;;  %v8816_v28 = vld [vmem:[#allocation3 + $0x58] sm:$0xff]  ;;  %v13726_v61 = vld [vmem:[#allocation29_spill] sm:$0xff]  ;;  %vm13735_vm0 = vmmov %vm13702_vm5 }
 0x892   : > { %vm13727_vm1 = vcmp.ne.s16.totalorder %v13726_v61, 0 }
 0x893   : > { %v6648_v18 = vsel %vm13708_vm3, %v6622_v40, %v12690_v5  ;;  %v8815_v40 = vld [vmem:[%s9013_s28 + $0xa0] sm:$0xff] }
 0x894   : > { %7421 = vrot.lane.b32.xlu1 %v8807_v24, %s8871_s1  ;;  %v5966_v29 = vpop.permute.xlu0 %5965 }
 0x895   : > { %7411 = vrot.lane.b32.xlu0 %v8808_v32, %s8871_s1  ;;  %v5805_v46 = vpop.permute.xlu1 %5804  ;;  %v6292_v23 = vsel %vm13723_vm11, %v12086_v41, %v5966_v29  ;;  %vm13734_vm11 = vmmov %vm13702_vm5 }
 0x896   : > { %v6331_v13 = vsel %vm6187_vm14, %v6292_v23, %v12664_v49 }
 0x898   : > { %7425 = vrot.lane.b32.xlu1 %v8809_v11, %s8871_s1  ;;  %7126 = vmatmul.mubr.bf16.gmra.mrb[108].mxu0 %v6648_v18  ;;  %v12702_v36 = vpop.permute.xlu0 %5967  ;;  %v5462_v18 = vsel %vm13727_vm1, %v8816_v28, 0  ;;  %vm13738_vm1 = vmmov %vm13708_vm3 }
 0x899   : > { %7415 = vrot.lane.b32.xlu0 %v8810_v7, %s8871_s1  ;;  %v5807_v44 = vpop.permute.xlu1 %5806  ;;  %v8817_v7 = vld [vmem:[%s9013_s28 + $0xd8] sm:$0xff] }
 0x89c   : > { %7429 = vrot.lane.b32.xlu1 %v8811_v9, %s8871_s1  ;;  %v12711_v22 = vpop.f32.mrb[104].mxu1  ;;  %v6073_v58 = vpop.permute.xlu0 %6072 }
 0x89d   : > { %7419 = vrot.lane.b32.xlu0 %v8812_v31, %s8871_s1  ;;  %v12719_v10 = vpop.f32.mrb[105].mxu1  ;;  %v6363_v53 = vsel %vm6222_vm7, %v6329_v55, %v6073_v58  ;;  %v5721_v3 = vpop.permute.xlu1 %5720  ;;  %v8818_v31 = vld [vmem:[%s9013_s28 + $0xb0] sm:$0xff] }
 0x89e   : > { %v12724_v62 = vpop.f32.mrb[106].mxu1  ;;  %v6674_v4 = vshrl.u32 %v6363_v53, 16  ;;  %v6677_v27 = vshll.u32 %v6363_v53, 16  ;;  %v6168_v19 = vsel %vm13702_vm5, %v5461_v63, %v5721_v3  ;;  %vm13736_vm5 = vmmov %vm13708_vm3 }
 0x89f   : > { %v12727_v8 = vpop.f32.mrb[107].mxu1  ;;  %v6209_v41 = vsel %vm6187_vm14, %v6168_v19, %v5805_v46  ;;  %v8819_v19 = vld [vmem:[%s9013_s28 + $0xe8] sm:$0xff] }
 0x8a0   : > { %7433 = vrot.lane.b32.xlu1 %v8814_v0, %s8871_s1  ;;  %v6676_v20 = vrot.slane %v6674_v4, 3  ;;  %v6679_v35 = vrot.slane %v6677_v27, 4  ;;  %v6244_v43 = vsel %vm6222_vm7, %v6209_v41, %v5856_v37  ;;  %v6075_v1 = vpop.permute.xlu0 %6074  ;;  %v8820_v0 = vld [vmem:[%s9013_s28 + $0xc0] sm:$0xff] }
 0x8a1   : > { %7423 = vrot.lane.b32.xlu0 %v8815_v40, %s8871_s1  ;;  %v6666_v17 = vshrl.u32 %v6244_v43, 16  ;;  %v6669_v6 = vshll.u32 %v6244_v43, 16  ;;  %v6365_v59 = vsel %vm6222_vm7, %v6331_v13, %v6075_v1  ;;  %v5723_v39 = vpop.permute.xlu1 %5722  ;;  %v8821_v13 = vld [vmem:[%s9013_s28 + $0xf8] sm:$0xff]  ;;  %v8822_v1 = vld [vmem:[%s9013_s28 + $0xd0] sm:$0xff] }
 0x8a2   : > { %v6680_v24 = vor.u32 %v6679_v35, %v6676_v20  ;;  %v6699_v37 = vshrl.u32 %v6365_v59, 16  ;;  %v6702_v29 = vshll.u32 %v6365_v59, 16  ;;  %v6171_v49 = vsel %vm13728_vm9, %v5462_v18, %v5723_v39  ;;  %v8823_v39 = vld [vmem:[%s9013_s28 + $0xe0] sm:$0xff]  ;;  %vm13739_vm9 = vmmov %vm13735_vm0 }
 0x8a3   : > { %v6668_v32 = vrot.slane %v6666_v17, 3  ;;  %v6671_v46 = vrot.slane %v6669_v6, 4  ;;  %v6211_v11 = vsel %vm6187_vm14, %v6171_v49, %v5807_v44  ;;  %v13732_v49 = vld [vmem:[#allocation30_spill] sm:$0xff] }
 0x8a4   : > { %7437 = vrot.lane.b32.xlu1 %v8817_v7, %s8871_s1  ;;  %v12744_v51 = vpop.f32.mrb[108].mxu1  ;;  %v6701_v15 = vrot.slane %v6699_v37, 3  ;;  %v6704_v9 = vrot.slane %v6702_v29, 4  ;;  %v6246_v55 = vsel %vm6222_vm7, %v6211_v11, %v12686_v14  ;;  %v6681_v58 = vsel %vm13729_vm4, %v12670_v42, %v6680_v24  ;;  %v8825_v29 = vld [vmem:[#allocation3 + $0x60] sm:$0xff]  ;;  %vm13741_vm4 = vmmov %vm13738_vm1 }
 0x8a5   : > { %7427 = vrot.lane.b32.xlu0 %v8818_v31, %s8871_s1  ;;  %v12752_v23 = vpop.f32.mrb[109].mxu1  ;;  %v6691_v44 = vshrl.u32 %v6246_v55, 16  ;;  %v6694_v53 = vshll.u32 %v6246_v55, 16  ;;  %7133 = vmatprep.mubr.bf16.mxu0 %v6681_v58  ;;  %v5860_v47 = vpop.permute.xlu1 %5859  ;;  %v6672_v12 = vor.u32 %v6671_v46, %v6668_v32  ;;  %vm13733_vm13 = vcmp.ne.s16.totalorder %v13732_v49, 0 }
 0x8a6   : > { %v12754_v63 = vor.u32 %v6704_v9, %v6701_v15  ;;  %v12756_v3 = vpop.f32.mrb[110].mxu1  ;;  %v5463_v32 = vsel %vm13733_vm13, %v8825_v29, 0  ;;  %vm13746_vm13 = vmmov %vm13735_vm0 }
 0x8a7   : > { %v6693_v14 = vrot.slane %v6691_v44, 3  ;;  %v6696_v4 = vrot.slane %v6694_v53, 4  ;;  %v12758_v42 = vpop.f32.mrb[111].mxu1  ;;  %v6673_v27 = vsel %vm13730_vm8, %v12690_v5, %v6672_v12  ;;  %vm13742_vm8 = vmmov %vm13738_vm1 }
 0x8a8   : > { %7441 = vrot.lane.b32.xlu1 %v8819_v19, %s8871_s1  ;;  %7134 = vmatmul.mubr.bf16.gmra.mrb[112].mxu0 %v6673_v27  ;;  %v6706_v41 = vsel %vm13731_vm15, %v6680_v24, %v12754_v63  ;;  %v8824_v24 = vld [vmem:[%s9013_s28 + $0xf0] sm:$0xff]  ;;  %vm13743_vm15 = vmmov %vm13735_vm0 }
 0x8a9   : > { %7431 = vrot.lane.b32.xlu0 %v8820_v0, %s8871_s1  ;;  %7141 = vmatprep.mubr.bf16.mxu0 %v6706_v41  ;;  %v5862_v20 = vpop.permute.xlu1 %5861  ;;  %v6697_v35 = vor.u32 %v6696_v4, %v6693_v14 }
 0x8ab   : > { %v6698_v43 = vsel %vm13708_vm3, %v6672_v12, %v6697_v35  ;;  %v8826_v12 = vld [vmem:[#allocation3 + $0x68] sm:$0xff]  ;;  %vm13744_vm3 = vmmov %vm13735_vm0 }
 0x8ac   : > { %7445 = vrot.lane.b32.xlu1 %v8821_v13, %s8871_s1  ;;  %v12771_v5 = vpop.f32.mrb[112].mxu1  ;;  %v5464_v14 = vsel %vm1780_vm2, %v8826_v12, 0  ;;  %vm13737_vm2 = vmmov %vm13735_vm0 }
 0x8ad   : > { %7435 = vrot.lane.b32.xlu0 %v8822_v1, %s8871_s1  ;;  %v12775_v40 = vpop.f32.mrb[113].mxu1  ;;  %v5809_v17 = vpop.permute.xlu1 %5808 }
 0x8ae   : > { %v12777_v6 = vpop.f32.mrb[114].mxu1 }
 0x8af   : > { %v12779_v59 = vpop.f32.mrb[115].mxu1  ;;  %v6021_v18 = vpop.permute.xlu0 %6020 }
 0x8b0   : > { %7142 = vmatmul.mubr.bf16.gmra.mrb[116].mxu0 %v6698_v43 }
 0x8b1   : > { %7439 = vrot.lane.b32.xlu0 %v8823_v39, %s8871_s1  ;;  %v5811_v28 = vpop.permute.xlu1 %5810 }
 0x8b3   : > { %v12798_v58 = vpop.permute.xlu0 %6022 }
 0x8b4   : > { %v12783_v61 = vpop.f32.mrb[116].mxu1 }
 0x8b5   : > { %7443 = vrot.lane.b32.xlu0 %v8824_v24, %s8871_s1  ;;  %v12787_v37 = vpop.f32.mrb[117].mxu1  ;;  %v5725_v46 = vpop.permute.xlu1 %5724 }
 0x8b6   : > { %v12791_v11 = vpop.f32.mrb[118].mxu1  ;;  %v6174_v7 = vsel %vm13734_vm11, %v5463_v32, %v5725_v46  ;;  %v6295_v46 = vsel %vm13737_vm2, %v12095_v30, %v12702_v36  ;;  %vm13747_vm11 = vmmov %vm13738_vm1 }
 0x8b7   : > { %v12794_v15 = vpop.f32.mrb[119].mxu1  ;;  %v6213_v9 = vsel %vm6187_vm14, %v6174_v7, %v5809_v17  ;;  %v8827_v7 = vld [vmem:[#allocation3 + $0x70] sm:$0xff]  ;;  %vm13750_vm2 = vmmov %vm13735_vm0 }
 0x8b8   : > { %v6248_v55 = vsel %vm6222_vm7, %v6213_v9, %v5860_v47 }
 0x8b9   : > { %v6716_v31 = vshrl.u32 %v6248_v55, 16  ;;  %v6719_v44 = vshll.u32 %v6248_v55, 16  ;;  %v5727_v53 = vpop.permute.xlu1 %5726 }
 0x8ba   : > { %v6177_v4 = vsel %vm13735_vm0, %v5464_v14, %v5727_v53 }
 0x8bb   : > { %v6718_v27 = vrot.slane %v6716_v31, 3  ;;  %v6721_v19 = vrot.slane %v6719_v44, 4  ;;  %v6215_v41 = vsel %vm6187_vm14, %v6177_v4, %v5811_v28  ;;  %v6333_v31 = vsel %vm6187_vm14, %v6295_v46, %v12678_v48 }
 0x8bc   : > { %v6250_v0 = vsel %vm6222_vm7, %v6215_v41, %v5862_v20  ;;  %v5465_v20 = vsel %vm1781_vm10, %v8827_v7, 0  ;;  %vm13740_vm10 = vmmov %vm13735_vm0 }
 0x8bd   : > { %v5970_v43 = vpop.permute.xlu0 %5969  ;;  %v6741_v13 = vshrl.u32 %v6250_v0, 16  ;;  %v6744_v47 = vshll.u32 %v6250_v0, 16  ;;  %v5864_v1 = vpop.permute.xlu1 %5863  ;;  %v6722_v17 = vor.u32 %v6721_v19, %v6718_v27 }
 0x8be   : > { %v6298_v0 = vsel %vm13740_vm10, %v12442_v34, %v5970_v43  ;;  %v5466_v43 = vsel %vm1782_vm6, %v12344_v56, 0  ;;  %vm13745_vm6 = vmmov %vm13738_vm1 }
 0x8bf   : > { %v6743_v39 = vrot.slane %v6741_v13, 3  ;;  %v6746_v24 = vrot.slane %v6744_v47, 4  ;;  %v6723_v29 = vsel %vm13736_vm5, %v6697_v35, %v6722_v17  ;;  %vm13748_vm5 = vmmov %vm13738_vm1 }
 0x8c1   : > { %v5813_v49 = vpop.permute.xlu1 %5812  ;;  %v5972_v25 = vpop.permute.xlu0 %5971  ;;  %v6747_v32 = vor.u32 %v6746_v24, %v6743_v39  ;;  %v6335_v24 = vsel %vm6187_vm14, %v6298_v0, %v6021_v18 }
 0x8c3   : > { %v6748_v28 = vsel %vm13738_vm1, %v6722_v17, %v6747_v32 }
 0x8c5   : > { %v5729_v9 = vpop.permute.xlu1 %5728 }
 0x8c6   : > { %v6180_v55 = vsel %vm13739_vm9, %v5465_v20, %v5729_v9  ;;  %v6077_v35 = vpop.permute.xlu0 %6076  ;;  %vm13751_vm9 = vmmov %vm13738_vm1 }
 0x8c7   : > { %v6217_v44 = vsel %vm6187_vm14, %v6180_v55, %v5813_v49  ;;  %v6367_v53 = vsel %vm6222_vm7, %v6333_v31, %v6077_v35 }
 0x8c8   : > { %v6252_v12 = vsel %vm6222_vm7, %v6217_v44, %v5864_v1  ;;  %v6724_v30 = vshrl.u32 %v6367_v53, 16  ;;  %v6727_v36 = vshll.u32 %v6367_v53, 16 }
 0x8c9   : > { %v6766_v14 = vshrl.u32 %v6252_v12, 16  ;;  %v6769_v4 = vshll.u32 %v6252_v12, 16  ;;  %v5815_v27 = vpop.permute.xlu1 %5814 }
 0x8ca   : > { %v6726_v16 = vrot.slane %v6724_v30, 3  ;;  %v6729_v19 = vrot.slane %v6727_v36, 4  ;;  %v5974_v41 = vpop.permute.xlu0 %5973 }
 0x8cb   : > { %v6768_v13 = vrot.slane %v6766_v14, 3  ;;  %v6771_v48 = vrot.slane %v6769_v4, 4 }
 0x8cc   : > { %v6730_v47 = vor.u32 %v6729_v19, %v6726_v16 }
 0x8cd   : > { %v5866_v17 = vpop.permute.xlu1 %5865  ;;  %v6772_v39 = vor.u32 %v6771_v48, %v6768_v13 }
 0x8ce   : > { %v6731_v1 = vsel %vm13741_vm4, %v12754_v63, %v6730_v47  ;;  %v6301_v63 = vsel %vm13744_vm3, %v12503_v21, %v5972_v25 }
 0x8cf   : > { %v6079_v49 = vpop.permute.xlu0 %6078  ;;  %7149 = vmatprep.mubr.bf16.mxu0 %v6731_v1  ;;  %v6773_v7 = vsel %vm13742_vm8, %v6747_v32, %v6772_v39  ;;  %v6337_v33 = vsel %vm6187_vm14, %v6301_v63, %v12798_v58 }
 0x8d0   : > { %v6369_v46 = vsel %vm6222_vm7, %v6335_v24, %v6079_v49  ;;  %7150 = vmatmul.mubr.bf16.gmra.mrb[120].mxu0 %v6723_v29 }
 0x8d1   : > { %v6749_v20 = vshrl.u32 %v6369_v46, 16  ;;  %v6752_v9 = vshll.u32 %v6369_v46, 16  ;;  %v5731_v34 = vpop.permute.xlu1 %5730 }
 0x8d2   : > { %v6183_v55 = vsel %vm13743_vm15, %v5466_v43, %v5731_v34 }
 0x8d3   : > { %v6751_v18 = vrot.slane %v6749_v20, 3  ;;  %v6754_v31 = vrot.slane %v6752_v9, 4  ;;  %v6025_v35 = vpop.permute.xlu0 %6024  ;;  %v6219_v44 = vsel %vm6187_vm14, %v6183_v55, %v5815_v27  ;;  %v6304_v27 = vsel %vm13746_vm13, %v12555_v54, %v5974_v41 }
 0x8d4   : > { %v6254_v32 = vsel %vm6222_vm7, %v6219_v44, %v5866_v17  ;;  %v6339_v13 = vsel %vm6187_vm14, %v6304_v27, %v6025_v35 }
 0x8d5   : > { %v6755_v53 = vor.u32 %v6754_v31, %v6751_v18  ;;  %v6791_v12 = vshrl.u32 %v6254_v32, 16  ;;  %v6794_v29 = vshll.u32 %v6254_v32, 16 }
 0x8d6   : > { %v5733_v30 = vpop.permute.xlu1 %5732 }
 0x8d7   : > { %v6081_v56 = vpop.permute.xlu0 %6080  ;;  %v6756_v36 = vsel %vm13745_vm6, %v6730_v47, %v6755_v53  ;;  %v6793_v14 = vrot.slane %v6791_v12, 3  ;;  %v6796_v4 = vrot.slane %v6794_v29, 4  ;;  %v5467_v47 = vsel %vm1783_vm12, %v12460_v2, 0  ;;  %vm13749_vm12 = vmmov %vm13738_vm1 }
 0x8d8   : > { %v6371_v16 = vsel %vm6222_vm7, %v6337_v33, %v6081_v56  ;;  %7157 = vmatprep.mubr.bf16.mxu0 %v6756_v36 }
 0x8d9   : > { %v6774_v21 = vshrl.u32 %v6371_v16, 16  ;;  %v6777_v25 = vshll.u32 %v6371_v16, 16  ;;  %7158 = vmatmul.mubr.bf16.gmra.mrb[124].mxu0 %v6748_v28  ;;  %v6797_v0 = vor.u32 %v6796_v4, %v6793_v14  ;;  %v6186_v28 = vsel %vm13735_vm0, %v5467_v47, %v5733_v30 }
 0x8da   : > { %v5817_v19 = vpop.permute.xlu1 %5816 }
 0x8db   : > { %v6776_v48 = vrot.slane %v6774_v21, 3  ;;  %v6779_v58 = vrot.slane %v6777_v25, 4  ;;  %v6083_v17 = vpop.permute.xlu0 %6082  ;;  %v6798_v49 = vsel %vm13747_vm11, %v6772_v39, %v6797_v0  ;;  %v6221_v41 = vsel %vm6187_vm14, %v6186_v28, %v5817_v19  ;;  %v12860_v25 = vld [vmem:[%s13005_s16] ss:$0 sm:$0xff] }
 0x8dc   : > { %v6373_v24 = vsel %vm6222_vm7, %v6339_v13, %v6083_v17  ;;  %v5890_v39 = vshrl.u32 %v12518_v57, 16 }
 0x8dd   : > { %v6780_v1 = vor.u32 %v6779_v58, %v6776_v48  ;;  %v6799_v46 = vshrl.u32 %v6373_v24, 16  ;;  %v6802_v54 = vshll.u32 %v6373_v24, 16 }
 0x8de   : > { %v5868_v20 = vpop.permute.xlu1 %5867  ;;  %v5892_v29 = vor.u32 %v5890_v39, %v12544_v26 }
 0x8df   : > { %v6256_v9 = vsel %vm6222_vm7, %v6221_v41, %v5868_v20  ;;  %v6801_v34 = vrot.slane %v6799_v46, 3  ;;  %v6804_v43 = vrot.slane %v6802_v54, 4  ;;  %v5976_v55 = vpop.permute.xlu0 %5975  ;;  %v6781_v45 = vsel %vm13748_vm5, %v6755_v53, %v6780_v1 }
 0x8e0   : > { %v6816_v2 = vshrl.u32 %v6256_v9, 16  ;;  %v6819_v18 = vshll.u32 %v6256_v9, 16  ;;  %7165 = vmatprep.mubr.bf16.mxu0 %v6781_v45  ;;  %v6307_v30 = vsel %vm13750_vm2, %v5892_v29, %v5976_v55 }
 0x8e1   : > { %v6805_v31 = vor.u32 %v6804_v43, %v6801_v34  ;;  %7166 = vmatmul.mubr.bf16.gmra.mrb[128].mxu0 %v6773_v7 }
 0x8e2   : > { %v6818_v35 = vrot.slane %v6816_v2, 3  ;;  %v6821_v63 = vrot.slane %v6819_v18, 4 }
 0x8e3   : > { %v6027_v44 = vpop.permute.xlu0 %6026  ;;  %v6806_v32 = vsel %vm13749_vm12, %v6780_v1, %v6805_v31 }
 0x8e4   : > { %v6822_v12 = vor.u32 %v6821_v63, %v6818_v35  ;;  %7173 = vmatprep.mubr.bf16.mxu0 %v6806_v32  ;;  %v6341_v33 = vsel %vm6187_vm14, %v6307_v30, %v6027_v44  ;;  %vm7543_vm14 = vcmask 23552  }
 0x8e6   : > { %v6823_v53 = vsel %vm13738_vm1, %v6797_v0, %v6822_v12 }
 0x8e7   : > { %v6085_v56 = vpop.permute.xlu0 %6084 }
 0x8e8   : > { %v6375_v7 = vsel %vm6222_vm7, %v6341_v33, %v6085_v56 }
 0x8e9   : > { %v6824_v36 = vshrl.u32 %v6375_v7, 16  ;;  %v6827_v57 = vshll.u32 %v6375_v7, 16  ;;  %7174 = vmatmul.mubr.bf16.gmra.mrb[132].mxu0 %v6798_v49  ;;  %v7386_v49 = vpop.permute.xlu1 %7385 }
 0x8eb   : > { %v6826_v14 = vrot.slane %v6824_v36, 3  ;;  %v6829_v4 = vrot.slane %v6827_v57, 4  ;;  %v7384_v17 = vpop.permute.xlu0 %7383 }
 0x8ed   : > { %v6830_v16 = vor.u32 %v6829_v4, %v6826_v14  ;;  %v7390_v29 = vpop.permute.xlu1 %7389 }
 0x8ef   : > { %v6831_v21 = vsel %vm13751_vm9, %v6805_v31, %v6830_v16 }
 0x8f0   : > { %7181 = vmatprep.mubr.bf16.mxu0 %v6831_v21 }
 0x8f1   : > { %7182 = vmatmul.mubr.bf16.gmra.mrb[136].mxu0 %v6823_v53 }
 0x91a   : > { %v8063_v26 = vpop.f32.mrb[76].mxu0 }
 0x91b   : > { %v8064_v27 = vpop.f32.mrb[77].mxu0 }
 0x91c   : > { %v8065_v19 = vadd.f32 %v8064_v27, %v8063_v26  ;;  %v8066_v0 = vpop.f32.mrb[78].mxu0 }
 0x91d   : > { %v8067_v13 = vpop.f32.mrb[79].mxu0 }
 0x91e   : > { %v7064_v48 = vadd.f32 %v8065_v19, %v12860_v25  ;;  %v8068_v58 = vadd.f32 %v8067_v13, %v8066_v0 }
 0x920   : > { %v7067_v47 = vadd.f32 %v8068_v58, %v12860_v25  ;;  %v7225_v24 = vadd.f32 %v12680_v50, %v7064_v48 }
 0x922   : > { %v7479_v28 = vsub.f32 %v7225_v24, %v7384_v17  ;;  %v7228_v46 = vadd.f32 %v12692_v60, %v7067_v47  ;;  %v7388_v60 = vpop.permute.xlu0 %7387 }
 0x923   : > { %v8069_v1 = vpop.f32.mrb[80].mxu0 }
 0x924   : > { %v8070_v54 = vpop.f32.mrb[81].mxu0  ;;  %v7511_v41 = vmul.f32 %v7479_v28, %v7479_v28  ;;  %v7480_v9 = vsub.f32 %v7228_v46, %v7386_v49  ;;  %v7394_v49 = vpop.permute.xlu1 %7393 }
 0x925   : > { %v8071_v20 = vadd.f32 %v8070_v54, %v8069_v1  ;;  %v8072_v34 = vpop.f32.mrb[82].mxu0 }
 0x926   : > { %v12866_v43 = vpop.f32.mrb[120].mxu1  ;;  %v8073_v55 = vpop.f32.mrb[83].mxu0  ;;  %v7512_v18 = vmul.f32 %v7480_v9, %v7480_v9  ;;  %v7544_v35 = vsel %vm7543_vm14, %v7511_v41, 0.0 }
 0x927   : > { %v12868_v45 = vpop.f32.mrb[121].mxu1  ;;  %v7072_v2 = vadd.f32 %v8071_v20, %v12860_v25  ;;  %v8074_v50 = vadd.f32 %v8073_v55, %v8072_v34  ;;  %v7392_v48 = vpop.permute.xlu0 %7391 }
 0x928   : > { %v12871_v31 = vpop.f32.mrb[122].mxu1  ;;  %v7545_v63 = vsel %vm7543_vm14, %v7512_v18, 0.0 }
 0x929   : > { %v12873_v39 = vpop.f32.mrb[123].mxu1  ;;  %v7075_v44 = vadd.f32 %v8074_v50, %v12860_v25  ;;  %v7233_v32 = vadd.f32 %v12672_v52, %v7072_v2  ;;  %v7546_v12 = vadd.f32 %v7545_v63, %v7544_v35 }
 0x92b   : > { %v7481_v30 = vsub.f32 %v7233_v32, %v7388_v60  ;;  %v8075_v53 = vpop.f32.mrb[84].mxu0  ;;  %v7236_v33 = vadd.f32 %v12688_v38, %v7075_v44  ;;  %v7396_v32 = vpop.permute.xlu0 %7395 }
 0x92c   : > { %v8076_v56 = vpop.f32.mrb[85].mxu0 }
 0x92d   : > { %v7513_v7 = vmul.f32 %v7481_v30, %v7481_v30  ;;  %v8077_v36 = vadd.f32 %v8076_v56, %v8075_v53  ;;  %v7482_v57 = vsub.f32 %v7236_v33, %v7390_v29  ;;  %v8078_v14 = vpop.f32.mrb[86].mxu0  ;;  %v7398_v33 = vpop.permute.xlu1 %7397 }
 0x92e   : > { %v12880_v4 = vpop.f32.mrb[124].mxu1  ;;  %v8079_v16 = vpop.f32.mrb[87].mxu0 }
 0x92f   : > { %v12882_v21 = vpop.f32.mrb[125].mxu1  ;;  %v7547_v26 = vsel %vm7543_vm14, %v7513_v7, 0.0  ;;  %v7080_v52 = vadd.f32 %v8077_v36, %v12860_v25  ;;  %v7514_v27 = vmul.f32 %v7482_v57, %v7482_v57  ;;  %v8080_v19 = vadd.f32 %v8079_v16, %v8078_v14 }
 0x930   : > { %v12886_v0 = vpop.f32.mrb[126].mxu1  ;;  %v7548_v13 = vadd.f32 %v7547_v26, %v7546_v12 }
 0x931   : > { %v12888_v38 = vpop.f32.mrb[127].mxu1  ;;  %v7549_v58 = vsel %vm7543_vm14, %v7514_v27, 0.0  ;;  %v7083_v17 = vadd.f32 %v8080_v19, %v12860_v25  ;;  %v7241_v47 = vadd.f32 %v12719_v10, %v7080_v52 }
 0x932   : > { %v7550_v24 = vadd.f32 %v7549_v58, %v7548_v13 }
 0x933   : > { %v7483_v28 = vsub.f32 %v7241_v47, %v7392_v48  ;;  %v7244_v46 = vadd.f32 %v12727_v8, %v7083_v17 }
 0x934   : > { %v8081_v1 = vpop.f32.mrb[88].mxu0 }
 0x935   : > { %v8082_v54 = vpop.f32.mrb[89].mxu0  ;;  %v7515_v41 = vmul.f32 %v7483_v28, %v7483_v28  ;;  %v7484_v20 = vsub.f32 %v7244_v46, %v7394_v49  ;;  %v7402_v28 = vpop.permute.xlu1 %7401 }
 0x936   : > { %v8083_v9 = vadd.f32 %v8082_v54, %v8081_v1  ;;  %v8084_v34 = vpop.f32.mrb[90].mxu0  ;;  %v12894_v55 = vpop.f32.mrb[128].mxu1 }
 0x937   : > { %v8085_v2 = vpop.f32.mrb[91].mxu0  ;;  %v12896_v18 = vpop.f32.mrb[129].mxu1  ;;  %v7551_v50 = vsel %vm7543_vm14, %v7515_v41, 0.0  ;;  %v7516_v60 = vmul.f32 %v7484_v20, %v7484_v20 }
 0x938   : > { %v7088_v10 = vadd.f32 %v8083_v9, %v12860_v25  ;;  %v8086_v35 = vadd.f32 %v8085_v2, %v8084_v34  ;;  %v12900_v63 = vpop.f32.mrb[130].mxu1  ;;  %v7552_v44 = vadd.f32 %v7551_v50, %v7550_v24 }
 0x939   : > { %v12902_v8 = vpop.f32.mrb[131].mxu1  ;;  %v7553_v12 = vsel %vm7543_vm14, %v7516_v60, 0.0 }
 0x93a   : > { %v7091_v29 = vadd.f32 %v8086_v35, %v12860_v25  ;;  %v7249_v30 = vadd.f32 %v12711_v22, %v7088_v10  ;;  %v7554_v53 = vadd.f32 %v7553_v12, %v7552_v44  ;;  %v7400_v22 = vpop.permute.xlu0 %7399 }
 0x93c   : > { %v7485_v56 = vsub.f32 %v7249_v30, %v7396_v32  ;;  %v8087_v7 = vpop.f32.mrb[92].mxu0  ;;  %v7252_v36 = vadd.f32 %v12724_v62, %v7091_v29 }
 0x93d   : > { %v8088_v57 = vpop.f32.mrb[93].mxu0 }
 0x93e   : > { %v7517_v14 = vmul.f32 %v7485_v56, %v7485_v56  ;;  %v8089_v16 = vadd.f32 %v8088_v57, %v8087_v7  ;;  %v7486_v26 = vsub.f32 %v7252_v36, %v7398_v33  ;;  %v8090_v52 = vpop.f32.mrb[94].mxu0  ;;  %v7404_v29 = vpop.permute.xlu0 %7403 }
 0x93f   : > { %v8091_v27 = vpop.f32.mrb[95].mxu0 }
 0x940   : > { %v7555_v19 = vsel %vm7543_vm14, %v7517_v14, 0.0  ;;  %v7096_v13 = vadd.f32 %v8089_v16, %v12860_v25  ;;  %v7518_v48 = vmul.f32 %v7486_v26, %v7486_v26  ;;  %v8092_v58 = vadd.f32 %v8091_v27, %v8090_v52 }
 0x941   : > { %v7556_v17 = vadd.f32 %v7555_v19, %v7554_v53  ;;  %v7406_v53 = vpop.permute.xlu1 %7405 }
 0x942   : > { %v7557_v47 = vsel %vm7543_vm14, %v7518_v48, 0.0  ;;  %v7099_v24 = vadd.f32 %v8092_v58, %v12860_v25  ;;  %v7257_v62 = vadd.f32 %v12752_v23, %v7096_v13 }
 0x943   : > { %v7558_v49 = vadd.f32 %v7557_v47, %v7556_v17  ;;  %v7408_v17 = vpop.permute.xlu0 %7407 }
 0x944   : > { %v7487_v1 = vsub.f32 %v7257_v62, %v7400_v22  ;;  %v7260_v46 = vadd.f32 %v12758_v42, %v7099_v24 }
 0x945   : > { %v7410_v24 = vpop.permute.xlu1 %7409 }
 0x946   : > { %v7519_v54 = vmul.f32 %v7487_v1, %v7487_v1  ;;  %v7488_v41 = vsub.f32 %v7260_v46, %v7402_v28 }
 0x948   : > { %v7559_v20 = vsel %vm7543_vm14, %v7519_v54, 0.0  ;;  %v7520_v9 = vmul.f32 %v7488_v41, %v7488_v41 }
 0x949   : > { %v7560_v34 = vadd.f32 %v7559_v20, %v7558_v49 }
 0x94a   : > { %v7561_v2 = vsel %vm7543_vm14, %v7520_v9, 0.0 }
 0x94b   : > { %v7562_v50 = vadd.f32 %v7561_v2, %v7560_v34  ;;  %v8093_v60 = vpop.f32.mrb[96].mxu0 }
 0x94c   : > { %v8094_v10 = vpop.f32.mrb[97].mxu0 }
 0x94d   : > { %v8095_v35 = vadd.f32 %v8094_v10, %v8093_v60  ;;  %v8096_v44 = vpop.f32.mrb[98].mxu0 }
 0x94e   : > { %v8097_v32 = vpop.f32.mrb[99].mxu0 }
 0x94f   : > { %v7104_v23 = vadd.f32 %v8095_v35, %v12860_v25  ;;  %v8098_v12 = vadd.f32 %v8097_v32, %v8096_v44  ;;  %v7412_v44 = vpop.permute.xlu0 %7411 }
 0x951   : > { %v7107_v42 = vadd.f32 %v8098_v12, %v12860_v25  ;;  %v7265_v30 = vadd.f32 %v12744_v51, %v7104_v23  ;;  %v7414_v23 = vpop.permute.xlu1 %7413 }
 0x953   : > { %v7489_v33 = vsub.f32 %v7265_v30, %v7404_v29  ;;  %v8099_v56 = vpop.f32.mrb[100].mxu0  ;;  %v7268_v7 = vadd.f32 %v12756_v3, %v7107_v42 }
 0x954   : > { %v8100_v36 = vpop.f32.mrb[101].mxu0 }
 0x955   : > { %v7521_v57 = vmul.f32 %v7489_v33, %v7489_v33  ;;  %v8101_v14 = vadd.f32 %v8100_v36, %v8099_v56  ;;  %v7490_v16 = vsub.f32 %v7268_v7, %v7406_v53  ;;  %v8102_v26 = vpop.f32.mrb[102].mxu0 }
 0x956   : > { %v8103_v52 = vpop.f32.mrb[103].mxu0 }
 0x957   : > { %v7563_v27 = vsel %vm7543_vm14, %v7521_v57, 0.0  ;;  %v7112_v19 = vadd.f32 %v8101_v14, %v12860_v25  ;;  %v7522_v13 = vmul.f32 %v7490_v16, %v7490_v16  ;;  %v8104_v48 = vadd.f32 %v8103_v52, %v8102_v26 }
 0x958   : > { %v7564_v58 = vadd.f32 %v7563_v27, %v7562_v50  ;;  %v7416_v27 = vpop.permute.xlu0 %7415 }
 0x959   : > { %v7565_v51 = vsel %vm7543_vm14, %v7522_v13, 0.0  ;;  %v7115_v22 = vadd.f32 %v8104_v48, %v12860_v25  ;;  %v7273_v3 = vadd.f32 %v12775_v40, %v7112_v19  ;;  %v7418_v48 = vpop.permute.xlu1 %7417 }
 0x95a   : > { %v7566_v47 = vadd.f32 %v7565_v51, %v7564_v58 }
 0x95b   : > { %v7491_v62 = vsub.f32 %v7273_v3, %v7408_v17  ;;  %v7276_v49 = vadd.f32 %v12779_v59, %v7115_v22 }
 0x95d   : > { %v7523_v28 = vmul.f32 %v7491_v62, %v7491_v62  ;;  %v7492_v1 = vsub.f32 %v7276_v49, %v7410_v24 }
 0x95f   : > { %v7567_v46 = vsel %vm7543_vm14, %v7523_v28, 0.0  ;;  %v7524_v54 = vmul.f32 %v7492_v1, %v7492_v1 }
 0x960   : > { %v7568_v41 = vadd.f32 %v7567_v46, %v7566_v47 }
 0x961   : > { %v7569_v20 = vsel %vm7543_vm14, %v7524_v54, 0.0 }
 0x962   : > { %v7570_v9 = vadd.f32 %v7569_v20, %v7568_v41 }
 0x963   : > { %v8105_v34 = vpop.f32.mrb[104].mxu0 }
 0x964   : > { %v8106_v2 = vpop.f32.mrb[105].mxu0 }
 0x965   : > { %v8107_v50 = vadd.f32 %v8106_v2, %v8105_v34  ;;  %v8108_v60 = vpop.f32.mrb[106].mxu0  ;;  %v7422_v2 = vpop.permute.xlu1 %7421 }
 0x966   : > { %v8109_v10 = vpop.f32.mrb[107].mxu0 }
 0x967   : > { %v7120_v40 = vadd.f32 %v8107_v50, %v12860_v25  ;;  %v8110_v35 = vadd.f32 %v8109_v10, %v8108_v60 }
 0x969   : > { %v7123_v59 = vadd.f32 %v8110_v35, %v12860_v25  ;;  %v7281_v32 = vadd.f32 %v12771_v5, %v7120_v40 }
 0x96b   : > { %v7493_v12 = vsub.f32 %v7281_v32, %v7412_v44  ;;  %v8111_v29 = vpop.f32.mrb[108].mxu0  ;;  %v7284_v42 = vadd.f32 %v12777_v6, %v7123_v59 }
 0x96c   : > { %v8112_v30 = vpop.f32.mrb[109].mxu0 }
 0x96d   : > { %v7525_v53 = vmul.f32 %v7493_v12, %v7493_v12  ;;  %v8113_v33 = vadd.f32 %v8112_v30, %v8111_v29  ;;  %v7494_v56 = vsub.f32 %v7284_v42, %v7414_v23  ;;  %v8114_v7 = vpop.f32.mrb[110].mxu0 }
 0x96e   : > { %v8115_v36 = vpop.f32.mrb[111].mxu0 }
 0x96f   : > { %v7571_v57 = vsel %vm7543_vm14, %v7525_v53, 0.0  ;;  %v7128_v14 = vadd.f32 %v8113_v33, %v12860_v25  ;;  %v7526_v16 = vmul.f32 %v7494_v56, %v7494_v56  ;;  %v8116_v26 = vadd.f32 %v8115_v36, %v8114_v7  ;;  %v7426_v36 = vpop.permute.xlu1 %7425 }
 0x970   : > { %v7572_v52 = vadd.f32 %v7571_v57, %v7570_v9  ;;  %v7420_v9 = vpop.permute.xlu0 %7419 }
 0x971   : > { %v7573_v5 = vsel %vm7543_vm14, %v7526_v16, 0.0  ;;  %v7131_v19 = vadd.f32 %v8116_v26, %v12860_v25  ;;  %v7289_v6 = vadd.f32 %v12787_v37, %v7128_v14 }
 0x972   : > { %v7574_v13 = vadd.f32 %v7573_v5, %v7572_v52 }
 0x973   : > { %v7495_v58 = vsub.f32 %v7289_v6, %v7416_v27  ;;  %v7292_v17 = vadd.f32 %v12794_v15, %v7131_v19 }
 0x974   : > { %v7424_v33 = vpop.permute.xlu0 %7423 }
 0x975   : > { %v7527_v51 = vmul.f32 %v7495_v58, %v7495_v58  ;;  %v7496_v22 = vsub.f32 %v7292_v17, %v7418_v48 }
 0x977   : > { %v7575_v3 = vsel %vm7543_vm14, %v7527_v51, 0.0  ;;  %v7528_v47 = vmul.f32 %v7496_v22, %v7496_v22 }
 0x978   : > { %v7576_v24 = vadd.f32 %v7575_v3, %v7574_v13  ;;  %v7428_v3 = vpop.permute.xlu0 %7427 }
 0x979   : > { %v7577_v62 = vsel %vm7543_vm14, %v7528_v47, 0.0 }
 0x97a   : > { %v7578_v49 = vadd.f32 %v7577_v62, %v7576_v24  ;;  %v7430_v24 = vpop.permute.xlu1 %7429 }
 0x97b   : > { %v8117_v28 = vpop.f32.mrb[112].mxu0 }
 0x97c   : > { %v8118_v1 = vpop.f32.mrb[113].mxu0 }
 0x97d   : > { %v8119_v46 = vadd.f32 %v8118_v1, %v8117_v28  ;;  %v8120_v54 = vpop.f32.mrb[114].mxu0 }
 0x97e   : > { %v8121_v41 = vpop.f32.mrb[115].mxu0 }
 0x97f   : > { %v7136_v37 = vadd.f32 %v8119_v46, %v12860_v25  ;;  %v8122_v20 = vadd.f32 %v8121_v41, %v8120_v54 }
 0x981   : > { %v7139_v15 = vadd.f32 %v8122_v20, %v12860_v25  ;;  %v7297_v34 = vadd.f32 %v12783_v61, %v7136_v37 }
 0x983   : > { %v7497_v50 = vsub.f32 %v7297_v34, %v7420_v9  ;;  %v8123_v60 = vpop.f32.mrb[116].mxu0  ;;  %v7300_v10 = vadd.f32 %v12791_v11, %v7139_v15 }
 0x984   : > { %v8124_v40 = vpop.f32.mrb[117].mxu0 }
 0x985   : > { %v7529_v35 = vmul.f32 %v7497_v50, %v7497_v50  ;;  %v8125_v44 = vadd.f32 %v8124_v40, %v8123_v60  ;;  %v7498_v59 = vsub.f32 %v7300_v10, %v7422_v2  ;;  %v8126_v32 = vpop.f32.mrb[118].mxu0  ;;  %v7432_v60 = vpop.permute.xlu0 %7431 }
 0x986   : > { %v8127_v23 = vpop.f32.mrb[119].mxu0 }
 0x987   : > { %v7579_v12 = vsel %vm7543_vm14, %v7529_v35, 0.0  ;;  %v7144_v29 = vadd.f32 %v8125_v44, %v12860_v25  ;;  %v7530_v42 = vmul.f32 %v7498_v59, %v7498_v59  ;;  %v8128_v30 = vadd.f32 %v8127_v23, %v8126_v32  ;;  %v7434_v35 = vpop.permute.xlu1 %7433 }
 0x988   : > { %v7580_v53 = vadd.f32 %v7579_v12, %v7578_v49 }
 0x989   : > { %v7581_v61 = vsel %vm7543_vm14, %v7530_v42, 0.0  ;;  %v7147_v56 = vadd.f32 %v8128_v30, %v12860_v25  ;;  %v7305_v11 = vadd.f32 %v12868_v45, %v7144_v29 }
 0x98a   : > { %v7582_v7 = vadd.f32 %v7581_v61, %v7580_v53 }
 0x98b   : > { %v7499_v57 = vsub.f32 %v7305_v11, %v7424_v33  ;;  %v7308_v14 = vadd.f32 %v12873_v39, %v7147_v56 }
 0x98d   : > { %v7531_v16 = vmul.f32 %v7499_v57, %v7499_v57  ;;  %v7500_v26 = vsub.f32 %v7308_v14, %v7426_v36 }
 0x98f   : > { %v7583_v52 = vsel %vm7543_vm14, %v7531_v16, 0.0  ;;  %v7532_v27 = vmul.f32 %v7500_v26, %v7500_v26  ;;  %v7438_v16 = vpop.permute.xlu1 %7437 }
 0x990   : > { %v7584_v5 = vadd.f32 %v7583_v52, %v7582_v7 }
 0x991   : > { %v7585_v19 = vsel %vm7543_vm14, %v7532_v27, 0.0 }
 0x992   : > { %v7586_v6 = vadd.f32 %v7585_v19, %v7584_v5 }
 0x9a3   : > { %v8129_v13 = vpop.f32.mrb[120].mxu0 }
 0x9a4   : > { %v8130_v48 = vpop.f32.mrb[121].mxu0 }
 0x9a5   : > { %v8131_v58 = vadd.f32 %v8130_v48, %v8129_v13  ;;  %v8132_v17 = vpop.f32.mrb[122].mxu0 }
 0x9a6   : > { %v8133_v51 = vpop.f32.mrb[123].mxu0 }
 0x9a7   : > { %v7152_v45 = vadd.f32 %v8131_v58, %v12860_v25  ;;  %v8134_v22 = vadd.f32 %v8133_v51, %v8132_v17 }
 0x9a9   : > { %v7155_v39 = vadd.f32 %v8134_v22, %v12860_v25  ;;  %v7313_v47 = vadd.f32 %v12866_v43, %v7152_v45 }
 0x9ab   : > { %v7501_v62 = vsub.f32 %v7313_v47, %v7428_v3  ;;  %v7316_v28 = vadd.f32 %v12871_v31, %v7155_v39 }
 0x9ac   : > { %v8135_v49 = vpop.f32.mrb[124].mxu0 }
 0x9ad   : > { %v8136_v1 = vpop.f32.mrb[125].mxu0  ;;  %v7533_v46 = vmul.f32 %v7501_v62, %v7501_v62  ;;  %v7502_v41 = vsub.f32 %v7316_v28, %v7430_v24  ;;  %v7442_v62 = vpop.permute.xlu1 %7441 }
 0x9ae   : > { %v8137_v54 = vadd.f32 %v8136_v1, %v8135_v49  ;;  %v8138_v37 = vpop.f32.mrb[126].mxu0 }
 0x9af   : > { %v8139_v20 = vpop.f32.mrb[127].mxu0  ;;  %v7587_v9 = vsel %vm7543_vm14, %v7533_v46, 0.0  ;;  %v7534_v34 = vmul.f32 %v7502_v41, %v7502_v41 }
 0x9b0   : > { %v7160_v15 = vadd.f32 %v8137_v54, %v12860_v25  ;;  %v8140_v2 = vadd.f32 %v8139_v20, %v8138_v37  ;;  %v7588_v50 = vadd.f32 %v7587_v9, %v7586_v6 }
 0x9b1   : > { %v7589_v43 = vsel %vm7543_vm14, %v7534_v34, 0.0 }
 0x9b2   : > { %v7163_v10 = vadd.f32 %v8140_v2, %v12860_v25  ;;  %v7321_v31 = vadd.f32 %v12882_v21, %v7160_v15  ;;  %v7590_v40 = vadd.f32 %v7589_v43, %v7588_v50  ;;  %v7436_v21 = vpop.permute.xlu0 %7435 }
 0x9b4   : > { %v7503_v44 = vsub.f32 %v7321_v31, %v7432_v60  ;;  %v8141_v59 = vpop.f32.mrb[128].mxu0  ;;  %v7324_v32 = vadd.f32 %v12888_v38, %v7163_v10 }
 0x9b5   : > { %v8142_v23 = vpop.f32.mrb[129].mxu0 }
 0x9b6   : > { %v7535_v12 = vmul.f32 %v7503_v44, %v7503_v44  ;;  %v8143_v29 = vadd.f32 %v8142_v23, %v8141_v59  ;;  %v7504_v42 = vsub.f32 %v7324_v32, %v7434_v35  ;;  %v8144_v30 = vpop.f32.mrb[130].mxu0 }
 0x9b7   : > { %v8145_v53 = vpop.f32.mrb[131].mxu0 }
 0x9b8   : > { %v7591_v33 = vsel %vm7543_vm14, %v7535_v12, 0.0  ;;  %v7168_v61 = vadd.f32 %v8143_v29, %v12860_v25  ;;  %v7536_v56 = vmul.f32 %v7504_v42, %v7504_v42  ;;  %v8146_v11 = vadd.f32 %v8145_v53, %v8144_v30 }
 0x9b9   : > { %v7592_v7 = vadd.f32 %v7591_v33, %v7590_v40  ;;  %v7446_v40 = vpop.permute.xlu1 %7445 }
 0x9ba   : > { %v7593_v36 = vsel %vm7543_vm14, %v7536_v56, 0.0  ;;  %v7171_v57 = vadd.f32 %v8146_v11, %v12860_v25  ;;  %v7329_v38 = vadd.f32 %v12880_v4, %v7168_v61  ;;  %v7440_v4 = vpop.permute.xlu0 %7439 }
 0x9bb   : > { %v7594_v14 = vadd.f32 %v7593_v36, %v7592_v7 }
 0x9bc   : > { %v7505_v26 = vsub.f32 %v7329_v38, %v7436_v21  ;;  %v8147_v52 = vpop.f32.mrb[132].mxu0  ;;  %v7332_v27 = vadd.f32 %v12886_v0, %v7171_v57 }
 0x9bd   : > { %v8148_v5 = vpop.f32.mrb[133].mxu0 }
 0x9be   : > { %v7537_v19 = vmul.f32 %v7505_v26, %v7505_v26  ;;  %v7506_v6 = vsub.f32 %v7332_v27, %v7438_v16  ;;  %v8149_v13 = vadd.f32 %v8148_v5, %v8147_v52  ;;  %v8150_v48 = vpop.f32.mrb[134].mxu0 }
 0x9bf   : > { %v8151_v58 = vpop.f32.mrb[135].mxu0 }
 0x9c0   : > { %v7595_v17 = vsel %vm7543_vm14, %v7537_v19, 0.0  ;;  %v7538_v51 = vmul.f32 %v7506_v6, %v7506_v6  ;;  %v7176_v45 = vadd.f32 %v8149_v13, %v12860_v25  ;;  %v8152_v22 = vadd.f32 %v8151_v58, %v8150_v48 }
 0x9c1   : > { %v7596_v3 = vadd.f32 %v7595_v17, %v7594_v14 }
 0x9c2   : > { %v7597_v39 = vsel %vm7543_vm14, %v7538_v51, 0.0  ;;  %v7179_v47 = vadd.f32 %v8152_v22, %v12860_v25  ;;  %v7337_v0 = vadd.f32 %v12896_v18, %v7176_v45  ;;  %v7444_v18 = vpop.permute.xlu0 %7443 }
 0x9c3   : > { %v7598_v24 = vadd.f32 %v7597_v39, %v7596_v3 }
 0x9c4   : > { %v7507_v49 = vsub.f32 %v7337_v0, %v7440_v4  ;;  %v8153_v28 = vpop.f32.mrb[136].mxu0  ;;  %v7340_v1 = vadd.f32 %v12902_v8, %v7179_v47 }
 0x9c5   : > { %v8154_v46 = vpop.f32.mrb[137].mxu0 }
 0x9c6   : > { %v7539_v54 = vmul.f32 %v7507_v49, %v7507_v49  ;;  %v7508_v41 = vsub.f32 %v7340_v1, %v7442_v62  ;;  %v8155_v37 = vadd.f32 %v8154_v46, %v8153_v28  ;;  %v8156_v20 = vpop.f32.mrb[138].mxu0 }
 0x9c7   : > { %v8157_v9 = vpop.f32.mrb[139].mxu0 }
 0x9c8   : > { %v7599_v15 = vsel %vm7543_vm14, %v7539_v54, 0.0  ;;  %v7540_v34 = vmul.f32 %v7508_v41, %v7508_v41  ;;  %v7184_v2 = vadd.f32 %v8155_v37, %v12860_v25  ;;  %v8158_v50 = vadd.f32 %v8157_v9, %v8156_v20 }
 0x9c9   : > { %v7600_v60 = vadd.f32 %v7599_v15, %v7598_v24 }
 0x9ca   : > { %v7601_v43 = vsel %vm7543_vm14, %v7540_v34, 0.0  ;;  %v7187_v10 = vadd.f32 %v8158_v50, %v12860_v25  ;;  %v7345_v8 = vadd.f32 %v12894_v55, %v7184_v2 }
 0x9cb   : > { %v7602_v31 = vadd.f32 %v7601_v43, %v7600_v60 }
 0x9cc   : > { %v7509_v35 = vsub.f32 %v7345_v8, %v7444_v18  ;;  %v7348_v44 = vadd.f32 %v12900_v63, %v7187_v10 }
 0x9ce   : > { %v7541_v59 = vmul.f32 %v7509_v35, %v7509_v35  ;;  %v7510_v32 = vsub.f32 %v7348_v44, %v7446_v40 }
 0x9d0   : > { %v7603_v23 = vsel %vm7543_vm14, %v7541_v59, 0.0  ;;  %v7542_v12 = vmul.f32 %v7510_v32, %v7510_v32 }
 0x9d1   : > { %v7604_v29 = vadd.f32 %v7603_v23, %v7602_v31 }
 0x9d2   : > { %v7605_v42 = vsel %vm7543_vm14, %v7542_v12, 0.0 }
 0x9d3   : > { %v7606_v30 = vadd.f32 %v7605_v42, %v7604_v29 }
 0x9d5   : > { %7607 = vadd.xlane.f32.xlu0 %v7606_v30 }
 0xa62   : > { %v7608_v53 = vpop.xlane.xlu0 %7607 }
 0xa63   : > { %v7609_v25 = vrot.slane %v7608_v53, 4 }
 0xa65   : > { %v7610_v33 = vadd.f32 %v7609_v25, %v7608_v53 }
 0xa67   : > { %v7611_v55 = vrot.slane %v7610_v33, 2 }
 0xa69   : > { %v7612_v61 = vadd.f32 %v7611_v55, %v7610_v33 }
 0xa6b   : > { %v7613_v56 = vrot.slane %v7612_v61, 1 }
 0xa6d   : > { %v7614_v11 = vadd.f32 %v7613_v56, %v7612_v61 }
 0xa6f   : > { %8437 = vpush %v7614_v11 }
 0xaa0   : > { %s8438_s20 = spop %8437 }
 0xaa1   : > { %v7616_v63 = vstv %s8438_s20 }
 0xaa2   : > { %7618 = vst [vmem:[%s612_s30] sm:$0x1] %v7616_v63 }
 0xaa3 PF: > { %s28_s24 = sadd.s32 1, %s8853_s24  }
 0xaa4   : > { %p25_p1 = scmp.ge.s32.totalorder %s28_s24, 4  }
 0xaa6   :  { %27 = sbr.rel (!%p25_p1) target bundleno = 4 (0x4), region = 132 }
 0xaad   :  { %7636 = vsyncpa [#allocation5], 1 }
 0xaae   :  { %7638 = vsyncpa [#allocation5 + $0x1], 1 }

</bundles_post_ra>
